<compile_context>
chip_gen: v7x
topology: tpu7x:2x2x1
jax: 0.10.0
libtpu: 0.0.40
codegen_flags: <defaults>
</compile_context>

<pallas_src>
import functools

import jax
import jax.numpy as jnp
from jax import lax
from jax.experimental import pallas as pl
from jax.experimental.pallas import tpu as pltpu


# ---------------------------------------------------------------------------
# Kernel: one conv layer over one whole (phase-decomposed, padded) image.
# ---------------------------------------------------------------------------
def _conv_layer_kernel(x_ref, w_ref, b_ref, o_ref, patch_ref, *,
                       stride, kh, kw, oh, ow, hq, apply_abs, apply_relu):
    """x_ref:     (1, s*s*hq, wq, cin)  phase-decomposed padded input
       w_ref:     (kh*kw*cin, cout)     im2col weight matrix
       b_ref:     (1, cout)             bias (f32)
       o_ref:     (1, oh*ow, cout)      output
       patch_ref: (oh*ow, kh*kw*cin)    VMEM scratch: im2col patch matrix
    """
    xv = x_ref[...]
    if apply_abs:
        # Hoisted: once per image; |patches(x)| == patches(|x|) under 0-pad.
        xv = jnp.abs(xv)

    # Build the patch matrix row by row using only static, unit-stride slices
    # (strides were removed by the wrapper-side phase decomposition).
    for oy in range(oh):
        pieces = []
        for i in range(kh):
            p, a = i % stride, i // stride
            for j in range(kw):
                q, b = j % stride, j // stride
                row = (p * stride + q) * hq + oy + a
                pieces.append(xv[0, row, b:b + ow, :])            # (ow, cin)
        patch_ref[oy * ow:(oy + 1) * ow, :] = jnp.concatenate(pieces, axis=-1)

    # One MXU matmul per image: M = oh*ow, K = kh*kw*cin, f32 accumulation.
    acc = jnp.dot(patch_ref[...], w_ref[...],
                  preferred_element_type=jnp.float32,
                  precision=jax.lax.Precision.HIGHEST)
    out = acc + b_ref[...]                       # bias in the epilogue
    if apply_relu:
        out = jnp.maximum(out, 0.0)
    o_ref[...] = out[None].astype(o_ref.dtype)   # single store per image


# ---------------------------------------------------------------------------
# Wrapper: one conv layer, NHWC in -> NHWC out (true Cout, no lane padding).
# ---------------------------------------------------------------------------
def _conv2d_pallas(x_nhwc, w_oihw, bias, stride, pad, *,
                   apply_abs, apply_relu, compute_dtype, out_dtype):
    n, h, w_sp, cin = x_nhwc.shape
    cout, cin2, kh, kw = w_oihw.shape
    assert cin == cin2, (cin, cin2)
    s = int(stride)
    hp, wp = h + 2 * pad, w_sp + 2 * pad
    oh = (hp - kh) // s + 1
    ow = (wp - kw) // s + 1
    a_taps = -(-kh // s)          # ceil(kh/s): sub-taps per phase along H
    b_taps = -(-kw // s)
    hq = oh + a_taps - 1          # per-phase rows needed
    wq = ow + b_taps - 1          # per-phase cols needed
    k_dim = kh * kw * cin         # folded contraction dim

    # --- wrapper-side prep (plain XLA, fused): pad + space-to-depth phases ---
    xp = jnp.pad(x_nhwc, ((0, 0), (pad, pad), (pad, pad), (0, 0)))
    phases = []
    for p in range(s):
        for q in range(s):
            ph = xp[:, p::s, q::s, :][:, :hq, :wq, :]
            ph = jnp.pad(ph, ((0, 0), (0, hq - ph.shape[1]),
                              (0, wq - ph.shape[2]), (0, 0)))
            phases.append(ph)
    xph = phases[0] if s == 1 else jnp.concatenate(phases, axis=1)
    xph = xph.astype(compute_dtype)              # (n, s*s*hq, wq, cin)

    # Weights -> (kh*kw*cin, cout), row order (i, j, c); bias -> (1, cout) f32.
    wmat = jnp.transpose(w_oihw, (2, 3, 1, 0)).reshape(k_dim, cout)
    wmat = wmat.astype(compute_dtype)
    bvec = bias.reshape(1, cout).astype(jnp.float32)

    kernel = functools.partial(
        _conv_layer_kernel, stride=s, kh=kh, kw=kw, oh=oh, ow=ow, hq=hq,
        apply_abs=apply_abs, apply_relu=apply_relu)

    elt = jnp.dtype(compute_dtype).itemsize
    oelt = jnp.dtype(out_dtype).itemsize
    x_blk = s * s * hq * wq * cin * elt
    o_blk = oh * ow * cout * oelt
    w_b = k_dim * cout * elt + 4 * cout
    patch_b = oh * ow * k_dim * elt
    vmem_need = 2 * x_blk + 2 * o_blk + w_b + patch_b
    vmem_limit = int(min(max(4 * vmem_need, 32 << 20), 48 << 20))  # v7x-safe cap

    out = pl.pallas_call(
        kernel,
        out_shape=jax.ShapeDtypeStruct((n, oh * ow, cout), out_dtype),
        grid=(n,),
        in_specs=[
            pl.BlockSpec((1, s * s * hq, wq, cin), lambda b: (b, 0, 0, 0)),
            pl.BlockSpec((k_dim, cout), lambda b: (0, 0)),   # weights, resident
            pl.BlockSpec((1, cout), lambda b: (0, 0)),       # bias, resident
        ],
        out_specs=pl.BlockSpec((1, oh * ow, cout), lambda b: (b, 0, 0)),
        scratch_shapes=[pltpu.VMEM((oh * ow, k_dim), compute_dtype)],
        compiler_params=pltpu.CompilerParams(
            dimension_semantics=("parallel",),
            vmem_limit_bytes=vmem_limit),
        cost_estimate=pl.CostEstimate(
            flops=2 * n * oh * ow * k_dim * cout,     # true cout (not padded)
            transcendentals=0,
            bytes_accessed=n * (x_blk + o_blk) + w_b),
    )(xph, wmat, bvec)

    return out.reshape(n, oh, ow, cout)


# ---------------------------------------------------------------------------
# Full module forward (public API: NCHW in, NCHW out, like PyTorch).
# ---------------------------------------------------------------------------
def h_analysis_transform_forward(x_nchw, params, strides_list,
                                 compute_dtype=jnp.bfloat16):
    (w1, b1), (w2, b2), (w3, b3) = params
    x = jnp.transpose(x_nchw, (0, 2, 3, 1))  # NCHW -> NHWC (once at entry)
    x = _conv2d_pallas(x, w1, b1, strides_list[0], 1, apply_abs=True,
                       apply_relu=True, compute_dtype=compute_dtype,
                       out_dtype=compute_dtype)
    x = _conv2d_pallas(x, w2, b2, strides_list[1], 2, apply_abs=False,
                       apply_relu=True, compute_dtype=compute_dtype,
                       out_dtype=compute_dtype)
    x = _conv2d_pallas(x, w3, b3, strides_list[2], 2, apply_abs=False,
                       apply_relu=False, compute_dtype=compute_dtype,
                       out_dtype=jnp.float32)
    return jnp.transpose(x, (0, 3, 1, 2))    # NHWC -> NCHW (once at exit)


# ---------------------------------------------------------------------------
# Pure-JAX reference (lax.conv) for correctness checking.
# ---------------------------------------------------------------------------
def _ref_forward(x_nchw, params, strides_list):
    pads = [1, 2, 2]
    relus = [True, True, False]
    x = jnp.abs(x_nchw)
    for (w, b), s, p, r in zip(params, strides_list, pads, relus):
        x = lax.conv_general_dilated(
            x, w, (s, s), [(p, p), (p, p)],
            dimension_numbers=("NCHW", "OIHW", "NCHW"),
            precision=lax.Precision.HIGHEST)
        x = x + b.reshape(1, -1, 1, 1)
        if r:
            x = jnp.maximum(x, 0.0)
    return x


def _init_params(key, in_dim, num_filters):
    specs = [
        (num_filters[0], in_dim, 3, 3),
        (num_filters[1], num_filters[0], 5, 5),
        (num_filters[2], num_filters[1], 5, 5),
    ]
    params = []
    for spec in specs:
        key, kw_, kb_ = jax.random.split(key, 3)
        w = 0.1 * jax.random.normal(kw_, spec, dtype=jnp.float32)
        b = 0.1 * jax.random.normal(kb_, (spec[0],), dtype=jnp.float32)
        params.append((w, b))
    return params


if __name__ == "__main__":
    batch, in_dim, spatial = 2, 4, 16
    num_filters = [8, 8, 8]
    strides_list = [1, 2, 2]

    key = jax.random.PRNGKey(0)
    key, kx = jax.random.split(key)
    x = jax.random.normal(kx, (batch, in_dim, spatial, spatial), dtype=jnp.float32)
    params = _init_params(key, in_dim, num_filters)

    ref = jax.block_until_ready(_ref_forward(x, params, strides_list))

    # Strict check: f32 MXU operands (math/indexing parity with the reference).
    fwd_f32 = jax.jit(functools.partial(h_analysis_transform_forward,
                                        strides_list=strides_list,
                                        compute_dtype=jnp.float32))
    out_f32 = jax.block_until_ready(fwd_f32(x, params))
    assert out_f32.shape == (batch, num_filters[2], spatial // 4, spatial // 4), out_f32.shape
    assert jnp.allclose(out_f32, ref, atol=5e-3, rtol=5e-3), float(
        jnp.max(jnp.abs(out_f32 - ref)))

    # Default fast path: bf16 MXU operands + bf16 intermediates (looser tol).
    fwd_bf16 = jax.jit(functools.partial(h_analysis_transform_forward,
                                         strides_list=strides_list))
    out_bf16 = jax.block_until_ready(fwd_bf16(x, params))
    assert out_bf16.shape == out_f32.shape, out_bf16.shape
    assert jnp.allclose(out_bf16, ref, atol=1e-1, rtol=1e-1), float(
        jnp.max(jnp.abs(out_bf16 - ref)))

    print("KERNEL_OK")
</pallas_src>

<mosaic_0001>
module attributes {stable_mosaic.version = 11 : i64} {
  func.func @_conv_layer_kernel(%arg0: i32, %arg1: memref<1x18x18x4xf32, #tpu.memory_space<vmem>>, %arg2: memref<36x8xf32, #tpu.memory_space<vmem>>, %arg3: memref<1x8xf32, #tpu.memory_space<vmem>>, %arg4: memref<1x256x8xf32, #tpu.memory_space<vmem>>, %arg5: memref<256x36xf32, #tpu.memory_space<vmem>>) attributes {dimension_semantics = [#tpu.dimension_semantics<parallel>], iteration_bounds = array<i64: 2>, scalar_prefetch = 0 : i64, scratch_operands = 1 : i64, tpu.core_type = #tpu.core_type<tc>, window_params = [{transform_indices = @transform_0, window_bounds = array<i64: 1, 18, 18, 4>}, {pipeline_mode = #tpu.pipeline_mode<synchronous>, transform_indices = @transform_1, window_bounds = array<i64: 36, 8>}, {pipeline_mode = #tpu.pipeline_mode<synchronous>, transform_indices = @transform_2, window_bounds = array<i64: 1, 8>}, {transform_indices = @transform_3, window_bounds = array<i64: 1, 256, 8>}]} {
    %c0 = arith.constant 0 : index
    %c0_0 = arith.constant 0 : index
    %c0_1 = arith.constant 0 : index
    %c0_2 = arith.constant 0 : index
    %0 = vector.load %arg1[%c0, %c0_0, %c0_1, %c0_2] : memref<1x18x18x4xf32, #tpu.memory_space<vmem>>, vector<1x18x18x4xf32>
    %1 = math.absf %0 : vector<1x18x18x4xf32>
    %2 = vector.extract_strided_slice %1 {offsets = [0, 0, 0, 0], sizes = [1, 1, 16, 4], strides = [1, 1, 1, 1]} : vector<1x18x18x4xf32> to vector<1x1x16x4xf32>
    %3 = vector.shape_cast %2 : vector<1x1x16x4xf32> to vector<16x4xf32>
    %4 = vector.extract_strided_slice %1 {offsets = [0, 0, 1, 0], sizes = [1, 1, 16, 4], strides = [1, 1, 1, 1]} : vector<1x18x18x4xf32> to vector<1x1x16x4xf32>
    %5 = vector.shape_cast %4 : vector<1x1x16x4xf32> to vector<16x4xf32>
    %6 = vector.extract_strided_slice %1 {offsets = [0, 0, 2, 0], sizes = [1, 1, 16, 4], strides = [1, 1, 1, 1]} : vector<1x18x18x4xf32> to vector<1x1x16x4xf32>
    %7 = vector.shape_cast %6 : vector<1x1x16x4xf32> to vector<16x4xf32>
    %8 = vector.extract_strided_slice %1 {offsets = [0, 1, 0, 0], sizes = [1, 1, 16, 4], strides = [1, 1, 1, 1]} : vector<1x18x18x4xf32> to vector<1x1x16x4xf32>
    %9 = vector.shape_cast %8 : vector<1x1x16x4xf32> to vector<16x4xf32>
    %10 = vector.extract_strided_slice %1 {offsets = [0, 1, 1, 0], sizes = [1, 1, 16, 4], strides = [1, 1, 1, 1]} : vector<1x18x18x4xf32> to vector<1x1x16x4xf32>
    %11 = vector.shape_cast %10 : vector<1x1x16x4xf32> to vector<16x4xf32>
    %12 = vector.extract_strided_slice %1 {offsets = [0, 1, 2, 0], sizes = [1, 1, 16, 4], strides = [1, 1, 1, 1]} : vector<1x18x18x4xf32> to vector<1x1x16x4xf32>
    %13 = vector.shape_cast %12 : vector<1x1x16x4xf32> to vector<16x4xf32>
    %14 = vector.extract_strided_slice %1 {offsets = [0, 2, 0, 0], sizes = [1, 1, 16, 4], strides = [1, 1, 1, 1]} : vector<1x18x18x4xf32> to vector<1x1x16x4xf32>
    %15 = vector.shape_cast %14 : vector<1x1x16x4xf32> to vector<16x4xf32>
    %16 = vector.extract_strided_slice %1 {offsets = [0, 2, 1, 0], sizes = [1, 1, 16, 4], strides = [1, 1, 1, 1]} : vector<1x18x18x4xf32> to vector<1x1x16x4xf32>
    %17 = vector.shape_cast %16 : vector<1x1x16x4xf32> to vector<16x4xf32>
    %18 = vector.extract_strided_slice %1 {offsets = [0, 2, 2, 0], sizes = [1, 1, 16, 4], strides = [1, 1, 1, 1]} : vector<1x18x18x4xf32> to vector<1x1x16x4xf32>
    %19 = vector.shape_cast %18 : vector<1x1x16x4xf32> to vector<16x4xf32>
    %20 = tpu.concatenate %3, %5, %7, %9, %11, %13, %15, %17, %19 in 1 : vector<16x4xf32>, vector<16x4xf32>, vector<16x4xf32>, vector<16x4xf32>, vector<16x4xf32>, vector<16x4xf32>, vector<16x4xf32>, vector<16x4xf32>, vector<16x4xf32> -> vector<16x36xf32>
    %c0_3 = arith.constant 0 : index
    %c0_4 = arith.constant 0 : index
    %21 = vector.load %arg5[%c0_3, %c0_4] : memref<256x36xf32, #tpu.memory_space<vmem>>, vector<16x36xf32>
    tpu.vector_store %arg5[%c0_3, %c0_4], %20 {strides = array<i32>} : memref<256x36xf32, #tpu.memory_space<vmem>>, vector<16x36xf32>,
    %22 = vector.extract_strided_slice %1 {offsets = [0, 1, 0, 0], sizes = [1, 1, 16, 4], strides = [1, 1, 1, 1]} : vector<1x18x18x4xf32> to vector<1x1x16x4xf32>
    %23 = vector.shape_cast %22 : vector<1x1x16x4xf32> to vector<16x4xf32>
    %24 = vector.extract_strided_slice %1 {offsets = [0, 1, 1, 0], sizes = [1, 1, 16, 4], strides = [1, 1, 1, 1]} : vector<1x18x18x4xf32> to vector<1x1x16x4xf32>
    %25 = vector.shape_cast %24 : vector<1x1x16x4xf32> to vector<16x4xf32>
    %26 = vector.extract_strided_slice %1 {offsets = [0, 1, 2, 0], sizes = [1, 1, 16, 4], strides = [1, 1, 1, 1]} : vector<1x18x18x4xf32> to vector<1x1x16x4xf32>
    %27 = vector.shape_cast %26 : vector<1x1x16x4xf32> to vector<16x4xf32>
    %28 = vector.extract_strided_slice %1 {offsets = [0, 2, 0, 0], sizes = [1, 1, 16, 4], strides = [1, 1, 1, 1]} : vector<1x18x18x4xf32> to vector<1x1x16x4xf32>
    %29 = vector.shape_cast %28 : vector<1x1x16x4xf32> to vector<16x4xf32>
    %30 = vector.extract_strided_slice %1 {offsets = [0, 2, 1, 0], sizes = [1, 1, 16, 4], strides = [1, 1, 1, 1]} : vector<1x18x18x4xf32> to vector<1x1x16x4xf32>
    %31 = vector.shape_cast %30 : vector<1x1x16x4xf32> to vector<16x4xf32>
    %32 = vector.extract_strided_slice %1 {offsets = [0, 2, 2, 0], sizes = [1, 1, 16, 4], strides = [1, 1, 1, 1]} : vector<1x18x18x4xf32> to vector<1x1x16x4xf32>
    %33 = vector.shape_cast %32 : vector<1x1x16x4xf32> to vector<16x4xf32>
    %34 = vector.extract_strided_slice %1 {offsets = [0, 3, 0, 0], sizes = [1, 1, 16, 4], strides = [1, 1, 1, 1]} : vector<1x18x18x4xf32> to vector<1x1x16x4xf32>
    %35 = vector.shape_cast %34 : vector<1x1x16x4xf32> to vector<16x4xf32>
    %36 = vector.extract_strided_slice %1 {offsets = [0, 3, 1, 0], sizes = [1, 1, 16, 4], strides = [1, 1, 1, 1]} : vector<1x18x18x4xf32> to vector<1x1x16x4xf32>
    %37 = vector.shape_cast %36 : vector<1x1x16x4xf32> to vector<16x4xf32>
    %38 = vector.extract_strided_slice %1 {offsets = [0, 3, 2, 0], sizes = [1, 1, 16, 4], strides = [1, 1, 1, 1]} : vector<1x18x18x4xf32> to vector<1x1x16x4xf32>
    %39 = vector.shape_cast %38 : vector<1x1x16x4xf32> to vector<16x4xf32>
    %40 = tpu.concatenate %23, %25, %27, %29, %31, %33, %35, %37, %39 in 1 : vector<16x4xf32>, vector<16x4xf32>, vector<16x4xf32>, vector<16x4xf32>, vector<16x4xf32>, vector<16x4xf32>, vector<16x4xf32>, vector<16x4xf32>, vector<16x4xf32> -> vector<16x36xf32>
    %c16 = arith.constant 16 : index
    %c0_5 = arith.constant 0 : index
    %41 = vector.load %arg5[%c16, %c0_5] : memref<256x36xf32, #tpu.memory_space<vmem>>, vector<16x36xf32>
    tpu.vector_store %arg5[%c16, %c0_5], %40 {strides = array<i32>} : memref<256x36xf32, #tpu.memory_space<vmem>>, vector<16x36xf32>,
    %42 = vector.extract_strided_slice %1 {offsets = [0, 2, 0, 0], sizes = [1, 1, 16, 4], strides = [1, 1, 1, 1]} : vector<1x18x18x4xf32> to vector<1x1x16x4xf32>
    %43 = vector.shape_cast %42 : vector<1x1x16x4xf32> to vector<16x4xf32>
    %44 = vector.extract_strided_slice %1 {offsets = [0, 2, 1, 0], sizes = [1, 1, 16, 4], strides = [1, 1, 1, 1]} : vector<1x18x18x4xf32> to vector<1x1x16x4xf32>
    %45 = vector.shape_cast %44 : vector<1x1x16x4xf32> to vector<16x4xf32>
    %46 = vector.extract_strided_slice %1 {offsets = [0, 2, 2, 0], sizes = [1, 1, 16, 4], strides = [1, 1, 1, 1]} : vector<1x18x18x4xf32> to vector<1x1x16x4xf32>
    %47 = vector.shape_cast %46 : vector<1x1x16x4xf32> to vector<16x4xf32>
    %48 = vector.extract_strided_slice %1 {offsets = [0, 3, 0, 0], sizes = [1, 1, 16, 4], strides = [1, 1, 1, 1]} : vector<1x18x18x4xf32> to vector<1x1x16x4xf32>
    %49 = vector.shape_cast %48 : vector<1x1x16x4xf32> to vector<16x4xf32>
    %50 = vector.extract_strided_slice %1 {offsets = [0, 3, 1, 0], sizes = [1, 1, 16, 4], strides = [1, 1, 1, 1]} : vector<1x18x18x4xf32> to vector<1x1x16x4xf32>
    %51 = vector.shape_cast %50 : vector<1x1x16x4xf32> to vector<16x4xf32>
    %52 = vector.extract_strided_slice %1 {offsets = [0, 3, 2, 0], sizes = [1, 1, 16, 4], strides = [1, 1, 1, 1]} : vector<1x18x18x4xf32> to vector<1x1x16x4xf32>
    %53 = vector.shape_cast %52 : vector<1x1x16x4xf32> to vector<16x4xf32>
    %54 = vector.extract_strided_slice %1 {offsets = [0, 4, 0, 0], sizes = [1, 1, 16, 4], strides = [1, 1, 1, 1]} : vector<1x18x18x4xf32> to vector<1x1x16x4xf32>
    %55 = vector.shape_cast %54 : vector<1x1x16x4xf32> to vector<16x4xf32>
    %56 = vector.extract_strided_slice %1 {offsets = [0, 4, 1, 0], sizes = [1, 1, 16, 4], strides = [1, 1, 1, 1]} : vector<1x18x18x4xf32> to vector<1x1x16x4xf32>
    %57 = vector.shape_cast %56 : vector<1x1x16x4xf32> to vector<16x4xf32>
    %58 = vector.extract_strided_slice %1 {offsets = [0, 4, 2, 0], sizes = [1, 1, 16, 4], strides = [1, 1, 1, 1]} : vector<1x18x18x4xf32> to vector<1x1x16x4xf32>
    %59 = vector.shape_cast %58 : vector<1x1x16x4xf32> to vector<16x4xf32>
    %60 = tpu.concatenate %43, %45, %47, %49, %51, %53, %55, %57, %59 in 1 : vector<16x4xf32>, vector<16x4xf32>, vector<16x4xf32>, vector<16x4xf32>, vector<16x4xf32>, vector<16x4xf32>, vector<16x4xf32>, vector<16x4xf32>, vector<16x4xf32> -> vector<16x36xf32>
    %c32 = arith.constant 32 : index
    %c0_6 = arith.constant 0 : index
    %61 = vector.load %arg5[%c32, %c0_6] : memref<256x36xf32, #tpu.memory_space<vmem>>, vector<16x36xf32>
    tpu.vector_store %arg5[%c32, %c0_6], %60 {strides = array<i32>} : memref<256x36xf32, #tpu.memory_space<vmem>>, vector<16x36xf32>,
    %62 = vector.extract_strided_slice %1 {offsets = [0, 3, 0, 0], sizes = [1, 1, 16, 4], strides = [1, 1, 1, 1]} : vector<1x18x18x4xf32> to vector<1x1x16x4xf32>
    %63 = vector.shape_cast %62 : vector<1x1x16x4xf32> to vector<16x4xf32>
    %64 = vector.extract_strided_slice %1 {offsets = [0, 3, 1, 0], sizes = [1, 1, 16, 4], strides = [1, 1, 1, 1]} : vector<1x18x18x4xf32> to vector<1x1x16x4xf32>
    %65 = vector.shape_cast %64 : vector<1x1x16x4xf32> to vector<16x4xf32>
    %66 = vector.extract_strided_slice %1 {offsets = [0, 3, 2, 0], sizes = [1, 1, 16, 4], strides = [1, 1, 1, 1]} : vector<1x18x18x4xf32> to vector<1x1x16x4xf32>
    %67 = vector.shape_cast %66 : vector<1x1x16x4xf32> to vector<16x4xf32>
    %68 = vector.extract_strided_slice %1 {offsets = [0, 4, 0, 0], sizes = [1, 1, 16, 4], strides = [1, 1, 1, 1]} : vector<1x18x18x4xf32> to vector<1x1x16x4xf32>
    %69 = vector.shape_cast %68 : vector<1x1x16x4xf32> to vector<16x4xf32>
    %70 = vector.extract_strided_slice %1 {offsets = [0, 4, 1, 0], sizes = [1, 1, 16, 4], strides = [1, 1, 1, 1]} : vector<1x18x18x4xf32> to vector<1x1x16x4xf32>
    %71 = vector.shape_cast %70 : vector<1x1x16x4xf32> to vector<16x4xf32>
    %72 = vector.extract_strided_slice %1 {offsets = [0, 4, 2, 0], sizes = [1, 1, 16, 4], strides = [1, 1, 1, 1]} : vector<1x18x18x4xf32> to vector<1x1x16x4xf32>
    %73 = vector.shape_cast %72 : vector<1x1x16x4xf32> to vector<16x4xf32>
    %74 = vector.extract_strided_slice %1 {offsets = [0, 5, 0, 0], sizes = [1, 1, 16, 4], strides = [1, 1, 1, 1]} : vector<1x18x18x4xf32> to vector<1x1x16x4xf32>
    %75 = vector.shape_cast %74 : vector<1x1x16x4xf32> to vector<16x4xf32>
    %76 = vector.extract_strided_slice %1 {offsets = [0, 5, 1, 0], sizes = [1, 1, 16, 4], strides = [1, 1, 1, 1]} : vector<1x18x18x4xf32> to vector<1x1x16x4xf32>
    %77 = vector.shape_cast %76 : vector<1x1x16x4xf32> to vector<16x4xf32>
    %78 = vector.extract_strided_slice %1 {offsets = [0, 5, 2, 0], sizes = [1, 1, 16, 4], strides = [1, 1, 1, 1]} : vector<1x18x18x4xf32> to vector<1x1x16x4xf32>
    %79 = vector.shape_cast %78 : vector<1x1x16x4xf32> to vector<16x4xf32>
    %80 = tpu.concatenate %63, %65, %67, %69, %71, %73, %75, %77, %79 in 1 : vector<16x4xf32>, vector<16x4xf32>, vector<16x4xf32>, vector<16x4xf32>, vector<16x4xf32>, vector<16x4xf32>, vector<16x4xf32>, vector<16x4xf32>, vector<16x4xf32> -> vector<16x36xf32>
    %c48 = arith.constant 48 : index
    %c0_7 = arith.constant 0 : index
    %81 = vector.load %arg5[%c48, %c0_7] : memref<256x36xf32, #tpu.memory_space<vmem>>, vector<16x36xf32>
    tpu.vector_store %arg5[%c48, %c0_7], %80 {strides = array<i32>} : memref<256x36xf32, #tpu.memory_space<vmem>>, vector<16x36xf32>,
    %82 = vector.extract_strided_slice %1 {offsets = [0, 4, 0, 0], sizes = [1, 1, 16, 4], strides = [1, 1, 1, 1]} : vector<1x18x18x4xf32> to vector<1x1x16x4xf32>
    %83 = vector.shape_cast %82 : vector<1x1x16x4xf32> to vector<16x4xf32>
    %84 = vector.extract_strided_slice %1 {offsets = [0, 4, 1, 0], sizes = [1, 1, 16, 4], strides = [1, 1, 1, 1]} : vector<1x18x18x4xf32> to vector<1x1x16x4xf32>
    %85 = vector.shape_cast %84 : vector<1x1x16x4xf32> to vector<16x4xf32>
    %86 = vector.extract_strided_slice %1 {offsets = [0, 4, 2, 0], sizes = [1, 1, 16, 4], strides = [1, 1, 1, 1]} : vector<1x18x18x4xf32> to vector<1x1x16x4xf32>
    %87 = vector.shape_cast %86 : vector<1x1x16x4xf32> to vector<16x4xf32>
    %88 = vector.extract_strided_slice %1 {offsets = [0, 5, 0, 0], sizes = [1, 1, 16, 4], strides = [1, 1, 1, 1]} : vector<1x18x18x4xf32> to vector<1x1x16x4xf32>
    %89 = vector.shape_cast %88 : vector<1x1x16x4xf32> to vector<16x4xf32>
    %90 = vector.extract_strided_slice %1 {offsets = [0, 5, 1, 0], sizes = [1, 1, 16, 4], strides = [1, 1, 1, 1]} : vector<1x18x18x4xf32> to vector<1x1x16x4xf32>
    %91 = vector.shape_cast %90 : vector<1x1x16x4xf32> to vector<16x4xf32>
    %92 = vector.extract_strided_slice %1 {offsets = [0, 5, 2, 0], sizes = [1, 1, 16, 4], strides = [1, 1, 1, 1]} : vector<1x18x18x4xf32> to vector<1x1x16x4xf32>
    %93 = vector.shape_cast %92 : vector<1x1x16x4xf32> to vector<16x4xf32>
    %94 = vector.extract_strided_slice %1 {offsets = [0, 6, 0, 0], sizes = [1, 1, 16, 4], strides = [1, 1, 1, 1]} : vector<1x18x18x4xf32> to vector<1x1x16x4xf32>
    %95 = vector.shape_cast %94 : vector<1x1x16x4xf32> to vector<16x4xf32>
    %96 = vector.extract_strided_slice %1 {offsets = [0, 6, 1, 0], sizes = [1, 1, 16, 4], strides = [1, 1, 1, 1]} : vector<1x18x18x4xf32> to vector<1x1x16x4xf32>
    %97 = vector.shape_cast %96 : vector<1x1x16x4xf32> to vector<16x4xf32>
    %98 = vector.extract_strided_slice %1 {offsets = [0, 6, 2, 0], sizes = [1, 1, 16, 4], strides = [1, 1, 1, 1]} : vector<1x18x18x4xf32> to vector<1x1x16x4xf32>
    %99 = vector.shape_cast %98 : vector<1x1x16x4xf32> to vector<16x4xf32>
    %100 = tpu.concatenate %83, %85, %87, %89, %91, %93, %95, %97, %99 in 1 : vector<16x4xf32>, vector<16x4xf32>, vector<16x4xf32>, vector<16x4xf32>, vector<16x4xf32>, vector<16x4xf32>, vector<16x4xf32>, vector<16x4xf32>, vector<16x4xf32> -> vector<16x36xf32>
    %c64 = arith.constant 64 : index
    %c0_8 = arith.constant 0 : index
    %101 = vector.load %arg5[%c64, %c0_8] : memref<256x36xf32, #tpu.memory_space<vmem>>, vector<16x36xf32>
    tpu.vector_store %arg5[%c64, %c0_8], %100 {strides = array<i32>} : memref<256x36xf32, #tpu.memory_space<vmem>>, vector<16x36xf32>,
    %102 = vector.extract_strided_slice %1 {offsets = [0, 5, 0, 0], sizes = [1, 1, 16, 4], strides = [1, 1, 1, 1]} : vector<1x18x18x4xf32> to vector<1x1x16x4xf32>
    %103 = vector.shape_cast %102 : vector<1x1x16x4xf32> to vector<16x4xf32>
    %104 = vector.extract_strided_slice %1 {offsets = [0, 5, 1, 0], sizes = [1, 1, 16, 4], strides = [1, 1, 1, 1]} : vector<1x18x18x4xf32> to vector<1x1x16x4xf32>
    %105 = vector.shape_cast %104 : vector<1x1x16x4xf32> to vector<16x4xf32>
    %106 = vector.extract_strided_slice %1 {offsets = [0, 5, 2, 0], sizes = [1, 1, 16, 4], strides = [1, 1, 1, 1]} : vector<1x18x18x4xf32> to vector<1x1x16x4xf32>
    %107 = vector.shape_cast %106 : vector<1x1x16x4xf32> to vector<16x4xf32>
    %108 = vector.extract_strided_slice %1 {offsets = [0, 6, 0, 0], sizes = [1, 1, 16, 4], strides = [1, 1, 1, 1]} : vector<1x18x18x4xf32> to vector<1x1x16x4xf32>
    %109 = vector.shape_cast %108 : vector<1x1x16x4xf32> to vector<16x4xf32>
    %110 = vector.extract_strided_slice %1 {offsets = [0, 6, 1, 0], sizes = [1, 1, 16, 4], strides = [1, 1, 1, 1]} : vector<1x18x18x4xf32> to vector<1x1x16x4xf32>
    %111 = vector.shape_cast %110 : vector<1x1x16x4xf32> to vector<16x4xf32>
    %112 = vector.extract_strided_slice %1 {offsets = [0, 6, 2, 0], sizes = [1, 1, 16, 4], strides = [1, 1, 1, 1]} : vector<1x18x18x4xf32> to vector<1x1x16x4xf32>
    %113 = vector.shape_cast %112 : vector<1x1x16x4xf32> to vector<16x4xf32>
    %114 = vector.extract_strided_slice %1 {offsets = [0, 7, 0, 0], sizes = [1, 1, 16, 4], strides = [1, 1, 1, 1]} : vector<1x18x18x4xf32> to vector<1x1x16x4xf32>
    %115 = vector.shape_cast %114 : vector<1x1x16x4xf32> to vector<16x4xf32>
    %116 = vector.extract_strided_slice %1 {offsets = [0, 7, 1, 0], sizes = [1, 1, 16, 4], strides = [1, 1, 1, 1]} : vector<1x18x18x4xf32> to vector<1x1x16x4xf32>
    %117 = vector.shape_cast %116 : vector<1x1x16x4xf32> to vector<16x4xf32>
    %118 = vector.extract_strided_slice %1 {offsets = [0, 7, 2, 0], sizes = [1, 1, 16, 4], strides = [1, 1, 1, 1]} : vector<1x18x18x4xf32> to vector<1x1x16x4xf32>
    %119 = vector.shape_cast %118 : vector<1x1x16x4xf32> to vector<16x4xf32>
    %120 = tpu.concatenate %103, %105, %107, %109, %111, %113, %115, %117, %119 in 1 : vector<16x4xf32>, vector<16x4xf32>, vector<16x4xf32>, vector<16x4xf32>, vector<16x4xf32>, vector<16x4xf32>, vector<16x4xf32>, vector<16x4xf32>, vector<16x4xf32> -> vector<16x36xf32>
    %c80 = arith.constant 80 : index
    %c0_9 = arith.constant 0 : index
    %121 = vector.load %arg5[%c80, %c0_9] : memref<256x36xf32, #tpu.memory_space<vmem>>, vector<16x36xf32>
    tpu.vector_store %arg5[%c80, %c0_9], %120 {strides = array<i32>} : memref<256x36xf32, #tpu.memory_space<vmem>>, vector<16x36xf32>,
    %122 = vector.extract_strided_slice %1 {offsets = [0, 6, 0, 0], sizes = [1, 1, 16, 4], strides = [1, 1, 1, 1]} : vector<1x18x18x4xf32> to vector<1x1x16x4xf32>
    %123 = vector.shape_cast %122 : vector<1x1x16x4xf32> to vector<16x4xf32>
    %124 = vector.extract_strided_slice %1 {offsets = [0, 6, 1, 0], sizes = [1, 1, 16, 4], strides = [1, 1, 1, 1]} : vector<1x18x18x4xf32> to vector<1x1x16x4xf32>
    %125 = vector.shape_cast %124 : vector<1x1x16x4xf32> to vector<16x4xf32>
    %126 = vector.extract_strided_slice %1 {offsets = [0, 6, 2, 0], sizes = [1, 1, 16, 4], strides = [1, 1, 1, 1]} : vector<1x18x18x4xf32> to vector<1x1x16x4xf32>
    %127 = vector.shape_cast %126 : vector<1x1x16x4xf32> to vector<16x4xf32>
    %128 = vector.extract_strided_slice %1 {offsets = [0, 7, 0, 0], sizes = [1, 1, 16, 4], strides = [1, 1, 1, 1]} : vector<1x18x18x4xf32> to vector<1x1x16x4xf32>
    %129 = vector.shape_cast %128 : vector<1x1x16x4xf32> to vector<16x4xf32>
    %130 = vector.extract_strided_slice %1 {offsets = [0, 7, 1, 0], sizes = [1, 1, 16, 4], strides = [1, 1, 1, 1]} : vector<1x18x18x4xf32> to vector<1x1x16x4xf32>
    %131 = vector.shape_cast %130 : vector<1x1x16x4xf32> to vector<16x4xf32>
    %132 = vector.extract_strided_slice %1 {offsets = [0, 7, 2, 0], sizes = [1, 1, 16, 4], strides = [1, 1, 1, 1]} : vector<1x18x18x4xf32> to vector<1x1x16x4xf32>
    %133 = vector.shape_cast %132 : vector<1x1x16x4xf32> to vector<16x4xf32>
    %134 = vector.extract_strided_slice %1 {offsets = [0, 8, 0, 0], sizes = [1, 1, 16, 4], strides = [1, 1, 1, 1]} : vector<1x18x18x4xf32> to vector<1x1x16x4xf32>
    %135 = vector.shape_cast %134 : vector<1x1x16x4xf32> to vector<16x4xf32>
    %136 = vector.extract_strided_slice %1 {offsets = [0, 8, 1, 0], sizes = [1, 1, 16, 4], strides = [1, 1, 1, 1]} : vector<1x18x18x4xf32> to vector<1x1x16x4xf32>
    %137 = vector.shape_cast %136 : vector<1x1x16x4xf32> to vector<16x4xf32>
    %138 = vector.extract_strided_slice %1 {offsets = [0, 8, 2, 0], sizes = [1, 1, 16, 4], strides = [1, 1, 1, 1]} : vector<1x18x18x4xf32> to vector<1x1x16x4xf32>
    %139 = vector.shape_cast %138 : vector<1x1x16x4xf32> to vector<16x4xf32>
    %140 = tpu.concatenate %123, %125, %127, %129, %131, %133, %135, %137, %139 in 1 : vector<16x4xf32>, vector<16x4xf32>, vector<16x4xf32>, vector<16x4xf32>, vector<16x4xf32>, vector<16x4xf32>, vector<16x4xf32>, vector<16x4xf32>, vector<16x4xf32> -> vector<16x36xf32>
    %c96 = arith.constant 96 : index
    %c0_10 = arith.constant 0 : index
    %141 = vector.load %arg5[%c96, %c0_10] : memref<256x36xf32, #tpu.memory_space<vmem>>, vector<16x36xf32>
    tpu.vector_store %arg5[%c96, %c0_10], %140 {strides = array<i32>} : memref<256x36xf32, #tpu.memory_space<vmem>>, vector<16x36xf32>,
    %142 = vector.extract_strided_slice %1 {offsets = [0, 7, 0, 0], sizes = [1, 1, 16, 4], strides = [1, 1, 1, 1]} : vector<1x18x18x4xf32> to vector<1x1x16x4xf32>
    %143 = vector.shape_cast %142 : vector<1x1x16x4xf32> to vector<16x4xf32>
    %144 = vector.extract_strided_slice %1 {offsets = [0, 7, 1, 0], sizes = [1, 1, 16, 4], strides = [1, 1, 1, 1]} : vector<1x18x18x4xf32> to vector<1x1x16x4xf32>
    %145 = vector.shape_cast %144 : vector<1x1x16x4xf32> to vector<16x4xf32>
    %146 = vector.extract_strided_slice %1 {offsets = [0, 7, 2, 0], sizes = [1, 1, 16, 4], strides = [1, 1, 1, 1]} : vector<1x18x18x4xf32> to vector<1x1x16x4xf32>
    %147 = vector.shape_cast %146 : vector<1x1x16x4xf32> to vector<16x4xf32>
    %148 = vector.extract_strided_slice %1 {offsets = [0, 8, 0, 0], sizes = [1, 1, 16, 4], strides = [1, 1, 1, 1]} : vector<1x18x18x4xf32> to vector<1x1x16x4xf32>
    %149 = vector.shape_cast %148 : vector<1x1x16x4xf32> to vector<16x4xf32>
    %150 = vector.extract_strided_slice %1 {offsets = [0, 8, 1, 0], sizes = [1, 1, 16, 4], strides = [1, 1, 1, 1]} : vector<1x18x18x4xf32> to vector<1x1x16x4xf32>
    %151 = vector.shape_cast %150 : vector<1x1x16x4xf32> to vector<16x4xf32>
    %152 = vector.extract_strided_slice %1 {offsets = [0, 8, 2, 0], sizes = [1, 1, 16, 4], strides = [1, 1, 1, 1]} : vector<1x18x18x4xf32> to vector<1x1x16x4xf32>
    %153 = vector.shape_cast %152 : vector<1x1x16x4xf32> to vector<16x4xf32>
    %154 = vector.extract_strided_slice %1 {offsets = [0, 9, 0, 0], sizes = [1, 1, 16, 4], strides = [1, 1, 1, 1]} : vector<1x18x18x4xf32> to vector<1x1x16x4xf32>
    %155 = vector.shape_cast %154 : vector<1x1x16x4xf32> to vector<16x4xf32>
    %156 = vector.extract_strided_slice %1 {offsets = [0, 9, 1, 0], sizes = [1, 1, 16, 4], strides = [1, 1, 1, 1]} : vector<1x18x18x4xf32> to vector<1x1x16x4xf32>
    %157 = vector.shape_cast %156 : vector<1x1x16x4xf32> to vector<16x4xf32>
    %158 = vector.extract_strided_slice %1 {offsets = [0, 9, 2, 0], sizes = [1, 1, 16, 4], strides = [1, 1, 1, 1]} : vector<1x18x18x4xf32> to vector<1x1x16x4xf32>
    %159 = vector.shape_cast %158 : vector<1x1x16x4xf32> to vector<16x4xf32>
    %160 = tpu.concatenate %143, %145, %147, %149, %151, %153, %155, %157, %159 in 1 : vector<16x4xf32>, vector<16x4xf32>, vector<16x4xf32>, vector<16x4xf32>, vector<16x4xf32>, vector<16x4xf32>, vector<16x4xf32>, vector<16x4xf32>, vector<16x4xf32> -> vector<16x36xf32>
    %c112 = arith.constant 112 : index
    %c0_11 = arith.constant 0 : index
    %161 = vector.load %arg5[%c112, %c0_11] : memref<256x36xf32, #tpu.memory_space<vmem>>, vector<16x36xf32>
    tpu.vector_store %arg5[%c112, %c0_11], %160 {strides = array<i32>} : memref<256x36xf32, #tpu.memory_space<vmem>>, vector<16x36xf32>,
    %162 = vector.extract_strided_slice %1 {offsets = [0, 8, 0, 0], sizes = [1, 1, 16, 4], strides = [1, 1, 1, 1]} : vector<1x18x18x4xf32> to vector<1x1x16x4xf32>
    %163 = vector.shape_cast %162 : vector<1x1x16x4xf32> to vector<16x4xf32>
    %164 = vector.extract_strided_slice %1 {offsets = [0, 8, 1, 0], sizes = [1, 1, 16, 4], strides = [1, 1, 1, 1]} : vector<1x18x18x4xf32> to vector<1x1x16x4xf32>
    %165 = vector.shape_cast %164 : vector<1x1x16x4xf32> to vector<16x4xf32>
    %166 = vector.extract_strided_slice %1 {offsets = [0, 8, 2, 0], sizes = [1, 1, 16, 4], strides = [1, 1, 1, 1]} : vector<1x18x18x4xf32> to vector<1x1x16x4xf32>
    %167 = vector.shape_cast %166 : vector<1x1x16x4xf32> to vector<16x4xf32>
    %168 = vector.extract_strided_slice %1 {offsets = [0, 9, 0, 0], sizes = [1, 1, 16, 4], strides = [1, 1, 1, 1]} : vector<1x18x18x4xf32> to vector<1x1x16x4xf32>
    %169 = vector.shape_cast %168 : vector<1x1x16x4xf32> to vector<16x4xf32>
    %170 = vector.extract_strided_slice %1 {offsets = [0, 9, 1, 0], sizes = [1, 1, 16, 4], strides = [1, 1, 1, 1]} : vector<1x18x18x4xf32> to vector<1x1x16x4xf32>
    %171 = vector.shape_cast %170 : vector<1x1x16x4xf32> to vector<16x4xf32>
    %172 = vector.extract_strided_slice %1 {offsets = [0, 9, 2, 0], sizes = [1, 1, 16, 4], strides = [1, 1, 1, 1]} : vector<1x18x18x4xf32> to vector<1x1x16x4xf32>
    %173 = vector.shape_cast %172 : vector<1x1x16x4xf32> to vector<16x4xf32>
    %174 = vector.extract_strided_slice %1 {offsets = [0, 10, 0, 0], sizes = [1, 1, 16, 4], strides = [1, 1, 1, 1]} : vector<1x18x18x4xf32> to vector<1x1x16x4xf32>
    %175 = vector.shape_cast %174 : vector<1x1x16x4xf32> to vector<16x4xf32>
    %176 = vector.extract_strided_slice %1 {offsets = [0, 10, 1, 0], sizes = [1, 1, 16, 4], strides = [1, 1, 1, 1]} : vector<1x18x18x4xf32> to vector<1x1x16x4xf32>
    %177 = vector.shape_cast %176 : vector<1x1x16x4xf32> to vector<16x4xf32>
    %178 = vector.extract_strided_slice %1 {offsets = [0, 10, 2, 0], sizes = [1, 1, 16, 4], strides = [1, 1, 1, 1]} : vector<1x18x18x4xf32> to vector<1x1x16x4xf32>
    %179 = vector.shape_cast %178 : vector<1x1x16x4xf32> to vector<16x4xf32>
    %180 = tpu.concatenate %163, %165, %167, %169, %171, %173, %175, %177, %179 in 1 : vector<16x4xf32>, vector<16x4xf32>, vector<16x4xf32>, vector<16x4xf32>, vector<16x4xf32>, vector<16x4xf32>, vector<16x4xf32>, vector<16x4xf32>, vector<16x4xf32> -> vector<16x36xf32>
    %c128 = arith.constant 128 : index
    %c0_12 = arith.constant 0 : index
    %181 = vector.load %arg5[%c128, %c0_12] : memref<256x36xf32, #tpu.memory_space<vmem>>, vector<16x36xf32>
    tpu.vector_store %arg5[%c128, %c0_12], %180 {strides = array<i32>} : memref<256x36xf32, #tpu.memory_space<vmem>>, vector<16x36xf32>,
    %182 = vector.extract_strided_slice %1 {offsets = [0, 9, 0, 0], sizes = [1, 1, 16, 4], strides = [1, 1, 1, 1]} : vector<1x18x18x4xf32> to vector<1x1x16x4xf32>
    %183 = vector.shape_cast %182 : vector<1x1x16x4xf32> to vector<16x4xf32>
    %184 = vector.extract_strided_slice %1 {offsets = [0, 9, 1, 0], sizes = [1, 1, 16, 4], strides = [1, 1, 1, 1]} : vector<1x18x18x4xf32> to vector<1x1x16x4xf32>
    %185 = vector.shape_cast %184 : vector<1x1x16x4xf32> to vector<16x4xf32>
    %186 = vector.extract_strided_slice %1 {offsets = [0, 9, 2, 0], sizes = [1, 1, 16, 4], strides = [1, 1, 1, 1]} : vector<1x18x18x4xf32> to vector<1x1x16x4xf32>
    %187 = vector.shape_cast %186 : vector<1x1x16x4xf32> to vector<16x4xf32>
    %188 = vector.extract_strided_slice %1 {offsets = [0, 10, 0, 0], sizes = [1, 1, 16, 4], strides = [1, 1, 1, 1]} : vector<1x18x18x4xf32> to vector<1x1x16x4xf32>
    %189 = vector.shape_cast %188 : vector<1x1x16x4xf32> to vector<16x4xf32>
    %190 = vector.extract_strided_slice %1 {offsets = [0, 10, 1, 0], sizes = [1, 1, 16, 4], strides = [1, 1, 1, 1]} : vector<1x18x18x4xf32> to vector<1x1x16x4xf32>
    %191 = vector.shape_cast %190 : vector<1x1x16x4xf32> to vector<16x4xf32>
    %192 = vector.extract_strided_slice %1 {offsets = [0, 10, 2, 0], sizes = [1, 1, 16, 4], strides = [1, 1, 1, 1]} : vector<1x18x18x4xf32> to vector<1x1x16x4xf32>
    %193 = vector.shape_cast %192 : vector<1x1x16x4xf32> to vector<16x4xf32>
    %194 = vector.extract_strided_slice %1 {offsets = [0, 11, 0, 0], sizes = [1, 1, 16, 4], strides = [1, 1, 1, 1]} : vector<1x18x18x4xf32> to vector<1x1x16x4xf32>
    %195 = vector.shape_cast %194 : vector<1x1x16x4xf32> to vector<16x4xf32>
    %196 = vector.extract_strided_slice %1 {offsets = [0, 11, 1, 0], sizes = [1, 1, 16, 4], strides = [1, 1, 1, 1]} : vector<1x18x18x4xf32> to vector<1x1x16x4xf32>
    %197 = vector.shape_cast %196 : vector<1x1x16x4xf32> to vector<16x4xf32>
    %198 = vector.extract_strided_slice %1 {offsets = [0, 11, 2, 0], sizes = [1, 1, 16, 4], strides = [1, 1, 1, 1]} : vector<1x18x18x4xf32> to vector<1x1x16x4xf32>
    %199 = vector.shape_cast %198 : vector<1x1x16x4xf32> to vector<16x4xf32>
    %200 = tpu.concatenate %183, %185, %187, %189, %191, %193, %195, %197, %199 in 1 : vector<16x4xf32>, vector<16x4xf32>, vector<16x4xf32>, vector<16x4xf32>, vector<16x4xf32>, vector<16x4xf32>, vector<16x4xf32>, vector<16x4xf32>, vector<16x4xf32> -> vector<16x36xf32>
    %c144 = arith.constant 144 : index
    %c0_13 = arith.constant 0 : index
    %201 = vector.load %arg5[%c144, %c0_13] : memref<256x36xf32, #tpu.memory_space<vmem>>, vector<16x36xf32>
    tpu.vector_store %arg5[%c144, %c0_13], %200 {strides = array<i32>} : memref<256x36xf32, #tpu.memory_space<vmem>>, vector<16x36xf32>,
    %202 = vector.extract_strided_slice %1 {offsets = [0, 10, 0, 0], sizes = [1, 1, 16, 4], strides = [1, 1, 1, 1]} : vector<1x18x18x4xf32> to vector<1x1x16x4xf32>
    %203 = vector.shape_cast %202 : vector<1x1x16x4xf32> to vector<16x4xf32>
    %204 = vector.extract_strided_slice %1 {offsets = [0, 10, 1, 0], sizes = [1, 1, 16, 4], strides = [1, 1, 1, 1]} : vector<1x18x18x4xf32> to vector<1x1x16x4xf32>
    %205 = vector.shape_cast %204 : vector<1x1x16x4xf32> to vector<16x4xf32>
    %206 = vector.extract_strided_slice %1 {offsets = [0, 10, 2, 0], sizes = [1, 1, 16, 4], strides = [1, 1, 1, 1]} : vector<1x18x18x4xf32> to vector<1x1x16x4xf32>
    %207 = vector.shape_cast %206 : vector<1x1x16x4xf32> to vector<16x4xf32>
    %208 = vector.extract_strided_slice %1 {offsets = [0, 11, 0, 0], sizes = [1, 1, 16, 4], strides = [1, 1, 1, 1]} : vector<1x18x18x4xf32> to vector<1x1x16x4xf32>
    %209 = vector.shape_cast %208 : vector<1x1x16x4xf32> to vector<16x4xf32>
    %210 = vector.extract_strided_slice %1 {offsets = [0, 11, 1, 0], sizes = [1, 1, 16, 4], strides = [1, 1, 1, 1]} : vector<1x18x18x4xf32> to vector<1x1x16x4xf32>
    %211 = vector.shape_cast %210 : vector<1x1x16x4xf32> to vector<16x4xf32>
    %212 = vector.extract_strided_slice %1 {offsets = [0, 11, 2, 0], sizes = [1, 1, 16, 4], strides = [1, 1, 1, 1]} : vector<1x18x18x4xf32> to vector<1x1x16x4xf32>
    %213 = vector.shape_cast %212 : vector<1x1x16x4xf32> to vector<16x4xf32>
    %214 = vector.extract_strided_slice %1 {offsets = [0, 12, 0, 0], sizes = [1, 1, 16, 4], strides = [1, 1, 1, 1]} : vector<1x18x18x4xf32> to vector<1x1x16x4xf32>
    %215 = vector.shape_cast %214 : vector<1x1x16x4xf32> to vector<16x4xf32>
    %216 = vector.extract_strided_slice %1 {offsets = [0, 12, 1, 0], sizes = [1, 1, 16, 4], strides = [1, 1, 1, 1]} : vector<1x18x18x4xf32> to vector<1x1x16x4xf32>
    %217 = vector.shape_cast %216 : vector<1x1x16x4xf32> to vector<16x4xf32>
    %218 = vector.extract_strided_slice %1 {offsets = [0, 12, 2, 0], sizes = [1, 1, 16, 4], strides = [1, 1, 1, 1]} : vector<1x18x18x4xf32> to vector<1x1x16x4xf32>
    %219 = vector.shape_cast %218 : vector<1x1x16x4xf32> to vector<16x4xf32>
    %220 = tpu.concatenate %203, %205, %207, %209, %211, %213, %215, %217, %219 in 1 : vector<16x4xf32>, vector<16x4xf32>, vector<16x4xf32>, vector<16x4xf32>, vector<16x4xf32>, vector<16x4xf32>, vector<16x4xf32>, vector<16x4xf32>, vector<16x4xf32> -> vector<16x36xf32>
    %c160 = arith.constant 160 : index
    %c0_14 = arith.constant 0 : index
    %221 = vector.load %arg5[%c160, %c0_14] : memref<256x36xf32, #tpu.memory_space<vmem>>, vector<16x36xf32>
    tpu.vector_store %arg5[%c160, %c0_14], %220 {strides = array<i32>} : memref<256x36xf32, #tpu.memory_space<vmem>>, vector<16x36xf32>,
    %222 = vector.extract_strided_slice %1 {offsets = [0, 11, 0, 0], sizes = [1, 1, 16, 4], strides = [1, 1, 1, 1]} : vector<1x18x18x4xf32> to vector<1x1x16x4xf32>
    %223 = vector.shape_cast %222 : vector<1x1x16x4xf32> to vector<16x4xf32>
    %224 = vector.extract_strided_slice %1 {offsets = [0, 11, 1, 0], sizes = [1, 1, 16, 4], strides = [1, 1, 1, 1]} : vector<1x18x18x4xf32> to vector<1x1x16x4xf32>
    %225 = vector.shape_cast %224 : vector<1x1x16x4xf32> to vector<16x4xf32>
    %226 = vector.extract_strided_slice %1 {offsets = [0, 11, 2, 0], sizes = [1, 1, 16, 4], strides = [1, 1, 1, 1]} : vector<1x18x18x4xf32> to vector<1x1x16x4xf32>
    %227 = vector.shape_cast %226 : vector<1x1x16x4xf32> to vector<16x4xf32>
    %228 = vector.extract_strided_slice %1 {offsets = [0, 12, 0, 0], sizes = [1, 1, 16, 4], strides = [1, 1, 1, 1]} : vector<1x18x18x4xf32> to vector<1x1x16x4xf32>
    %229 = vector.shape_cast %228 : vector<1x1x16x4xf32> to vector<16x4xf32>
    %230 = vector.extract_strided_slice %1 {offsets = [0, 12, 1, 0], sizes = [1, 1, 16, 4], strides = [1, 1, 1, 1]} : vector<1x18x18x4xf32> to vector<1x1x16x4xf32>
    %231 = vector.shape_cast %230 : vector<1x1x16x4xf32> to vector<16x4xf32>
    %232 = vector.extract_strided_slice %1 {offsets = [0, 12, 2, 0], sizes = [1, 1, 16, 4], strides = [1, 1, 1, 1]} : vector<1x18x18x4xf32> to vector<1x1x16x4xf32>
    %233 = vector.shape_cast %232 : vector<1x1x16x4xf32> to vector<16x4xf32>
    %234 = vector.extract_strided_slice %1 {offsets = [0, 13, 0, 0], sizes = [1, 1, 16, 4], strides = [1, 1, 1, 1]} : vector<1x18x18x4xf32> to vector<1x1x16x4xf32>
    %235 = vector.shape_cast %234 : vector<1x1x16x4xf32> to vector<16x4xf32>
    %236 = vector.extract_strided_slice %1 {offsets = [0, 13, 1, 0], sizes = [1, 1, 16, 4], strides = [1, 1, 1, 1]} : vector<1x18x18x4xf32> to vector<1x1x16x4xf32>
    %237 = vector.shape_cast %236 : vector<1x1x16x4xf32> to vector<16x4xf32>
    %238 = vector.extract_strided_slice %1 {offsets = [0, 13, 2, 0], sizes = [1, 1, 16, 4], strides = [1, 1, 1, 1]} : vector<1x18x18x4xf32> to vector<1x1x16x4xf32>
    %239 = vector.shape_cast %238 : vector<1x1x16x4xf32> to vector<16x4xf32>
    %240 = tpu.concatenate %223, %225, %227, %229, %231, %233, %235, %237, %239 in 1 : vector<16x4xf32>, vector<16x4xf32>, vector<16x4xf32>, vector<16x4xf32>, vector<16x4xf32>, vector<16x4xf32>, vector<16x4xf32>, vector<16x4xf32>, vector<16x4xf32> -> vector<16x36xf32>
    %c176 = arith.constant 176 : index
    %c0_15 = arith.constant 0 : index
    %241 = vector.load %arg5[%c176, %c0_15] : memref<256x36xf32, #tpu.memory_space<vmem>>, vector<16x36xf32>
    tpu.vector_store %arg5[%c176, %c0_15], %240 {strides = array<i32>} : memref<256x36xf32, #tpu.memory_space<vmem>>, vector<16x36xf32>,
    %242 = vector.extract_strided_slice %1 {offsets = [0, 12, 0, 0], sizes = [1, 1, 16, 4], strides = [1, 1, 1, 1]} : vector<1x18x18x4xf32> to vector<1x1x16x4xf32>
    %243 = vector.shape_cast %242 : vector<1x1x16x4xf32> to vector<16x4xf32>
    %244 = vector.extract_strided_slice %1 {offsets = [0, 12, 1, 0], sizes = [1, 1, 16, 4], strides = [1, 1, 1, 1]} : vector<1x18x18x4xf32> to vector<1x1x16x4xf32>
    %245 = vector.shape_cast %244 : vector<1x1x16x4xf32> to vector<16x4xf32>
    %246 = vector.extract_strided_slice %1 {offsets = [0, 12, 2, 0], sizes = [1, 1, 16, 4], strides = [1, 1, 1, 1]} : vector<1x18x18x4xf32> to vector<1x1x16x4xf32>
    %247 = vector.shape_cast %246 : vector<1x1x16x4xf32> to vector<16x4xf32>
    %248 = vector.extract_strided_slice %1 {offsets = [0, 13, 0, 0], sizes = [1, 1, 16, 4], strides = [1, 1, 1, 1]} : vector<1x18x18x4xf32> to vector<1x1x16x4xf32>
    %249 = vector.shape_cast %248 : vector<1x1x16x4xf32> to vector<16x4xf32>
    %250 = vector.extract_strided_slice %1 {offsets = [0, 13, 1, 0], sizes = [1, 1, 16, 4], strides = [1, 1, 1, 1]} : vector<1x18x18x4xf32> to vector<1x1x16x4xf32>
    %251 = vector.shape_cast %250 : vector<1x1x16x4xf32> to vector<16x4xf32>
    %252 = vector.extract_strided_slice %1 {offsets = [0, 13, 2, 0], sizes = [1, 1, 16, 4], strides = [1, 1, 1, 1]} : vector<1x18x18x4xf32> to vector<1x1x16x4xf32>
    %253 = vector.shape_cast %252 : vector<1x1x16x4xf32> to vector<16x4xf32>
    %254 = vector.extract_strided_slice %1 {offsets = [0, 14, 0, 0], sizes = [1, 1, 16, 4], strides = [1, 1, 1, 1]} : vector<1x18x18x4xf32> to vector<1x1x16x4xf32>
    %255 = vector.shape_cast %254 : vector<1x1x16x4xf32> to vector<16x4xf32>
    %256 = vector.extract_strided_slice %1 {offsets = [0, 14, 1, 0], sizes = [1, 1, 16, 4], strides = [1, 1, 1, 1]} : vector<1x18x18x4xf32> to vector<1x1x16x4xf32>
    %257 = vector.shape_cast %256 : vector<1x1x16x4xf32> to vector<16x4xf32>
    %258 = vector.extract_strided_slice %1 {offsets = [0, 14, 2, 0], sizes = [1, 1, 16, 4], strides = [1, 1, 1, 1]} : vector<1x18x18x4xf32> to vector<1x1x16x4xf32>
    %259 = vector.shape_cast %258 : vector<1x1x16x4xf32> to vector<16x4xf32>
    %260 = tpu.concatenate %243, %245, %247, %249, %251, %253, %255, %257, %259 in 1 : vector<16x4xf32>, vector<16x4xf32>, vector<16x4xf32>, vector<16x4xf32>, vector<16x4xf32>, vector<16x4xf32>, vector<16x4xf32>, vector<16x4xf32>, vector<16x4xf32> -> vector<16x36xf32>
    %c192 = arith.constant 192 : index
    %c0_16 = arith.constant 0 : index
    %261 = vector.load %arg5[%c192, %c0_16] : memref<256x36xf32, #tpu.memory_space<vmem>>, vector<16x36xf32>
    tpu.vector_store %arg5[%c192, %c0_16], %260 {strides = array<i32>} : memref<256x36xf32, #tpu.memory_space<vmem>>, vector<16x36xf32>,
    %262 = vector.extract_strided_slice %1 {offsets = [0, 13, 0, 0], sizes = [1, 1, 16, 4], strides = [1, 1, 1, 1]} : vector<1x18x18x4xf32> to vector<1x1x16x4xf32>
    %263 = vector.shape_cast %262 : vector<1x1x16x4xf32> to vector<16x4xf32>
    %264 = vector.extract_strided_slice %1 {offsets = [0, 13, 1, 0], sizes = [1, 1, 16, 4], strides = [1, 1, 1, 1]} : vector<1x18x18x4xf32> to vector<1x1x16x4xf32>
    %265 = vector.shape_cast %264 : vector<1x1x16x4xf32> to vector<16x4xf32>
    %266 = vector.extract_strided_slice %1 {offsets = [0, 13, 2, 0], sizes = [1, 1, 16, 4], strides = [1, 1, 1, 1]} : vector<1x18x18x4xf32> to vector<1x1x16x4xf32>
    %267 = vector.shape_cast %266 : vector<1x1x16x4xf32> to vector<16x4xf32>
    %268 = vector.extract_strided_slice %1 {offsets = [0, 14, 0, 0], sizes = [1, 1, 16, 4], strides = [1, 1, 1, 1]} : vector<1x18x18x4xf32> to vector<1x1x16x4xf32>
    %269 = vector.shape_cast %268 : vector<1x1x16x4xf32> to vector<16x4xf32>
    %270 = vector.extract_strided_slice %1 {offsets = [0, 14, 1, 0], sizes = [1, 1, 16, 4], strides = [1, 1, 1, 1]} : vector<1x18x18x4xf32> to vector<1x1x16x4xf32>
    %271 = vector.shape_cast %270 : vector<1x1x16x4xf32> to vector<16x4xf32>
    %272 = vector.extract_strided_slice %1 {offsets = [0, 14, 2, 0], sizes = [1, 1, 16, 4], strides = [1, 1, 1, 1]} : vector<1x18x18x4xf32> to vector<1x1x16x4xf32>
    %273 = vector.shape_cast %272 : vector<1x1x16x4xf32> to vector<16x4xf32>
    %274 = vector.extract_strided_slice %1 {offsets = [0, 15, 0, 0], sizes = [1, 1, 16, 4], strides = [1, 1, 1, 1]} : vector<1x18x18x4xf32> to vector<1x1x16x4xf32>
    %275 = vector.shape_cast %274 : vector<1x1x16x4xf32> to vector<16x4xf32>
    %276 = vector.extract_strided_slice %1 {offsets = [0, 15, 1, 0], sizes = [1, 1, 16, 4], strides = [1, 1, 1, 1]} : vector<1x18x18x4xf32> to vector<1x1x16x4xf32>
    %277 = vector.shape_cast %276 : vector<1x1x16x4xf32> to vector<16x4xf32>
    %278 = vector.extract_strided_slice %1 {offsets = [0, 15, 2, 0], sizes = [1, 1, 16, 4], strides = [1, 1, 1, 1]} : vector<1x18x18x4xf32> to vector<1x1x16x4xf32>
    %279 = vector.shape_cast %278 : vector<1x1x16x4xf32> to vector<16x4xf32>
    %280 = tpu.concatenate %263, %265, %267, %269, %271, %273, %275, %277, %279 in 1 : vector<16x4xf32>, vector<16x4xf32>, vector<16x4xf32>, vector<16x4xf32>, vector<16x4xf32>, vector<16x4xf32>, vector<16x4xf32>, vector<16x4xf32>, vector<16x4xf32> -> vector<16x36xf32>
    %c208 = arith.constant 208 : index
    %c0_17 = arith.constant 0 : index
    %281 = vector.load %arg5[%c208, %c0_17] : memref<256x36xf32, #tpu.memory_space<vmem>>, vector<16x36xf32>
    tpu.vector_store %arg5[%c208, %c0_17], %280 {strides = array<i32>} : memref<256x36xf32, #tpu.memory_space<vmem>>, vector<16x36xf32>,
    %282 = vector.extract_strided_slice %1 {offsets = [0, 14, 0, 0], sizes = [1, 1, 16, 4], strides = [1, 1, 1, 1]} : vector<1x18x18x4xf32> to vector<1x1x16x4xf32>
    %283 = vector.shape_cast %282 : vector<1x1x16x4xf32> to vector<16x4xf32>
    %284 = vector.extract_strided_slice %1 {offsets = [0, 14, 1, 0], sizes = [1, 1, 16, 4], strides = [1, 1, 1, 1]} : vector<1x18x18x4xf32> to vector<1x1x16x4xf32>
    %285 = vector.shape_cast %284 : vector<1x1x16x4xf32> to vector<16x4xf32>
    %286 = vector.extract_strided_slice %1 {offsets = [0, 14, 2, 0], sizes = [1, 1, 16, 4], strides = [1, 1, 1, 1]} : vector<1x18x18x4xf32> to vector<1x1x16x4xf32>
    %287 = vector.shape_cast %286 : vector<1x1x16x4xf32> to vector<16x4xf32>
    %288 = vector.extract_strided_slice %1 {offsets = [0, 15, 0, 0], sizes = [1, 1, 16, 4], strides = [1, 1, 1, 1]} : vector<1x18x18x4xf32> to vector<1x1x16x4xf32>
    %289 = vector.shape_cast %288 : vector<1x1x16x4xf32> to vector<16x4xf32>
    %290 = vector.extract_strided_slice %1 {offsets = [0, 15, 1, 0], sizes = [1, 1, 16, 4], strides = [1, 1, 1, 1]} : vector<1x18x18x4xf32> to vector<1x1x16x4xf32>
    %291 = vector.shape_cast %290 : vector<1x1x16x4xf32> to vector<16x4xf32>
    %292 = vector.extract_strided_slice %1 {offsets = [0, 15, 2, 0], sizes = [1, 1, 16, 4], strides = [1, 1, 1, 1]} : vector<1x18x18x4xf32> to vector<1x1x16x4xf32>
    %293 = vector.shape_cast %292 : vector<1x1x16x4xf32> to vector<16x4xf32>
    %294 = vector.extract_strided_slice %1 {offsets = [0, 16, 0, 0], sizes = [1, 1, 16, 4], strides = [1, 1, 1, 1]} : vector<1x18x18x4xf32> to vector<1x1x16x4xf32>
    %295 = vector.shape_cast %294 : vector<1x1x16x4xf32> to vector<16x4xf32>
    %296 = vector.extract_strided_slice %1 {offsets = [0, 16, 1, 0], sizes = [1, 1, 16, 4], strides = [1, 1, 1, 1]} : vector<1x18x18x4xf32> to vector<1x1x16x4xf32>
    %297 = vector.shape_cast %296 : vector<1x1x16x4xf32> to vector<16x4xf32>
    %298 = vector.extract_strided_slice %1 {offsets = [0, 16, 2, 0], sizes = [1, 1, 16, 4], strides = [1, 1, 1, 1]} : vector<1x18x18x4xf32> to vector<1x1x16x4xf32>
    %299 = vector.shape_cast %298 : vector<1x1x16x4xf32> to vector<16x4xf32>
    %300 = tpu.concatenate %283, %285, %287, %289, %291, %293, %295, %297, %299 in 1 : vector<16x4xf32>, vector<16x4xf32>, vector<16x4xf32>, vector<16x4xf32>, vector<16x4xf32>, vector<16x4xf32>, vector<16x4xf32>, vector<16x4xf32>, vector<16x4xf32> -> vector<16x36xf32>
    %c224 = arith.constant 224 : index
    %c0_18 = arith.constant 0 : index
    %301 = vector.load %arg5[%c224, %c0_18] : memref<256x36xf32, #tpu.memory_space<vmem>>, vector<16x36xf32>
    tpu.vector_store %arg5[%c224, %c0_18], %300 {strides = array<i32>} : memref<256x36xf32, #tpu.memory_space<vmem>>, vector<16x36xf32>,
    %302 = vector.extract_strided_slice %1 {offsets = [0, 15, 0, 0], sizes = [1, 1, 16, 4], strides = [1, 1, 1, 1]} : vector<1x18x18x4xf32> to vector<1x1x16x4xf32>
    %303 = vector.shape_cast %302 : vector<1x1x16x4xf32> to vector<16x4xf32>
    %304 = vector.extract_strided_slice %1 {offsets = [0, 15, 1, 0], sizes = [1, 1, 16, 4], strides = [1, 1, 1, 1]} : vector<1x18x18x4xf32> to vector<1x1x16x4xf32>
    %305 = vector.shape_cast %304 : vector<1x1x16x4xf32> to vector<16x4xf32>
    %306 = vector.extract_strided_slice %1 {offsets = [0, 15, 2, 0], sizes = [1, 1, 16, 4], strides = [1, 1, 1, 1]} : vector<1x18x18x4xf32> to vector<1x1x16x4xf32>
    %307 = vector.shape_cast %306 : vector<1x1x16x4xf32> to vector<16x4xf32>
    %308 = vector.extract_strided_slice %1 {offsets = [0, 16, 0, 0], sizes = [1, 1, 16, 4], strides = [1, 1, 1, 1]} : vector<1x18x18x4xf32> to vector<1x1x16x4xf32>
    %309 = vector.shape_cast %308 : vector<1x1x16x4xf32> to vector<16x4xf32>
    %310 = vector.extract_strided_slice %1 {offsets = [0, 16, 1, 0], sizes = [1, 1, 16, 4], strides = [1, 1, 1, 1]} : vector<1x18x18x4xf32> to vector<1x1x16x4xf32>
    %311 = vector.shape_cast %310 : vector<1x1x16x4xf32> to vector<16x4xf32>
    %312 = vector.extract_strided_slice %1 {offsets = [0, 16, 2, 0], sizes = [1, 1, 16, 4], strides = [1, 1, 1, 1]} : vector<1x18x18x4xf32> to vector<1x1x16x4xf32>
    %313 = vector.shape_cast %312 : vector<1x1x16x4xf32> to vector<16x4xf32>
    %314 = vector.extract_strided_slice %1 {offsets = [0, 17, 0, 0], sizes = [1, 1, 16, 4], strides = [1, 1, 1, 1]} : vector<1x18x18x4xf32> to vector<1x1x16x4xf32>
    %315 = vector.shape_cast %314 : vector<1x1x16x4xf32> to vector<16x4xf32>
    %316 = vector.extract_strided_slice %1 {offsets = [0, 17, 1, 0], sizes = [1, 1, 16, 4], strides = [1, 1, 1, 1]} : vector<1x18x18x4xf32> to vector<1x1x16x4xf32>
    %317 = vector.shape_cast %316 : vector<1x1x16x4xf32> to vector<16x4xf32>
    %318 = vector.extract_strided_slice %1 {offsets = [0, 17, 2, 0], sizes = [1, 1, 16, 4], strides = [1, 1, 1, 1]} : vector<1x18x18x4xf32> to vector<1x1x16x4xf32>
    %319 = vector.shape_cast %318 : vector<1x1x16x4xf32> to vector<16x4xf32>
    %320 = tpu.concatenate %303, %305, %307, %309, %311, %313, %315, %317, %319 in 1 : vector<16x4xf32>, vector<16x4xf32>, vector<16x4xf32>, vector<16x4xf32>, vector<16x4xf32>, vector<16x4xf32>, vector<16x4xf32>, vector<16x4xf32>, vector<16x4xf32> -> vector<16x36xf32>
    %c240 = arith.constant 240 : index
    %c0_19 = arith.constant 0 : index
    %321 = vector.load %arg5[%c240, %c0_19] : memref<256x36xf32, #tpu.memory_space<vmem>>, vector<16x36xf32>
    tpu.vector_store %arg5[%c240, %c0_19], %320 {strides = array<i32>} : memref<256x36xf32, #tpu.memory_space<vmem>>, vector<16x36xf32>,
    %c0_20 = arith.constant 0 : index
    %c0_21 = arith.constant 0 : index
    %322 = vector.load %arg5[%c0_20, %c0_21] : memref<256x36xf32, #tpu.memory_space<vmem>>, vector<256x36xf32>
    %c0_22 = arith.constant 0 : index
    %c0_23 = arith.constant 0 : index
    %323 = vector.load %arg2[%c0_22, %c0_23] : memref<36x8xf32, #tpu.memory_space<vmem>>, vector<36x8xf32>
    %cst = arith.constant dense<0.000000e+00> : vector<256x8xf32>
    %324 = tpu.matmul %322, %323, %cst {dimension_numbers = #tpu.dot_dimension_numbers<[1], [0], [0], [1], [0, 0, 1, 1], [], []>, precision = #tpu.contract_precision<fp32>} : vector<256x36xf32>, vector<36x8xf32>, vector<256x8xf32> -> vector<256x8xf32>
    %c0_24 = arith.constant 0 : index
    %c0_25 = arith.constant 0 : index
    %325 = vector.load %arg3[%c0_24, %c0_25] : memref<1x8xf32, #tpu.memory_space<vmem>>, vector<1x8xf32>
    %326 = vector.broadcast %325 : vector<1x8xf32> to vector<256x8xf32>
    %327 = arith.addf %324, %326 : vector<256x8xf32>
    %cst_26 = arith.constant 0.000000e+00 : f32
    %328 = vector.broadcast %cst_26 : f32 to vector<256x8xf32>
    %329 = arith.maximumf %327, %328 : vector<256x8xf32>
    %330 = vector.shape_cast %329 : vector<256x8xf32> to vector<1x256x8xf32>
    %c0_27 = arith.constant 0 : index
    %c0_28 = arith.constant 0 : index
    %c0_29 = arith.constant 0 : index
    %331 = vector.load %arg4[%c0_27, %c0_28, %c0_29] : memref<1x256x8xf32, #tpu.memory_space<vmem>>, vector<1x256x8xf32>
    tpu.vector_store %arg4[%c0_27, %c0_28, %c0_29], %330 {strides = array<i32>} : memref<1x256x8xf32, #tpu.memory_space<vmem>>, vector<1x256x8xf32>,
    return
  }
  func.func @transform_0(%arg0: i32) -> (i32, i32, i32, i32) {
    %c0_i32 = arith.constant 0 : i32
    %c0_i32_0 = arith.constant 0 : i32
    %c0_i32_1 = arith.constant 0 : i32
    %c0_i32_2 = arith.constant 0 : i32
    return %arg0, %c0_i32, %c0_i32_0, %c0_i32_1 : i32, i32, i32, i32
  }
  func.func @transform_1(%arg0: i32) -> (i32, i32) {
    %c0_i32 = arith.constant 0 : i32
    %c0_i32_0 = arith.constant 0 : i32
    %c0_i32_1 = arith.constant 0 : i32
    return %c0_i32, %c0_i32_0 : i32, i32
  }
  func.func @transform_2(%arg0: i32) -> (i32, i32) {
    %c0_i32 = arith.constant 0 : i32
    %c0_i32_0 = arith.constant 0 : i32
    %c0_i32_1 = arith.constant 0 : i32
    return %c0_i32, %c0_i32_0 : i32, i32
  }
  func.func @transform_3(%arg0: i32) -> (i32, i32, i32) {
    %c0_i32 = arith.constant 0 : i32
    %c0_i32_0 = arith.constant 0 : i32
    %c0_i32_1 = arith.constant 0 : i32
    return %arg0, %c0_i32, %c0_i32_0 : i32, i32, i32
  }
}

module attributes {stable_mosaic.version = 11 : i64} {
  func.func @_conv_layer_kernel(%arg0: i32, %arg1: memref<1x40x10x8xf32, #tpu.memory_space<vmem>>, %arg2: memref<200x8xf32, #tpu.memory_space<vmem>>, %arg3: memref<1x8xf32, #tpu.memory_space<vmem>>, %arg4: memref<1x64x8xf32, #tpu.memory_space<vmem>>, %arg5: memref<64x200xf32, #tpu.memory_space<vmem>>) attributes {dimension_semantics = [#tpu.dimension_semantics<parallel>], iteration_bounds = array<i64: 2>, scalar_prefetch = 0 : i64, scratch_operands = 1 : i64, tpu.core_type = #tpu.core_type<tc>, window_params = [{transform_indices = @transform_0, window_bounds = array<i64: 1, 40, 10, 8>}, {pipeline_mode = #tpu.pipeline_mode<synchronous>, transform_indices = @transform_1, window_bounds = array<i64: 200, 8>}, {pipeline_mode = #tpu.pipeline_mode<synchronous>, transform_indices = @transform_2, window_bounds = array<i64: 1, 8>}, {transform_indices = @transform_3, window_bounds = array<i64: 1, 64, 8>}]} {
    %c0 = arith.constant 0 : index
    %c0_0 = arith.constant 0 : index
    %c0_1 = arith.constant 0 : index
    %c0_2 = arith.constant 0 : index
    %0 = vector.load %arg1[%c0, %c0_0, %c0_1, %c0_2] : memref<1x40x10x8xf32, #tpu.memory_space<vmem>>, vector<1x40x10x8xf32>
    %1 = vector.extract_strided_slice %0 {offsets = [0, 0, 0, 0], sizes = [1, 1, 8, 8], strides = [1, 1, 1, 1]} : vector<1x40x10x8xf32> to vector<1x1x8x8xf32>
    %2 = vector.shape_cast %1 : vector<1x1x8x8xf32> to vector<8x8xf32>
    %3 = vector.extract_strided_slice %0 {offsets = [0, 10, 0, 0], sizes = [1, 1, 8, 8], strides = [1, 1, 1, 1]} : vector<1x40x10x8xf32> to vector<1x1x8x8xf32>
    %4 = vector.shape_cast %3 : vector<1x1x8x8xf32> to vector<8x8xf32>
    %5 = vector.extract_strided_slice %0 {offsets = [0, 0, 1, 0], sizes = [1, 1, 8, 8], strides = [1, 1, 1, 1]} : vector<1x40x10x8xf32> to vector<1x1x8x8xf32>
    %6 = vector.shape_cast %5 : vector<1x1x8x8xf32> to vector<8x8xf32>
    %7 = vector.extract_strided_slice %0 {offsets = [0, 10, 1, 0], sizes = [1, 1, 8, 8], strides = [1, 1, 1, 1]} : vector<1x40x10x8xf32> to vector<1x1x8x8xf32>
    %8 = vector.shape_cast %7 : vector<1x1x8x8xf32> to vector<8x8xf32>
    %9 = vector.extract_strided_slice %0 {offsets = [0, 0, 2, 0], sizes = [1, 1, 8, 8], strides = [1, 1, 1, 1]} : vector<1x40x10x8xf32> to vector<1x1x8x8xf32>
    %10 = vector.shape_cast %9 : vector<1x1x8x8xf32> to vector<8x8xf32>
    %11 = vector.extract_strided_slice %0 {offsets = [0, 20, 0, 0], sizes = [1, 1, 8, 8], strides = [1, 1, 1, 1]} : vector<1x40x10x8xf32> to vector<1x1x8x8xf32>
    %12 = vector.shape_cast %11 : vector<1x1x8x8xf32> to vector<8x8xf32>
    %13 = vector.extract_strided_slice %0 {offsets = [0, 30, 0, 0], sizes = [1, 1, 8, 8], strides = [1, 1, 1, 1]} : vector<1x40x10x8xf32> to vector<1x1x8x8xf32>
    %14 = vector.shape_cast %13 : vector<1x1x8x8xf32> to vector<8x8xf32>
    %15 = vector.extract_strided_slice %0 {offsets = [0, 20, 1, 0], sizes = [1, 1, 8, 8], strides = [1, 1, 1, 1]} : vector<1x40x10x8xf32> to vector<1x1x8x8xf32>
    %16 = vector.shape_cast %15 : vector<1x1x8x8xf32> to vector<8x8xf32>
    %17 = vector.extract_strided_slice %0 {offsets = [0, 30, 1, 0], sizes = [1, 1, 8, 8], strides = [1, 1, 1, 1]} : vector<1x40x10x8xf32> to vector<1x1x8x8xf32>
    %18 = vector.shape_cast %17 : vector<1x1x8x8xf32> to vector<8x8xf32>
    %19 = vector.extract_strided_slice %0 {offsets = [0, 20, 2, 0], sizes = [1, 1, 8, 8], strides = [1, 1, 1, 1]} : vector<1x40x10x8xf32> to vector<1x1x8x8xf32>
    %20 = vector.shape_cast %19 : vector<1x1x8x8xf32> to vector<8x8xf32>
    %21 = vector.extract_strided_slice %0 {offsets = [0, 1, 0, 0], sizes = [1, 1, 8, 8], strides = [1, 1, 1, 1]} : vector<1x40x10x8xf32> to vector<1x1x8x8xf32>
    %22 = vector.shape_cast %21 : vector<1x1x8x8xf32> to vector<8x8xf32>
    %23 = vector.extract_strided_slice %0 {offsets = [0, 11, 0, 0], sizes = [1, 1, 8, 8], strides = [1, 1, 1, 1]} : vector<1x40x10x8xf32> to vector<1x1x8x8xf32>
    %24 = vector.shape_cast %23 : vector<1x1x8x8xf32> to vector<8x8xf32>
    %25 = vector.extract_strided_slice %0 {offsets = [0, 1, 1, 0], sizes = [1, 1, 8, 8], strides = [1, 1, 1, 1]} : vector<1x40x10x8xf32> to vector<1x1x8x8xf32>
    %26 = vector.shape_cast %25 : vector<1x1x8x8xf32> to vector<8x8xf32>
    %27 = vector.extract_strided_slice %0 {offsets = [0, 11, 1, 0], sizes = [1, 1, 8, 8], strides = [1, 1, 1, 1]} : vector<1x40x10x8xf32> to vector<1x1x8x8xf32>
    %28 = vector.shape_cast %27 : vector<1x1x8x8xf32> to vector<8x8xf32>
    %29 = vector.extract_strided_slice %0 {offsets = [0, 1, 2, 0], sizes = [1, 1, 8, 8], strides = [1, 1, 1, 1]} : vector<1x40x10x8xf32> to vector<1x1x8x8xf32>
    %30 = vector.shape_cast %29 : vector<1x1x8x8xf32> to vector<8x8xf32>
    %31 = vector.extract_strided_slice %0 {offsets = [0, 21, 0, 0], sizes = [1, 1, 8, 8], strides = [1, 1, 1, 1]} : vector<1x40x10x8xf32> to vector<1x1x8x8xf32>
    %32 = vector.shape_cast %31 : vector<1x1x8x8xf32> to vector<8x8xf32>
    %33 = vector.extract_strided_slice %0 {offsets = [0, 31, 0, 0], sizes = [1, 1, 8, 8], strides = [1, 1, 1, 1]} : vector<1x40x10x8xf32> to vector<1x1x8x8xf32>
    %34 = vector.shape_cast %33 : vector<1x1x8x8xf32> to vector<8x8xf32>
    %35 = vector.extract_strided_slice %0 {offsets = [0, 21, 1, 0], sizes = [1, 1, 8, 8], strides = [1, 1, 1, 1]} : vector<1x40x10x8xf32> to vector<1x1x8x8xf32>
    %36 = vector.shape_cast %35 : vector<1x1x8x8xf32> to vector<8x8xf32>
    %37 = vector.extract_strided_slice %0 {offsets = [0, 31, 1, 0], sizes = [1, 1, 8, 8], strides = [1, 1, 1, 1]} : vector<1x40x10x8xf32> to vector<1x1x8x8xf32>
    %38 = vector.shape_cast %37 : vector<1x1x8x8xf32> to vector<8x8xf32>
    %39 = vector.extract_strided_slice %0 {offsets = [0, 21, 2, 0], sizes = [1, 1, 8, 8], strides = [1, 1, 1, 1]} : vector<1x40x10x8xf32> to vector<1x1x8x8xf32>
    %40 = vector.shape_cast %39 : vector<1x1x8x8xf32> to vector<8x8xf32>
    %41 = vector.extract_strided_slice %0 {offsets = [0, 2, 0, 0], sizes = [1, 1, 8, 8], strides = [1, 1, 1, 1]} : vector<1x40x10x8xf32> to vector<1x1x8x8xf32>
    %42 = vector.shape_cast %41 : vector<1x1x8x8xf32> to vector<8x8xf32>
    %43 = vector.extract_strided_slice %0 {offsets = [0, 12, 0, 0], sizes = [1, 1, 8, 8], strides = [1, 1, 1, 1]} : vector<1x40x10x8xf32> to vector<1x1x8x8xf32>
    %44 = vector.shape_cast %43 : vector<1x1x8x8xf32> to vector<8x8xf32>
    %45 = vector.extract_strided_slice %0 {offsets = [0, 2, 1, 0], sizes = [1, 1, 8, 8], strides = [1, 1, 1, 1]} : vector<1x40x10x8xf32> to vector<1x1x8x8xf32>
    %46 = vector.shape_cast %45 : vector<1x1x8x8xf32> to vector<8x8xf32>
    %47 = vector.extract_strided_slice %0 {offsets = [0, 12, 1, 0], sizes = [1, 1, 8, 8], strides = [1, 1, 1, 1]} : vector<1x40x10x8xf32> to vector<1x1x8x8xf32>
    %48 = vector.shape_cast %47 : vector<1x1x8x8xf32> to vector<8x8xf32>
    %49 = vector.extract_strided_slice %0 {offsets = [0, 2, 2, 0], sizes = [1, 1, 8, 8], strides = [1, 1, 1, 1]} : vector<1x40x10x8xf32> to vector<1x1x8x8xf32>
    %50 = vector.shape_cast %49 : vector<1x1x8x8xf32> to vector<8x8xf32>
    %51 = tpu.concatenate %2, %4, %6, %8, %10, %12, %14, %16, %18, %20, %22, %24, %26, %28, %30, %32 in 1 : vector<8x8xf32>, vector<8x8xf32>, vector<8x8xf32>, vector<8x8xf32>, vector<8x8xf32>, vector<8x8xf32>, vector<8x8xf32>, vector<8x8xf32>, vector<8x8xf32>, vector<8x8xf32>, vector<8x8xf32>, vector<8x8xf32>, vector<8x8xf32>, vector<8x8xf32>, vector<8x8xf32>, vector<8x8xf32> -> vector<8x128xf32>
    %52 = tpu.concatenate %34, %36, %38, %40, %42, %44, %46, %48, %50 in 1 : vector<8x8xf32>, vector<8x8xf32>, vector<8x8xf32>, vector<8x8xf32>, vector<8x8xf32>, vector<8x8xf32>, vector<8x8xf32>, vector<8x8xf32>, vector<8x8xf32> -> vector<8x72xf32>
    %53 = tpu.concatenate %51, %52 in 1 : vector<8x128xf32>, vector<8x72xf32> -> vector<8x200xf32>
    %c0_3 = arith.constant 0 : index
    %c0_4 = arith.constant 0 : index
    %54 = vector.load %arg5[%c0_3, %c0_4] : memref<64x200xf32, #tpu.memory_space<vmem>>, vector<8x200xf32>
    tpu.vector_store %arg5[%c0_3, %c0_4], %53 {strides = array<i32>} : memref<64x200xf32, #tpu.memory_space<vmem>>, vector<8x200xf32>,
    %55 = vector.extract_strided_slice %0 {offsets = [0, 1, 0, 0], sizes = [1, 1, 8, 8], strides = [1, 1, 1, 1]} : vector<1x40x10x8xf32> to vector<1x1x8x8xf32>
    %56 = vector.shape_cast %55 : vector<1x1x8x8xf32> to vector<8x8xf32>
    %57 = vector.extract_strided_slice %0 {offsets = [0, 11, 0, 0], sizes = [1, 1, 8, 8], strides = [1, 1, 1, 1]} : vector<1x40x10x8xf32> to vector<1x1x8x8xf32>
    %58 = vector.shape_cast %57 : vector<1x1x8x8xf32> to vector<8x8xf32>
    %59 = vector.extract_strided_slice %0 {offsets = [0, 1, 1, 0], sizes = [1, 1, 8, 8], strides = [1, 1, 1, 1]} : vector<1x40x10x8xf32> to vector<1x1x8x8xf32>
    %60 = vector.shape_cast %59 : vector<1x1x8x8xf32> to vector<8x8xf32>
    %61 = vector.extract_strided_slice %0 {offsets = [0, 11, 1, 0], sizes = [1, 1, 8, 8], strides = [1, 1, 1, 1]} : vector<1x40x10x8xf32> to vector<1x1x8x8xf32>
    %62 = vector.shape_cast %61 : vector<1x1x8x8xf32> to vector<8x8xf32>
    %63 = vector.extract_strided_slice %0 {offsets = [0, 1, 2, 0], sizes = [1, 1, 8, 8], strides = [1, 1, 1, 1]} : vector<1x40x10x8xf32> to vector<1x1x8x8xf32>
    %64 = vector.shape_cast %63 : vector<1x1x8x8xf32> to vector<8x8xf32>
    %65 = vector.extract_strided_slice %0 {offsets = [0, 21, 0, 0], sizes = [1, 1, 8, 8], strides = [1, 1, 1, 1]} : vector<1x40x10x8xf32> to vector<1x1x8x8xf32>
    %66 = vector.shape_cast %65 : vector<1x1x8x8xf32> to vector<8x8xf32>
    %67 = vector.extract_strided_slice %0 {offsets = [0, 31, 0, 0], sizes = [1, 1, 8, 8], strides = [1, 1, 1, 1]} : vector<1x40x10x8xf32> to vector<1x1x8x8xf32>
    %68 = vector.shape_cast %67 : vector<1x1x8x8xf32> to vector<8x8xf32>
    %69 = vector.extract_strided_slice %0 {offsets = [0, 21, 1, 0], sizes = [1, 1, 8, 8], strides = [1, 1, 1, 1]} : vector<1x40x10x8xf32> to vector<1x1x8x8xf32>
    %70 = vector.shape_cast %69 : vector<1x1x8x8xf32> to vector<8x8xf32>
    %71 = vector.extract_strided_slice %0 {offsets = [0, 31, 1, 0], sizes = [1, 1, 8, 8], strides = [1, 1, 1, 1]} : vector<1x40x10x8xf32> to vector<1x1x8x8xf32>
    %72 = vector.shape_cast %71 : vector<1x1x8x8xf32> to vector<8x8xf32>
    %73 = vector.extract_strided_slice %0 {offsets = [0, 21, 2, 0], sizes = [1, 1, 8, 8], strides = [1, 1, 1, 1]} : vector<1x40x10x8xf32> to vector<1x1x8x8xf32>
    %74 = vector.shape_cast %73 : vector<1x1x8x8xf32> to vector<8x8xf32>
    %75 = vector.extract_strided_slice %0 {offsets = [0, 2, 0, 0], sizes = [1, 1, 8, 8], strides = [1, 1, 1, 1]} : vector<1x40x10x8xf32> to vector<1x1x8x8xf32>
    %76 = vector.shape_cast %75 : vector<1x1x8x8xf32> to vector<8x8xf32>
    %77 = vector.extract_strided_slice %0 {offsets = [0, 12, 0, 0], sizes = [1, 1, 8, 8], strides = [1, 1, 1, 1]} : vector<1x40x10x8xf32> to vector<1x1x8x8xf32>
    %78 = vector.shape_cast %77 : vector<1x1x8x8xf32> to vector<8x8xf32>
    %79 = vector.extract_strided_slice %0 {offsets = [0, 2, 1, 0], sizes = [1, 1, 8, 8], strides = [1, 1, 1, 1]} : vector<1x40x10x8xf32> to vector<1x1x8x8xf32>
    %80 = vector.shape_cast %79 : vector<1x1x8x8xf32> to vector<8x8xf32>
    %81 = vector.extract_strided_slice %0 {offsets = [0, 12, 1, 0], sizes = [1, 1, 8, 8], strides = [1, 1, 1, 1]} : vector<1x40x10x8xf32> to vector<1x1x8x8xf32>
    %82 = vector.shape_cast %81 : vector<1x1x8x8xf32> to vector<8x8xf32>
    %83 = vector.extract_strided_slice %0 {offsets = [0, 2, 2, 0], sizes = [1, 1, 8, 8], strides = [1, 1, 1, 1]} : vector<1x40x10x8xf32> to vector<1x1x8x8xf32>
    %84 = vector.shape_cast %83 : vector<1x1x8x8xf32> to vector<8x8xf32>
    %85 = vector.extract_strided_slice %0 {offsets = [0, 22, 0, 0], sizes = [1, 1, 8, 8], strides = [1, 1, 1, 1]} : vector<1x40x10x8xf32> to vector<1x1x8x8xf32>
    %86 = vector.shape_cast %85 : vector<1x1x8x8xf32> to vector<8x8xf32>
    %87 = vector.extract_strided_slice %0 {offsets = [0, 32, 0, 0], sizes = [1, 1, 8, 8], strides = [1, 1, 1, 1]} : vector<1x40x10x8xf32> to vector<1x1x8x8xf32>
    %88 = vector.shape_cast %87 : vector<1x1x8x8xf32> to vector<8x8xf32>
    %89 = vector.extract_strided_slice %0 {offsets = [0, 22, 1, 0], sizes = [1, 1, 8, 8], strides = [1, 1, 1, 1]} : vector<1x40x10x8xf32> to vector<1x1x8x8xf32>
    %90 = vector.shape_cast %89 : vector<1x1x8x8xf32> to vector<8x8xf32>
    %91 = vector.extract_strided_slice %0 {offsets = [0, 32, 1, 0], sizes = [1, 1, 8, 8], strides = [1, 1, 1, 1]} : vector<1x40x10x8xf32> to vector<1x1x8x8xf32>
    %92 = vector.shape_cast %91 : vector<1x1x8x8xf32> to vector<8x8xf32>
    %93 = vector.extract_strided_slice %0 {offsets = [0, 22, 2, 0], sizes = [1, 1, 8, 8], strides = [1, 1, 1, 1]} : vector<1x40x10x8xf32> to vector<1x1x8x8xf32>
    %94 = vector.shape_cast %93 : vector<1x1x8x8xf32> to vector<8x8xf32>
    %95 = vector.extract_strided_slice %0 {offsets = [0, 3, 0, 0], sizes = [1, 1, 8, 8], strides = [1, 1, 1, 1]} : vector<1x40x10x8xf32> to vector<1x1x8x8xf32>
    %96 = vector.shape_cast %95 : vector<1x1x8x8xf32> to vector<8x8xf32>
    %97 = vector.extract_strided_slice %0 {offsets = [0, 13, 0, 0], sizes = [1, 1, 8, 8], strides = [1, 1, 1, 1]} : vector<1x40x10x8xf32> to vector<1x1x8x8xf32>
    %98 = vector.shape_cast %97 : vector<1x1x8x8xf32> to vector<8x8xf32>
    %99 = vector.extract_strided_slice %0 {offsets = [0, 3, 1, 0], sizes = [1, 1, 8, 8], strides = [1, 1, 1, 1]} : vector<1x40x10x8xf32> to vector<1x1x8x8xf32>
    %100 = vector.shape_cast %99 : vector<1x1x8x8xf32> to vector<8x8xf32>
    %101 = vector.extract_strided_slice %0 {offsets = [0, 13, 1, 0], sizes = [1, 1, 8, 8], strides = [1, 1, 1, 1]} : vector<1x40x10x8xf32> to vector<1x1x8x8xf32>
    %102 = vector.shape_cast %101 : vector<1x1x8x8xf32> to vector<8x8xf32>
    %103 = vector.extract_strided_slice %0 {offsets = [0, 3, 2, 0], sizes = [1, 1, 8, 8], strides = [1, 1, 1, 1]} : vector<1x40x10x8xf32> to vector<1x1x8x8xf32>
    %104 = vector.shape_cast %103 : vector<1x1x8x8xf32> to vector<8x8xf32>
    %105 = tpu.concatenate %56, %58, %60, %62, %64, %66, %68, %70, %72, %74, %76, %78, %80, %82, %84, %86 in 1 : vector<8x8xf32>, vector<8x8xf32>, vector<8x8xf32>, vector<8x8xf32>, vector<8x8xf32>, vector<8x8xf32>, vector<8x8xf32>, vector<8x8xf32>, vector<8x8xf32>, vector<8x8xf32>, vector<8x8xf32>, vector<8x8xf32>, vector<8x8xf32>, vector<8x8xf32>, vector<8x8xf32>, vector<8x8xf32> -> vector<8x128xf32>
    %106 = tpu.concatenate %88, %90, %92, %94, %96, %98, %100, %102, %104 in 1 : vector<8x8xf32>, vector<8x8xf32>, vector<8x8xf32>, vector<8x8xf32>, vector<8x8xf32>, vector<8x8xf32>, vector<8x8xf32>, vector<8x8xf32>, vector<8x8xf32> -> vector<8x72xf32>
    %107 = tpu.concatenate %105, %106 in 1 : vector<8x128xf32>, vector<8x72xf32> -> vector<8x200xf32>
    %c8 = arith.constant 8 : index
    %c0_5 = arith.constant 0 : index
    %108 = vector.load %arg5[%c8, %c0_5] : memref<64x200xf32, #tpu.memory_space<vmem>>, vector<8x200xf32>
    tpu.vector_store %arg5[%c8, %c0_5], %107 {strides = array<i32>} : memref<64x200xf32, #tpu.memory_space<vmem>>, vector<8x200xf32>,
    %109 = vector.extract_strided_slice %0 {offsets = [0, 2, 0, 0], sizes = [1, 1, 8, 8], strides = [1, 1, 1, 1]} : vector<1x40x10x8xf32> to vector<1x1x8x8xf32>
    %110 = vector.shape_cast %109 : vector<1x1x8x8xf32> to vector<8x8xf32>
    %111 = vector.extract_strided_slice %0 {offsets = [0, 12, 0, 0], sizes = [1, 1, 8, 8], strides = [1, 1, 1, 1]} : vector<1x40x10x8xf32> to vector<1x1x8x8xf32>
    %112 = vector.shape_cast %111 : vector<1x1x8x8xf32> to vector<8x8xf32>
    %113 = vector.extract_strided_slice %0 {offsets = [0, 2, 1, 0], sizes = [1, 1, 8, 8], strides = [1, 1, 1, 1]} : vector<1x40x10x8xf32> to vector<1x1x8x8xf32>
    %114 = vector.shape_cast %113 : vector<1x1x8x8xf32> to vector<8x8xf32>
    %115 = vector.extract_strided_slice %0 {offsets = [0, 12, 1, 0], sizes = [1, 1, 8, 8], strides = [1, 1, 1, 1]} : vector<1x40x10x8xf32> to vector<1x1x8x8xf32>
    %116 = vector.shape_cast %115 : vector<1x1x8x8xf32> to vector<8x8xf32>
    %117 = vector.extract_strided_slice %0 {offsets = [0, 2, 2, 0], sizes = [1, 1, 8, 8], strides = [1, 1, 1, 1]} : vector<1x40x10x8xf32> to vector<1x1x8x8xf32>
    %118 = vector.shape_cast %117 : vector<1x1x8x8xf32> to vector<8x8xf32>
    %119 = vector.extract_strided_slice %0 {offsets = [0, 22, 0, 0], sizes = [1, 1, 8, 8], strides = [1, 1, 1, 1]} : vector<1x40x10x8xf32> to vector<1x1x8x8xf32>
    %120 = vector.shape_cast %119 : vector<1x1x8x8xf32> to vector<8x8xf32>
    %121 = vector.extract_strided_slice %0 {offsets = [0, 32, 0, 0], sizes = [1, 1, 8, 8], strides = [1, 1, 1, 1]} : vector<1x40x10x8xf32> to vector<1x1x8x8xf32>
    %122 = vector.shape_cast %121 : vector<1x1x8x8xf32> to vector<8x8xf32>
    %123 = vector.extract_strided_slice %0 {offsets = [0, 22, 1, 0], sizes = [1, 1, 8, 8], strides = [1, 1, 1, 1]} : vector<1x40x10x8xf32> to vector<1x1x8x8xf32>
    %124 = vector.shape_cast %123 : vector<1x1x8x8xf32> to vector<8x8xf32>
    %125 = vector.extract_strided_slice %0 {offsets = [0, 32, 1, 0], sizes = [1, 1, 8, 8], strides = [1, 1, 1, 1]} : vector<1x40x10x8xf32> to vector<1x1x8x8xf32>
    %126 = vector.shape_cast %125 : vector<1x1x8x8xf32> to vector<8x8xf32>
    %127 = vector.extract_strided_slice %0 {offsets = [0, 22, 2, 0], sizes = [1, 1, 8, 8], strides = [1, 1, 1, 1]} : vector<1x40x10x8xf32> to vector<1x1x8x8xf32>
    %128 = vector.shape_cast %127 : vector<1x1x8x8xf32> to vector<8x8xf32>
    %129 = vector.extract_strided_slice %0 {offsets = [0, 3, 0, 0], sizes = [1, 1, 8, 8], strides = [1, 1, 1, 1]} : vector<1x40x10x8xf32> to vector<1x1x8x8xf32>
    %130 = vector.shape_cast %129 : vector<1x1x8x8xf32> to vector<8x8xf32>
    %131 = vector.extract_strided_slice %0 {offsets = [0, 13, 0, 0], sizes = [1, 1, 8, 8], strides = [1, 1, 1, 1]} : vector<1x40x10x8xf32> to vector<1x1x8x8xf32>
    %132 = vector.shape_cast %131 : vector<1x1x8x8xf32> to vector<8x8xf32>
    %133 = vector.extract_strided_slice %0 {offsets = [0, 3, 1, 0], sizes = [1, 1, 8, 8], strides = [1, 1, 1, 1]} : vector<1x40x10x8xf32> to vector<1x1x8x8xf32>
    %134 = vector.shape_cast %133 : vector<1x1x8x8xf32> to vector<8x8xf32>
    %135 = vector.extract_strided_slice %0 {offsets = [0, 13, 1, 0], sizes = [1, 1, 8, 8], strides = [1, 1, 1, 1]} : vector<1x40x10x8xf32> to vector<1x1x8x8xf32>
    %136 = vector.shape_cast %135 : vector<1x1x8x8xf32> to vector<8x8xf32>
    %137 = vector.extract_strided_slice %0 {offsets = [0, 3, 2, 0], sizes = [1, 1, 8, 8], strides = [1, 1, 1, 1]} : vector<1x40x10x8xf32> to vector<1x1x8x8xf32>
    %138 = vector.shape_cast %137 : vector<1x1x8x8xf32> to vector<8x8xf32>
    %139 = vector.extract_strided_slice %0 {offsets = [0, 23, 0, 0], sizes = [1, 1, 8, 8], strides = [1, 1, 1, 1]} : vector<1x40x10x8xf32> to vector<1x1x8x8xf32>
    %140 = vector.shape_cast %139 : vector<1x1x8x8xf32> to vector<8x8xf32>
    %141 = vector.extract_strided_slice %0 {offsets = [0, 33, 0, 0], sizes = [1, 1, 8, 8], strides = [1, 1, 1, 1]} : vector<1x40x10x8xf32> to vector<1x1x8x8xf32>
    %142 = vector.shape_cast %141 : vector<1x1x8x8xf32> to vector<8x8xf32>
    %143 = vector.extract_strided_slice %0 {offsets = [0, 23, 1, 0], sizes = [1, 1, 8, 8], strides = [1, 1, 1, 1]} : vector<1x40x10x8xf32> to vector<1x1x8x8xf32>
    %144 = vector.shape_cast %143 : vector<1x1x8x8xf32> to vector<8x8xf32>
    %145 = vector.extract_strided_slice %0 {offsets = [0, 33, 1, 0], sizes = [1, 1, 8, 8], strides = [1, 1, 1, 1]} : vector<1x40x10x8xf32> to vector<1x1x8x8xf32>
    %146 = vector.shape_cast %145 : vector<1x1x8x8xf32> to vector<8x8xf32>
    %147 = vector.extract_strided_slice %0 {offsets = [0, 23, 2, 0], sizes = [1, 1, 8, 8], strides = [1, 1, 1, 1]} : vector<1x40x10x8xf32> to vector<1x1x8x8xf32>
    %148 = vector.shape_cast %147 : vector<1x1x8x8xf32> to vector<8x8xf32>
    %149 = vector.extract_strided_slice %0 {offsets = [0, 4, 0, 0], sizes = [1, 1, 8, 8], strides = [1, 1, 1, 1]} : vector<1x40x10x8xf32> to vector<1x1x8x8xf32>
    %150 = vector.shape_cast %149 : vector<1x1x8x8xf32> to vector<8x8xf32>
    %151 = vector.extract_strided_slice %0 {offsets = [0, 14, 0, 0], sizes = [1, 1, 8, 8], strides = [1, 1, 1, 1]} : vector<1x40x10x8xf32> to vector<1x1x8x8xf32>
    %152 = vector.shape_cast %151 : vector<1x1x8x8xf32> to vector<8x8xf32>
    %153 = vector.extract_strided_slice %0 {offsets = [0, 4, 1, 0], sizes = [1, 1, 8, 8], strides = [1, 1, 1, 1]} : vector<1x40x10x8xf32> to vector<1x1x8x8xf32>
    %154 = vector.shape_cast %153 : vector<1x1x8x8xf32> to vector<8x8xf32>
    %155 = vector.extract_strided_slice %0 {offsets = [0, 14, 1, 0], sizes = [1, 1, 8, 8], strides = [1, 1, 1, 1]} : vector<1x40x10x8xf32> to vector<1x1x8x8xf32>
    %156 = vector.shape_cast %155 : vector<1x1x8x8xf32> to vector<8x8xf32>
    %157 = vector.extract_strided_slice %0 {offsets = [0, 4, 2, 0], sizes = [1, 1, 8, 8], strides = [1, 1, 1, 1]} : vector<1x40x10x8xf32> to vector<1x1x8x8xf32>
    %158 = vector.shape_cast %157 : vector<1x1x8x8xf32> to vector<8x8xf32>
    %159 = tpu.concatenate %110, %112, %114, %116, %118, %120, %122, %124, %126, %128, %130, %132, %134, %136, %138, %140 in 1 : vector<8x8xf32>, vector<8x8xf32>, vector<8x8xf32>, vector<8x8xf32>, vector<8x8xf32>, vector<8x8xf32>, vector<8x8xf32>, vector<8x8xf32>, vector<8x8xf32>, vector<8x8xf32>, vector<8x8xf32>, vector<8x8xf32>, vector<8x8xf32>, vector<8x8xf32>, vector<8x8xf32>, vector<8x8xf32> -> vector<8x128xf32>
    %160 = tpu.concatenate %142, %144, %146, %148, %150, %152, %154, %156, %158 in 1 : vector<8x8xf32>, vector<8x8xf32>, vector<8x8xf32>, vector<8x8xf32>, vector<8x8xf32>, vector<8x8xf32>, vector<8x8xf32>, vector<8x8xf32>, vector<8x8xf32> -> vector<8x72xf32>
    %161 = tpu.concatenate %159, %160 in 1 : vector<8x128xf32>, vector<8x72xf32> -> vector<8x200xf32>
    %c16 = arith.constant 16 : index
    %c0_6 = arith.constant 0 : index
    %162 = vector.load %arg5[%c16, %c0_6] : memref<64x200xf32, #tpu.memory_space<vmem>>, vector<8x200xf32>
    tpu.vector_store %arg5[%c16, %c0_6], %161 {strides = array<i32>} : memref<64x200xf32, #tpu.memory_space<vmem>>, vector<8x200xf32>,
    %163 = vector.extract_strided_slice %0 {offsets = [0, 3, 0, 0], sizes = [1, 1, 8, 8], strides = [1, 1, 1, 1]} : vector<1x40x10x8xf32> to vector<1x1x8x8xf32>
    %164 = vector.shape_cast %163 : vector<1x1x8x8xf32> to vector<8x8xf32>
    %165 = vector.extract_strided_slice %0 {offsets = [0, 13, 0, 0], sizes = [1, 1, 8, 8], strides = [1, 1, 1, 1]} : vector<1x40x10x8xf32> to vector<1x1x8x8xf32>
    %166 = vector.shape_cast %165 : vector<1x1x8x8xf32> to vector<8x8xf32>
    %167 = vector.extract_strided_slice %0 {offsets = [0, 3, 1, 0], sizes = [1, 1, 8, 8], strides = [1, 1, 1, 1]} : vector<1x40x10x8xf32> to vector<1x1x8x8xf32>
    %168 = vector.shape_cast %167 : vector<1x1x8x8xf32> to vector<8x8xf32>
    %169 = vector.extract_strided_slice %0 {offsets = [0, 13, 1, 0], sizes = [1, 1, 8, 8], strides = [1, 1, 1, 1]} : vector<1x40x10x8xf32> to vector<1x1x8x8xf32>
    %170 = vector.shape_cast %169 : vector<1x1x8x8xf32> to vector<8x8xf32>
    %171 = vector.extract_strided_slice %0 {offsets = [0, 3, 2, 0], sizes = [1, 1, 8, 8], strides = [1, 1, 1, 1]} : vector<1x40x10x8xf32> to vector<1x1x8x8xf32>
    %172 = vector.shape_cast %171 : vector<1x1x8x8xf32> to vector<8x8xf32>
    %173 = vector.extract_strided_slice %0 {offsets = [0, 23, 0, 0], sizes = [1, 1, 8, 8], strides = [1, 1, 1, 1]} : vector<1x40x10x8xf32> to vector<1x1x8x8xf32>
    %174 = vector.shape_cast %173 : vector<1x1x8x8xf32> to vector<8x8xf32>
    %175 = vector.extract_strided_slice %0 {offsets = [0, 33, 0, 0], sizes = [1, 1, 8, 8], strides = [1, 1, 1, 1]} : vector<1x40x10x8xf32> to vector<1x1x8x8xf32>
    %176 = vector.shape_cast %175 : vector<1x1x8x8xf32> to vector<8x8xf32>
    %177 = vector.extract_strided_slice %0 {offsets = [0, 23, 1, 0], sizes = [1, 1, 8, 8], strides = [1, 1, 1, 1]} : vector<1x40x10x8xf32> to vector<1x1x8x8xf32>
    %178 = vector.shape_cast %177 : vector<1x1x8x8xf32> to vector<8x8xf32>
    %179 = vector.extract_strided_slice %0 {offsets = [0, 33, 1, 0], sizes = [1, 1, 8, 8], strides = [1, 1, 1, 1]} : vector<1x40x10x8xf32> to vector<1x1x8x8xf32>
    %180 = vector.shape_cast %179 : vector<1x1x8x8xf32> to vector<8x8xf32>
    %181 = vector.extract_strided_slice %0 {offsets = [0, 23, 2, 0], sizes = [1, 1, 8, 8], strides = [1, 1, 1, 1]} : vector<1x40x10x8xf32> to vector<1x1x8x8xf32>
    %182 = vector.shape_cast %181 : vector<1x1x8x8xf32> to vector<8x8xf32>
    %183 = vector.extract_strided_slice %0 {offsets = [0, 4, 0, 0], sizes = [1, 1, 8, 8], strides = [1, 1, 1, 1]} : vector<1x40x10x8xf32> to vector<1x1x8x8xf32>
    %184 = vector.shape_cast %183 : vector<1x1x8x8xf32> to vector<8x8xf32>
    %185 = vector.extract_strided_slice %0 {offsets = [0, 14, 0, 0], sizes = [1, 1, 8, 8], strides = [1, 1, 1, 1]} : vector<1x40x10x8xf32> to vector<1x1x8x8xf32>
    %186 = vector.shape_cast %185 : vector<1x1x8x8xf32> to vector<8x8xf32>
    %187 = vector.extract_strided_slice %0 {offsets = [0, 4, 1, 0], sizes = [1, 1, 8, 8], strides = [1, 1, 1, 1]} : vector<1x40x10x8xf32> to vector<1x1x8x8xf32>
    %188 = vector.shape_cast %187 : vector<1x1x8x8xf32> to vector<8x8xf32>
    %189 = vector.extract_strided_slice %0 {offsets = [0, 14, 1, 0], sizes = [1, 1, 8, 8], strides = [1, 1, 1, 1]} : vector<1x40x10x8xf32> to vector<1x1x8x8xf32>
    %190 = vector.shape_cast %189 : vector<1x1x8x8xf32> to vector<8x8xf32>
    %191 = vector.extract_strided_slice %0 {offsets = [0, 4, 2, 0], sizes = [1, 1, 8, 8], strides = [1, 1, 1, 1]} : vector<1x40x10x8xf32> to vector<1x1x8x8xf32>
    %192 = vector.shape_cast %191 : vector<1x1x8x8xf32> to vector<8x8xf32>
    %193 = vector.extract_strided_slice %0 {offsets = [0, 24, 0, 0], sizes = [1, 1, 8, 8], strides = [1, 1, 1, 1]} : vector<1x40x10x8xf32> to vector<1x1x8x8xf32>
    %194 = vector.shape_cast %193 : vector<1x1x8x8xf32> to vector<8x8xf32>
    %195 = vector.extract_strided_slice %0 {offsets = [0, 34, 0, 0], sizes = [1, 1, 8, 8], strides = [1, 1, 1, 1]} : vector<1x40x10x8xf32> to vector<1x1x8x8xf32>
    %196 = vector.shape_cast %195 : vector<1x1x8x8xf32> to vector<8x8xf32>
    %197 = vector.extract_strided_slice %0 {offsets = [0, 24, 1, 0], sizes = [1, 1, 8, 8], strides = [1, 1, 1, 1]} : vector<1x40x10x8xf32> to vector<1x1x8x8xf32>
    %198 = vector.shape_cast %197 : vector<1x1x8x8xf32> to vector<8x8xf32>
    %199 = vector.extract_strided_slice %0 {offsets = [0, 34, 1, 0], sizes = [1, 1, 8, 8], strides = [1, 1, 1, 1]} : vector<1x40x10x8xf32> to vector<1x1x8x8xf32>
    %200 = vector.shape_cast %199 : vector<1x1x8x8xf32> to vector<8x8xf32>
    %201 = vector.extract_strided_slice %0 {offsets = [0, 24, 2, 0], sizes = [1, 1, 8, 8], strides = [1, 1, 1, 1]} : vector<1x40x10x8xf32> to vector<1x1x8x8xf32>
    %202 = vector.shape_cast %201 : vector<1x1x8x8xf32> to vector<8x8xf32>
    %203 = vector.extract_strided_slice %0 {offsets = [0, 5, 0, 0], sizes = [1, 1, 8, 8], strides = [1, 1, 1, 1]} : vector<1x40x10x8xf32> to vector<1x1x8x8xf32>
    %204 = vector.shape_cast %203 : vector<1x1x8x8xf32> to vector<8x8xf32>
    %205 = vector.extract_strided_slice %0 {offsets = [0, 15, 0, 0], sizes = [1, 1, 8, 8], strides = [1, 1, 1, 1]} : vector<1x40x10x8xf32> to vector<1x1x8x8xf32>
    %206 = vector.shape_cast %205 : vector<1x1x8x8xf32> to vector<8x8xf32>
    %207 = vector.extract_strided_slice %0 {offsets = [0, 5, 1, 0], sizes = [1, 1, 8, 8], strides = [1, 1, 1, 1]} : vector<1x40x10x8xf32> to vector<1x1x8x8xf32>
    %208 = vector.shape_cast %207 : vector<1x1x8x8xf32> to vector<8x8xf32>
    %209 = vector.extract_strided_slice %0 {offsets = [0, 15, 1, 0], sizes = [1, 1, 8, 8], strides = [1, 1, 1, 1]} : vector<1x40x10x8xf32> to vector<1x1x8x8xf32>
    %210 = vector.shape_cast %209 : vector<1x1x8x8xf32> to vector<8x8xf32>
    %211 = vector.extract_strided_slice %0 {offsets = [0, 5, 2, 0], sizes = [1, 1, 8, 8], strides = [1, 1, 1, 1]} : vector<1x40x10x8xf32> to vector<1x1x8x8xf32>
    %212 = vector.shape_cast %211 : vector<1x1x8x8xf32> to vector<8x8xf32>
    %213 = tpu.concatenate %164, %166, %168, %170, %172, %174, %176, %178, %180, %182, %184, %186, %188, %190, %192, %194 in 1 : vector<8x8xf32>, vector<8x8xf32>, vector<8x8xf32>, vector<8x8xf32>, vector<8x8xf32>, vector<8x8xf32>, vector<8x8xf32>, vector<8x8xf32>, vector<8x8xf32>, vector<8x8xf32>, vector<8x8xf32>, vector<8x8xf32>, vector<8x8xf32>, vector<8x8xf32>, vector<8x8xf32>, vector<8x8xf32> -> vector<8x128xf32>
    %214 = tpu.concatenate %196, %198, %200, %202, %204, %206, %208, %210, %212 in 1 : vector<8x8xf32>, vector<8x8xf32>, vector<8x8xf32>, vector<8x8xf32>, vector<8x8xf32>, vector<8x8xf32>, vector<8x8xf32>, vector<8x8xf32>, vector<8x8xf32> -> vector<8x72xf32>
    %215 = tpu.concatenate %213, %214 in 1 : vector<8x128xf32>, vector<8x72xf32> -> vector<8x200xf32>
    %c24 = arith.constant 24 : index
    %c0_7 = arith.constant 0 : index
    %216 = vector.load %arg5[%c24, %c0_7] : memref<64x200xf32, #tpu.memory_space<vmem>>, vector<8x200xf32>
    tpu.vector_store %arg5[%c24, %c0_7], %215 {strides = array<i32>} : memref<64x200xf32, #tpu.memory_space<vmem>>, vector<8x200xf32>,
    %217 = vector.extract_strided_slice %0 {offsets = [0, 4, 0, 0], sizes = [1, 1, 8, 8], strides = [1, 1, 1, 1]} : vector<1x40x10x8xf32> to vector<1x1x8x8xf32>
    %218 = vector.shape_cast %217 : vector<1x1x8x8xf32> to vector<8x8xf32>
    %219 = vector.extract_strided_slice %0 {offsets = [0, 14, 0, 0], sizes = [1, 1, 8, 8], strides = [1, 1, 1, 1]} : vector<1x40x10x8xf32> to vector<1x1x8x8xf32>
    %220 = vector.shape_cast %219 : vector<1x1x8x8xf32> to vector<8x8xf32>
    %221 = vector.extract_strided_slice %0 {offsets = [0, 4, 1, 0], sizes = [1, 1, 8, 8], strides = [1, 1, 1, 1]} : vector<1x40x10x8xf32> to vector<1x1x8x8xf32>
    %222 = vector.shape_cast %221 : vector<1x1x8x8xf32> to vector<8x8xf32>
    %223 = vector.extract_strided_slice %0 {offsets = [0, 14, 1, 0], sizes = [1, 1, 8, 8], strides = [1, 1, 1, 1]} : vector<1x40x10x8xf32> to vector<1x1x8x8xf32>
    %224 = vector.shape_cast %223 : vector<1x1x8x8xf32> to vector<8x8xf32>
    %225 = vector.extract_strided_slice %0 {offsets = [0, 4, 2, 0], sizes = [1, 1, 8, 8], strides = [1, 1, 1, 1]} : vector<1x40x10x8xf32> to vector<1x1x8x8xf32>
    %226 = vector.shape_cast %225 : vector<1x1x8x8xf32> to vector<8x8xf32>
    %227 = vector.extract_strided_slice %0 {offsets = [0, 24, 0, 0], sizes = [1, 1, 8, 8], strides = [1, 1, 1, 1]} : vector<1x40x10x8xf32> to vector<1x1x8x8xf32>
    %228 = vector.shape_cast %227 : vector<1x1x8x8xf32> to vector<8x8xf32>
    %229 = vector.extract_strided_slice %0 {offsets = [0, 34, 0, 0], sizes = [1, 1, 8, 8], strides = [1, 1, 1, 1]} : vector<1x40x10x8xf32> to vector<1x1x8x8xf32>
    %230 = vector.shape_cast %229 : vector<1x1x8x8xf32> to vector<8x8xf32>
    %231 = vector.extract_strided_slice %0 {offsets = [0, 24, 1, 0], sizes = [1, 1, 8, 8], strides = [1, 1, 1, 1]} : vector<1x40x10x8xf32> to vector<1x1x8x8xf32>
    %232 = vector.shape_cast %231 : vector<1x1x8x8xf32> to vector<8x8xf32>
    %233 = vector.extract_strided_slice %0 {offsets = [0, 34, 1, 0], sizes = [1, 1, 8, 8], strides = [1, 1, 1, 1]} : vector<1x40x10x8xf32> to vector<1x1x8x8xf32>
    %234 = vector.shape_cast %233 : vector<1x1x8x8xf32> to vector<8x8xf32>
    %235 = vector.extract_strided_slice %0 {offsets = [0, 24, 2, 0], sizes = [1, 1, 8, 8], strides = [1, 1, 1, 1]} : vector<1x40x10x8xf32> to vector<1x1x8x8xf32>
    %236 = vector.shape_cast %235 : vector<1x1x8x8xf32> to vector<8x8xf32>
    %237 = vector.extract_strided_slice %0 {offsets = [0, 5, 0, 0], sizes = [1, 1, 8, 8], strides = [1, 1, 1, 1]} : vector<1x40x10x8xf32> to vector<1x1x8x8xf32>
    %238 = vector.shape_cast %237 : vector<1x1x8x8xf32> to vector<8x8xf32>
    %239 = vector.extract_strided_slice %0 {offsets = [0, 15, 0, 0], sizes = [1, 1, 8, 8], strides = [1, 1, 1, 1]} : vector<1x40x10x8xf32> to vector<1x1x8x8xf32>
    %240 = vector.shape_cast %239 : vector<1x1x8x8xf32> to vector<8x8xf32>
    %241 = vector.extract_strided_slice %0 {offsets = [0, 5, 1, 0], sizes = [1, 1, 8, 8], strides = [1, 1, 1, 1]} : vector<1x40x10x8xf32> to vector<1x1x8x8xf32>
    %242 = vector.shape_cast %241 : vector<1x1x8x8xf32> to vector<8x8xf32>
    %243 = vector.extract_strided_slice %0 {offsets = [0, 15, 1, 0], sizes = [1, 1, 8, 8], strides = [1, 1, 1, 1]} : vector<1x40x10x8xf32> to vector<1x1x8x8xf32>
    %244 = vector.shape_cast %243 : vector<1x1x8x8xf32> to vector<8x8xf32>
    %245 = vector.extract_strided_slice %0 {offsets = [0, 5, 2, 0], sizes = [1, 1, 8, 8], strides = [1, 1, 1, 1]} : vector<1x40x10x8xf32> to vector<1x1x8x8xf32>
    %246 = vector.shape_cast %245 : vector<1x1x8x8xf32> to vector<8x8xf32>
    %247 = vector.extract_strided_slice %0 {offsets = [0, 25, 0, 0], sizes = [1, 1, 8, 8], strides = [1, 1, 1, 1]} : vector<1x40x10x8xf32> to vector<1x1x8x8xf32>
    %248 = vector.shape_cast %247 : vector<1x1x8x8xf32> to vector<8x8xf32>
    %249 = vector.extract_strided_slice %0 {offsets = [0, 35, 0, 0], sizes = [1, 1, 8, 8], strides = [1, 1, 1, 1]} : vector<1x40x10x8xf32> to vector<1x1x8x8xf32>
    %250 = vector.shape_cast %249 : vector<1x1x8x8xf32> to vector<8x8xf32>
    %251 = vector.extract_strided_slice %0 {offsets = [0, 25, 1, 0], sizes = [1, 1, 8, 8], strides = [1, 1, 1, 1]} : vector<1x40x10x8xf32> to vector<1x1x8x8xf32>
    %252 = vector.shape_cast %251 : vector<1x1x8x8xf32> to vector<8x8xf32>
    %253 = vector.extract_strided_slice %0 {offsets = [0, 35, 1, 0], sizes = [1, 1, 8, 8], strides = [1, 1, 1, 1]} : vector<1x40x10x8xf32> to vector<1x1x8x8xf32>
    %254 = vector.shape_cast %253 : vector<1x1x8x8xf32> to vector<8x8xf32>
    %255 = vector.extract_strided_slice %0 {offsets = [0, 25, 2, 0], sizes = [1, 1, 8, 8], strides = [1, 1, 1, 1]} : vector<1x40x10x8xf32> to vector<1x1x8x8xf32>
    %256 = vector.shape_cast %255 : vector<1x1x8x8xf32> to vector<8x8xf32>
    %257 = vector.extract_strided_slice %0 {offsets = [0, 6, 0, 0], sizes = [1, 1, 8, 8], strides = [1, 1, 1, 1]} : vector<1x40x10x8xf32> to vector<1x1x8x8xf32>
    %258 = vector.shape_cast %257 : vector<1x1x8x8xf32> to vector<8x8xf32>
    %259 = vector.extract_strided_slice %0 {offsets = [0, 16, 0, 0], sizes = [1, 1, 8, 8], strides = [1, 1, 1, 1]} : vector<1x40x10x8xf32> to vector<1x1x8x8xf32>
    %260 = vector.shape_cast %259 : vector<1x1x8x8xf32> to vector<8x8xf32>
    %261 = vector.extract_strided_slice %0 {offsets = [0, 6, 1, 0], sizes = [1, 1, 8, 8], strides = [1, 1, 1, 1]} : vector<1x40x10x8xf32> to vector<1x1x8x8xf32>
    %262 = vector.shape_cast %261 : vector<1x1x8x8xf32> to vector<8x8xf32>
    %263 = vector.extract_strided_slice %0 {offsets = [0, 16, 1, 0], sizes = [1, 1, 8, 8], strides = [1, 1, 1, 1]} : vector<1x40x10x8xf32> to vector<1x1x8x8xf32>
    %264 = vector.shape_cast %263 : vector<1x1x8x8xf32> to vector<8x8xf32>
    %265 = vector.extract_strided_slice %0 {offsets = [0, 6, 2, 0], sizes = [1, 1, 8, 8], strides = [1, 1, 1, 1]} : vector<1x40x10x8xf32> to vector<1x1x8x8xf32>
    %266 = vector.shape_cast %265 : vector<1x1x8x8xf32> to vector<8x8xf32>
    %267 = tpu.concatenate %218, %220, %222, %224, %226, %228, %230, %232, %234, %236, %238, %240, %242, %244, %246, %248 in 1 : vector<8x8xf32>, vector<8x8xf32>, vector<8x8xf32>, vector<8x8xf32>, vector<8x8xf32>, vector<8x8xf32>, vector<8x8xf32>, vector<8x8xf32>, vector<8x8xf32>, vector<8x8xf32>, vector<8x8xf32>, vector<8x8xf32>, vector<8x8xf32>, vector<8x8xf32>, vector<8x8xf32>, vector<8x8xf32> -> vector<8x128xf32>
    %268 = tpu.concatenate %250, %252, %254, %256, %258, %260, %262, %264, %266 in 1 : vector<8x8xf32>, vector<8x8xf32>, vector<8x8xf32>, vector<8x8xf32>, vector<8x8xf32>, vector<8x8xf32>, vector<8x8xf32>, vector<8x8xf32>, vector<8x8xf32> -> vector<8x72xf32>
    %269 = tpu.concatenate %267, %268 in 1 : vector<8x128xf32>, vector<8x72xf32> -> vector<8x200xf32>
    %c32 = arith.constant 32 : index
    %c0_8 = arith.constant 0 : index
    %270 = vector.load %arg5[%c32, %c0_8] : memref<64x200xf32, #tpu.memory_space<vmem>>, vector<8x200xf32>
    tpu.vector_store %arg5[%c32, %c0_8], %269 {strides = array<i32>} : memref<64x200xf32, #tpu.memory_space<vmem>>, vector<8x200xf32>,
    %271 = vector.extract_strided_slice %0 {offsets = [0, 5, 0, 0], sizes = [1, 1, 8, 8], strides = [1, 1, 1, 1]} : vector<1x40x10x8xf32> to vector<1x1x8x8xf32>
    %272 = vector.shape_cast %271 : vector<1x1x8x8xf32> to vector<8x8xf32>
    %273 = vector.extract_strided_slice %0 {offsets = [0, 15, 0, 0], sizes = [1, 1, 8, 8], strides = [1, 1, 1, 1]} : vector<1x40x10x8xf32> to vector<1x1x8x8xf32>
    %274 = vector.shape_cast %273 : vector<1x1x8x8xf32> to vector<8x8xf32>
    %275 = vector.extract_strided_slice %0 {offsets = [0, 5, 1, 0], sizes = [1, 1, 8, 8], strides = [1, 1, 1, 1]} : vector<1x40x10x8xf32> to vector<1x1x8x8xf32>
    %276 = vector.shape_cast %275 : vector<1x1x8x8xf32> to vector<8x8xf32>
    %277 = vector.extract_strided_slice %0 {offsets = [0, 15, 1, 0], sizes = [1, 1, 8, 8], strides = [1, 1, 1, 1]} : vector<1x40x10x8xf32> to vector<1x1x8x8xf32>
    %278 = vector.shape_cast %277 : vector<1x1x8x8xf32> to vector<8x8xf32>
    %279 = vector.extract_strided_slice %0 {offsets = [0, 5, 2, 0], sizes = [1, 1, 8, 8], strides = [1, 1, 1, 1]} : vector<1x40x10x8xf32> to vector<1x1x8x8xf32>
    %280 = vector.shape_cast %279 : vector<1x1x8x8xf32> to vector<8x8xf32>
    %281 = vector.extract_strided_slice %0 {offsets = [0, 25, 0, 0], sizes = [1, 1, 8, 8], strides = [1, 1, 1, 1]} : vector<1x40x10x8xf32> to vector<1x1x8x8xf32>
    %282 = vector.shape_cast %281 : vector<1x1x8x8xf32> to vector<8x8xf32>
    %283 = vector.extract_strided_slice %0 {offsets = [0, 35, 0, 0], sizes = [1, 1, 8, 8], strides = [1, 1, 1, 1]} : vector<1x40x10x8xf32> to vector<1x1x8x8xf32>
    %284 = vector.shape_cast %283 : vector<1x1x8x8xf32> to vector<8x8xf32>
    %285 = vector.extract_strided_slice %0 {offsets = [0, 25, 1, 0], sizes = [1, 1, 8, 8], strides = [1, 1, 1, 1]} : vector<1x40x10x8xf32> to vector<1x1x8x8xf32>
    %286 = vector.shape_cast %285 : vector<1x1x8x8xf32> to vector<8x8xf32>
    %287 = vector.extract_strided_slice %0 {offsets = [0, 35, 1, 0], sizes = [1, 1, 8, 8], strides = [1, 1, 1, 1]} : vector<1x40x10x8xf32> to vector<1x1x8x8xf32>
    %288 = vector.shape_cast %287 : vector<1x1x8x8xf32> to vector<8x8xf32>
    %289 = vector.extract_strided_slice %0 {offsets = [0, 25, 2, 0], sizes = [1, 1, 8, 8], strides = [1, 1, 1, 1]} : vector<1x40x10x8xf32> to vector<1x1x8x8xf32>
    %290 = vector.shape_cast %289 : vector<1x1x8x8xf32> to vector<8x8xf32>
    %291 = vector.extract_strided_slice %0 {offsets = [0, 6, 0, 0], sizes = [1, 1, 8, 8], strides = [1, 1, 1, 1]} : vector<1x40x10x8xf32> to vector<1x1x8x8xf32>
    %292 = vector.shape_cast %291 : vector<1x1x8x8xf32> to vector<8x8xf32>
    %293 = vector.extract_strided_slice %0 {offsets = [0, 16, 0, 0], sizes = [1, 1, 8, 8], strides = [1, 1, 1, 1]} : vector<1x40x10x8xf32> to vector<1x1x8x8xf32>
    %294 = vector.shape_cast %293 : vector<1x1x8x8xf32> to vector<8x8xf32>
    %295 = vector.extract_strided_slice %0 {offsets = [0, 6, 1, 0], sizes = [1, 1, 8, 8], strides = [1, 1, 1, 1]} : vector<1x40x10x8xf32> to vector<1x1x8x8xf32>
    %296 = vector.shape_cast %295 : vector<1x1x8x8xf32> to vector<8x8xf32>
    %297 = vector.extract_strided_slice %0 {offsets = [0, 16, 1, 0], sizes = [1, 1, 8, 8], strides = [1, 1, 1, 1]} : vector<1x40x10x8xf32> to vector<1x1x8x8xf32>
    %298 = vector.shape_cast %297 : vector<1x1x8x8xf32> to vector<8x8xf32>
    %299 = vector.extract_strided_slice %0 {offsets = [0, 6, 2, 0], sizes = [1, 1, 8, 8], strides = [1, 1, 1, 1]} : vector<1x40x10x8xf32> to vector<1x1x8x8xf32>
    %300 = vector.shape_cast %299 : vector<1x1x8x8xf32> to vector<8x8xf32>
    %301 = vector.extract_strided_slice %0 {offsets = [0, 26, 0, 0], sizes = [1, 1, 8, 8], strides = [1, 1, 1, 1]} : vector<1x40x10x8xf32> to vector<1x1x8x8xf32>
    %302 = vector.shape_cast %301 : vector<1x1x8x8xf32> to vector<8x8xf32>
    %303 = vector.extract_strided_slice %0 {offsets = [0, 36, 0, 0], sizes = [1, 1, 8, 8], strides = [1, 1, 1, 1]} : vector<1x40x10x8xf32> to vector<1x1x8x8xf32>
    %304 = vector.shape_cast %303 : vector<1x1x8x8xf32> to vector<8x8xf32>
    %305 = vector.extract_strided_slice %0 {offsets = [0, 26, 1, 0], sizes = [1, 1, 8, 8], strides = [1, 1, 1, 1]} : vector<1x40x10x8xf32> to vector<1x1x8x8xf32>
    %306 = vector.shape_cast %305 : vector<1x1x8x8xf32> to vector<8x8xf32>
    %307 = vector.extract_strided_slice %0 {offsets = [0, 36, 1, 0], sizes = [1, 1, 8, 8], strides = [1, 1, 1, 1]} : vector<1x40x10x8xf32> to vector<1x1x8x8xf32>
    %308 = vector.shape_cast %307 : vector<1x1x8x8xf32> to vector<8x8xf32>
    %309 = vector.extract_strided_slice %0 {offsets = [0, 26, 2, 0], sizes = [1, 1, 8, 8], strides = [1, 1, 1, 1]} : vector<1x40x10x8xf32> to vector<1x1x8x8xf32>
    %310 = vector.shape_cast %309 : vector<1x1x8x8xf32> to vector<8x8xf32>
    %311 = vector.extract_strided_slice %0 {offsets = [0, 7, 0, 0], sizes = [1, 1, 8, 8], strides = [1, 1, 1, 1]} : vector<1x40x10x8xf32> to vector<1x1x8x8xf32>
    %312 = vector.shape_cast %311 : vector<1x1x8x8xf32> to vector<8x8xf32>
    %313 = vector.extract_strided_slice %0 {offsets = [0, 17, 0, 0], sizes = [1, 1, 8, 8], strides = [1, 1, 1, 1]} : vector<1x40x10x8xf32> to vector<1x1x8x8xf32>
    %314 = vector.shape_cast %313 : vector<1x1x8x8xf32> to vector<8x8xf32>
    %315 = vector.extract_strided_slice %0 {offsets = [0, 7, 1, 0], sizes = [1, 1, 8, 8], strides = [1, 1, 1, 1]} : vector<1x40x10x8xf32> to vector<1x1x8x8xf32>
    %316 = vector.shape_cast %315 : vector<1x1x8x8xf32> to vector<8x8xf32>
    %317 = vector.extract_strided_slice %0 {offsets = [0, 17, 1, 0], sizes = [1, 1, 8, 8], strides = [1, 1, 1, 1]} : vector<1x40x10x8xf32> to vector<1x1x8x8xf32>
    %318 = vector.shape_cast %317 : vector<1x1x8x8xf32> to vector<8x8xf32>
    %319 = vector.extract_strided_slice %0 {offsets = [0, 7, 2, 0], sizes = [1, 1, 8, 8], strides = [1, 1, 1, 1]} : vector<1x40x10x8xf32> to vector<1x1x8x8xf32>
    %320 = vector.shape_cast %319 : vector<1x1x8x8xf32> to vector<8x8xf32>
    %321 = tpu.concatenate %272, %274, %276, %278, %280, %282, %284, %286, %288, %290, %292, %294, %296, %298, %300, %302 in 1 : vector<8x8xf32>, vector<8x8xf32>, vector<8x8xf32>, vector<8x8xf32>, vector<8x8xf32>, vector<8x8xf32>, vector<8x8xf32>, vector<8x8xf32>, vector<8x8xf32>, vector<8x8xf32>, vector<8x8xf32>, vector<8x8xf32>, vector<8x8xf32>, vector<8x8xf32>, vector<8x8xf32>, vector<8x8xf32> -> vector<8x128xf32>
    %322 = tpu.concatenate %304, %306, %308, %310, %312, %314, %316, %318, %320 in 1 : vector<8x8xf32>, vector<8x8xf32>, vector<8x8xf32>, vector<8x8xf32>, vector<8x8xf32>, vector<8x8xf32>, vector<8x8xf32>, vector<8x8xf32>, vector<8x8xf32> -> vector<8x72xf32>
    %323 = tpu.concatenate %321, %322 in 1 : vector<8x128xf32>, vector<8x72xf32> -> vector<8x200xf32>
    %c40 = arith.constant 40 : index
    %c0_9 = arith.constant 0 : index
    %324 = vector.load %arg5[%c40, %c0_9] : memref<64x200xf32, #tpu.memory_space<vmem>>, vector<8x200xf32>
    tpu.vector_store %arg5[%c40, %c0_9], %323 {strides = array<i32>} : memref<64x200xf32, #tpu.memory_space<vmem>>, vector<8x200xf32>,
    %325 = vector.extract_strided_slice %0 {offsets = [0, 6, 0, 0], sizes = [1, 1, 8, 8], strides = [1, 1, 1, 1]} : vector<1x40x10x8xf32> to vector<1x1x8x8xf32>
    %326 = vector.shape_cast %325 : vector<1x1x8x8xf32> to vector<8x8xf32>
    %327 = vector.extract_strided_slice %0 {offsets = [0, 16, 0, 0], sizes = [1, 1, 8, 8], strides = [1, 1, 1, 1]} : vector<1x40x10x8xf32> to vector<1x1x8x8xf32>
    %328 = vector.shape_cast %327 : vector<1x1x8x8xf32> to vector<8x8xf32>
    %329 = vector.extract_strided_slice %0 {offsets = [0, 6, 1, 0], sizes = [1, 1, 8, 8], strides = [1, 1, 1, 1]} : vector<1x40x10x8xf32> to vector<1x1x8x8xf32>
    %330 = vector.shape_cast %329 : vector<1x1x8x8xf32> to vector<8x8xf32>
    %331 = vector.extract_strided_slice %0 {offsets = [0, 16, 1, 0], sizes = [1, 1, 8, 8], strides = [1, 1, 1, 1]} : vector<1x40x10x8xf32> to vector<1x1x8x8xf32>
    %332 = vector.shape_cast %331 : vector<1x1x8x8xf32> to vector<8x8xf32>
    %333 = vector.extract_strided_slice %0 {offsets = [0, 6, 2, 0], sizes = [1, 1, 8, 8], strides = [1, 1, 1, 1]} : vector<1x40x10x8xf32> to vector<1x1x8x8xf32>
    %334 = vector.shape_cast %333 : vector<1x1x8x8xf32> to vector<8x8xf32>
    %335 = vector.extract_strided_slice %0 {offsets = [0, 26, 0, 0], sizes = [1, 1, 8, 8], strides = [1, 1, 1, 1]} : vector<1x40x10x8xf32> to vector<1x1x8x8xf32>
    %336 = vector.shape_cast %335 : vector<1x1x8x8xf32> to vector<8x8xf32>
    %337 = vector.extract_strided_slice %0 {offsets = [0, 36, 0, 0], sizes = [1, 1, 8, 8], strides = [1, 1, 1, 1]} : vector<1x40x10x8xf32> to vector<1x1x8x8xf32>
    %338 = vector.shape_cast %337 : vector<1x1x8x8xf32> to vector<8x8xf32>
    %339 = vector.extract_strided_slice %0 {offsets = [0, 26, 1, 0], sizes = [1, 1, 8, 8], strides = [1, 1, 1, 1]} : vector<1x40x10x8xf32> to vector<1x1x8x8xf32>
    %340 = vector.shape_cast %339 : vector<1x1x8x8xf32> to vector<8x8xf32>
    %341 = vector.extract_strided_slice %0 {offsets = [0, 36, 1, 0], sizes = [1, 1, 8, 8], strides = [1, 1, 1, 1]} : vector<1x40x10x8xf32> to vector<1x1x8x8xf32>
    %342 = vector.shape_cast %341 : vector<1x1x8x8xf32> to vector<8x8xf32>
    %343 = vector.extract_strided_slice %0 {offsets = [0, 26, 2, 0], sizes = [1, 1, 8, 8], strides = [1, 1, 1, 1]} : vector<1x40x10x8xf32> to vector<1x1x8x8xf32>
    %344 = vector.shape_cast %343 : vector<1x1x8x8xf32> to vector<8x8xf32>
    %345 = vector.extract_strided_slice %0 {offsets = [0, 7, 0, 0], sizes = [1, 1, 8, 8], strides = [1, 1, 1, 1]} : vector<1x40x10x8xf32> to vector<1x1x8x8xf32>
    %346 = vector.shape_cast %345 : vector<1x1x8x8xf32> to vector<8x8xf32>
    %347 = vector.extract_strided_slice %0 {offsets = [0, 17, 0, 0], sizes = [1, 1, 8, 8], strides = [1, 1, 1, 1]} : vector<1x40x10x8xf32> to vector<1x1x8x8xf32>
    %348 = vector.shape_cast %347 : vector<1x1x8x8xf32> to vector<8x8xf32>
    %349 = vector.extract_strided_slice %0 {offsets = [0, 7, 1, 0], sizes = [1, 1, 8, 8], strides = [1, 1, 1, 1]} : vector<1x40x10x8xf32> to vector<1x1x8x8xf32>
    %350 = vector.shape_cast %349 : vector<1x1x8x8xf32> to vector<8x8xf32>
    %351 = vector.extract_strided_slice %0 {offsets = [0, 17, 1, 0], sizes = [1, 1, 8, 8], strides = [1, 1, 1, 1]} : vector<1x40x10x8xf32> to vector<1x1x8x8xf32>
    %352 = vector.shape_cast %351 : vector<1x1x8x8xf32> to vector<8x8xf32>
    %353 = vector.extract_strided_slice %0 {offsets = [0, 7, 2, 0], sizes = [1, 1, 8, 8], strides = [1, 1, 1, 1]} : vector<1x40x10x8xf32> to vector<1x1x8x8xf32>
    %354 = vector.shape_cast %353 : vector<1x1x8x8xf32> to vector<8x8xf32>
    %355 = vector.extract_strided_slice %0 {offsets = [0, 27, 0, 0], sizes = [1, 1, 8, 8], strides = [1, 1, 1, 1]} : vector<1x40x10x8xf32> to vector<1x1x8x8xf32>
    %356 = vector.shape_cast %355 : vector<1x1x8x8xf32> to vector<8x8xf32>
    %357 = vector.extract_strided_slice %0 {offsets = [0, 37, 0, 0], sizes = [1, 1, 8, 8], strides = [1, 1, 1, 1]} : vector<1x40x10x8xf32> to vector<1x1x8x8xf32>
    %358 = vector.shape_cast %357 : vector<1x1x8x8xf32> to vector<8x8xf32>
    %359 = vector.extract_strided_slice %0 {offsets = [0, 27, 1, 0], sizes = [1, 1, 8, 8], strides = [1, 1, 1, 1]} : vector<1x40x10x8xf32> to vector<1x1x8x8xf32>
    %360 = vector.shape_cast %359 : vector<1x1x8x8xf32> to vector<8x8xf32>
    %361 = vector.extract_strided_slice %0 {offsets = [0, 37, 1, 0], sizes = [1, 1, 8, 8], strides = [1, 1, 1, 1]} : vector<1x40x10x8xf32> to vector<1x1x8x8xf32>
    %362 = vector.shape_cast %361 : vector<1x1x8x8xf32> to vector<8x8xf32>
    %363 = vector.extract_strided_slice %0 {offsets = [0, 27, 2, 0], sizes = [1, 1, 8, 8], strides = [1, 1, 1, 1]} : vector<1x40x10x8xf32> to vector<1x1x8x8xf32>
    %364 = vector.shape_cast %363 : vector<1x1x8x8xf32> to vector<8x8xf32>
    %365 = vector.extract_strided_slice %0 {offsets = [0, 8, 0, 0], sizes = [1, 1, 8, 8], strides = [1, 1, 1, 1]} : vector<1x40x10x8xf32> to vector<1x1x8x8xf32>
    %366 = vector.shape_cast %365 : vector<1x1x8x8xf32> to vector<8x8xf32>
    %367 = vector.extract_strided_slice %0 {offsets = [0, 18, 0, 0], sizes = [1, 1, 8, 8], strides = [1, 1, 1, 1]} : vector<1x40x10x8xf32> to vector<1x1x8x8xf32>
    %368 = vector.shape_cast %367 : vector<1x1x8x8xf32> to vector<8x8xf32>
    %369 = vector.extract_strided_slice %0 {offsets = [0, 8, 1, 0], sizes = [1, 1, 8, 8], strides = [1, 1, 1, 1]} : vector<1x40x10x8xf32> to vector<1x1x8x8xf32>
    %370 = vector.shape_cast %369 : vector<1x1x8x8xf32> to vector<8x8xf32>
    %371 = vector.extract_strided_slice %0 {offsets = [0, 18, 1, 0], sizes = [1, 1, 8, 8], strides = [1, 1, 1, 1]} : vector<1x40x10x8xf32> to vector<1x1x8x8xf32>
    %372 = vector.shape_cast %371 : vector<1x1x8x8xf32> to vector<8x8xf32>
    %373 = vector.extract_strided_slice %0 {offsets = [0, 8, 2, 0], sizes = [1, 1, 8, 8], strides = [1, 1, 1, 1]} : vector<1x40x10x8xf32> to vector<1x1x8x8xf32>
    %374 = vector.shape_cast %373 : vector<1x1x8x8xf32> to vector<8x8xf32>
    %375 = tpu.concatenate %326, %328, %330, %332, %334, %336, %338, %340, %342, %344, %346, %348, %350, %352, %354, %356 in 1 : vector<8x8xf32>, vector<8x8xf32>, vector<8x8xf32>, vector<8x8xf32>, vector<8x8xf32>, vector<8x8xf32>, vector<8x8xf32>, vector<8x8xf32>, vector<8x8xf32>, vector<8x8xf32>, vector<8x8xf32>, vector<8x8xf32>, vector<8x8xf32>, vector<8x8xf32>, vector<8x8xf32>, vector<8x8xf32> -> vector<8x128xf32>
    %376 = tpu.concatenate %358, %360, %362, %364, %366, %368, %370, %372, %374 in 1 : vector<8x8xf32>, vector<8x8xf32>, vector<8x8xf32>, vector<8x8xf32>, vector<8x8xf32>, vector<8x8xf32>, vector<8x8xf32>, vector<8x8xf32>, vector<8x8xf32> -> vector<8x72xf32>
    %377 = tpu.concatenate %375, %376 in 1 : vector<8x128xf32>, vector<8x72xf32> -> vector<8x200xf32>
    %c48 = arith.constant 48 : index
    %c0_10 = arith.constant 0 : index
    %378 = vector.load %arg5[%c48, %c0_10] : memref<64x200xf32, #tpu.memory_space<vmem>>, vector<8x200xf32>
    tpu.vector_store %arg5[%c48, %c0_10], %377 {strides = array<i32>} : memref<64x200xf32, #tpu.memory_space<vmem>>, vector<8x200xf32>,
    %379 = vector.extract_strided_slice %0 {offsets = [0, 7, 0, 0], sizes = [1, 1, 8, 8], strides = [1, 1, 1, 1]} : vector<1x40x10x8xf32> to vector<1x1x8x8xf32>
    %380 = vector.shape_cast %379 : vector<1x1x8x8xf32> to vector<8x8xf32>
    %381 = vector.extract_strided_slice %0 {offsets = [0, 17, 0, 0], sizes = [1, 1, 8, 8], strides = [1, 1, 1, 1]} : vector<1x40x10x8xf32> to vector<1x1x8x8xf32>
    %382 = vector.shape_cast %381 : vector<1x1x8x8xf32> to vector<8x8xf32>
    %383 = vector.extract_strided_slice %0 {offsets = [0, 7, 1, 0], sizes = [1, 1, 8, 8], strides = [1, 1, 1, 1]} : vector<1x40x10x8xf32> to vector<1x1x8x8xf32>
    %384 = vector.shape_cast %383 : vector<1x1x8x8xf32> to vector<8x8xf32>
    %385 = vector.extract_strided_slice %0 {offsets = [0, 17, 1, 0], sizes = [1, 1, 8, 8], strides = [1, 1, 1, 1]} : vector<1x40x10x8xf32> to vector<1x1x8x8xf32>
    %386 = vector.shape_cast %385 : vector<1x1x8x8xf32> to vector<8x8xf32>
    %387 = vector.extract_strided_slice %0 {offsets = [0, 7, 2, 0], sizes = [1, 1, 8, 8], strides = [1, 1, 1, 1]} : vector<1x40x10x8xf32> to vector<1x1x8x8xf32>
    %388 = vector.shape_cast %387 : vector<1x1x8x8xf32> to vector<8x8xf32>
    %389 = vector.extract_strided_slice %0 {offsets = [0, 27, 0, 0], sizes = [1, 1, 8, 8], strides = [1, 1, 1, 1]} : vector<1x40x10x8xf32> to vector<1x1x8x8xf32>
    %390 = vector.shape_cast %389 : vector<1x1x8x8xf32> to vector<8x8xf32>
    %391 = vector.extract_strided_slice %0 {offsets = [0, 37, 0, 0], sizes = [1, 1, 8, 8], strides = [1, 1, 1, 1]} : vector<1x40x10x8xf32> to vector<1x1x8x8xf32>
    %392 = vector.shape_cast %391 : vector<1x1x8x8xf32> to vector<8x8xf32>
    %393 = vector.extract_strided_slice %0 {offsets = [0, 27, 1, 0], sizes = [1, 1, 8, 8], strides = [1, 1, 1, 1]} : vector<1x40x10x8xf32> to vector<1x1x8x8xf32>
    %394 = vector.shape_cast %393 : vector<1x1x8x8xf32> to vector<8x8xf32>
    %395 = vector.extract_strided_slice %0 {offsets = [0, 37, 1, 0], sizes = [1, 1, 8, 8], strides = [1, 1, 1, 1]} : vector<1x40x10x8xf32> to vector<1x1x8x8xf32>
    %396 = vector.shape_cast %395 : vector<1x1x8x8xf32> to vector<8x8xf32>
    %397 = vector.extract_strided_slice %0 {offsets = [0, 27, 2, 0], sizes = [1, 1, 8, 8], strides = [1, 1, 1, 1]} : vector<1x40x10x8xf32> to vector<1x1x8x8xf32>
    %398 = vector.shape_cast %397 : vector<1x1x8x8xf32> to vector<8x8xf32>
    %399 = vector.extract_strided_slice %0 {offsets = [0, 8, 0, 0], sizes = [1, 1, 8, 8], strides = [1, 1, 1, 1]} : vector<1x40x10x8xf32> to vector<1x1x8x8xf32>
    %400 = vector.shape_cast %399 : vector<1x1x8x8xf32> to vector<8x8xf32>
    %401 = vector.extract_strided_slice %0 {offsets = [0, 18, 0, 0], sizes = [1, 1, 8, 8], strides = [1, 1, 1, 1]} : vector<1x40x10x8xf32> to vector<1x1x8x8xf32>
    %402 = vector.shape_cast %401 : vector<1x1x8x8xf32> to vector<8x8xf32>
    %403 = vector.extract_strided_slice %0 {offsets = [0, 8, 1, 0], sizes = [1, 1, 8, 8], strides = [1, 1, 1, 1]} : vector<1x40x10x8xf32> to vector<1x1x8x8xf32>
    %404 = vector.shape_cast %403 : vector<1x1x8x8xf32> to vector<8x8xf32>
    %405 = vector.extract_strided_slice %0 {offsets = [0, 18, 1, 0], sizes = [1, 1, 8, 8], strides = [1, 1, 1, 1]} : vector<1x40x10x8xf32> to vector<1x1x8x8xf32>
    %406 = vector.shape_cast %405 : vector<1x1x8x8xf32> to vector<8x8xf32>
    %407 = vector.extract_strided_slice %0 {offsets = [0, 8, 2, 0], sizes = [1, 1, 8, 8], strides = [1, 1, 1, 1]} : vector<1x40x10x8xf32> to vector<1x1x8x8xf32>
    %408 = vector.shape_cast %407 : vector<1x1x8x8xf32> to vector<8x8xf32>
    %409 = vector.extract_strided_slice %0 {offsets = [0, 28, 0, 0], sizes = [1, 1, 8, 8], strides = [1, 1, 1, 1]} : vector<1x40x10x8xf32> to vector<1x1x8x8xf32>
    %410 = vector.shape_cast %409 : vector<1x1x8x8xf32> to vector<8x8xf32>
    %411 = vector.extract_strided_slice %0 {offsets = [0, 38, 0, 0], sizes = [1, 1, 8, 8], strides = [1, 1, 1, 1]} : vector<1x40x10x8xf32> to vector<1x1x8x8xf32>
    %412 = vector.shape_cast %411 : vector<1x1x8x8xf32> to vector<8x8xf32>
    %413 = vector.extract_strided_slice %0 {offsets = [0, 28, 1, 0], sizes = [1, 1, 8, 8], strides = [1, 1, 1, 1]} : vector<1x40x10x8xf32> to vector<1x1x8x8xf32>
    %414 = vector.shape_cast %413 : vector<1x1x8x8xf32> to vector<8x8xf32>
    %415 = vector.extract_strided_slice %0 {offsets = [0, 38, 1, 0], sizes = [1, 1, 8, 8], strides = [1, 1, 1, 1]} : vector<1x40x10x8xf32> to vector<1x1x8x8xf32>
    %416 = vector.shape_cast %415 : vector<1x1x8x8xf32> to vector<8x8xf32>
    %417 = vector.extract_strided_slice %0 {offsets = [0, 28, 2, 0], sizes = [1, 1, 8, 8], strides = [1, 1, 1, 1]} : vector<1x40x10x8xf32> to vector<1x1x8x8xf32>
    %418 = vector.shape_cast %417 : vector<1x1x8x8xf32> to vector<8x8xf32>
    %419 = vector.extract_strided_slice %0 {offsets = [0, 9, 0, 0], sizes = [1, 1, 8, 8], strides = [1, 1, 1, 1]} : vector<1x40x10x8xf32> to vector<1x1x8x8xf32>
    %420 = vector.shape_cast %419 : vector<1x1x8x8xf32> to vector<8x8xf32>
    %421 = vector.extract_strided_slice %0 {offsets = [0, 19, 0, 0], sizes = [1, 1, 8, 8], strides = [1, 1, 1, 1]} : vector<1x40x10x8xf32> to vector<1x1x8x8xf32>
    %422 = vector.shape_cast %421 : vector<1x1x8x8xf32> to vector<8x8xf32>
    %423 = vector.extract_strided_slice %0 {offsets = [0, 9, 1, 0], sizes = [1, 1, 8, 8], strides = [1, 1, 1, 1]} : vector<1x40x10x8xf32> to vector<1x1x8x8xf32>
    %424 = vector.shape_cast %423 : vector<1x1x8x8xf32> to vector<8x8xf32>
    %425 = vector.extract_strided_slice %0 {offsets = [0, 19, 1, 0], sizes = [1, 1, 8, 8], strides = [1, 1, 1, 1]} : vector<1x40x10x8xf32> to vector<1x1x8x8xf32>
    %426 = vector.shape_cast %425 : vector<1x1x8x8xf32> to vector<8x8xf32>
    %427 = vector.extract_strided_slice %0 {offsets = [0, 9, 2, 0], sizes = [1, 1, 8, 8], strides = [1, 1, 1, 1]} : vector<1x40x10x8xf32> to vector<1x1x8x8xf32>
    %428 = vector.shape_cast %427 : vector<1x1x8x8xf32> to vector<8x8xf32>
    %429 = tpu.concatenate %380, %382, %384, %386, %388, %390, %392, %394, %396, %398, %400, %402, %404, %406, %408, %410 in 1 : vector<8x8xf32>, vector<8x8xf32>, vector<8x8xf32>, vector<8x8xf32>, vector<8x8xf32>, vector<8x8xf32>, vector<8x8xf32>, vector<8x8xf32>, vector<8x8xf32>, vector<8x8xf32>, vector<8x8xf32>, vector<8x8xf32>, vector<8x8xf32>, vector<8x8xf32>, vector<8x8xf32>, vector<8x8xf32> -> vector<8x128xf32>
    %430 = tpu.concatenate %412, %414, %416, %418, %420, %422, %424, %426, %428 in 1 : vector<8x8xf32>, vector<8x8xf32>, vector<8x8xf32>, vector<8x8xf32>, vector<8x8xf32>, vector<8x8xf32>, vector<8x8xf32>, vector<8x8xf32>, vector<8x8xf32> -> vector<8x72xf32>
    %431 = tpu.concatenate %429, %430 in 1 : vector<8x128xf32>, vector<8x72xf32> -> vector<8x200xf32>
    %c56 = arith.constant 56 : index
    %c0_11 = arith.constant 0 : index
    %432 = vector.load %arg5[%c56, %c0_11] : memref<64x200xf32, #tpu.memory_space<vmem>>, vector<8x200xf32>
    tpu.vector_store %arg5[%c56, %c0_11], %431 {strides = array<i32>} : memref<64x200xf32, #tpu.memory_space<vmem>>, vector<8x200xf32>,
    %c0_12 = arith.constant 0 : index
    %c0_13 = arith.constant 0 : index
    %433 = vector.load %arg5[%c0_12, %c0_13] : memref<64x200xf32, #tpu.memory_space<vmem>>, vector<64x200xf32>
    %c0_14 = arith.constant 0 : index
    %c0_15 = arith.constant 0 : index
    %434 = vector.load %arg2[%c0_14, %c0_15] : memref<200x8xf32, #tpu.memory_space<vmem>>, vector<200x8xf32>
    %cst = arith.constant dense<0.000000e+00> : vector<64x8xf32>
    %435 = tpu.matmul %433, %434, %cst {dimension_numbers = #tpu.dot_dimension_numbers<[1], [0], [0], [1], [0, 0, 1, 1], [], []>, precision = #tpu.contract_precision<fp32>} : vector<64x200xf32>, vector<200x8xf32>, vector<64x8xf32> -> vector<64x8xf32>
    %c0_16 = arith.constant 0 : index
    %c0_17 = arith.constant 0 : index
    %436 = vector.load %arg3[%c0_16, %c0_17] : memref<1x8xf32, #tpu.memory_space<vmem>>, vector<1x8xf32>
    %437 = vector.broadcast %436 : vector<1x8xf32> to vector<64x8xf32>
    %438 = arith.addf %435, %437 : vector<64x8xf32>
    %cst_18 = arith.constant 0.000000e+00 : f32
    %439 = vector.broadcast %cst_18 : f32 to vector<64x8xf32>
    %440 = arith.maximumf %438, %439 : vector<64x8xf32>
    %441 = vector.shape_cast %440 : vector<64x8xf32> to vector<1x64x8xf32>
    %c0_19 = arith.constant 0 : index
    %c0_20 = arith.constant 0 : index
    %c0_21 = arith.constant 0 : index
    %442 = vector.load %arg4[%c0_19, %c0_20, %c0_21] : memref<1x64x8xf32, #tpu.memory_space<vmem>>, vector<1x64x8xf32>
    tpu.vector_store %arg4[%c0_19, %c0_20, %c0_21], %441 {strides = array<i32>} : memref<1x64x8xf32, #tpu.memory_space<vmem>>, vector<1x64x8xf32>,
    return
  }
  func.func @transform_0(%arg0: i32) -> (i32, i32, i32, i32) {
    %c0_i32 = arith.constant 0 : i32
    %c0_i32_0 = arith.constant 0 : i32
    %c0_i32_1 = arith.constant 0 : i32
    %c0_i32_2 = arith.constant 0 : i32
    return %arg0, %c0_i32, %c0_i32_0, %c0_i32_1 : i32, i32, i32, i32
  }
  func.func @transform_1(%arg0: i32) -> (i32, i32) {
    %c0_i32 = arith.constant 0 : i32
    %c0_i32_0 = arith.constant 0 : i32
    %c0_i32_1 = arith.constant 0 : i32
    return %c0_i32, %c0_i32_0 : i32, i32
  }
  func.func @transform_2(%arg0: i32) -> (i32, i32) {
    %c0_i32 = arith.constant 0 : i32
    %c0_i32_0 = arith.constant 0 : i32
    %c0_i32_1 = arith.constant 0 : i32
    return %c0_i32, %c0_i32_0 : i32, i32
  }
  func.func @transform_3(%arg0: i32) -> (i32, i32, i32) {
    %c0_i32 = arith.constant 0 : i32
    %c0_i32_0 = arith.constant 0 : i32
    %c0_i32_1 = arith.constant 0 : i32
    return %arg0, %c0_i32, %c0_i32_0 : i32, i32, i32
  }
}

module attributes {stable_mosaic.version = 11 : i64} {
  func.func @_conv_layer_kernel(%arg0: i32, %arg1: memref<1x24x6x8xf32, #tpu.memory_space<vmem>>, %arg2: memref<200x8xf32, #tpu.memory_space<vmem>>, %arg3: memref<1x8xf32, #tpu.memory_space<vmem>>, %arg4: memref<1x16x8xf32, #tpu.memory_space<vmem>>, %arg5: memref<16x200xf32, #tpu.memory_space<vmem>>) attributes {dimension_semantics = [#tpu.dimension_semantics<parallel>], iteration_bounds = array<i64: 2>, scalar_prefetch = 0 : i64, scratch_operands = 1 : i64, tpu.core_type = #tpu.core_type<tc>, window_params = [{transform_indices = @transform_0, window_bounds = array<i64: 1, 24, 6, 8>}, {pipeline_mode = #tpu.pipeline_mode<synchronous>, transform_indices = @transform_1, window_bounds = array<i64: 200, 8>}, {pipeline_mode = #tpu.pipeline_mode<synchronous>, transform_indices = @transform_2, window_bounds = array<i64: 1, 8>}, {transform_indices = @transform_3, window_bounds = array<i64: 1, 16, 8>}]} {
    %c0 = arith.constant 0 : index
    %c0_0 = arith.constant 0 : index
    %c0_1 = arith.constant 0 : index
    %c0_2 = arith.constant 0 : index
    %0 = vector.load %arg1[%c0, %c0_0, %c0_1, %c0_2] : memref<1x24x6x8xf32, #tpu.memory_space<vmem>>, vector<1x24x6x8xf32>
    %1 = vector.extract_strided_slice %0 {offsets = [0, 0, 0, 0], sizes = [1, 1, 4, 8], strides = [1, 1, 1, 1]} : vector<1x24x6x8xf32> to vector<1x1x4x8xf32>
    %2 = vector.shape_cast %1 : vector<1x1x4x8xf32> to vector<4x8xf32>
    %3 = vector.extract_strided_slice %0 {offsets = [0, 6, 0, 0], sizes = [1, 1, 4, 8], strides = [1, 1, 1, 1]} : vector<1x24x6x8xf32> to vector<1x1x4x8xf32>
    %4 = vector.shape_cast %3 : vector<1x1x4x8xf32> to vector<4x8xf32>
    %5 = vector.extract_strided_slice %0 {offsets = [0, 0, 1, 0], sizes = [1, 1, 4, 8], strides = [1, 1, 1, 1]} : vector<1x24x6x8xf32> to vector<1x1x4x8xf32>
    %6 = vector.shape_cast %5 : vector<1x1x4x8xf32> to vector<4x8xf32>
    %7 = vector.extract_strided_slice %0 {offsets = [0, 6, 1, 0], sizes = [1, 1, 4, 8], strides = [1, 1, 1, 1]} : vector<1x24x6x8xf32> to vector<1x1x4x8xf32>
    %8 = vector.shape_cast %7 : vector<1x1x4x8xf32> to vector<4x8xf32>
    %9 = vector.extract_strided_slice %0 {offsets = [0, 0, 2, 0], sizes = [1, 1, 4, 8], strides = [1, 1, 1, 1]} : vector<1x24x6x8xf32> to vector<1x1x4x8xf32>
    %10 = vector.shape_cast %9 : vector<1x1x4x8xf32> to vector<4x8xf32>
    %11 = vector.extract_strided_slice %0 {offsets = [0, 12, 0, 0], sizes = [1, 1, 4, 8], strides = [1, 1, 1, 1]} : vector<1x24x6x8xf32> to vector<1x1x4x8xf32>
    %12 = vector.shape_cast %11 : vector<1x1x4x8xf32> to vector<4x8xf32>
    %13 = vector.extract_strided_slice %0 {offsets = [0, 18, 0, 0], sizes = [1, 1, 4, 8], strides = [1, 1, 1, 1]} : vector<1x24x6x8xf32> to vector<1x1x4x8xf32>
    %14 = vector.shape_cast %13 : vector<1x1x4x8xf32> to vector<4x8xf32>
    %15 = vector.extract_strided_slice %0 {offsets = [0, 12, 1, 0], sizes = [1, 1, 4, 8], strides = [1, 1, 1, 1]} : vector<1x24x6x8xf32> to vector<1x1x4x8xf32>
    %16 = vector.shape_cast %15 : vector<1x1x4x8xf32> to vector<4x8xf32>
    %17 = vector.extract_strided_slice %0 {offsets = [0, 18, 1, 0], sizes = [1, 1, 4, 8], strides = [1, 1, 1, 1]} : vector<1x24x6x8xf32> to vector<1x1x4x8xf32>
    %18 = vector.shape_cast %17 : vector<1x1x4x8xf32> to vector<4x8xf32>
    %19 = vector.extract_strided_slice %0 {offsets = [0, 12, 2, 0], sizes = [1, 1, 4, 8], strides = [1, 1, 1, 1]} : vector<1x24x6x8xf32> to vector<1x1x4x8xf32>
    %20 = vector.shape_cast %19 : vector<1x1x4x8xf32> to vector<4x8xf32>
    %21 = vector.extract_strided_slice %0 {offsets = [0, 1, 0, 0], sizes = [1, 1, 4, 8], strides = [1, 1, 1, 1]} : vector<1x24x6x8xf32> to vector<1x1x4x8xf32>
    %22 = vector.shape_cast %21 : vector<1x1x4x8xf32> to vector<4x8xf32>
    %23 = vector.extract_strided_slice %0 {offsets = [0, 7, 0, 0], sizes = [1, 1, 4, 8], strides = [1, 1, 1, 1]} : vector<1x24x6x8xf32> to vector<1x1x4x8xf32>
    %24 = vector.shape_cast %23 : vector<1x1x4x8xf32> to vector<4x8xf32>
    %25 = vector.extract_strided_slice %0 {offsets = [0, 1, 1, 0], sizes = [1, 1, 4, 8], strides = [1, 1, 1, 1]} : vector<1x24x6x8xf32> to vector<1x1x4x8xf32>
    %26 = vector.shape_cast %25 : vector<1x1x4x8xf32> to vector<4x8xf32>
    %27 = vector.extract_strided_slice %0 {offsets = [0, 7, 1, 0], sizes = [1, 1, 4, 8], strides = [1, 1, 1, 1]} : vector<1x24x6x8xf32> to vector<1x1x4x8xf32>
    %28 = vector.shape_cast %27 : vector<1x1x4x8xf32> to vector<4x8xf32>
    %29 = vector.extract_strided_slice %0 {offsets = [0, 1, 2, 0], sizes = [1, 1, 4, 8], strides = [1, 1, 1, 1]} : vector<1x24x6x8xf32> to vector<1x1x4x8xf32>
    %30 = vector.shape_cast %29 : vector<1x1x4x8xf32> to vector<4x8xf32>
    %31 = vector.extract_strided_slice %0 {offsets = [0, 13, 0, 0], sizes = [1, 1, 4, 8], strides = [1, 1, 1, 1]} : vector<1x24x6x8xf32> to vector<1x1x4x8xf32>
    %32 = vector.shape_cast %31 : vector<1x1x4x8xf32> to vector<4x8xf32>
    %33 = vector.extract_strided_slice %0 {offsets = [0, 19, 0, 0], sizes = [1, 1, 4, 8], strides = [1, 1, 1, 1]} : vector<1x24x6x8xf32> to vector<1x1x4x8xf32>
    %34 = vector.shape_cast %33 : vector<1x1x4x8xf32> to vector<4x8xf32>
    %35 = vector.extract_strided_slice %0 {offsets = [0, 13, 1, 0], sizes = [1, 1, 4, 8], strides = [1, 1, 1, 1]} : vector<1x24x6x8xf32> to vector<1x1x4x8xf32>
    %36 = vector.shape_cast %35 : vector<1x1x4x8xf32> to vector<4x8xf32>
    %37 = vector.extract_strided_slice %0 {offsets = [0, 19, 1, 0], sizes = [1, 1, 4, 8], strides = [1, 1, 1, 1]} : vector<1x24x6x8xf32> to vector<1x1x4x8xf32>
    %38 = vector.shape_cast %37 : vector<1x1x4x8xf32> to vector<4x8xf32>
    %39 = vector.extract_strided_slice %0 {offsets = [0, 13, 2, 0], sizes = [1, 1, 4, 8], strides = [1, 1, 1, 1]} : vector<1x24x6x8xf32> to vector<1x1x4x8xf32>
    %40 = vector.shape_cast %39 : vector<1x1x4x8xf32> to vector<4x8xf32>
    %41 = vector.extract_strided_slice %0 {offsets = [0, 2, 0, 0], sizes = [1, 1, 4, 8], strides = [1, 1, 1, 1]} : vector<1x24x6x8xf32> to vector<1x1x4x8xf32>
    %42 = vector.shape_cast %41 : vector<1x1x4x8xf32> to vector<4x8xf32>
    %43 = vector.extract_strided_slice %0 {offsets = [0, 8, 0, 0], sizes = [1, 1, 4, 8], strides = [1, 1, 1, 1]} : vector<1x24x6x8xf32> to vector<1x1x4x8xf32>
    %44 = vector.shape_cast %43 : vector<1x1x4x8xf32> to vector<4x8xf32>
    %45 = vector.extract_strided_slice %0 {offsets = [0, 2, 1, 0], sizes = [1, 1, 4, 8], strides = [1, 1, 1, 1]} : vector<1x24x6x8xf32> to vector<1x1x4x8xf32>
    %46 = vector.shape_cast %45 : vector<1x1x4x8xf32> to vector<4x8xf32>
    %47 = vector.extract_strided_slice %0 {offsets = [0, 8, 1, 0], sizes = [1, 1, 4, 8], strides = [1, 1, 1, 1]} : vector<1x24x6x8xf32> to vector<1x1x4x8xf32>
    %48 = vector.shape_cast %47 : vector<1x1x4x8xf32> to vector<4x8xf32>
    %49 = vector.extract_strided_slice %0 {offsets = [0, 2, 2, 0], sizes = [1, 1, 4, 8], strides = [1, 1, 1, 1]} : vector<1x24x6x8xf32> to vector<1x1x4x8xf32>
    %50 = vector.shape_cast %49 : vector<1x1x4x8xf32> to vector<4x8xf32>
    %51 = tpu.concatenate %2, %4, %6, %8, %10, %12, %14, %16, %18, %20, %22, %24, %26, %28, %30, %32 in 1 : vector<4x8xf32>, vector<4x8xf32>, vector<4x8xf32>, vector<4x8xf32>, vector<4x8xf32>, vector<4x8xf32>, vector<4x8xf32>, vector<4x8xf32>, vector<4x8xf32>, vector<4x8xf32>, vector<4x8xf32>, vector<4x8xf32>, vector<4x8xf32>, vector<4x8xf32>, vector<4x8xf32>, vector<4x8xf32> -> vector<4x128xf32>
    %52 = tpu.concatenate %34, %36, %38, %40, %42, %44, %46, %48, %50 in 1 : vector<4x8xf32>, vector<4x8xf32>, vector<4x8xf32>, vector<4x8xf32>, vector<4x8xf32>, vector<4x8xf32>, vector<4x8xf32>, vector<4x8xf32>, vector<4x8xf32> -> vector<4x72xf32>
    %53 = tpu.concatenate %51, %52 in 1 : vector<4x128xf32>, vector<4x72xf32> -> vector<4x200xf32>
    %c0_3 = arith.constant 0 : index
    %c0_4 = arith.constant 0 : index
    %54 = vector.load %arg5[%c0_3, %c0_4] : memref<16x200xf32, #tpu.memory_space<vmem>>, vector<4x200xf32>
    tpu.vector_store %arg5[%c0_3, %c0_4], %53 {strides = array<i32>} : memref<16x200xf32, #tpu.memory_space<vmem>>, vector<4x200xf32>,
    %55 = vector.extract_strided_slice %0 {offsets = [0, 1, 0, 0], sizes = [1, 1, 4, 8], strides = [1, 1, 1, 1]} : vector<1x24x6x8xf32> to vector<1x1x4x8xf32>
    %56 = vector.shape_cast %55 : vector<1x1x4x8xf32> to vector<4x8xf32>
    %57 = vector.extract_strided_slice %0 {offsets = [0, 7, 0, 0], sizes = [1, 1, 4, 8], strides = [1, 1, 1, 1]} : vector<1x24x6x8xf32> to vector<1x1x4x8xf32>
    %58 = vector.shape_cast %57 : vector<1x1x4x8xf32> to vector<4x8xf32>
    %59 = vector.extract_strided_slice %0 {offsets = [0, 1, 1, 0], sizes = [1, 1, 4, 8], strides = [1, 1, 1, 1]} : vector<1x24x6x8xf32> to vector<1x1x4x8xf32>
    %60 = vector.shape_cast %59 : vector<1x1x4x8xf32> to vector<4x8xf32>
    %61 = vector.extract_strided_slice %0 {offsets = [0, 7, 1, 0], sizes = [1, 1, 4, 8], strides = [1, 1, 1, 1]} : vector<1x24x6x8xf32> to vector<1x1x4x8xf32>
    %62 = vector.shape_cast %61 : vector<1x1x4x8xf32> to vector<4x8xf32>
    %63 = vector.extract_strided_slice %0 {offsets = [0, 1, 2, 0], sizes = [1, 1, 4, 8], strides = [1, 1, 1, 1]} : vector<1x24x6x8xf32> to vector<1x1x4x8xf32>
    %64 = vector.shape_cast %63 : vector<1x1x4x8xf32> to vector<4x8xf32>
    %65 = vector.extract_strided_slice %0 {offsets = [0, 13, 0, 0], sizes = [1, 1, 4, 8], strides = [1, 1, 1, 1]} : vector<1x24x6x8xf32> to vector<1x1x4x8xf32>
    %66 = vector.shape_cast %65 : vector<1x1x4x8xf32> to vector<4x8xf32>
    %67 = vector.extract_strided_slice %0 {offsets = [0, 19, 0, 0], sizes = [1, 1, 4, 8], strides = [1, 1, 1, 1]} : vector<1x24x6x8xf32> to vector<1x1x4x8xf32>
    %68 = vector.shape_cast %67 : vector<1x1x4x8xf32> to vector<4x8xf32>
    %69 = vector.extract_strided_slice %0 {offsets = [0, 13, 1, 0], sizes = [1, 1, 4, 8], strides = [1, 1, 1, 1]} : vector<1x24x6x8xf32> to vector<1x1x4x8xf32>
    %70 = vector.shape_cast %69 : vector<1x1x4x8xf32> to vector<4x8xf32>
    %71 = vector.extract_strided_slice %0 {offsets = [0, 19, 1, 0], sizes = [1, 1, 4, 8], strides = [1, 1, 1, 1]} : vector<1x24x6x8xf32> to vector<1x1x4x8xf32>
    %72 = vector.shape_cast %71 : vector<1x1x4x8xf32> to vector<4x8xf32>
    %73 = vector.extract_strided_slice %0 {offsets = [0, 13, 2, 0], sizes = [1, 1, 4, 8], strides = [1, 1, 1, 1]} : vector<1x24x6x8xf32> to vector<1x1x4x8xf32>
    %74 = vector.shape_cast %73 : vector<1x1x4x8xf32> to vector<4x8xf32>
    %75 = vector.extract_strided_slice %0 {offsets = [0, 2, 0, 0], sizes = [1, 1, 4, 8], strides = [1, 1, 1, 1]} : vector<1x24x6x8xf32> to vector<1x1x4x8xf32>
    %76 = vector.shape_cast %75 : vector<1x1x4x8xf32> to vector<4x8xf32>
    %77 = vector.extract_strided_slice %0 {offsets = [0, 8, 0, 0], sizes = [1, 1, 4, 8], strides = [1, 1, 1, 1]} : vector<1x24x6x8xf32> to vector<1x1x4x8xf32>
    %78 = vector.shape_cast %77 : vector<1x1x4x8xf32> to vector<4x8xf32>
    %79 = vector.extract_strided_slice %0 {offsets = [0, 2, 1, 0], sizes = [1, 1, 4, 8], strides = [1, 1, 1, 1]} : vector<1x24x6x8xf32> to vector<1x1x4x8xf32>
    %80 = vector.shape_cast %79 : vector<1x1x4x8xf32> to vector<4x8xf32>
    %81 = vector.extract_strided_slice %0 {offsets = [0, 8, 1, 0], sizes = [1, 1, 4, 8], strides = [1, 1, 1, 1]} : vector<1x24x6x8xf32> to vector<1x1x4x8xf32>
    %82 = vector.shape_cast %81 : vector<1x1x4x8xf32> to vector<4x8xf32>
    %83 = vector.extract_strided_slice %0 {offsets = [0, 2, 2, 0], sizes = [1, 1, 4, 8], strides = [1, 1, 1, 1]} : vector<1x24x6x8xf32> to vector<1x1x4x8xf32>
    %84 = vector.shape_cast %83 : vector<1x1x4x8xf32> to vector<4x8xf32>
    %85 = vector.extract_strided_slice %0 {offsets = [0, 14, 0, 0], sizes = [1, 1, 4, 8], strides = [1, 1, 1, 1]} : vector<1x24x6x8xf32> to vector<1x1x4x8xf32>
    %86 = vector.shape_cast %85 : vector<1x1x4x8xf32> to vector<4x8xf32>
    %87 = vector.extract_strided_slice %0 {offsets = [0, 20, 0, 0], sizes = [1, 1, 4, 8], strides = [1, 1, 1, 1]} : vector<1x24x6x8xf32> to vector<1x1x4x8xf32>
    %88 = vector.shape_cast %87 : vector<1x1x4x8xf32> to vector<4x8xf32>
    %89 = vector.extract_strided_slice %0 {offsets = [0, 14, 1, 0], sizes = [1, 1, 4, 8], strides = [1, 1, 1, 1]} : vector<1x24x6x8xf32> to vector<1x1x4x8xf32>
    %90 = vector.shape_cast %89 : vector<1x1x4x8xf32> to vector<4x8xf32>
    %91 = vector.extract_strided_slice %0 {offsets = [0, 20, 1, 0], sizes = [1, 1, 4, 8], strides = [1, 1, 1, 1]} : vector<1x24x6x8xf32> to vector<1x1x4x8xf32>
    %92 = vector.shape_cast %91 : vector<1x1x4x8xf32> to vector<4x8xf32>
    %93 = vector.extract_strided_slice %0 {offsets = [0, 14, 2, 0], sizes = [1, 1, 4, 8], strides = [1, 1, 1, 1]} : vector<1x24x6x8xf32> to vector<1x1x4x8xf32>
    %94 = vector.shape_cast %93 : vector<1x1x4x8xf32> to vector<4x8xf32>
    %95 = vector.extract_strided_slice %0 {offsets = [0, 3, 0, 0], sizes = [1, 1, 4, 8], strides = [1, 1, 1, 1]} : vector<1x24x6x8xf32> to vector<1x1x4x8xf32>
    %96 = vector.shape_cast %95 : vector<1x1x4x8xf32> to vector<4x8xf32>
    %97 = vector.extract_strided_slice %0 {offsets = [0, 9, 0, 0], sizes = [1, 1, 4, 8], strides = [1, 1, 1, 1]} : vector<1x24x6x8xf32> to vector<1x1x4x8xf32>
    %98 = vector.shape_cast %97 : vector<1x1x4x8xf32> to vector<4x8xf32>
    %99 = vector.extract_strided_slice %0 {offsets = [0, 3, 1, 0], sizes = [1, 1, 4, 8], strides = [1, 1, 1, 1]} : vector<1x24x6x8xf32> to vector<1x1x4x8xf32>
    %100 = vector.shape_cast %99 : vector<1x1x4x8xf32> to vector<4x8xf32>
    %101 = vector.extract_strided_slice %0 {offsets = [0, 9, 1, 0], sizes = [1, 1, 4, 8], strides = [1, 1, 1, 1]} : vector<1x24x6x8xf32> to vector<1x1x4x8xf32>
    %102 = vector.shape_cast %101 : vector<1x1x4x8xf32> to vector<4x8xf32>
    %103 = vector.extract_strided_slice %0 {offsets = [0, 3, 2, 0], sizes = [1, 1, 4, 8], strides = [1, 1, 1, 1]} : vector<1x24x6x8xf32> to vector<1x1x4x8xf32>
    %104 = vector.shape_cast %103 : vector<1x1x4x8xf32> to vector<4x8xf32>
    %105 = tpu.concatenate %56, %58, %60, %62, %64, %66, %68, %70, %72, %74, %76, %78, %80, %82, %84, %86 in 1 : vector<4x8xf32>, vector<4x8xf32>, vector<4x8xf32>, vector<4x8xf32>, vector<4x8xf32>, vector<4x8xf32>, vector<4x8xf32>, vector<4x8xf32>, vector<4x8xf32>, vector<4x8xf32>, vector<4x8xf32>, vector<4x8xf32>, vector<4x8xf32>, vector<4x8xf32>, vector<4x8xf32>, vector<4x8xf32> -> vector<4x128xf32>
    %106 = tpu.concatenate %88, %90, %92, %94, %96, %98, %100, %102, %104 in 1 : vector<4x8xf32>, vector<4x8xf32>, vector<4x8xf32>, vector<4x8xf32>, vector<4x8xf32>, vector<4x8xf32>, vector<4x8xf32>, vector<4x8xf32>, vector<4x8xf32> -> vector<4x72xf32>
    %107 = tpu.concatenate %105, %106 in 1 : vector<4x128xf32>, vector<4x72xf32> -> vector<4x200xf32>
    %c4 = arith.constant 4 : index
    %c0_5 = arith.constant 0 : index
    %108 = vector.load %arg5[%c4, %c0_5] : memref<16x200xf32, #tpu.memory_space<vmem>>, vector<4x200xf32>
    tpu.vector_store %arg5[%c4, %c0_5], %107 {strides = array<i32>} : memref<16x200xf32, #tpu.memory_space<vmem>>, vector<4x200xf32>,
    %109 = vector.extract_strided_slice %0 {offsets = [0, 2, 0, 0], sizes = [1, 1, 4, 8], strides = [1, 1, 1, 1]} : vector<1x24x6x8xf32> to vector<1x1x4x8xf32>
    %110 = vector.shape_cast %109 : vector<1x1x4x8xf32> to vector<4x8xf32>
    %111 = vector.extract_strided_slice %0 {offsets = [0, 8, 0, 0], sizes = [1, 1, 4, 8], strides = [1, 1, 1, 1]} : vector<1x24x6x8xf32> to vector<1x1x4x8xf32>
    %112 = vector.shape_cast %111 : vector<1x1x4x8xf32> to vector<4x8xf32>
    %113 = vector.extract_strided_slice %0 {offsets = [0, 2, 1, 0], sizes = [1, 1, 4, 8], strides = [1, 1, 1, 1]} : vector<1x24x6x8xf32> to vector<1x1x4x8xf32>
    %114 = vector.shape_cast %113 : vector<1x1x4x8xf32> to vector<4x8xf32>
    %115 = vector.extract_strided_slice %0 {offsets = [0, 8, 1, 0], sizes = [1, 1, 4, 8], strides = [1, 1, 1, 1]} : vector<1x24x6x8xf32> to vector<1x1x4x8xf32>
    %116 = vector.shape_cast %115 : vector<1x1x4x8xf32> to vector<4x8xf32>
    %117 = vector.extract_strided_slice %0 {offsets = [0, 2, 2, 0], sizes = [1, 1, 4, 8], strides = [1, 1, 1, 1]} : vector<1x24x6x8xf32> to vector<1x1x4x8xf32>
    %118 = vector.shape_cast %117 : vector<1x1x4x8xf32> to vector<4x8xf32>
    %119 = vector.extract_strided_slice %0 {offsets = [0, 14, 0, 0], sizes = [1, 1, 4, 8], strides = [1, 1, 1, 1]} : vector<1x24x6x8xf32> to vector<1x1x4x8xf32>
    %120 = vector.shape_cast %119 : vector<1x1x4x8xf32> to vector<4x8xf32>
    %121 = vector.extract_strided_slice %0 {offsets = [0, 20, 0, 0], sizes = [1, 1, 4, 8], strides = [1, 1, 1, 1]} : vector<1x24x6x8xf32> to vector<1x1x4x8xf32>
    %122 = vector.shape_cast %121 : vector<1x1x4x8xf32> to vector<4x8xf32>
    %123 = vector.extract_strided_slice %0 {offsets = [0, 14, 1, 0], sizes = [1, 1, 4, 8], strides = [1, 1, 1, 1]} : vector<1x24x6x8xf32> to vector<1x1x4x8xf32>
    %124 = vector.shape_cast %123 : vector<1x1x4x8xf32> to vector<4x8xf32>
    %125 = vector.extract_strided_slice %0 {offsets = [0, 20, 1, 0], sizes = [1, 1, 4, 8], strides = [1, 1, 1, 1]} : vector<1x24x6x8xf32> to vector<1x1x4x8xf32>
    %126 = vector.shape_cast %125 : vector<1x1x4x8xf32> to vector<4x8xf32>
    %127 = vector.extract_strided_slice %0 {offsets = [0, 14, 2, 0], sizes = [1, 1, 4, 8], strides = [1, 1, 1, 1]} : vector<1x24x6x8xf32> to vector<1x1x4x8xf32>
    %128 = vector.shape_cast %127 : vector<1x1x4x8xf32> to vector<4x8xf32>
    %129 = vector.extract_strided_slice %0 {offsets = [0, 3, 0, 0], sizes = [1, 1, 4, 8], strides = [1, 1, 1, 1]} : vector<1x24x6x8xf32> to vector<1x1x4x8xf32>
    %130 = vector.shape_cast %129 : vector<1x1x4x8xf32> to vector<4x8xf32>
    %131 = vector.extract_strided_slice %0 {offsets = [0, 9, 0, 0], sizes = [1, 1, 4, 8], strides = [1, 1, 1, 1]} : vector<1x24x6x8xf32> to vector<1x1x4x8xf32>
    %132 = vector.shape_cast %131 : vector<1x1x4x8xf32> to vector<4x8xf32>
    %133 = vector.extract_strided_slice %0 {offsets = [0, 3, 1, 0], sizes = [1, 1, 4, 8], strides = [1, 1, 1, 1]} : vector<1x24x6x8xf32> to vector<1x1x4x8xf32>
    %134 = vector.shape_cast %133 : vector<1x1x4x8xf32> to vector<4x8xf32>
    %135 = vector.extract_strided_slice %0 {offsets = [0, 9, 1, 0], sizes = [1, 1, 4, 8], strides = [1, 1, 1, 1]} : vector<1x24x6x8xf32> to vector<1x1x4x8xf32>
    %136 = vector.shape_cast %135 : vector<1x1x4x8xf32> to vector<4x8xf32>
    %137 = vector.extract_strided_slice %0 {offsets = [0, 3, 2, 0], sizes = [1, 1, 4, 8], strides = [1, 1, 1, 1]} : vector<1x24x6x8xf32> to vector<1x1x4x8xf32>
    %138 = vector.shape_cast %137 : vector<1x1x4x8xf32> to vector<4x8xf32>
    %139 = vector.extract_strided_slice %0 {offsets = [0, 15, 0, 0], sizes = [1, 1, 4, 8], strides = [1, 1, 1, 1]} : vector<1x24x6x8xf32> to vector<1x1x4x8xf32>
    %140 = vector.shape_cast %139 : vector<1x1x4x8xf32> to vector<4x8xf32>
    %141 = vector.extract_strided_slice %0 {offsets = [0, 21, 0, 0], sizes = [1, 1, 4, 8], strides = [1, 1, 1, 1]} : vector<1x24x6x8xf32> to vector<1x1x4x8xf32>
    %142 = vector.shape_cast %141 : vector<1x1x4x8xf32> to vector<4x8xf32>
    %143 = vector.extract_strided_slice %0 {offsets = [0, 15, 1, 0], sizes = [1, 1, 4, 8], strides = [1, 1, 1, 1]} : vector<1x24x6x8xf32> to vector<1x1x4x8xf32>
    %144 = vector.shape_cast %143 : vector<1x1x4x8xf32> to vector<4x8xf32>
    %145 = vector.extract_strided_slice %0 {offsets = [0, 21, 1, 0], sizes = [1, 1, 4, 8], strides = [1, 1, 1, 1]} : vector<1x24x6x8xf32> to vector<1x1x4x8xf32>
    %146 = vector.shape_cast %145 : vector<1x1x4x8xf32> to vector<4x8xf32>
    %147 = vector.extract_strided_slice %0 {offsets = [0, 15, 2, 0], sizes = [1, 1, 4, 8], strides = [1, 1, 1, 1]} : vector<1x24x6x8xf32> to vector<1x1x4x8xf32>
    %148 = vector.shape_cast %147 : vector<1x1x4x8xf32> to vector<4x8xf32>
    %149 = vector.extract_strided_slice %0 {offsets = [0, 4, 0, 0], sizes = [1, 1, 4, 8], strides = [1, 1, 1, 1]} : vector<1x24x6x8xf32> to vector<1x1x4x8xf32>
    %150 = vector.shape_cast %149 : vector<1x1x4x8xf32> to vector<4x8xf32>
    %151 = vector.extract_strided_slice %0 {offsets = [0, 10, 0, 0], sizes = [1, 1, 4, 8], strides = [1, 1, 1, 1]} : vector<1x24x6x8xf32> to vector<1x1x4x8xf32>
    %152 = vector.shape_cast %151 : vector<1x1x4x8xf32> to vector<4x8xf32>
    %153 = vector.extract_strided_slice %0 {offsets = [0, 4, 1, 0], sizes = [1, 1, 4, 8], strides = [1, 1, 1, 1]} : vector<1x24x6x8xf32> to vector<1x1x4x8xf32>
    %154 = vector.shape_cast %153 : vector<1x1x4x8xf32> to vector<4x8xf32>
    %155 = vector.extract_strided_slice %0 {offsets = [0, 10, 1, 0], sizes = [1, 1, 4, 8], strides = [1, 1, 1, 1]} : vector<1x24x6x8xf32> to vector<1x1x4x8xf32>
    %156 = vector.shape_cast %155 : vector<1x1x4x8xf32> to vector<4x8xf32>
    %157 = vector.extract_strided_slice %0 {offsets = [0, 4, 2, 0], sizes = [1, 1, 4, 8], strides = [1, 1, 1, 1]} : vector<1x24x6x8xf32> to vector<1x1x4x8xf32>
    %158 = vector.shape_cast %157 : vector<1x1x4x8xf32> to vector<4x8xf32>
    %159 = tpu.concatenate %110, %112, %114, %116, %118, %120, %122, %124, %126, %128, %130, %132, %134, %136, %138, %140 in 1 : vector<4x8xf32>, vector<4x8xf32>, vector<4x8xf32>, vector<4x8xf32>, vector<4x8xf32>, vector<4x8xf32>, vector<4x8xf32>, vector<4x8xf32>, vector<4x8xf32>, vector<4x8xf32>, vector<4x8xf32>, vector<4x8xf32>, vector<4x8xf32>, vector<4x8xf32>, vector<4x8xf32>, vector<4x8xf32> -> vector<4x128xf32>
    %160 = tpu.concatenate %142, %144, %146, %148, %150, %152, %154, %156, %158 in 1 : vector<4x8xf32>, vector<4x8xf32>, vector<4x8xf32>, vector<4x8xf32>, vector<4x8xf32>, vector<4x8xf32>, vector<4x8xf32>, vector<4x8xf32>, vector<4x8xf32> -> vector<4x72xf32>
    %161 = tpu.concatenate %159, %160 in 1 : vector<4x128xf32>, vector<4x72xf32> -> vector<4x200xf32>
    %c8 = arith.constant 8 : index
    %c0_6 = arith.constant 0 : index
    %162 = vector.load %arg5[%c8, %c0_6] : memref<16x200xf32, #tpu.memory_space<vmem>>, vector<4x200xf32>
    tpu.vector_store %arg5[%c8, %c0_6], %161 {strides = array<i32>} : memref<16x200xf32, #tpu.memory_space<vmem>>, vector<4x200xf32>,
    %163 = vector.extract_strided_slice %0 {offsets = [0, 3, 0, 0], sizes = [1, 1, 4, 8], strides = [1, 1, 1, 1]} : vector<1x24x6x8xf32> to vector<1x1x4x8xf32>
    %164 = vector.shape_cast %163 : vector<1x1x4x8xf32> to vector<4x8xf32>
    %165 = vector.extract_strided_slice %0 {offsets = [0, 9, 0, 0], sizes = [1, 1, 4, 8], strides = [1, 1, 1, 1]} : vector<1x24x6x8xf32> to vector<1x1x4x8xf32>
    %166 = vector.shape_cast %165 : vector<1x1x4x8xf32> to vector<4x8xf32>
    %167 = vector.extract_strided_slice %0 {offsets = [0, 3, 1, 0], sizes = [1, 1, 4, 8], strides = [1, 1, 1, 1]} : vector<1x24x6x8xf32> to vector<1x1x4x8xf32>
    %168 = vector.shape_cast %167 : vector<1x1x4x8xf32> to vector<4x8xf32>
    %169 = vector.extract_strided_slice %0 {offsets = [0, 9, 1, 0], sizes = [1, 1, 4, 8], strides = [1, 1, 1, 1]} : vector<1x24x6x8xf32> to vector<1x1x4x8xf32>
    %170 = vector.shape_cast %169 : vector<1x1x4x8xf32> to vector<4x8xf32>
    %171 = vector.extract_strided_slice %0 {offsets = [0, 3, 2, 0], sizes = [1, 1, 4, 8], strides = [1, 1, 1, 1]} : vector<1x24x6x8xf32> to vector<1x1x4x8xf32>
    %172 = vector.shape_cast %171 : vector<1x1x4x8xf32> to vector<4x8xf32>
    %173 = vector.extract_strided_slice %0 {offsets = [0, 15, 0, 0], sizes = [1, 1, 4, 8], strides = [1, 1, 1, 1]} : vector<1x24x6x8xf32> to vector<1x1x4x8xf32>
    %174 = vector.shape_cast %173 : vector<1x1x4x8xf32> to vector<4x8xf32>
    %175 = vector.extract_strided_slice %0 {offsets = [0, 21, 0, 0], sizes = [1, 1, 4, 8], strides = [1, 1, 1, 1]} : vector<1x24x6x8xf32> to vector<1x1x4x8xf32>
    %176 = vector.shape_cast %175 : vector<1x1x4x8xf32> to vector<4x8xf32>
    %177 = vector.extract_strided_slice %0 {offsets = [0, 15, 1, 0], sizes = [1, 1, 4, 8], strides = [1, 1, 1, 1]} : vector<1x24x6x8xf32> to vector<1x1x4x8xf32>
    %178 = vector.shape_cast %177 : vector<1x1x4x8xf32> to vector<4x8xf32>
    %179 = vector.extract_strided_slice %0 {offsets = [0, 21, 1, 0], sizes = [1, 1, 4, 8], strides = [1, 1, 1, 1]} : vector<1x24x6x8xf32> to vector<1x1x4x8xf32>
    %180 = vector.shape_cast %179 : vector<1x1x4x8xf32> to vector<4x8xf32>
    %181 = vector.extract_strided_slice %0 {offsets = [0, 15, 2, 0], sizes = [1, 1, 4, 8], strides = [1, 1, 1, 1]} : vector<1x24x6x8xf32> to vector<1x1x4x8xf32>
    %182 = vector.shape_cast %181 : vector<1x1x4x8xf32> to vector<4x8xf32>
    %183 = vector.extract_strided_slice %0 {offsets = [0, 4, 0, 0], sizes = [1, 1, 4, 8], strides = [1, 1, 1, 1]} : vector<1x24x6x8xf32> to vector<1x1x4x8xf32>
    %184 = vector.shape_cast %183 : vector<1x1x4x8xf32> to vector<4x8xf32>
    %185 = vector.extract_strided_slice %0 {offsets = [0, 10, 0, 0], sizes = [1, 1, 4, 8], strides = [1, 1, 1, 1]} : vector<1x24x6x8xf32> to vector<1x1x4x8xf32>
    %186 = vector.shape_cast %185 : vector<1x1x4x8xf32> to vector<4x8xf32>
    %187 = vector.extract_strided_slice %0 {offsets = [0, 4, 1, 0], sizes = [1, 1, 4, 8], strides = [1, 1, 1, 1]} : vector<1x24x6x8xf32> to vector<1x1x4x8xf32>
    %188 = vector.shape_cast %187 : vector<1x1x4x8xf32> to vector<4x8xf32>
    %189 = vector.extract_strided_slice %0 {offsets = [0, 10, 1, 0], sizes = [1, 1, 4, 8], strides = [1, 1, 1, 1]} : vector<1x24x6x8xf32> to vector<1x1x4x8xf32>
    %190 = vector.shape_cast %189 : vector<1x1x4x8xf32> to vector<4x8xf32>
    %191 = vector.extract_strided_slice %0 {offsets = [0, 4, 2, 0], sizes = [1, 1, 4, 8], strides = [1, 1, 1, 1]} : vector<1x24x6x8xf32> to vector<1x1x4x8xf32>
    %192 = vector.shape_cast %191 : vector<1x1x4x8xf32> to vector<4x8xf32>
    %193 = vector.extract_strided_slice %0 {offsets = [0, 16, 0, 0], sizes = [1, 1, 4, 8], strides = [1, 1, 1, 1]} : vector<1x24x6x8xf32> to vector<1x1x4x8xf32>
    %194 = vector.shape_cast %193 : vector<1x1x4x8xf32> to vector<4x8xf32>
    %195 = vector.extract_strided_slice %0 {offsets = [0, 22, 0, 0], sizes = [1, 1, 4, 8], strides = [1, 1, 1, 1]} : vector<1x24x6x8xf32> to vector<1x1x4x8xf32>
    %196 = vector.shape_cast %195 : vector<1x1x4x8xf32> to vector<4x8xf32>
    %197 = vector.extract_strided_slice %0 {offsets = [0, 16, 1, 0], sizes = [1, 1, 4, 8], strides = [1, 1, 1, 1]} : vector<1x24x6x8xf32> to vector<1x1x4x8xf32>
    %198 = vector.shape_cast %197 : vector<1x1x4x8xf32> to vector<4x8xf32>
    %199 = vector.extract_strided_slice %0 {offsets = [0, 22, 1, 0], sizes = [1, 1, 4, 8], strides = [1, 1, 1, 1]} : vector<1x24x6x8xf32> to vector<1x1x4x8xf32>
    %200 = vector.shape_cast %199 : vector<1x1x4x8xf32> to vector<4x8xf32>
    %201 = vector.extract_strided_slice %0 {offsets = [0, 16, 2, 0], sizes = [1, 1, 4, 8], strides = [1, 1, 1, 1]} : vector<1x24x6x8xf32> to vector<1x1x4x8xf32>
    %202 = vector.shape_cast %201 : vector<1x1x4x8xf32> to vector<4x8xf32>
    %203 = vector.extract_strided_slice %0 {offsets = [0, 5, 0, 0], sizes = [1, 1, 4, 8], strides = [1, 1, 1, 1]} : vector<1x24x6x8xf32> to vector<1x1x4x8xf32>
    %204 = vector.shape_cast %203 : vector<1x1x4x8xf32> to vector<4x8xf32>
    %205 = vector.extract_strided_slice %0 {offsets = [0, 11, 0, 0], sizes = [1, 1, 4, 8], strides = [1, 1, 1, 1]} : vector<1x24x6x8xf32> to vector<1x1x4x8xf32>
    %206 = vector.shape_cast %205 : vector<1x1x4x8xf32> to vector<4x8xf32>
    %207 = vector.extract_strided_slice %0 {offsets = [0, 5, 1, 0], sizes = [1, 1, 4, 8], strides = [1, 1, 1, 1]} : vector<1x24x6x8xf32> to vector<1x1x4x8xf32>
    %208 = vector.shape_cast %207 : vector<1x1x4x8xf32> to vector<4x8xf32>
    %209 = vector.extract_strided_slice %0 {offsets = [0, 11, 1, 0], sizes = [1, 1, 4, 8], strides = [1, 1, 1, 1]} : vector<1x24x6x8xf32> to vector<1x1x4x8xf32>
    %210 = vector.shape_cast %209 : vector<1x1x4x8xf32> to vector<4x8xf32>
    %211 = vector.extract_strided_slice %0 {offsets = [0, 5, 2, 0], sizes = [1, 1, 4, 8], strides = [1, 1, 1, 1]} : vector<1x24x6x8xf32> to vector<1x1x4x8xf32>
    %212 = vector.shape_cast %211 : vector<1x1x4x8xf32> to vector<4x8xf32>
    %213 = tpu.concatenate %164, %166, %168, %170, %172, %174, %176, %178, %180, %182, %184, %186, %188, %190, %192, %194 in 1 : vector<4x8xf32>, vector<4x8xf32>, vector<4x8xf32>, vector<4x8xf32>, vector<4x8xf32>, vector<4x8xf32>, vector<4x8xf32>, vector<4x8xf32>, vector<4x8xf32>, vector<4x8xf32>, vector<4x8xf32>, vector<4x8xf32>, vector<4x8xf32>, vector<4x8xf32>, vector<4x8xf32>, vector<4x8xf32> -> vector<4x128xf32>
    %214 = tpu.concatenate %196, %198, %200, %202, %204, %206, %208, %210, %212 in 1 : vector<4x8xf32>, vector<4x8xf32>, vector<4x8xf32>, vector<4x8xf32>, vector<4x8xf32>, vector<4x8xf32>, vector<4x8xf32>, vector<4x8xf32>, vector<4x8xf32> -> vector<4x72xf32>
    %215 = tpu.concatenate %213, %214 in 1 : vector<4x128xf32>, vector<4x72xf32> -> vector<4x200xf32>
    %c12 = arith.constant 12 : index
    %c0_7 = arith.constant 0 : index
    %216 = vector.load %arg5[%c12, %c0_7] : memref<16x200xf32, #tpu.memory_space<vmem>>, vector<4x200xf32>
    tpu.vector_store %arg5[%c12, %c0_7], %215 {strides = array<i32>} : memref<16x200xf32, #tpu.memory_space<vmem>>, vector<4x200xf32>,
    %c0_8 = arith.constant 0 : index
    %c0_9 = arith.constant 0 : index
    %217 = vector.load %arg5[%c0_8, %c0_9] : memref<16x200xf32, #tpu.memory_space<vmem>>, vector<16x200xf32>
    %c0_10 = arith.constant 0 : index
    %c0_11 = arith.constant 0 : index
    %218 = vector.load %arg2[%c0_10, %c0_11] : memref<200x8xf32, #tpu.memory_space<vmem>>, vector<200x8xf32>
    %cst = arith.constant dense<0.000000e+00> : vector<16x8xf32>
    %219 = tpu.matmul %217, %218, %cst {dimension_numbers = #tpu.dot_dimension_numbers<[1], [0], [0], [1], [0, 0, 1, 1], [], []>, precision = #tpu.contract_precision<fp32>} : vector<16x200xf32>, vector<200x8xf32>, vector<16x8xf32> -> vector<16x8xf32>
    %c0_12 = arith.constant 0 : index
    %c0_13 = arith.constant 0 : index
    %220 = vector.load %arg3[%c0_12, %c0_13] : memref<1x8xf32, #tpu.memory_space<vmem>>, vector<1x8xf32>
    %221 = vector.broadcast %220 : vector<1x8xf32> to vector<16x8xf32>
    %222 = arith.addf %219, %221 : vector<16x8xf32>
    %223 = vector.shape_cast %222 : vector<16x8xf32> to vector<1x16x8xf32>
    %c0_14 = arith.constant 0 : index
    %c0_15 = arith.constant 0 : index
    %c0_16 = arith.constant 0 : index
    %224 = vector.load %arg4[%c0_14, %c0_15, %c0_16] : memref<1x16x8xf32, #tpu.memory_space<vmem>>, vector<1x16x8xf32>
    tpu.vector_store %arg4[%c0_14, %c0_15, %c0_16], %223 {strides = array<i32>} : memref<1x16x8xf32, #tpu.memory_space<vmem>>, vector<1x16x8xf32>,
    return
  }
  func.func @transform_0(%arg0: i32) -> (i32, i32, i32, i32) {
    %c0_i32 = arith.constant 0 : i32
    %c0_i32_0 = arith.constant 0 : i32
    %c0_i32_1 = arith.constant 0 : i32
    %c0_i32_2 = arith.constant 0 : i32
    return %arg0, %c0_i32, %c0_i32_0, %c0_i32_1 : i32, i32, i32, i32
  }
  func.func @transform_1(%arg0: i32) -> (i32, i32) {
    %c0_i32 = arith.constant 0 : i32
    %c0_i32_0 = arith.constant 0 : i32
    %c0_i32_1 = arith.constant 0 : i32
    return %c0_i32, %c0_i32_0 : i32, i32
  }
  func.func @transform_2(%arg0: i32) -> (i32, i32) {
    %c0_i32 = arith.constant 0 : i32
    %c0_i32_0 = arith.constant 0 : i32
    %c0_i32_1 = arith.constant 0 : i32
    return %c0_i32, %c0_i32_0 : i32, i32
  }
  func.func @transform_3(%arg0: i32) -> (i32, i32, i32) {
    %c0_i32 = arith.constant 0 : i32
    %c0_i32_0 = arith.constant 0 : i32
    %c0_i32_1 = arith.constant 0 : i32
    return %arg0, %c0_i32, %c0_i32_0 : i32, i32, i32
  }
}

</mosaic_0001>

<bundles_post_ra>
// kernel: h_analysis_transform_forward.3
= control target key start
LH: loop header
LB: loop body
LE: loop exit
PB: predicated region body
PF: predicated region fallthrough
CT: control target
= control target key end

     0   :  { %s4553_s12 = smov 0   ;;  %s6410_s0 = inlined_call_operand.vmem [shape: f32[2,18,18,4], index: 0, kind: input, shape index: {}]   ;;  %s6411_s1 = inlined_call_operand.vmem [shape: f32[36,8], index: 1, kind: input, shape index: {}]   ;;  %s6412_s2 = inlined_call_operand.vmem [shape: f32[1,8], index: 2, kind: input, shape index: {}]   ;;  %s6413_s3 = inlined_call_operand.vmem [shape: f32[2,256,8], index: 3, kind: output, shape index: {}]  }
   0x1 LB: > { %s3674_s13 = sadd.s32 4294967295, %s4523_s12   ;;  %p3678_p0 = scmp.ge.s32.totalorder %s4523_s12, 1  ;;  %s4523_s12 = sphi %s4553_s12, %s13_s12  }
   0x2   : > { %p137_p1 = scmp.lt.s32.totalorder %s4523_s12, 3 }
   0x4   : > { %p138_p2 = pnand %p3678_p0, %p137_p1 }
   0x6   : > { %141 = sbr.rel (%p138_p2) target bundleno = 1014 (0x3f6), region = 32 }
   0xd   : > { %p161_p3 = scmp.lt.s32.totalorder %s3674_s13, 1  ;;  %s4525_s18 = smov 12   ;;  %vm294_vm0 = vcmask 1045504   ;;  %vm282_vm1 = vcmask 1046528   ;;  %v4637_v44 = vld [vmem:[%s6411_s1] sm:$0xff]  ;;  %v4642_v45 = vld [vmem:[%s6411_s1 + $0x8] sm:$0xff] }
   0xe   : > { %s4526_s19 = smov 8   ;;  %s4527_s20 = smov 4   ;;  %v6417_v48 = vand.u32 4294901760, %v4637_v44  ;;  %v6416_v49 = vand.u32 4294901760, %v4642_v45  ;;  %v4659_v51 = vld [vmem:[%s6411_s1 + $0x10] sm:$0xff]  ;;  %v4664_v52 = vld [vmem:[%s6411_s1 + $0x18] sm:$0xff] }
   0xf   : > { %s6526_s13 = smov (!%p161_p3, %s3674_s13), 1  ;;  %s4528_s21 = smov 16   ;;  %v6415_v54 = vand.u32 4294901760, %v4659_v51  ;;  %v6414_v55 = vand.u32 4294901760, %v4664_v52  ;;  %v1616_v58 = vld [vmem:[%s6411_s1 + $0x20] sm:$0xf] }
  0x10   : > { %s4496_s14 = smul.u32 432, %s6526_s13  ;;  %s4529_s22 = smov 20   ;;  %v4654_v50 = vpack.c.bf16 %v6416_v49, %v6417_v48  ;;  %vm1720_vm2 = vcmask 1043456   ;;  %vm368_vm3 = vcmask 31744   ;;  %vm371_vm4 = vcmask 64512  }
  0x11   : > { %s4530_s23 = smov 24   ;;  %s4531_s24 = smov 28   ;;  %v4675_v56 = vpack.c.bf16 %v6414_v55, %v6415_v54  ;;  %v4687_v59 = vsel %vm1720_vm2, %v1616_v58, 0  ;;  %vm374_vm5 = vcmask 97280   ;;  %vm377_vm6 = vcmask 130048  }
  0x12   : > { %s4567_s17 = scalar_lea.vmem %s6410_s0, %s4496_s14  ;;  %s4532_s29 = smov 32   ;;  %4281 = vmatprep.subr.bf16.mxu0 %v4654_v50  ;;  %4257 = vmatprep.subr.bf16.mxu1 %v4654_v50  ;;  %v4691_v60 = vand.u32 4294901760, %v4687_v59  ;;  %vm380_vm7 = vcmask 162816   ;;  %vm383_vm8 = vcmask 195584   ;;  %vm386_vm9 = vcmask 228352  }
  0x13   : > { %v175_v0 = vld [vmem:[%s4567_s17 + $0x20] sm:$0xff]  ;;  %v174_v1 = vld [vmem:[%s4567_s17 + $0x18] sm:$0xff]  ;;  %v172_v5 = vld [vmem:[%s4567_s17 + $0x8] sm:$0xff]  ;;  %4283 = vmatpush3.bf16.msra.mxu0 %v4654_v50  ;;  %4259 = vmatpush3.bf16.msra.mxu1 %v4654_v50  ;;  %vm389_vm10 = vcmask 261120   ;;  %vm392_vm11 = vcmask 293888  }
  0x14   : > { %v171_v2 = vld [vmem:[%s4567_s17] sm:$0xff]  ;;  %v4572_v3 = vand.u32 2147483647, %v175_v0  ;;  %v4574_v4 = vand.u32 2147483647, %v174_v1  ;;  %v178_v32 = vld [vmem:[%s4567_s17 + $0x38] sm:$0xff]  ;;  %4285 = vmatprep.subr.bf16.mxu0 %v4675_v56  ;;  %4261 = vmatprep.subr.bf16.mxu1 %v4675_v56 }
  0x15   : > { %v4577_v6 = vand.u32 2147483647, %v171_v2  ;;  %v4579_v7 = vand.u32 2147483647, %v172_v5  ;;  %v173_v8 = vld [vmem:[%s4567_s17 + $0x10] sm:$0x3] }
  0x16   : > { %310 = vrot.lane.b32.xlu1 %v4572_v3, %s4525_s18  ;;  %308 = vrot.lane.b32.xlu0 %v4574_v4, %s4525_s18  ;;  %v227_v9 = vand.u32 2147483647, %v173_v8  ;;  %v176_v10 = vld [vmem:[%s4567_s17 + $0x28] sm:$0x3]  ;;  %v316_v20 = vrot.slane %v4572_v3, 1  ;;  %v315_v21 = vrot.slane %v4574_v4, 1 }
  0x17   : > { %v295_v11 = vrot.slane %v4577_v6, 2  ;;  %v296_v12 = vrot.slane %v4579_v7, 2  ;;  %v283_v13 = vrot.slane %v4577_v6, 1  ;;  %v284_v14 = vrot.slane %v4579_v7, 1  ;;  %v177_v33 = vld [vmem:[%s4567_s17 + $0x30] sm:$0xff]  ;;  %4287 = vmatpush3.bf16.msra.mxu0 %v4675_v56  ;;  %4263 = vmatpush3.bf16.msra.mxu1 %v4675_v56  ;;  %v180_v61 = vld [vmem:[%s4567_s17 + $0x48] sm:$0xff] }
  0x18   : > { %v298_v15 = vrot.slane %v227_v9, 2  ;;  %v286_v16 = vrot.slane %v227_v9, 1  ;;  %v230_v17 = vand.u32 2147483647, %v176_v10  ;;  %v317_v25 = vsel %vm282_vm1, %v315_v21, %v316_v20  ;;  %v179_v38 = vld [vmem:[%s4567_s17 + $0x40] sm:$0x3]  ;;  %4090 = vmatprep.subr.mxu0 %v4691_v60  ;;  %3916 = vmatprep.subr.mxu1 %v4691_v60 }
  0x19   : > { %v297_v18 = vsel %vm294_vm0, %v295_v11, %v296_v12  ;;  %v285_v19 = vsel %vm282_vm1, %v283_v13, %v284_v14  ;;  %v327_v27 = vrot.slane %v4572_v3, 2  ;;  %v326_v29 = vrot.slane %v4574_v4, 2  ;;  %v181_v62 = vld [vmem:[%s4567_s17 + $0x50] sm:$0xff]  ;;  %v182_v5 = vld [vmem:[%s4567_s17 + $0x58] sm:$0x3] }
  0x1a   : > { %300 = vrot.lane.b32.xlu1 %v297_v18, %s4526_s19  ;;  %288 = vrot.lane.b32.xlu0 %v285_v19, %s4527_s20  ;;  %v299_v22 = vsel %vm294_vm0, %v296_v12, %v298_v15  ;;  %v287_v23 = vsel %vm282_vm1, %v284_v14, %v286_v16  ;;  %v318_v24 = vrot.slane %v230_v17, 1  ;;  %v329_v28 = vrot.slane %v230_v17, 2  ;;  %v183_v17 = vld [vmem:[%s4567_s17 + $0x60] sm:$0xff]  ;;  %v184_v18 = vld [vmem:[%s4567_s17 + $0x68] sm:$0xff] }
  0x1b   : > { %v328_v31 = vsel %vm294_vm0, %v326_v29, %v327_v27  ;;  %v4613_v34 = vand.u32 2147483647, %v178_v32  ;;  %v4615_v35 = vand.u32 2147483647, %v177_v33  ;;  %v233_v40 = vand.u32 2147483647, %v179_v38  ;;  %4091 = vmatpush3.msra.mxu0 %v4691_v60  ;;  %3917 = vmatpush3.msra.mxu1 %v4691_v60 }
  0x1c   : > { %v319_v26 = vsel %vm282_vm1, %v316_v20, %v318_v24  ;;  %v330_v30 = vsel %vm294_vm0, %v327_v27, %v329_v28  ;;  %v4704_v63 = vand.u32 2147483647, %v180_v61  ;;  %v4706_v0 = vand.u32 2147483647, %v181_v62  ;;  %v186_v33 = vld [vmem:[%s4567_s17 + $0x78] sm:$0xff] }
  0x1d   : > { %v346_v36 = vrot.slane %v4615_v35, 1  ;;  %v347_v37 = vrot.slane %v4613_v34, 1  ;;  %v357_v41 = vrot.slane %v4615_v35, 2  ;;  %v358_v42 = vrot.slane %v4613_v34, 2 }
  0x1e   : > { %302 = vrot.lane.b32.xlu1 %v299_v22, %s4526_s19  ;;  %290 = vrot.lane.b32.xlu0 %v287_v23, %s4527_s20  ;;  %v349_v43 = vrot.slane %v233_v40, 1  ;;  %v360_v53 = vrot.slane %v233_v40, 2  ;;  %v434_v1 = vrot.slane %v4704_v63, 1  ;;  %v435_v2 = vrot.slane %v4706_v0, 1  ;;  %v185_v23 = vld [vmem:[%s4567_s17 + $0x70] sm:$0x3] }
  0x1f   : > { %v348_v39 = vsel %vm282_vm1, %v346_v36, %v347_v37  ;;  %v359_v46 = vsel %vm294_vm0, %v357_v41, %v358_v42  ;;  %v236_v9 = vand.u32 2147483647, %v182_v5  ;;  %v445_v10 = vrot.slane %v4704_v63, 2  ;;  %v187_v36 = vld [vmem:[%s4567_s17 + $0x80] sm:$0xff] }
  0x20   : > { %v350_v47 = vsel %vm282_vm1, %v347_v37, %v349_v43  ;;  %v361_v57 = vsel %vm294_vm0, %v358_v42, %v360_v53  ;;  %v436_v8 = vsel %vm282_vm1, %v434_v1, %v435_v2  ;;  %v446_v11 = vrot.slane %v4706_v0, 2 }
  0x21   : > { %v437_v12 = vrot.slane %v236_v9, 1  ;;  %v448_v15 = vrot.slane %v236_v9, 2  ;;  %v4739_v19 = vand.u32 2147483647, %v183_v17  ;;  %v4741_v20 = vand.u32 2147483647, %v184_v18 }
  0x22   : > { %322 = vrot.lane.b32.xlu1 %v319_v26, %s4528_s21  ;;  %320 = vrot.lane.b32.xlu0 %v317_v25, %s4528_s21  ;;  %v447_v13 = vsel %vm294_vm0, %v445_v10, %v446_v11  ;;  %v4774_v37 = vand.u32 2147483647, %v186_v33  ;;  %v4776_v38 = vand.u32 2147483647, %v187_v36 }
  0x23   : > { %v438_v14 = vsel %vm282_vm1, %v435_v2, %v437_v12  ;;  %v449_v16 = vsel %vm294_vm0, %v446_v11, %v448_v15  ;;  %v513_v21 = vrot.slane %v4739_v19, 1  ;;  %v514_v22 = vrot.slane %v4741_v20, 1 }
  0x24   : > { %v525_v27 = vrot.slane %v4741_v20, 2  ;;  %v592_v41 = vrot.slane %v4774_v37, 1  ;;  %v593_v42 = vrot.slane %v4776_v38, 1  ;;  %v603_v62 = vrot.slane %v4774_v37, 2 }
  0x25   : > { %v515_v24 = vsel %vm282_vm1, %v513_v21, %v514_v22  ;;  %v604_v1 = vrot.slane %v4776_v38, 2 }
  0x26   : > { %333 = vrot.lane.b32.xlu1 %v330_v30, %s4529_s22  ;;  %331 = vrot.lane.b32.xlu0 %v328_v31, %s4529_s22  ;;  %v594_v53 = vsel %vm282_vm1, %v592_v41, %v593_v42 }
  0x27   : > { %v605_v9 = vsel %vm294_vm0, %v603_v62, %v604_v1 }
  0x2a   : > { %341 = vrot.lane.b32.xlu1 %v4613_v34, %s4530_s23  ;;  %339 = vrot.lane.b32.xlu0 %v4615_v35, %s4530_s23 }
  0x2e   : > { %397 = vrot.lane.b32.xlu1 %v319_v26, %s4527_s20  ;;  %395 = vrot.lane.b32.xlu0 %v317_v25, %s4527_s20  ;;  %v239_v25 = vand.u32 2147483647, %v185_v23  ;;  %v524_v26 = vrot.slane %v4739_v19, 2 }
  0x30   : > { %v516_v28 = vrot.slane %v239_v25, 1  ;;  %v526_v29 = vsel %vm294_vm0, %v524_v26, %v525_v27 }
  0x32   : > { %351 = vrot.lane.b32.xlu1 %v348_v39, %s4531_s24  ;;  %401 = vrot.lane.b32.xlu0 %v328_v31, %s4526_s19  ;;  %v527_v31 = vrot.slane %v239_v25, 2  ;;  %v190_v25 = vld [vmem:[%s4567_s17 + $0x98] sm:$0xff] }
  0x34   : > { %v528_v32 = vsel %vm294_vm0, %v525_v27, %v527_v31 }
  0x36   : > { %407 = vrot.lane.b32.xlu1 %v4615_v35, %s4525_s18  ;;  %403 = vrot.lane.b32.xlu0 %v330_v30, %s4526_s19  ;;  %v517_v30 = vsel %vm282_vm1, %v514_v22, %v516_v28  ;;  %v189_v22 = vld [vmem:[%s4567_s17 + $0x90] sm:$0xff] }
  0x37   : > { %v4822_v27 = vand.u32 2147483647, %v189_v22 }
  0x3a   : > { %362 = vrot.lane.b32.xlu1 %v359_v46, %s4532_s29  ;;  %353 = vrot.lane.b32.xlu0 %v350_v47, %s4531_s24 }
  0x3e   : > { %413 = vrot.lane.b32.xlu1 %v348_v39, %s4528_s21  ;;  %409 = vrot.lane.b32.xlu0 %v4613_v34, %s4525_s18 }
  0x42   : > { %415 = vrot.lane.b32.xlu1 %v350_v47, %s4528_s21  ;;  %364 = vrot.lane.b32.xlu0 %v361_v57, %s4532_s29 }
  0x46   : > { %474 = vrot.lane.b32.xlu1 %v348_v39, %s4527_s20  ;;  %419 = vrot.lane.b32.xlu0 %v359_v46, %s4529_s22 }
  0x4a   : > { %427 = vrot.lane.b32.xlu1 %v4704_v63, %s4530_s23  ;;  %421 = vrot.lane.b32.xlu0 %v361_v57, %s4529_s22 }
  0x4e   : > { %480 = vrot.lane.b32.xlu1 %v359_v46, %s4526_s19  ;;  %476 = vrot.lane.b32.xlu0 %v350_v47, %s4527_s20  ;;  %v188_v47 = vld [vmem:[%s4567_s17 + $0x88] sm:$0x3] }
  0x52   : > { %439 = vrot.lane.b32.xlu1 %v436_v8, %s4531_s24  ;;  %429 = vrot.lane.b32.xlu0 %v4706_v0, %s4530_s23 }
  0x56   : > { %486 = vrot.lane.b32.xlu1 %v4704_v63, %s4525_s18  ;;  %482 = vrot.lane.b32.xlu0 %v361_v57, %s4526_s19  ;;  %v242_v57 = vand.u32 2147483647, %v188_v47  ;;  %v191_v47 = vld [vmem:[%s4567_s17 + $0xa0] sm:$0x3] }
  0x58   : > { %v595_v2 = vrot.slane %v242_v57, 1 }
  0x5a   : > { %450 = vrot.lane.b32.xlu1 %v447_v13, %s4532_s29  ;;  %441 = vrot.lane.b32.xlu0 %v438_v14, %s4531_s24  ;;  %v596_v10 = vsel %vm282_vm1, %v593_v42, %v595_v2 }
  0x5e   : > { %492 = vrot.lane.b32.xlu1 %v436_v8, %s4528_s21  ;;  %488 = vrot.lane.b32.xlu0 %v4706_v0, %s4525_s18 }
  0x62   : > { %494 = vrot.lane.b32.xlu1 %v438_v14, %s4528_s21  ;;  %452 = vrot.lane.b32.xlu0 %v449_v16, %s4532_s29 }
  0x66   : > { %553 = vrot.lane.b32.xlu1 %v436_v8, %s4527_s20  ;;  %498 = vrot.lane.b32.xlu0 %v447_v13, %s4529_s22 }
  0x6a   : > { %506 = vrot.lane.b32.xlu1 %v4739_v19, %s4530_s23  ;;  %500 = vrot.lane.b32.xlu0 %v449_v16, %s4529_s22 }
  0x6e   : > { %559 = vrot.lane.b32.xlu1 %v447_v13, %s4526_s19  ;;  %555 = vrot.lane.b32.xlu0 %v438_v14, %s4527_s20  ;;  %v606_v13 = vrot.slane %v242_v57, 2 }
  0x72   : > { %518 = vrot.lane.b32.xlu1 %v515_v24, %s4531_s24  ;;  %508 = vrot.lane.b32.xlu0 %v4741_v20, %s4530_s23 }
  0x76   : > { %565 = vrot.lane.b32.xlu1 %v4739_v19, %s4525_s18  ;;  %561 = vrot.lane.b32.xlu0 %v449_v16, %s4526_s19  ;;  %v607_v16 = vsel %vm294_vm0, %v604_v1, %v606_v13 }
  0x7a   : > { %529 = vrot.lane.b32.xlu1 %v526_v29, %s4532_s29  ;;  %520 = vrot.lane.b32.xlu0 %v517_v30, %s4531_s24 }
  0x7e   : > { %571 = vrot.lane.b32.xlu1 %v515_v24, %s4528_s21  ;;  %567 = vrot.lane.b32.xlu0 %v4741_v20, %s4525_s18 }
  0x82   : > { %573 = vrot.lane.b32.xlu1 %v517_v30, %s4528_s21  ;;  %531 = vrot.lane.b32.xlu0 %v528_v32, %s4532_s29 }
  0x86   : > { %632 = vrot.lane.b32.xlu1 %v515_v24, %s4527_s20  ;;  %577 = vrot.lane.b32.xlu0 %v526_v29, %s4529_s22 }
  0x88   : > { %v4778_v39 = vpop.permute.xlu1 %310  ;;  %v309_v40 = vpop.permute.xlu0 %308 }
  0x8a   : > { %585 = vrot.lane.b32.xlu1 %v4774_v37, %s4530_s23  ;;  %579 = vrot.lane.b32.xlu0 %v528_v32, %s4529_s22 }
  0x8c   : > { %v301_v43 = vpop.permute.xlu1 %300  ;;  %v289_v46 = vpop.permute.xlu0 %288 }
  0x8d   : > { %v369_v21 = vsel %vm368_vm3, %v4577_v6, %v289_v46  ;;  %v4824_v6 = vand.u32 2147483647, %v190_v25 }
  0x8e   : > { %638 = vrot.lane.b32.xlu1 %v526_v29, %s4526_s19  ;;  %634 = vrot.lane.b32.xlu0 %v517_v30, %s4527_s20  ;;  %v372_v26 = vsel %vm371_vm4, %v369_v21, %v301_v43 }
  0x8f   : > { %v375_v29 = vsel %vm374_vm5, %v372_v26, %v309_v40  ;;  %v671_v40 = vrot.slane %v4822_v27, 1  ;;  %v672_v41 = vrot.slane %v4824_v6, 1 }
  0x90   : > { %v303_v58 = vpop.permute.xlu1 %302  ;;  %v291_v61 = vpop.permute.xlu0 %290 }
  0x91   : > { %v370_v28 = vsel %vm368_vm3, %v4579_v7, %v291_v61  ;;  %v245_v61 = vand.u32 2147483647, %v191_v47 }
  0x92   : > { %597 = vrot.lane.b32.xlu1 %v594_v53, %s4531_s24  ;;  %587 = vrot.lane.b32.xlu0 %v4776_v38, %s4530_s23  ;;  %v373_v7 = vsel %vm371_vm4, %v370_v28, %v303_v58  ;;  %v673_v58 = vsel %vm282_vm1, %v671_v40, %v672_v41 }
  0x93   : > { %v376_v57 = vsel %vm374_vm5, %v373_v7, %v4778_v39 }
  0x94   : > { %v4794_v5 = vpop.permute.xlu1 %322  ;;  %v321_v8 = vpop.permute.xlu0 %320 }
  0x95   : > { %v379_v2 = vsel %vm377_vm6, %v376_v57, %v4794_v5 }
  0x96   : > { %644 = vrot.lane.b32.xlu1 %v4774_v37, %s4525_s18  ;;  %640 = vrot.lane.b32.xlu0 %v528_v32, %s4526_s19  ;;  %v378_v32 = vsel %vm377_vm6, %v375_v29, %v321_v8 }
  0x98   : > { %v334_v11 = vpop.permute.xlu1 %333  ;;  %v332_v12 = vpop.permute.xlu0 %331 }
  0x99   : > { %v381_v33 = vsel %vm380_vm7, %v378_v32, %v332_v12  ;;  %v382_v8 = vsel %vm380_vm7, %v379_v2, %v334_v11  ;;  %v674_v12 = vrot.slane %v245_v61, 1  ;;  %v685_v32 = vrot.slane %v245_v61, 2  ;;  %v192_v2 = vld [vmem:[%s4567_s17 + $0xa8] sm:$0xff] }
  0x9a   : > { %608 = vrot.lane.b32.xlu1 %v605_v9, %s4532_s29  ;;  %599 = vrot.lane.b32.xlu0 %v596_v10, %s4531_s24 }
  0x9c   : > { %v342_v14 = vpop.permute.xlu1 %341  ;;  %v340_v15 = vpop.permute.xlu0 %339 }
  0x9d   : > { %v384_v36 = vsel %vm383_vm8, %v381_v33, %v340_v15  ;;  %v385_v39 = vsel %vm383_vm8, %v382_v8, %v342_v14 }
  0x9e   : > { %650 = vrot.lane.b32.xlu1 %v594_v53, %s4528_s21  ;;  %646 = vrot.lane.b32.xlu0 %v4776_v38, %s4525_s18 }
  0xa0   : > { %v4807_v17 = vpop.permute.xlu1 %397  ;;  %v4809_v18 = vpop.permute.xlu0 %395 }
  0xa2   : > { %652 = vrot.lane.b32.xlu1 %v596_v10, %s4528_s21  ;;  %610 = vrot.lane.b32.xlu0 %v607_v16, %s4532_s29 }
  0xa4   : > { %v352_v23 = vpop.permute.xlu1 %351  ;;  %v4816_v24 = vpop.permute.xlu0 %401 }
  0xa5   : > { %v387_v42 = vsel %vm386_vm9, %v384_v36, %v352_v23  ;;  %v675_v23 = vsel %vm282_vm1, %v672_v41, %v674_v12  ;;  %v456_v12 = vsel %vm368_vm3, %v4574_v4, %v4809_v18 }
  0xa6   : > { %711 = vrot.lane.b32.xlu1 %v594_v53, %s4527_s20  ;;  %656 = vrot.lane.b32.xlu0 %v605_v9, %s4529_s22 }
  0xa8   : > { %v4829_v30 = vpop.permute.xlu1 %407  ;;  %v4831_v31 = vpop.permute.xlu0 %403 }
  0xaa   : > { %664 = vrot.lane.b32.xlu1 %v4822_v27, %s4530_s23  ;;  %658 = vrot.lane.b32.xlu0 %v607_v16, %s4529_s22 }
  0xac   : > { %v363_v43 = vpop.permute.xlu1 %362  ;;  %v354_v46 = vpop.permute.xlu0 %353 }
  0xad   : > { %v390_v53 = vsel %vm389_vm10, %v387_v42, %v363_v43  ;;  %v388_v13 = vsel %vm386_vm9, %v385_v39, %v354_v46 }
  0xae   : > { %393 = vst.msk [vmem:[#allocation2] sm:$0xff] %vm392_vm11, %v390_v53  ;;  %717 = vrot.lane.b32.xlu1 %v605_v9, %s4526_s19  ;;  %713 = vrot.lane.b32.xlu0 %v596_v10, %s4527_s20  ;;  %v682_v9 = vrot.slane %v4822_v27, 2  ;;  %v683_v10 = vrot.slane %v4824_v6, 2 }
  0xb0   : > { %v4851_v62 = vpop.permute.xlu1 %413  ;;  %v4853_v1 = vpop.permute.xlu0 %409  ;;  %v684_v22 = vsel %vm294_vm0, %v682_v9, %v683_v10  ;;  %v686_v43 = vsel %vm294_vm0, %v683_v10, %v685_v32  ;;  %v193_v9 = vld [vmem:[%s4567_s17 + $0xb0] sm:$0xff] }
  0xb2   : > { %676 = vrot.lane.b32.xlu1 %v673_v58, %s4531_s24  ;;  %666 = vrot.lane.b32.xlu0 %v4824_v6, %s4530_s23 }
  0xb4   : > { %v4865_v15 = vpop.permute.xlu1 %415  ;;  %v365_v21 = vpop.permute.xlu0 %364 }
  0xb5   : > { %v391_v5 = vsel %vm389_vm10, %v388_v13, %v365_v21  ;;  %v1580_v11 = vld [vmem:[#allocation2] sm:$0xff]  ;;  %v4911_v13 = vand.u32 2147483647, %v192_v2  ;;  %v458_v21 = vsel %vm371_vm4, %v456_v12, %v4816_v24 }
  0xb6   : > { %394 = vst.msk [vmem:[#allocation2 + $0x8] sm:$0xff] %vm392_vm11, %v391_v5  ;;  %723 = vrot.lane.b32.xlu1 %v4822_v27, %s4525_s18  ;;  %719 = vrot.lane.b32.xlu0 %v607_v16, %s4526_s19  ;;  %v1625_v14 = vsel %vm392_vm11, %v1580_v11, 0  ;;  %v4915_v11 = vand.u32 2147483647, %v193_v9 }
  0xb7   : > { %v4875_v25 = vand.u32 4294901760, %v1625_v14 }
  0xb8   : > { %v4877_v26 = vpop.permute.xlu1 %474  ;;  %v420_v28 = vpop.permute.xlu0 %419 }
  0xb9   : > { %v4880_v29 = vsub.f32 %v1625_v14, %v4875_v25  ;;  %v460_v14 = vsel %vm374_vm5, %v458_v21, %v4829_v30  ;;  %v751_v30 = vrot.slane %v4915_v11, 1 }
  0xba   : > { %687 = vrot.lane.b32.xlu1 %v684_v22, %s4532_s29  ;;  %678 = vrot.lane.b32.xlu0 %v675_v23, %s4531_s24  ;;  %v462_v4 = vsel %vm377_vm6, %v460_v14, %v4851_v62 }
  0xbb   : > { %6459 = vst [vmem:[#allocation3_spill] sm:$0xff] %v4880_v29  ;;  %v1796_v16 = vand.u32 4294901760, %v4880_v29  ;;  %v464_v18 = vsel %vm380_vm7, %v462_v4, %v420_v28  ;;  %v457_v28 = vsel %vm368_vm3, %v4572_v3, %v4807_v17 }
  0xbc   : > { %v428_v33 = vpop.permute.xlu1 %427  ;;  %v422_v7 = vpop.permute.xlu0 %421 }
  0xbd   : > { %4092 = vmatprep.mubr.f32.mxu0 %v1796_v16  ;;  %v1797_v36 = vsub.f32 %v4880_v29, %v1796_v16  ;;  %v1581_v40 = vld [vmem:[#allocation2 + $0x8] sm:$0xff]  ;;  %v466_v24 = vsel %vm383_vm8, %v464_v18, %v428_v33  ;;  %v459_v33 = vsel %vm371_vm4, %v457_v28, %v4831_v31 }
  0xbe   : > { %729 = vrot.lane.b32.xlu1 %v673_v58, %s4528_s21  ;;  %725 = vrot.lane.b32.xlu0 %v4824_v6, %s4525_s18  ;;  %v1628_v41 = vsel %vm392_vm11, %v1581_v40, 0 }
  0xbf   : > { %v1798_v42 = vand.u32 4294901760, %v1797_v36  ;;  %v4891_v46 = vand.u32 4294901760, %v1628_v41 }
  0xc0   : > { %v4893_v47 = vpop.permute.xlu1 %480  ;;  %v4895_v53 = vpop.permute.xlu0 %476 }
  0xc1   : > { %3918 = vmatprep.mubr.f32.mxu1 %v1798_v42  ;;  %v4898_v57 = vsub.f32 %v1628_v41, %v4891_v46  ;;  %v194_v42 = vld [vmem:[%s4567_s17 + $0xb8] sm:$0x3] }
  0xc2   : > { %731 = vrot.lane.b32.xlu1 %v675_v23, %s4528_s21  ;;  %689 = vrot.lane.b32.xlu0 %v686_v43, %s4532_s29  ;;  %v248_v2 = vand.u32 2147483647, %v194_v42 }
  0xc3   : > { %6460 = vst [vmem:[#allocation4_spill] sm:$0xff] %v4898_v57  ;;  %v1806_v61 = vand.u32 4294901760, %v4898_v57 }
  0xc4   : > { %v440_v8 = vpop.permute.xlu1 %439  ;;  %v430_v39 = vpop.permute.xlu0 %429 }
  0xc5   : > { %4093 = vmatmul.mubr.f32.vlgmr.msra.gmra.mrb[0].mxu0 %v1806_v61  ;;  %v1807_v10 = vsub.f32 %v4898_v57, %v1806_v61  ;;  %v468_v36 = vsel %vm386_vm9, %v466_v24, %v440_v8  ;;  %v461_v8 = vsel %vm374_vm5, %v459_v33, %v4853_v1  ;;  %v762_v1 = vrot.slane %v4915_v11, 2 }
  0xc6   : > { %790 = vrot.lane.b32.xlu1 %v673_v58, %s4527_s20  ;;  %735 = vrot.lane.b32.xlu0 %v684_v22, %s4529_s22  ;;  %v750_v58 = vrot.slane %v4911_v13, 1  ;;  %v463_v3 = vsel %vm377_vm6, %v461_v8, %v4865_v15 }
  0xc7   : > { %v1808_v5 = vand.u32 4294901760, %v1807_v10  ;;  %v465_v17 = vsel %vm380_vm7, %v463_v3, %v422_v7 }
  0xc8   : > { %v4919_v16 = vpop.permute.xlu1 %486  ;;  %v4921_v32 = vpop.permute.xlu0 %482  ;;  %v752_v61 = vsel %vm282_vm1, %v750_v58, %v751_v30  ;;  %v467_v31 = vsel %vm383_vm8, %v465_v17, %v430_v39 }
  0xc9   : > { %3919 = vmatmul.mubr.f32.vlgmr.msra.gmra.mrb[0].mxu1 %v1808_v5 }
  0xca   : > { %743 = vrot.lane.b32.xlu1 %v4911_v13, %s4530_s23  ;;  %737 = vrot.lane.b32.xlu0 %v686_v43, %s4529_s22 }
  0xcc   : > { %v451_v40 = vpop.permute.xlu1 %450  ;;  %v442_v41 = vpop.permute.xlu0 %441 }
  0xcd   : > { %v470_v62 = vsel %vm389_vm10, %v468_v36, %v451_v40  ;;  %v469_v12 = vsel %vm386_vm9, %v467_v31, %v442_v41  ;;  %v764_v40 = vrot.slane %v248_v2, 2 }
  0xce   : > { %472 = vst.msk [vmem:[#allocation2 + $0x10] sm:$0xff] %vm392_vm11, %v470_v62  ;;  %796 = vrot.lane.b32.xlu1 %v684_v22, %s4526_s19  ;;  %792 = vrot.lane.b32.xlu0 %v675_v23, %s4527_s20  ;;  %v761_v22 = vrot.slane %v4911_v13, 2  ;;  %v753_v23 = vrot.slane %v248_v2, 1 }
  0xcf   : > { %v765_v8 = vsel %vm294_vm0, %v762_v1, %v764_v40 }
  0xd0   : > { %v4946_v9 = vpop.permute.xlu1 %492  ;;  %v4948_v10 = vpop.permute.xlu0 %488  ;;  %v763_v14 = vsel %vm294_vm0, %v761_v22, %v762_v1  ;;  %v754_v4 = vsel %vm282_vm1, %v751_v30, %v753_v23  ;;  %v195_v23 = vld [vmem:[%s4567_s17 + $0xc0] sm:$0xff]  ;;  %v196_v1 = vld [vmem:[%s4567_s17 + $0xc8] sm:$0xff] }
  0xd2   : > { %755 = vrot.lane.b32.xlu1 %v752_v61, %s4531_s24  ;;  %745 = vrot.lane.b32.xlu0 %v4915_v11, %s4530_s23 }
  0xd4   : > { %v4960_v21 = vpop.permute.xlu1 %494  ;;  %v453_v5 = vpop.permute.xlu0 %452 }
  0xd5   : > { %v471_v15 = vsel %vm389_vm10, %v469_v12, %v453_v5  ;;  %v1582_v7 = vld [vmem:[#allocation2 + $0x10] sm:$0xff] }
  0xd6   : > { %473 = vst.msk [vmem:[#allocation2 + $0x18] sm:$0xff] %vm392_vm11, %v471_v15  ;;  %802 = vrot.lane.b32.xlu1 %v4911_v13, %s4525_s18  ;;  %798 = vrot.lane.b32.xlu0 %v686_v43, %s4526_s19  ;;  %v1631_v39 = vsel %vm392_vm11, %v1582_v7, 0  ;;  %v535_v7 = vsel %vm368_vm3, %v4615_v35, %v4877_v26 }
  0xd7   : > { %v4970_v18 = vand.u32 4294901760, %v1631_v39 }
  0xd8   : > { %v4972_v24 = vpop.permute.xlu1 %553  ;;  %v499_v58 = vpop.permute.xlu0 %498 }
  0xd9   : > { %v4975_v36 = vsub.f32 %v1631_v39, %v4970_v18  ;;  %v5006_v39 = vand.u32 2147483647, %v195_v23 }
  0xda   : > { %766 = vrot.lane.b32.xlu1 %v763_v14, %s4532_s29  ;;  %757 = vrot.lane.b32.xlu0 %v754_v4, %s4531_s24 }
  0xdb   : > { %6461 = vst [vmem:[#allocation5_spill] sm:$0xff] %v4975_v36  ;;  %v1816_v43 = vand.u32 4294901760, %v4975_v36 }
  0xdc   : > { %v507_v41 = vpop.permute.xlu1 %506  ;;  %v501_v42 = vpop.permute.xlu0 %500 }
  0xdd   : > { %4095 = vmatprep.mubr.f32.mxu0 %v1816_v43  ;;  %v1817_v30 = vsub.f32 %v4975_v36, %v1816_v43  ;;  %v1583_v62 = vld [vmem:[#allocation2 + $0x18] sm:$0xff]  ;;  %v537_v43 = vsel %vm371_vm4, %v535_v7, %v4893_v47 }
  0xde   : > { %808 = vrot.lane.b32.xlu1 %v752_v61, %s4528_s21  ;;  %804 = vrot.lane.b32.xlu0 %v4915_v11, %s4525_s18  ;;  %v1634_v28 = vsel %vm392_vm11, %v1583_v62, 0  ;;  %v539_v62 = vsel %vm374_vm5, %v537_v43, %v4919_v16 }
  0xdf   : > { %v1818_v33 = vand.u32 4294901760, %v1817_v30  ;;  %v4986_v3 = vand.u32 4294901760, %v1634_v28  ;;  %v5010_v30 = vand.u32 2147483647, %v196_v1  ;;  %v541_v35 = vsel %vm377_vm6, %v539_v62, %v4946_v9 }
  0xe0   : > { %v4988_v2 = vpop.permute.xlu1 %559  ;;  %v4990_v17 = vpop.permute.xlu0 %555  ;;  %v543_v26 = vsel %vm380_vm7, %v541_v35, %v499_v58  ;;  %v536_v58 = vsel %vm368_vm3, %v4613_v34, %v4895_v53 }
  0xe1   : > { %3921 = vmatprep.mubr.f32.mxu1 %v1818_v33  ;;  %v4993_v31 = vsub.f32 %v1634_v28, %v4986_v3  ;;  %v545_v47 = vsel %vm383_vm8, %v543_v26, %v507_v41  ;;  %v830_v16 = vrot.slane %v5010_v30, 1  ;;  %v538_v41 = vsel %vm371_vm4, %v536_v58, %v4921_v32 }
  0xe2   : > { %810 = vrot.lane.b32.xlu1 %v754_v4, %s4528_s21  ;;  %768 = vrot.lane.b32.xlu0 %v765_v8, %s4532_s29  ;;  %v540_v43 = vsel %vm374_vm5, %v538_v41, %v4948_v10  ;;  %v841_v10 = vrot.slane %v5010_v30, 2 }
  0xe3   : > { %6462 = vst [vmem:[#allocation6_spill] sm:$0xff] %v4993_v31  ;;  %v1826_v22 = vand.u32 4294901760, %v4993_v31  ;;  %v542_v34 = vsel %vm377_vm6, %v540_v43, %v4960_v21 }
  0xe4   : > { %v519_v12 = vpop.permute.xlu1 %518  ;;  %v509_v5 = vpop.permute.xlu0 %508  ;;  %v544_v53 = vsel %vm380_vm7, %v542_v34, %v501_v42 }
  0xe5   : > { %4096 = vmatmul.mubr.f32.gmra.mrb[2].mxu0 %v1826_v22  ;;  %v1827_v15 = vsub.f32 %v4993_v31, %v1826_v22  ;;  %v547_v22 = vsel %vm386_vm9, %v545_v47, %v519_v12  ;;  %v546_v32 = vsel %vm383_vm8, %v544_v53, %v509_v5 }
  0xe6   : > { %869 = vrot.lane.b32.xlu1 %v752_v61, %s4527_s20  ;;  %814 = vrot.lane.b32.xlu0 %v763_v14, %s4529_s22  ;;  %v829_v61 = vrot.slane %v5006_v39, 1 }
  0xe7   : > { %v1828_v40 = vand.u32 4294901760, %v1827_v15  ;;  %v197_v15 = vld [vmem:[%s4567_s17 + $0xd0] sm:$0x3] }
  0xe8   : > { %v5014_v28 = vpop.permute.xlu1 %565  ;;  %v5016_v33 = vpop.permute.xlu0 %561  ;;  %v831_v12 = vsel %vm282_vm1, %v829_v61, %v830_v16  ;;  %v251_v7 = vand.u32 2147483647, %v197_v15 }
  0xe9   : > { %3922 = vmatmul.mubr.f32.gmra.mrb[2].mxu1 %v1828_v40 }
  0xea   : > { %822 = vrot.lane.b32.xlu1 %v5006_v39, %s4530_s23  ;;  %816 = vrot.lane.b32.xlu0 %v765_v8, %s4529_s22  ;;  %v843_v58 = vrot.slane %v251_v7, 2 }
  0xec   : > { %v530_v23 = vpop.permute.xlu1 %529  ;;  %v521_v1 = vpop.permute.xlu0 %520 }
  0xed   : > { %v549_v9 = vsel %vm389_vm10, %v547_v22, %v530_v23  ;;  %v548_v35 = vsel %vm386_vm9, %v546_v32, %v521_v1 }
  0xee   : > { %551 = vst.msk [vmem:[#allocation2 + $0x20] sm:$0xff] %vm392_vm11, %v549_v9  ;;  %875 = vrot.lane.b32.xlu1 %v763_v14, %s4526_s19  ;;  %871 = vrot.lane.b32.xlu0 %v754_v4, %s4527_s20  ;;  %v840_v14 = vrot.slane %v5006_v39, 2  ;;  %v832_v4 = vrot.slane %v251_v7, 1 }
  0xf0   : > { %v5041_v40 = vpop.permute.xlu1 %571  ;;  %v5043_v62 = vpop.permute.xlu0 %567  ;;  %v842_v61 = vsel %vm294_vm0, %v840_v14, %v841_v10  ;;  %v833_v22 = vsel %vm282_vm1, %v830_v16, %v832_v4  ;;  %v844_v14 = vsel %vm294_vm0, %v841_v10, %v843_v58  ;;  %v199_v10 = vld [vmem:[%s4567_s17 + $0xe0] sm:$0xff] }
  0xf1   : > { %v5105_v55 = vand.u32 2147483647, %v199_v10 }
  0xf2   : > { %834 = vrot.lane.b32.xlu1 %v831_v12, %s4531_s24  ;;  %824 = vrot.lane.b32.xlu0 %v5010_v30, %s4530_s23 }
  0xf4   : > { %v5055_v26 = vpop.permute.xlu1 %573  ;;  %v532_v47 = vpop.permute.xlu0 %531 }
  0xf5   : > { %v550_v21 = vsel %vm389_vm10, %v548_v35, %v532_v47  ;;  %v1584_v42 = vld [vmem:[#allocation2 + $0x20] sm:$0xff] }
  0xf6   : > { %552 = vst.msk [vmem:[#allocation2 + $0x28] sm:$0xff] %vm392_vm11, %v550_v21  ;;  %881 = vrot.lane.b32.xlu1 %v5006_v39, %s4525_s18  ;;  %877 = vrot.lane.b32.xlu0 %v765_v8, %s4526_s19  ;;  %v1637_v5 = vsel %vm392_vm11, %v1584_v42, 0  ;;  %v198_v42 = vld [vmem:[%s4567_s17 + $0xd8] sm:$0xff] }
  0xf7   : > { %v5065_v23 = vand.u32 4294901760, %v1637_v5 }
  0xf8   : > { %v5067_v1 = vpop.permute.xlu1 %632  ;;  %v578_v15 = vpop.permute.xlu0 %577 }
  0xf9   : > { %v5070_v9 = vsub.f32 %v1637_v5, %v5065_v23 }
  0xfa   : > { %845 = vrot.lane.b32.xlu1 %v842_v61, %s4532_s29  ;;  %836 = vrot.lane.b32.xlu0 %v833_v22, %s4531_s24 }
  0xfb   : > { %6463 = vst [vmem:[#allocation7_spill] sm:$0xff] %v5070_v9  ;;  %v1836_v8 = vand.u32 4294901760, %v5070_v9 }
  0xfc   : > { %v586_v41 = vpop.permute.xlu1 %585  ;;  %v580_v43 = vpop.permute.xlu0 %579 }
  0xfd   : > { %4098 = vmatprep.mubr.f32.mxu0 %v1836_v8  ;;  %v1837_v16 = vsub.f32 %v5070_v9, %v1836_v8  ;;  %v1585_v34 = vld [vmem:[#allocation2 + $0x28] sm:$0xff] }
  0xfe   : > { %887 = vrot.lane.b32.xlu1 %v831_v12, %s4528_s21  ;;  %883 = vrot.lane.b32.xlu0 %v5010_v30, %s4525_s18  ;;  %v1640_v53 = vsel %vm392_vm11, %v1585_v34, 0  ;;  %v5101_v34 = vand.u32 2147483647, %v198_v42 }
  0xff   : > { %v1838_v32 = vand.u32 4294901760, %v1837_v16  ;;  %v5081_v4 = vand.u32 4294901760, %v1640_v53  ;;  %v614_v16 = vsel %vm368_vm3, %v4704_v63, %v4972_v24 }
 0x100   : > { %v5083_v7 = vpop.permute.xlu1 %638  ;;  %v5085_v35 = vpop.permute.xlu0 %634 }
 0x101   : > { %3924 = vmatprep.mubr.f32.mxu1 %v1838_v32  ;;  %v5088_v47 = vsub.f32 %v1640_v53, %v5081_v4  ;;  %v616_v53 = vsel %vm371_vm4, %v614_v16, %v4988_v2  ;;  %v200_v16 = vld [vmem:[%s4567_s17 + $0xe8] sm:$0x3] }
 0x102   : > { %889 = vrot.lane.b32.xlu1 %v833_v22, %s4528_s21  ;;  %847 = vrot.lane.b32.xlu0 %v844_v14, %s4532_s29 }
 0x103   : > { %6464 = vst [vmem:[#allocation8_spill] sm:$0xff] %v5088_v47  ;;  %v1846_v21 = vand.u32 4294901760, %v5088_v47 }
 0x104   : > { %v598_v5 = vpop.permute.xlu1 %597  ;;  %v588_v8 = vpop.permute.xlu0 %587 }
 0x105   : > { %4099 = vmatmul.mubr.f32.gmra.mrb[4].mxu0 %v1846_v21  ;;  %v1847_v58 = vsub.f32 %v5088_v47, %v1846_v21  ;;  %v618_v21 = vsel %vm374_vm5, %v616_v53, %v5014_v28  ;;  %v909_v28 = vrot.slane %v5105_v55, 1  ;;  %v254_v53 = vand.u32 2147483647, %v200_v16 }
 0x106   : > { %948 = vrot.lane.b32.xlu1 %v831_v12, %s4527_s20  ;;  %893 = vrot.lane.b32.xlu0 %v842_v61, %s4529_s22  ;;  %v620_v63 = vsel %vm377_vm6, %v618_v21, %v5041_v40  ;;  %v908_v12 = vrot.slane %v5101_v34, 1 }
 0x107   : > { %v1848_v32 = vand.u32 4294901760, %v1847_v58  ;;  %v622_v24 = vsel %vm380_vm7, %v620_v63, %v578_v15  ;;  %v615_v15 = vsel %vm368_vm3, %v4706_v0, %v4990_v17 }
 0x108   : > { %v5109_v54 = vpop.permute.xlu1 %644  ;;  %v5111_v49 = vpop.permute.xlu0 %640  ;;  %v624_v2 = vsel %vm383_vm8, %v622_v24, %v586_v41  ;;  %v617_v41 = vsel %vm371_vm4, %v615_v15, %v5016_v33 }
 0x109   : > { %3925 = vmatmul.mubr.f32.gmra.mrb[4].mxu1 %v1848_v32  ;;  %v626_v42 = vsel %vm386_vm9, %v624_v2, %v598_v5  ;;  %v910_v5 = vsel %vm282_vm1, %v908_v12, %v909_v28  ;;  %v619_v32 = vsel %vm374_vm5, %v617_v41, %v5043_v62  ;;  %v920_v62 = vrot.slane %v5105_v55, 2 }
 0x10a   : > { %901 = vrot.lane.b32.xlu1 %v5101_v34, %s4530_s23  ;;  %895 = vrot.lane.b32.xlu0 %v844_v14, %s4529_s22  ;;  %v621_v0 = vsel %vm377_vm6, %v619_v32, %v5055_v26  ;;  %v922_v41 = vrot.slane %v254_v53, 2 }
 0x10b   : > { %v623_v17 = vsel %vm380_vm7, %v621_v0, %v580_v43 }
 0x10c   : > { %v609_v10 = vpop.permute.xlu1 %608  ;;  %v600_v58 = vpop.permute.xlu0 %599  ;;  %v625_v33 = vsel %vm383_vm8, %v623_v17, %v588_v8 }
 0x10d   : > { %v628_v40 = vsel %vm389_vm10, %v626_v42, %v609_v10  ;;  %v627_v24 = vsel %vm386_vm9, %v625_v33, %v600_v58 }
 0x10e   : > { %630 = vst.msk [vmem:[#allocation2 + $0x30] sm:$0xff] %vm392_vm11, %v628_v40  ;;  %954 = vrot.lane.b32.xlu1 %v842_v61, %s4526_s19  ;;  %950 = vrot.lane.b32.xlu0 %v833_v22, %s4527_s20  ;;  %v919_v61 = vrot.slane %v5101_v34, 2  ;;  %v911_v22 = vrot.slane %v254_v53, 1 }
 0x110   : > { %v5136_v21 = vpop.permute.xlu1 %650  ;;  %v5138_v63 = vpop.permute.xlu0 %646  ;;  %v921_v42 = vsel %vm294_vm0, %v919_v61, %v920_v62  ;;  %v912_v10 = vsel %vm282_vm1, %v909_v28, %v911_v22  ;;  %v923_v22 = vsel %vm294_vm0, %v920_v62, %v922_v41  ;;  %v202_v62 = vld [vmem:[%s4567_s17 + $0xf8] sm:$0xff] }
 0x112   : > { %913 = vrot.lane.b32.xlu1 %v910_v5, %s4531_s24  ;;  %903 = vrot.lane.b32.xlu0 %v5105_v55, %s4530_s23 }
 0x114   : > { %v5150_v2 = vpop.permute.xlu1 %652  ;;  %v611_v12 = vpop.permute.xlu0 %610 }
 0x115   : > { %v629_v26 = vsel %vm389_vm10, %v627_v24, %v611_v12  ;;  %v1586_v43 = vld [vmem:[#allocation2 + $0x30] sm:$0xff] }
 0x116   : > { %631 = vst.msk [vmem:[#allocation2 + $0x38] sm:$0xff] %vm392_vm11, %v629_v26  ;;  %960 = vrot.lane.b32.xlu1 %v5101_v34, %s4525_s18  ;;  %956 = vrot.lane.b32.xlu0 %v844_v14, %s4526_s19  ;;  %v1643_v8 = vsel %vm392_vm11, %v1586_v43, 0 }
 0x117   : > { %v5160_v58 = vand.u32 4294901760, %v1643_v8 }
 0x118   : > { %v5162_v16 = vpop.permute.xlu1 %711  ;;  %v657_v40 = vpop.permute.xlu0 %656 }
 0x119   : > { %v5165_v15 = vsub.f32 %v1643_v8, %v5160_v58  ;;  %v201_v8 = vld [vmem:[%s4567_s17 + $0xf0] sm:$0xff] }
 0x11a   : > { %924 = vrot.lane.b32.xlu1 %v921_v42, %s4532_s29  ;;  %915 = vrot.lane.b32.xlu0 %v912_v10, %s4531_s24 }
 0x11b   : > { %6465 = vst [vmem:[#allocation9_spill] sm:$0xff] %v5165_v15  ;;  %v1856_v14 = vand.u32 4294901760, %v5165_v15 }
 0x11c   : > { %v665_v32 = vpop.permute.xlu1 %664  ;;  %v659_v0 = vpop.permute.xlu0 %658 }
 0x11d   : > { %4101 = vmatprep.mubr.f32.mxu0 %v1856_v14  ;;  %v1857_v28 = vsub.f32 %v5165_v15, %v1856_v14  ;;  %v1587_v17 = vld [vmem:[#allocation2 + $0x38] sm:$0xff]  ;;  %v5200_v15 = vand.u32 2147483647, %v202_v62 }
 0x11e   : > { %966 = vrot.lane.b32.xlu1 %v910_v5, %s4528_s21  ;;  %962 = vrot.lane.b32.xlu0 %v5105_v55, %s4525_s18  ;;  %v1646_v33 = vsel %vm392_vm11, %v1587_v17, 0  ;;  %v693_v17 = vsel %vm368_vm3, %v4739_v19, %v5067_v1 }
 0x11f   : > { %v1858_v61 = vand.u32 4294901760, %v1857_v28  ;;  %v5176_v24 = vand.u32 4294901760, %v1646_v33 }
 0x120   : > { %v5178_v53 = vpop.permute.xlu1 %717  ;;  %v5180_v12 = vpop.permute.xlu0 %713 }
 0x121   : > { %3927 = vmatprep.mubr.f32.mxu1 %v1858_v61  ;;  %v5183_v26 = vsub.f32 %v1646_v33, %v5176_v24  ;;  %v5196_v33 = vand.u32 2147483647, %v201_v8  ;;  %v695_v61 = vsel %vm371_vm4, %v693_v17, %v5083_v7  ;;  %v203_v17 = vld [vmem:[%s4567_s17 + $0x100] sm:$0x3] }
 0x122   : > { %968 = vrot.lane.b32.xlu1 %v912_v10, %s4528_s21  ;;  %926 = vrot.lane.b32.xlu0 %v923_v22, %s4532_s29 }
 0x123   : > { %6466 = vst [vmem:[#allocation10_spill] sm:$0xff] %v5183_v26  ;;  %v1866_v43 = vand.u32 4294901760, %v5183_v26 }
 0x124   : > { %v677_v14 = vpop.permute.xlu1 %676  ;;  %v667_v28 = vpop.permute.xlu0 %666 }
 0x125   : > { %4102 = vmatmul.mubr.f32.gmra.mrb[6].mxu0 %v1866_v43  ;;  %v1867_v41 = vsub.f32 %v5183_v26, %v1866_v43  ;;  %v697_v43 = vsel %vm374_vm5, %v695_v61, %v5109_v54  ;;  %v988_v54 = vrot.slane %v5200_v15, 1 }
 0x126   : > { %1027 = vrot.lane.b32.xlu1 %v910_v5, %s4527_s20  ;;  %972 = vrot.lane.b32.xlu0 %v921_v42, %s4529_s22  ;;  %v699_v19 = vsel %vm377_vm6, %v697_v43, %v5136_v21  ;;  %v987_v5 = vrot.slane %v5196_v33, 1  ;;  %v694_v21 = vsel %vm368_vm3, %v4741_v20, %v5085_v35 }
 0x127   : > { %v1868_v48 = vand.u32 4294901760, %v1867_v41  ;;  %v701_v1 = vsel %vm380_vm7, %v699_v19, %v657_v40  ;;  %v696_v40 = vsel %vm371_vm4, %v694_v21, %v5111_v49 }
 0x128   : > { %v5204_v26 = vpop.permute.xlu1 %723  ;;  %v5206_v47 = vpop.permute.xlu0 %719  ;;  %v703_v7 = vsel %vm383_vm8, %v701_v1, %v665_v32  ;;  %v989_v32 = vsel %vm282_vm1, %v987_v5, %v988_v54  ;;  %v698_v61 = vsel %vm374_vm5, %v696_v40, %v5138_v63  ;;  %v999_v63 = vrot.slane %v5200_v15, 2 }
 0x129   : > { %3928 = vmatmul.mubr.f32.gmra.mrb[6].mxu1 %v1868_v48  ;;  %v705_v8 = vsel %vm386_vm9, %v703_v7, %v677_v14  ;;  %v257_v14 = vand.u32 2147483647, %v203_v17  ;;  %v700_v20 = vsel %vm377_vm6, %v698_v61, %v5150_v2 }
 0x12a   : > { %980 = vrot.lane.b32.xlu1 %v5196_v33, %s4530_s23  ;;  %974 = vrot.lane.b32.xlu0 %v923_v22, %s4529_s22  ;;  %v702_v35 = vsel %vm380_vm7, %v700_v20, %v659_v0 }
 0x12b   : > { %v704_v49 = vsel %vm383_vm8, %v702_v35, %v667_v28  ;;  %v1001_v40 = vrot.slane %v257_v14, 2 }
 0x12c   : > { %v688_v62 = vpop.permute.xlu1 %687  ;;  %v679_v41 = vpop.permute.xlu0 %678 }
 0x12d   : > { %v707_v48 = vsel %vm389_vm10, %v705_v8, %v688_v62  ;;  %v706_v1 = vsel %vm386_vm9, %v704_v49, %v679_v41 }
 0x12e   : > { %709 = vst.msk [vmem:[#allocation2 + $0x40] sm:$0xff] %vm392_vm11, %v707_v48  ;;  %1033 = vrot.lane.b32.xlu1 %v921_v42, %s4526_s19  ;;  %1029 = vrot.lane.b32.xlu0 %v912_v10, %s4527_s20  ;;  %v998_v42 = vrot.slane %v5196_v33, 2  ;;  %v990_v10 = vrot.slane %v257_v14, 1 }
 0x130   : > { %v5231_v43 = vpop.permute.xlu1 %729  ;;  %v5233_v19 = vpop.permute.xlu0 %725  ;;  %v1000_v8 = vsel %vm294_vm0, %v998_v42, %v999_v63  ;;  %v991_v62 = vsel %vm282_vm1, %v988_v54, %v990_v10  ;;  %v1002_v10 = vsel %vm294_vm0, %v999_v63, %v1001_v40  ;;  %v205_v63 = vld [vmem:[%s4567_s17 + $0x110] sm:$0xff] }
 0x131   : > { %v5295_v9 = vand.u32 2147483647, %v205_v63 }
 0x132   : > { %992 = vrot.lane.b32.xlu1 %v989_v32, %s4531_s24  ;;  %982 = vrot.lane.b32.xlu0 %v5200_v15, %s4530_s23 }
 0x134   : > { %v5245_v7 = vpop.permute.xlu1 %731  ;;  %v690_v5 = vpop.permute.xlu0 %689 }
 0x135   : > { %v708_v2 = vsel %vm389_vm10, %v706_v1, %v690_v5  ;;  %v1588_v0 = vld [vmem:[#allocation2 + $0x40] sm:$0xff] }
 0x136   : > { %710 = vst.msk [vmem:[#allocation2 + $0x48] sm:$0xff] %vm392_vm11, %v708_v2  ;;  %1039 = vrot.lane.b32.xlu1 %v5196_v33, %s4525_s18  ;;  %1035 = vrot.lane.b32.xlu0 %v923_v22, %s4526_s19  ;;  %v1649_v28 = vsel %vm392_vm11, %v1588_v0, 0 }
 0x137   : > { %v5255_v41 = vand.u32 4294901760, %v1649_v28 }
 0x138   : > { %v5257_v17 = vpop.permute.xlu1 %790  ;;  %v736_v48 = vpop.permute.xlu0 %735 }
 0x139   : > { %v5260_v21 = vsub.f32 %v1649_v28, %v5255_v41  ;;  %v204_v28 = vld [vmem:[%s4567_s17 + $0x108] sm:$0xff] }
 0x13a   : > { %1003 = vrot.lane.b32.xlu1 %v1000_v8, %s4532_s29  ;;  %994 = vrot.lane.b32.xlu0 %v991_v62, %s4531_s24 }
 0x13b   : > { %6467 = vst [vmem:[#allocation11_spill] sm:$0xff] %v5260_v21  ;;  %v1876_v22 = vand.u32 4294901760, %v5260_v21 }
 0x13c   : > { %v744_v61 = vpop.permute.xlu1 %743  ;;  %v738_v20 = vpop.permute.xlu0 %737 }
 0x13d   : > { %4104 = vmatprep.mubr.f32.mxu0 %v1876_v22  ;;  %v1877_v54 = vsub.f32 %v5260_v21, %v1876_v22  ;;  %v1589_v35 = vld [vmem:[#allocation2 + $0x48] sm:$0xff] }
 0x13e   : > { %1045 = vrot.lane.b32.xlu1 %v989_v32, %s4528_s21  ;;  %1041 = vrot.lane.b32.xlu0 %v5200_v15, %s4525_s18  ;;  %v1652_v49 = vsel %vm392_vm11, %v1589_v35, 0  ;;  %v772_v35 = vsel %vm368_vm3, %v4774_v37, %v5162_v16 }
 0x13f   : > { %v1878_v42 = vand.u32 4294901760, %v1877_v54  ;;  %v5271_v1 = vand.u32 4294901760, %v1652_v49 }
 0x140   : > { %v5273_v14 = vpop.permute.xlu1 %796  ;;  %v5275_v5 = vpop.permute.xlu0 %792 }
 0x141   : > { %3930 = vmatprep.mubr.f32.mxu1 %v1878_v42  ;;  %v5278_v2 = vsub.f32 %v1652_v49, %v5271_v1  ;;  %v5291_v49 = vand.u32 2147483647, %v204_v28  ;;  %v774_v42 = vsel %vm371_vm4, %v772_v35, %v5178_v53  ;;  %v206_v35 = vld [vmem:[%s4567_s17 + $0x118] sm:$0x3] }
 0x142   : > { %1047 = vrot.lane.b32.xlu1 %v991_v62, %s4528_s21  ;;  %1005 = vrot.lane.b32.xlu0 %v1002_v10, %s4532_s29 }
 0x143   : > { %6468 = vst [vmem:[#allocation12_spill] sm:$0xff] %v5278_v2  ;;  %v1886_v0 = vand.u32 4294901760, %v5278_v2 }
 0x144   : > { %v756_v22 = vpop.permute.xlu1 %755  ;;  %v746_v54 = vpop.permute.xlu0 %745 }
 0x145   : > { %4105 = vmatmul.mubr.f32.gmra.mrb[8].mxu0 %v1886_v0  ;;  %v1887_v40 = vsub.f32 %v5278_v2, %v1886_v0  ;;  %v776_v0 = vsel %vm374_vm5, %v774_v42, %v5204_v26  ;;  %v1067_v26 = vrot.slane %v5295_v9, 1 }
 0x146   : > { %1106 = vrot.lane.b32.xlu1 %v989_v32, %s4527_s20  ;;  %1051 = vrot.lane.b32.xlu0 %v1000_v8, %s4529_s22  ;;  %v778_v37 = vsel %vm377_vm6, %v776_v0, %v5231_v43  ;;  %v1066_v32 = vrot.slane %v5291_v49, 1 }
 0x147   : > { %v1888_v21 = vand.u32 4294901760, %v1887_v40  ;;  %v780_v16 = vsel %vm380_vm7, %v778_v37, %v736_v48  ;;  %v773_v48 = vsel %vm368_vm3, %v4776_v38, %v5180_v12 }
 0x148   : > { %v5299_v2 = vpop.permute.xlu1 %802  ;;  %v5301_v31 = vpop.permute.xlu0 %798  ;;  %v782_v53 = vsel %vm383_vm8, %v780_v16, %v744_v61  ;;  %v1068_v61 = vsel %vm282_vm1, %v1066_v32, %v1067_v26 }
 0x149   : > { %3931 = vmatmul.mubr.f32.gmra.mrb[8].mxu1 %v1888_v21  ;;  %v784_v28 = vsel %vm386_vm9, %v782_v53, %v756_v22  ;;  %v775_v21 = vsel %vm371_vm4, %v773_v48, %v5206_v47  ;;  %v260_v22 = vand.u32 2147483647, %v206_v35 }
 0x14a   : > { %1059 = vrot.lane.b32.xlu1 %v5291_v49, %s4530_s23  ;;  %1053 = vrot.lane.b32.xlu0 %v1002_v10, %s4529_s22  ;;  %v777_v42 = vsel %vm374_vm5, %v775_v21, %v5233_v19  ;;  %v1078_v19 = vrot.slane %v5295_v9, 2 }
 0x14b   : > { %v779_v38 = vsel %vm377_vm6, %v777_v42, %v5245_v7  ;;  %v1080_v21 = vrot.slane %v260_v22, 2 }
 0x14c   : > { %v767_v63 = vpop.permute.xlu1 %766  ;;  %v758_v40 = vpop.permute.xlu0 %757  ;;  %v781_v12 = vsel %vm380_vm7, %v779_v38, %v738_v20 }
 0x14d   : > { %v786_v43 = vsel %vm389_vm10, %v784_v28, %v767_v63  ;;  %v783_v47 = vsel %vm383_vm8, %v781_v12, %v746_v54 }
 0x14e   : > { %788 = vst.msk [vmem:[#allocation2 + $0x50] sm:$0xff] %vm392_vm11, %v786_v43  ;;  %1112 = vrot.lane.b32.xlu1 %v1000_v8, %s4526_s19  ;;  %1108 = vrot.lane.b32.xlu0 %v991_v62, %s4527_s20  ;;  %v1077_v8 = vrot.slane %v5291_v49, 2  ;;  %v1069_v62 = vrot.slane %v260_v22, 1  ;;  %v785_v16 = vsel %vm386_vm9, %v783_v47, %v758_v40 }
 0x150   : > { %v5326_v0 = vpop.permute.xlu1 %808  ;;  %v5328_v37 = vpop.permute.xlu0 %804  ;;  %v1079_v28 = vsel %vm294_vm0, %v1077_v8, %v1078_v19  ;;  %v1070_v63 = vsel %vm282_vm1, %v1067_v26, %v1069_v62  ;;  %v1081_v62 = vsel %vm294_vm0, %v1078_v19, %v1080_v21  ;;  %v208_v19 = vld [vmem:[%s4567_s17 + $0x128] sm:$0xff] }
 0x151   : > { %v5390_v36 = vand.u32 2147483647, %v208_v19 }
 0x152   : > { %1071 = vrot.lane.b32.xlu1 %v1068_v61, %s4531_s24  ;;  %1061 = vrot.lane.b32.xlu0 %v5295_v9, %s4530_s23 }
 0x154   : > { %v5340_v53 = vpop.permute.xlu1 %810  ;;  %v769_v32 = vpop.permute.xlu0 %768 }
 0x155   : > { %v787_v7 = vsel %vm389_vm10, %v785_v16, %v769_v32  ;;  %v1590_v20 = vld [vmem:[#allocation2 + $0x50] sm:$0xff] }
 0x156   : > { %789 = vst.msk [vmem:[#allocation2 + $0x58] sm:$0xff] %vm392_vm11, %v787_v7  ;;  %1118 = vrot.lane.b32.xlu1 %v5291_v49, %s4525_s18  ;;  %1114 = vrot.lane.b32.xlu0 %v1002_v10, %s4526_s19  ;;  %v1655_v54 = vsel %vm392_vm11, %v1590_v20, 0 }
 0x157   : > { %v5350_v40 = vand.u32 4294901760, %v1655_v54 }
 0x158   : > { %v5352_v35 = vpop.permute.xlu1 %869  ;;  %v815_v43 = vpop.permute.xlu0 %814 }
 0x159   : > { %6469 = vst [vmem:[#allocation13_spill] sm:$0xff] %v5350_v40  ;;  %v5355_v48 = vsub.f32 %v1655_v54, %v5350_v40  ;;  %v207_v54 = vld [vmem:[%s4567_s17 + $0x120] sm:$0xff] }
 0x15a   : > { %1082 = vrot.lane.b32.xlu1 %v1079_v28, %s4532_s29  ;;  %1073 = vrot.lane.b32.xlu0 %v1070_v63, %s4531_s24 }
 0x15b   : > { %6470 = vst [vmem:[#allocation14_spill] sm:$0xff] %v5355_v48  ;;  %v1896_v10 = vand.u32 4294901760, %v5355_v48 }
 0x15c   : > { %v823_v42 = vpop.permute.xlu1 %822  ;;  %v817_v38 = vpop.permute.xlu0 %816 }
 0x15d   : > { %4107 = vmatprep.mubr.f32.mxu0 %v1896_v10  ;;  %v1897_v26 = vsub.f32 %v5355_v48, %v1896_v10  ;;  %v1591_v12 = vld [vmem:[#allocation2 + $0x58] sm:$0xff] }
 0x15e   : > { %1124 = vrot.lane.b32.xlu1 %v1068_v61, %s4528_s21  ;;  %1120 = vrot.lane.b32.xlu0 %v5295_v9, %s4525_s18  ;;  %v1658_v47 = vsel %vm392_vm11, %v1591_v12, 0  ;;  %v851_v12 = vsel %vm368_vm3, %v4822_v27, %v5257_v17 }
 0x15f   : > { %v1898_v8 = vand.u32 4294901760, %v1897_v26  ;;  %v5366_v16 = vand.u32 4294901760, %v1658_v47 }
 0x160   : > { %v5368_v22 = vpop.permute.xlu1 %875  ;;  %v5370_v32 = vpop.permute.xlu0 %871 }
 0x161   : > { %6471 = vst [vmem:[#allocation15_spill] sm:$0xff] %v5366_v16  ;;  %3933 = vmatprep.mubr.f32.mxu1 %v1898_v8  ;;  %v5373_v7 = vsub.f32 %v1658_v47, %v5366_v16  ;;  %v5386_v47 = vand.u32 2147483647, %v207_v54  ;;  %v853_v8 = vsel %vm371_vm4, %v851_v12, %v5273_v14  ;;  %v209_v12 = vld [vmem:[%s4567_s17 + $0x130] sm:$0x3] }
 0x162   : > { %1126 = vrot.lane.b32.xlu1 %v1070_v63, %s4528_s21  ;;  %1084 = vrot.lane.b32.xlu0 %v1081_v62, %s4532_s29 }
 0x163   : > { %6472 = vst [vmem:[#allocation16_spill] sm:$0xff] %v5373_v7  ;;  %v1906_v20 = vand.u32 4294901760, %v5373_v7 }
 0x164   : > { %v835_v10 = vpop.permute.xlu1 %834  ;;  %v825_v26 = vpop.permute.xlu0 %824 }
 0x165   : > { %4108 = vmatmul.mubr.f32.gmra.mrb[10].mxu0 %v1906_v20  ;;  %v1907_v21 = vsub.f32 %v5373_v7, %v1906_v20  ;;  %v855_v20 = vsel %vm374_vm5, %v853_v8, %v5299_v2  ;;  %v1146_v2 = vrot.slane %v5390_v36, 1 }
 0x166   : > { %1185 = vrot.lane.b32.xlu1 %v1068_v61, %s4527_s20  ;;  %1130 = vrot.lane.b32.xlu0 %v1079_v28, %s4529_s22  ;;  %v857_v27 = vsel %vm377_vm6, %v855_v20, %v5326_v0  ;;  %v1145_v61 = vrot.slane %v5386_v47, 1 }
 0x167   : > { %v1908_v48 = vand.u32 4294901760, %v1907_v21  ;;  %v859_v17 = vsel %vm380_vm7, %v857_v27, %v815_v43  ;;  %v852_v43 = vsel %vm368_vm3, %v4824_v6, %v5275_v5 }
 0x168   : > { %v5394_v7 = vpop.permute.xlu1 %881  ;;  %v5396_v57 = vpop.permute.xlu0 %877  ;;  %v861_v14 = vsel %vm383_vm8, %v859_v17, %v823_v42  ;;  %v1147_v42 = vsel %vm282_vm1, %v1145_v61, %v1146_v2 }
 0x169   : > { %3934 = vmatmul.mubr.f32.gmra.mrb[10].mxu1 %v1908_v48  ;;  %v863_v54 = vsel %vm386_vm9, %v861_v14, %v835_v10  ;;  %v854_v48 = vsel %vm371_vm4, %v852_v43, %v5301_v31  ;;  %v263_v10 = vand.u32 2147483647, %v209_v12 }
 0x16a   : > { %1138 = vrot.lane.b32.xlu1 %v5386_v47, %s4530_s23  ;;  %1132 = vrot.lane.b32.xlu0 %v1081_v62, %s4529_s22  ;;  %v856_v8 = vsel %vm374_vm5, %v854_v48, %v5328_v37  ;;  %v1157_v37 = vrot.slane %v5390_v36, 2 }
 0x16b   : > { %v858_v6 = vsel %vm377_vm6, %v856_v8, %v5340_v53  ;;  %v1159_v48 = vrot.slane %v263_v10, 2 }
 0x16c   : > { %v846_v19 = vpop.permute.xlu1 %845  ;;  %v837_v21 = vpop.permute.xlu0 %836  ;;  %v860_v5 = vsel %vm380_vm7, %v858_v6, %v817_v38 }
 0x16d   : > { %v865_v0 = vsel %vm389_vm10, %v863_v54, %v846_v19  ;;  %v862_v31 = vsel %vm383_vm8, %v860_v5, %v825_v26 }
 0x16e   : > { %867 = vst.msk [vmem:[#allocation2 + $0x60] sm:$0xff] %vm392_vm11, %v865_v0  ;;  %1191 = vrot.lane.b32.xlu1 %v1079_v28, %s4526_s19  ;;  %1187 = vrot.lane.b32.xlu0 %v1070_v63, %s4527_s20  ;;  %v1156_v28 = vrot.slane %v5386_v47, 2  ;;  %v1148_v63 = vrot.slane %v263_v10, 1  ;;  %v864_v17 = vsel %vm386_vm9, %v862_v31, %v837_v21 }
 0x170   : > { %v5421_v20 = vpop.permute.xlu1 %887  ;;  %v5423_v27 = vpop.permute.xlu0 %883  ;;  %v1158_v54 = vsel %vm294_vm0, %v1156_v28, %v1157_v37  ;;  %v1149_v19 = vsel %vm282_vm1, %v1146_v2, %v1148_v63  ;;  %v1160_v63 = vsel %vm294_vm0, %v1157_v37, %v1159_v48  ;;  %v211_v37 = vld [vmem:[%s4567_s17 + $0x140] sm:$0xff] }
 0x171   : > { %v5485_v29 = vand.u32 2147483647, %v211_v37 }
 0x172   : > { %1150 = vrot.lane.b32.xlu1 %v1147_v42, %s4531_s24  ;;  %1140 = vrot.lane.b32.xlu0 %v5390_v36, %s4530_s23 }
 0x174   : > { %v5435_v14 = vpop.permute.xlu1 %889  ;;  %v848_v61 = vpop.permute.xlu0 %847 }
 0x175   : > { %v866_v53 = vsel %vm389_vm10, %v864_v17, %v848_v61  ;;  %v1592_v38 = vld [vmem:[#allocation2 + $0x60] sm:$0xff] }
 0x176   : > { %868 = vst.msk [vmem:[#allocation2 + $0x68] sm:$0xff] %vm392_vm11, %v866_v53  ;;  %1197 = vrot.lane.b32.xlu1 %v5386_v47, %s4525_s18  ;;  %1193 = vrot.lane.b32.xlu0 %v1081_v62, %s4526_s19  ;;  %v1661_v26 = vsel %vm392_vm11, %v1592_v38, 0 }
 0x177   : > { %v5445_v21 = vand.u32 4294901760, %v1661_v26 }
 0x178   : > { %v5447_v12 = vpop.permute.xlu1 %948  ;;  %v894_v0 = vpop.permute.xlu0 %893 }
 0x179   : > { %6473 = vst [vmem:[#allocation17_spill] sm:$0xff] %v5445_v21  ;;  %v5450_v43 = vsub.f32 %v1661_v26, %v5445_v21  ;;  %v210_v26 = vld [vmem:[%s4567_s17 + $0x138] sm:$0xff]  ;;  %v220_v21 = vld [vmem:[%s4567_s17 + $0x188] sm:$0xff] }
 0x17a   : > { %1161 = vrot.lane.b32.xlu1 %v1158_v54, %s4532_s29  ;;  %1152 = vrot.lane.b32.xlu0 %v1149_v19, %s4531_s24  ;;  %v5804_v40 = vand.u32 2147483647, %v220_v21 }
 0x17b   : > { %6474 = vst [vmem:[#allocation18_spill] sm:$0xff] %v5450_v43  ;;  %v1916_v62 = vand.u32 4294901760, %v5450_v43 }
 0x17c   : > { %v902_v8 = vpop.permute.xlu1 %901  ;;  %v896_v6 = vpop.permute.xlu0 %895 }
 0x17d   : > { %4110 = vmatprep.mubr.f32.mxu0 %v1916_v62  ;;  %v1917_v2 = vsub.f32 %v5450_v43, %v1916_v62  ;;  %v1593_v5 = vld [vmem:[#allocation2 + $0x68] sm:$0xff] }
 0x17e   : > { %1203 = vrot.lane.b32.xlu1 %v1147_v42, %s4528_s21  ;;  %1199 = vrot.lane.b32.xlu0 %v5390_v36, %s4525_s18  ;;  %v1664_v31 = vsel %vm392_vm11, %v1593_v5, 0  ;;  %v930_v5 = vsel %vm368_vm3, %v4911_v13, %v5352_v35 }
 0x17f   : > { %v1918_v28 = vand.u32 4294901760, %v1917_v2  ;;  %v5461_v17 = vand.u32 4294901760, %v1664_v31 }
 0x180   : > { %v5463_v10 = vpop.permute.xlu1 %954  ;;  %v5465_v61 = vpop.permute.xlu0 %950 }
 0x181   : > { %6475 = vst [vmem:[#allocation19_spill] sm:$0xff] %v5461_v17  ;;  %3936 = vmatprep.mubr.f32.mxu1 %v1918_v28  ;;  %v5468_v53 = vsub.f32 %v1664_v31, %v5461_v17  ;;  %v5481_v31 = vand.u32 2147483647, %v210_v26  ;;  %v932_v28 = vsel %vm371_vm4, %v930_v5, %v5368_v22  ;;  %v212_v5 = vld [vmem:[%s4567_s17 + $0x148] sm:$0x3] }
 0x182   : > { %1205 = vrot.lane.b32.xlu1 %v1149_v19, %s4528_s21  ;;  %1163 = vrot.lane.b32.xlu0 %v1160_v63, %s4532_s29 }
 0x183   : > { %6476 = vst [vmem:[#allocation20_spill] sm:$0xff] %v5468_v53  ;;  %v1926_v38 = vand.u32 4294901760, %v5468_v53 }
 0x184   : > { %v914_v62 = vpop.permute.xlu1 %913  ;;  %v904_v2 = vpop.permute.xlu0 %903 }
 0x185   : > { %4111 = vmatmul.mubr.f32.gmra.mrb[12].mxu0 %v1926_v38  ;;  %v1927_v48 = vsub.f32 %v5468_v53, %v1926_v38  ;;  %v934_v38 = vsel %vm374_vm5, %v932_v28, %v5394_v7  ;;  %v1225_v7 = vrot.slane %v5485_v29, 1 }
 0x186   : > { %1264 = vrot.lane.b32.xlu1 %v1147_v42, %s4527_s20  ;;  %1209 = vrot.lane.b32.xlu0 %v1158_v54, %s4529_s22  ;;  %v936_v13 = vsel %vm377_vm6, %v934_v38, %v5421_v20  ;;  %v1224_v42 = vrot.slane %v5481_v31, 1 }
 0x187   : > { %v1928_v43 = vand.u32 4294901760, %v1927_v48  ;;  %v938_v35 = vsel %vm380_vm7, %v936_v13, %v894_v0  ;;  %v931_v0 = vsel %vm368_vm3, %v4915_v11, %v5370_v32 }
 0x188   : > { %v5489_v53 = vpop.permute.xlu1 %960  ;;  %v5491_v17 = vpop.permute.xlu0 %956  ;;  %v940_v22 = vsel %vm383_vm8, %v938_v35, %v902_v8  ;;  %v1226_v8 = vsel %vm282_vm1, %v1224_v42, %v1225_v7 }
 0x189   : > { %3937 = vmatmul.mubr.f32.gmra.mrb[12].mxu1 %v1928_v43  ;;  %v942_v26 = vsel %vm386_vm9, %v940_v22, %v914_v62  ;;  %v933_v43 = vsel %vm371_vm4, %v931_v0, %v5396_v57  ;;  %v266_v62 = vand.u32 2147483647, %v212_v5 }
 0x18a   : > { %1217 = vrot.lane.b32.xlu1 %v5481_v31, %s4530_s23  ;;  %1211 = vrot.lane.b32.xlu0 %v1160_v63, %s4529_s22  ;;  %v935_v28 = vsel %vm374_vm5, %v933_v43, %v5423_v27  ;;  %v1236_v27 = vrot.slane %v5485_v29, 2 }
 0x18b   : > { %v937_v11 = vsel %vm377_vm6, %v935_v28, %v5435_v14  ;;  %v1238_v43 = vrot.slane %v266_v62, 2 }
 0x18c   : > { %v925_v37 = vpop.permute.xlu1 %924  ;;  %v916_v48 = vpop.permute.xlu0 %915  ;;  %v939_v32 = vsel %vm380_vm7, %v937_v11, %v896_v6 }
 0x18d   : > { %v944_v20 = vsel %vm389_vm10, %v942_v26, %v925_v37  ;;  %v941_v57 = vsel %vm383_vm8, %v939_v32, %v904_v2 }
 0x18e   : > { %946 = vst.msk [vmem:[#allocation2 + $0x70] sm:$0xff] %vm392_vm11, %v944_v20  ;;  %1270 = vrot.lane.b32.xlu1 %v1158_v54, %s4526_s19  ;;  %1266 = vrot.lane.b32.xlu0 %v1149_v19, %s4527_s20  ;;  %v1235_v54 = vrot.slane %v5481_v31, 2  ;;  %v1227_v19 = vrot.slane %v266_v62, 1  ;;  %v943_v35 = vsel %vm386_vm9, %v941_v57, %v916_v48 }
 0x190   : > { %v5516_v38 = vpop.permute.xlu1 %966  ;;  %v5518_v13 = vpop.permute.xlu0 %962  ;;  %v1237_v26 = vsel %vm294_vm0, %v1235_v54, %v1236_v27  ;;  %v1228_v37 = vsel %vm282_vm1, %v1225_v7, %v1227_v19  ;;  %v1239_v19 = vsel %vm294_vm0, %v1236_v27, %v1238_v43  ;;  %v214_v27 = vld [vmem:[%s4567_s17 + $0x158] sm:$0xff] }
 0x192   : > { %1229 = vrot.lane.b32.xlu1 %v1226_v8, %s4531_s24  ;;  %1219 = vrot.lane.b32.xlu0 %v5485_v29, %s4530_s23 }
 0x194   : > { %v5530_v22 = vpop.permute.xlu1 %968  ;;  %v927_v42 = vpop.permute.xlu0 %926 }
 0x195   : > { %v945_v14 = vsel %vm389_vm10, %v943_v35, %v927_v42  ;;  %v1594_v6 = vld [vmem:[#allocation2 + $0x70] sm:$0xff] }
 0x196   : > { %947 = vst.msk [vmem:[#allocation2 + $0x78] sm:$0xff] %vm392_vm11, %v945_v14  ;;  %1276 = vrot.lane.b32.xlu1 %v5481_v31, %s4525_s18  ;;  %1272 = vrot.lane.b32.xlu0 %v1160_v63, %s4526_s19  ;;  %v1667_v2 = vsel %vm392_vm11, %v1594_v6, 0 }
 0x197   : > { %v5540_v48 = vand.u32 4294901760, %v1667_v2 }
 0x198   : > { %v5542_v5 = vpop.permute.xlu1 %1027  ;;  %v973_v20 = vpop.permute.xlu0 %972 }
 0x199   : > { %6477 = vst [vmem:[#allocation21_spill] sm:$0xff] %v5540_v48  ;;  %v5545_v0 = vsub.f32 %v1667_v2, %v5540_v48  ;;  %v213_v2 = vld [vmem:[%s4567_s17 + $0x150] sm:$0xff] }
 0x19a   : > { %1240 = vrot.lane.b32.xlu1 %v1237_v26, %s4532_s29  ;;  %1231 = vrot.lane.b32.xlu0 %v1228_v37, %s4531_s24 }
 0x19b   : > { %6478 = vst [vmem:[#allocation22_spill] sm:$0xff] %v5545_v0  ;;  %v1936_v63 = vand.u32 4294901760, %v5545_v0 }
 0x19c   : > { %v981_v28 = vpop.permute.xlu1 %980  ;;  %v975_v11 = vpop.permute.xlu0 %974 }
 0x19d   : > { %4113 = vmatprep.mubr.f32.mxu0 %v1936_v63  ;;  %v1937_v7 = vsub.f32 %v5545_v0, %v1936_v63  ;;  %v1595_v32 = vld [vmem:[#allocation2 + $0x78] sm:$0xff] }
 0x19e   : > { %1282 = vrot.lane.b32.xlu1 %v1226_v8, %s4528_s21  ;;  %1278 = vrot.lane.b32.xlu0 %v5485_v29, %s4525_s18  ;;  %v1670_v57 = vsel %vm392_vm11, %v1595_v32, 0  ;;  %v1009_v32 = vsel %vm368_vm3, %v5006_v39, %v5447_v12 }
 0x19f   : > { %v1938_v54 = vand.u32 4294901760, %v1937_v7  ;;  %v5556_v35 = vand.u32 4294901760, %v1670_v57 }
 0x1a0   : > { %v5558_v62 = vpop.permute.xlu1 %1033  ;;  %v5560_v42 = vpop.permute.xlu0 %1029 }
 0x1a1   : > { %6479 = vst [vmem:[#allocation23_spill] sm:$0xff] %v5556_v35  ;;  %3939 = vmatprep.mubr.f32.mxu1 %v1938_v54  ;;  %v5563_v14 = vsub.f32 %v1670_v57, %v5556_v35  ;;  %v5576_v57 = vand.u32 2147483647, %v213_v2  ;;  %v1011_v54 = vsel %vm371_vm4, %v1009_v32, %v5463_v10  ;;  %v5580_v35 = vand.u32 2147483647, %v214_v27 }
 0x1a2   : > { %1284 = vrot.lane.b32.xlu1 %v1228_v37, %s4528_s21  ;;  %1242 = vrot.lane.b32.xlu0 %v1239_v19, %s4532_s29  ;;  %v215_v32 = vld [vmem:[%s4567_s17 + $0x160] sm:$0x3] }
 0x1a3   : > { %6480 = vst [vmem:[#allocation24_spill] sm:$0xff] %v5563_v14  ;;  %v1946_v6 = vand.u32 4294901760, %v5563_v14 }
 0x1a4   : > { %v993_v63 = vpop.permute.xlu1 %992  ;;  %v983_v7 = vpop.permute.xlu0 %982 }
 0x1a5   : > { %4114 = vmatmul.mubr.f32.gmra.mrb[14].mxu0 %v1946_v6  ;;  %v1947_v43 = vsub.f32 %v5563_v14, %v1946_v6  ;;  %v1013_v6 = vsel %vm374_vm5, %v1011_v54, %v5489_v53  ;;  %v1304_v53 = vrot.slane %v5580_v35, 1 }
 0x1a6   : > { %1343 = vrot.lane.b32.xlu1 %v1226_v8, %s4527_s20  ;;  %1288 = vrot.lane.b32.xlu0 %v1237_v26, %s4529_s22  ;;  %v1015_v39 = vsel %vm377_vm6, %v1013_v6, %v5516_v38  ;;  %v1303_v8 = vrot.slane %v5576_v57, 1 }
 0x1a7   : > { %v1948_v0 = vand.u32 4294901760, %v1947_v43  ;;  %v1017_v12 = vsel %vm380_vm7, %v1015_v39, %v973_v20  ;;  %v1010_v20 = vsel %vm368_vm3, %v5010_v30, %v5465_v61 }
 0x1a8   : > { %v5584_v14 = vpop.permute.xlu1 %1039  ;;  %v5586_v48 = vpop.permute.xlu0 %1035  ;;  %v1019_v10 = vsel %vm383_vm8, %v1017_v12, %v981_v28  ;;  %v1305_v28 = vsel %vm282_vm1, %v1303_v8, %v1304_v53 }
 0x1a9   : > { %3940 = vmatmul.mubr.f32.gmra.mrb[14].mxu1 %v1948_v0  ;;  %v1021_v2 = vsel %vm386_vm9, %v1019_v10, %v993_v63  ;;  %v1012_v0 = vsel %vm371_vm4, %v1010_v20, %v5491_v17  ;;  %v269_v63 = vand.u32 2147483647, %v215_v32 }
 0x1aa   : > { %1296 = vrot.lane.b32.xlu1 %v5576_v57, %s4530_s23  ;;  %1290 = vrot.lane.b32.xlu0 %v1239_v19, %s4529_s22  ;;  %v1014_v54 = vsel %vm374_vm5, %v1012_v0, %v5518_v13  ;;  %v1315_v13 = vrot.slane %v5580_v35, 2 }
 0x1ab   : > { %v1016_v30 = vsel %vm377_vm6, %v1014_v54, %v5530_v22  ;;  %v1317_v0 = vrot.slane %v269_v63, 2 }
 0x1ac   : > { %v1004_v27 = vpop.permute.xlu1 %1003  ;;  %v995_v43 = vpop.permute.xlu0 %994  ;;  %v1018_v61 = vsel %vm380_vm7, %v1016_v30, %v975_v11 }
 0x1ad   : > { %v1023_v38 = vsel %vm389_vm10, %v1021_v2, %v1004_v27  ;;  %v1020_v17 = vsel %vm383_vm8, %v1018_v61, %v983_v7 }
 0x1ae   : > { %1025 = vst.msk [vmem:[#allocation2 + $0x80] sm:$0xff] %vm392_vm11, %v1023_v38  ;;  %1349 = vrot.lane.b32.xlu1 %v1237_v26, %s4526_s19  ;;  %1345 = vrot.lane.b32.xlu0 %v1228_v37, %s4527_s20  ;;  %v1314_v26 = vrot.slane %v5576_v57, 2  ;;  %v1306_v37 = vrot.slane %v269_v63, 1  ;;  %v1022_v12 = vsel %vm386_vm9, %v1020_v17, %v995_v43 }
 0x1b0   : > { %v5611_v6 = vpop.permute.xlu1 %1045  ;;  %v5613_v39 = vpop.permute.xlu0 %1041  ;;  %v1316_v2 = vsel %vm294_vm0, %v1314_v26, %v1315_v13  ;;  %v1307_v27 = vsel %vm282_vm1, %v1304_v53, %v1306_v37  ;;  %v1318_v37 = vsel %vm294_vm0, %v1315_v13, %v1317_v0  ;;  %v217_v13 = vld [vmem:[%s4567_s17 + $0x170] sm:$0xff] }
 0x1b2   : > { %1308 = vrot.lane.b32.xlu1 %v1305_v28, %s4531_s24  ;;  %1298 = vrot.lane.b32.xlu0 %v5580_v35, %s4530_s23 }
 0x1b4   : > { %v5625_v10 = vpop.permute.xlu1 %1047  ;;  %v1006_v8 = vpop.permute.xlu0 %1005 }
 0x1b5   : > { %v1024_v22 = vsel %vm389_vm10, %v1022_v12, %v1006_v8  ;;  %v1596_v11 = vld [vmem:[#allocation2 + $0x80] sm:$0xff] }
 0x1b6   : > { %1026 = vst.msk [vmem:[#allocation2 + $0x88] sm:$0xff] %vm392_vm11, %v1024_v22  ;;  %1355 = vrot.lane.b32.xlu1 %v5576_v57, %s4525_s18  ;;  %1351 = vrot.lane.b32.xlu0 %v1239_v19, %s4526_s19  ;;  %v1673_v7 = vsel %vm392_vm11, %v1596_v11, 0 }
 0x1b7   : > { %v5635_v43 = vand.u32 4294901760, %v1673_v7 }
 0x1b8   : > { %v5637_v32 = vpop.permute.xlu1 %1106  ;;  %v1052_v38 = vpop.permute.xlu0 %1051 }
 0x1b9   : > { %6481 = vst [vmem:[#allocation25_spill] sm:$0xff] %v5635_v43  ;;  %v5640_v20 = vsub.f32 %v1673_v7, %v5635_v43  ;;  %v216_v7 = vld [vmem:[%s4567_s17 + $0x168] sm:$0xff]  ;;  %v1167_v16 = vsel %vm368_vm3, %v5196_v33, %v5637_v32 }
 0x1ba   : > { %1319 = vrot.lane.b32.xlu1 %v1316_v2, %s4532_s29  ;;  %1310 = vrot.lane.b32.xlu0 %v1307_v27, %s4531_s24 }
 0x1bb   : > { %6482 = vst [vmem:[#allocation26_spill] sm:$0xff] %v5640_v20  ;;  %v1956_v19 = vand.u32 4294901760, %v5640_v20 }
 0x1bc   : > { %v1060_v54 = vpop.permute.xlu1 %1059  ;;  %v1054_v30 = vpop.permute.xlu0 %1053 }
 0x1bd   : > { %4116 = vmatprep.mubr.f32.mxu0 %v1956_v19  ;;  %v1957_v53 = vsub.f32 %v5640_v20, %v1956_v19  ;;  %v1597_v61 = vld [vmem:[#allocation2 + $0x88] sm:$0xff] }
 0x1be   : > { %1361 = vrot.lane.b32.xlu1 %v1305_v28, %s4528_s21  ;;  %1357 = vrot.lane.b32.xlu0 %v5580_v35, %s4525_s18  ;;  %v1676_v17 = vsel %vm392_vm11, %v1597_v61, 0  ;;  %v1088_v61 = vsel %vm368_vm3, %v5101_v34, %v5542_v5 }
 0x1bf   : > { %v1958_v26 = vand.u32 4294901760, %v1957_v53  ;;  %v5651_v12 = vand.u32 4294901760, %v1676_v17 }
 0x1c0   : > { %v5653_v63 = vpop.permute.xlu1 %1112  ;;  %v5655_v8 = vpop.permute.xlu0 %1108 }
 0x1c1   : > { %6483 = vst [vmem:[#allocation27_spill] sm:$0xff] %v5651_v12  ;;  %3942 = vmatprep.mubr.f32.mxu1 %v1958_v26  ;;  %v5658_v22 = vsub.f32 %v1676_v17, %v5651_v12  ;;  %v5671_v17 = vand.u32 2147483647, %v216_v7  ;;  %v1090_v26 = vsel %vm371_vm4, %v1088_v61, %v5558_v62  ;;  %v5675_v12 = vand.u32 2147483647, %v217_v13 }
 0x1c2   : > { %1363 = vrot.lane.b32.xlu1 %v1307_v27, %s4528_s21  ;;  %1321 = vrot.lane.b32.xlu0 %v1318_v37, %s4532_s29  ;;  %v218_v61 = vld [vmem:[%s4567_s17 + $0x178] sm:$0x3] }
 0x1c3   : > { %6484 = vst [vmem:[#allocation28_spill] sm:$0xff] %v5658_v22  ;;  %v1966_v11 = vand.u32 4294901760, %v5658_v22 }
 0x1c4   : > { %v1072_v19 = vpop.permute.xlu1 %1071  ;;  %v1062_v53 = vpop.permute.xlu0 %1061 }
 0x1c5   : > { %4117 = vmatmul.mubr.f32.gmra.mrb[16].mxu0 %v1966_v11  ;;  %v1967_v0 = vsub.f32 %v5658_v22, %v1966_v11  ;;  %v1092_v11 = vsel %vm374_vm5, %v1090_v26, %v5584_v14  ;;  %v1383_v14 = vrot.slane %v5675_v12, 1 }
 0x1c6   : > { %1422 = vrot.lane.b32.xlu1 %v1305_v28, %s4527_s20  ;;  %1367 = vrot.lane.b32.xlu0 %v1316_v2, %s4529_s22  ;;  %v1094_v34 = vsel %vm377_vm6, %v1092_v11, %v5611_v6  ;;  %v1382_v28 = vrot.slane %v5671_v17, 1 }
 0x1c7   : > { %v1968_v20 = vand.u32 4294901760, %v1967_v0  ;;  %v1096_v5 = vsel %vm380_vm7, %v1094_v34, %v1052_v38  ;;  %v1089_v38 = vsel %vm368_vm3, %v5105_v55, %v5560_v42 }
 0x1c8   : > { %v5679_v22 = vpop.permute.xlu1 %1118  ;;  %v5681_v43 = vpop.permute.xlu0 %1114  ;;  %v1098_v62 = vsel %vm383_vm8, %v1096_v5, %v1060_v54  ;;  %v5704_v54 = vsel %vm282_vm1, %v1382_v28, %v1383_v14 }
 0x1c9   : > { %3943 = vmatmul.mubr.f32.gmra.mrb[16].mxu1 %v1968_v20  ;;  %v1100_v7 = vsel %vm386_vm9, %v1098_v62, %v1072_v19  ;;  %v1091_v20 = vsel %vm371_vm4, %v1089_v38, %v5586_v48  ;;  %v272_v19 = vand.u32 2147483647, %v218_v61 }
 0x1ca   : > { %1375 = vrot.lane.b32.xlu1 %v5671_v17, %s4530_s23  ;;  %1369 = vrot.lane.b32.xlu0 %v1318_v37, %s4529_s22  ;;  %v1093_v26 = vsel %vm374_vm5, %v1091_v20, %v5613_v39  ;;  %v1394_v39 = vrot.slane %v5675_v12, 2 }
 0x1cb   : > { %v1095_v55 = vsel %vm377_vm6, %v1093_v26, %v5625_v10  ;;  %v1396_v20 = vrot.slane %v272_v19, 2 }
 0x1cc   : > { %v1083_v13 = vpop.permute.xlu1 %1082  ;;  %v1074_v0 = vpop.permute.xlu0 %1073  ;;  %v1097_v42 = vsel %vm380_vm7, %v1095_v55, %v1054_v30 }
 0x1cd   : > { %v1102_v6 = vsel %vm389_vm10, %v1100_v7, %v1083_v13  ;;  %v1099_v48 = vsel %vm383_vm8, %v1097_v42, %v1062_v53 }
 0x1ce   : > { %1104 = vst.msk [vmem:[#allocation2 + $0x90] sm:$0xff] %vm392_vm11, %v1102_v6  ;;  %1428 = vrot.lane.b32.xlu1 %v1316_v2, %s4526_s19  ;;  %1424 = vrot.lane.b32.xlu0 %v1307_v27, %s4527_s20  ;;  %v1393_v2 = vrot.slane %v5671_v17, 2  ;;  %v1385_v27 = vrot.slane %v272_v19, 1  ;;  %v1101_v5 = vsel %vm386_vm9, %v1099_v48, %v1074_v0  ;;  %v4513_v48 = vld [vmem:[%s6411_s1] sm:$0xff] }
 0x1d0   : > { %v5708_v11 = vpop.permute.xlu1 %1124  ;;  %v5710_v34 = vpop.permute.xlu0 %1120  ;;  %v5732_v7 = vsel %vm294_vm0, %v1393_v2, %v1394_v39  ;;  %v5735_v13 = vsel %vm282_vm1, %v1383_v14, %v1385_v27  ;;  %v6487_v2 = vand.u32 4294901760, %v4637_v44 }
 0x1d2   : > { %1387 = vrot.lane.b32.xlu1 %v5704_v54, %s4531_s24  ;;  %1377 = vrot.lane.b32.xlu0 %v5675_v12, %s4530_s23  ;;  %v5757_v27 = vsub.f32 %v4513_v48, %v6487_v2 }
 0x1d4   : > { %v5723_v62 = vpop.permute.xlu1 %1126  ;;  %v1085_v10 = vpop.permute.xlu0 %1084 }
 0x1d5   : > { %v1103_v30 = vsel %vm389_vm10, %v1101_v5, %v1085_v10  ;;  %v1598_v28 = vld [vmem:[#allocation2 + $0x90] sm:$0xff]  ;;  %v4514_v5 = vld [vmem:[%s6411_s1 + $0x8] sm:$0xff]  ;;  %v6488_v10 = vand.u32 4294901760, %v4642_v45 }
 0x1d6   : > { %1105 = vst.msk [vmem:[#allocation2 + $0x98] sm:$0xff] %vm392_vm11, %v1103_v30  ;;  %1434 = vrot.lane.b32.xlu1 %v5671_v17, %s4525_s18  ;;  %1430 = vrot.lane.b32.xlu0 %v1318_v37, %s4526_s19  ;;  %v1679_v53 = vsel %vm392_vm11, %v1598_v28, 0  ;;  %v5772_v28 = vsel %vm294_vm0, %v1394_v39, %v1396_v20 }
 0x1d7   : > { %v5737_v0 = vand.u32 4294901760, %v1679_v53  ;;  %v5769_v30 = vsub.f32 %v4514_v5, %v6488_v10  ;;  %v219_v10 = vld [vmem:[%s4567_s17 + $0x180] sm:$0xff] }
 0x1d8   : > { %v5739_v61 = vpop.permute.xlu1 %1185  ;;  %v1131_v6 = vpop.permute.xlu0 %1130 }
 0x1d9   : > { %6485 = vst [vmem:[#allocation29_spill] sm:$0xff] %v5737_v0  ;;  %v5742_v38 = vsub.f32 %v1679_v53, %v5737_v0  ;;  %v2124_v2 = vand.u32 4294901760, %v5769_v30 }
 0x1da   : > { %1398 = vrot.lane.b32.xlu1 %v5732_v7, %s4532_s29  ;;  %1389 = vrot.lane.b32.xlu0 %v5735_v13, %s4531_s24 }
 0x1db   : > { %6486 = vst [vmem:[#allocation30_spill] sm:$0xff] %v5742_v38  ;;  %v1976_v37 = vand.u32 4294901760, %v5742_v38  ;;  %v2125_v39 = vsub.f32 %v5769_v30, %v2124_v2 }
 0x1dc   : > { %v1139_v26 = vpop.permute.xlu1 %1138  ;;  %v5749_v14 = vpop.permute.xlu0 %1132 }
 0x1dd   : > { %4119 = vmatprep.mubr.f32.mxu0 %v1976_v37  ;;  %v1977_v55 = vsub.f32 %v5742_v38, %v1976_v37  ;;  %v1599_v42 = vld [vmem:[#allocation2 + $0x98] sm:$0xff]  ;;  %v2117_v37 = vand.u32 4294901760, %v5757_v27 }
 0x1de   : > { %1440 = vrot.lane.b32.xlu1 %v5704_v54, %s4528_s21  ;;  %1436 = vrot.lane.b32.xlu0 %v5675_v12, %s4525_s18  ;;  %v1682_v19 = vsel %vm392_vm11, %v1599_v42, 0 }
 0x1df   : > { %v1978_v44 = vand.u32 4294901760, %v1977_v55  ;;  %v5774_v53 = vand.u32 4294901760, %v1682_v19  ;;  %v2118_v55 = vsub.f32 %v5757_v27, %v2117_v37  ;;  %v4288_v20 = vpack.c.bf16 %v2124_v2, %v2117_v37 }
 0x1e0   : > { %v5777_v48 = vpop.permute.xlu1 %1191  ;;  %v5779_v42 = vpop.permute.xlu0 %1187  ;;  %v273_v37 = vand.u32 2147483647, %v219_v10  ;;  %v221_v10 = vld [vmem:[%s4567_s17 + $0x190] sm:$0x3] }
 0x1e1   : > { %6489 = vst [vmem:[#allocation31_spill] sm:$0xff] %v5774_v53  ;;  %3945 = vmatprep.mubr.f32.mxu1 %v1978_v44  ;;  %v5783_v45 = vsub.f32 %v1682_v19, %v5774_v53  ;;  %v2119_v38 = vand.u32 4294901760, %v2118_v55  ;;  %v2126_v19 = vand.u32 4294901760, %v2125_v39  ;;  %4289 = vmatprep.subr.bf16.mxu0 %v4288_v20  ;;  %v1169_v55 = vsel %vm371_vm4, %v1167_v16, %v5653_v63 }
 0x1e2   : > { %1442 = vrot.lane.b32.xlu1 %v5735_v13, %s4528_s21  ;;  %1400 = vrot.lane.b32.xlu0 %v5772_v28, %s4532_s29  ;;  %v1461_v21 = vrot.slane %v273_v37, 1  ;;  %v1462_v63 = vrot.slane %v5804_v40, 1 }
 0x1e3   : > { %v1986_v5 = vand.u32 4294901760, %v5783_v45  ;;  %v4264_v2 = vpack.c.bf16 %v2126_v19, %v2119_v38  ;;  %4291 = vmatpush3.bf16.msra.mxu0 %v4288_v20  ;;  %v275_v19 = vand.u32 2147483647, %v221_v10 }
 0x1e4   : > { %v1151_v0 = vpop.permute.xlu1 %1150  ;;  %v1141_v44 = vpop.permute.xlu0 %1140 }
 0x1e5   : > { %4120 = vmatmul.mubr.f32.gmra.mrb[18].mxu0 %v1986_v5  ;;  %v1987_v53 = vsub.f32 %v5783_v45, %v1986_v5  ;;  %v1171_v5 = vsel %vm374_vm5, %v1169_v55, %v5679_v22  ;;  %4265 = vmatprep.subr.bf16.mxu1 %v4264_v2 }
 0x1e6   : > { %1501 = vrot.lane.b32.xlu1 %v5704_v54, %s4527_s20  ;;  %1446 = vrot.lane.b32.xlu0 %v5732_v7, %s4529_s22  ;;  %v1173_v54 = vsel %vm377_vm6, %v1171_v5, %v5708_v11 }
 0x1e7   : > { %v1988_v39 = vand.u32 4294901760, %v1987_v53  ;;  %v1175_v38 = vsel %vm380_vm7, %v1173_v54, %v1131_v6  ;;  %4267 = vmatpush3.bf16.msra.mxu1 %v4264_v2  ;;  %v1168_v6 = vsel %vm368_vm3, %v5200_v15, %v5655_v8 }
 0x1e8   : > { %v5808_v33 = vpop.permute.xlu1 %1197  ;;  %v5810_v32 = vpop.permute.xlu0 %1193  ;;  %v1177_v16 = vsel %vm383_vm8, %v1175_v38, %v1139_v26  ;;  %v1463_v26 = vsel %vm282_vm1, %v1461_v21, %v1462_v63 }
 0x1e9   : > { %3946 = vmatmul.mubr.f32.gmra.mrb[18].mxu1 %v1988_v39  ;;  %v1179_v22 = vsel %vm386_vm9, %v1177_v16, %v1151_v0  ;;  %v1170_v0 = vsel %vm371_vm4, %v1168_v6, %v5681_v43  ;;  %v4516_v39 = vld [vmem:[%s6411_s1 + $0x18] sm:$0xff]  ;;  %v1464_v16 = vrot.slane %v275_v19, 1 }
 0x1ea   : > { %1454 = vrot.lane.b32.xlu1 %v273_v37, %s4530_s23  ;;  %1448 = vrot.lane.b32.xlu0 %v5772_v28, %s4529_s22  ;;  %v1172_v2 = vsel %vm374_vm5, %v1170_v0, %v5710_v34  ;;  %v6491_v34 = vand.u32 4294901760, %v4664_v52 }
 0x1eb   : > { %v1174_v8 = vsel %vm377_vm6, %v1172_v2, %v5723_v62  ;;  %v1472_v62 = vrot.slane %v273_v37, 2 }
 0x1ec   : > { %v1162_v53 = vpop.permute.xlu1 %1161  ;;  %v1153_v20 = vpop.permute.xlu0 %1152  ;;  %v5854_v5 = vsub.f32 %v4516_v39, %v6491_v34  ;;  %v1176_v54 = vsel %vm380_vm7, %v1174_v8, %v5749_v14  ;;  %v1465_v8 = vsel %vm282_vm1, %v1462_v63, %v1464_v16  ;;  %v1475_v63 = vrot.slane %v275_v19, 2 }
 0x1ed   : > { %v1181_v11 = vsel %vm389_vm10, %v1179_v22, %v1162_v53  ;;  %v1178_v38 = vsel %vm383_vm8, %v1176_v54, %v1141_v44 }
 0x1ee   : > { %1183 = vst.msk [vmem:[#allocation2 + $0xa0] sm:$0xff] %vm392_vm11, %v1181_v11  ;;  %1507 = vrot.lane.b32.xlu1 %v5732_v7, %s4526_s19  ;;  %1503 = vrot.lane.b32.xlu0 %v5735_v13, %s4527_s20  ;;  %v4515_v7 = vld [vmem:[%s6411_s1 + $0x10] sm:$0xff]  ;;  %v6490_v13 = vand.u32 4294901760, %v4659_v51  ;;  %v1473_v51 = vrot.slane %v5804_v40, 2  ;;  %v2138_v52 = vand.u32 4294901760, %v5854_v5  ;;  %v1180_v22 = vsel %vm386_vm9, %v1178_v38, %v1153_v20 }
 0x1f0   : > { %v5836_v55 = vpop.permute.xlu1 %1203  ;;  %v5838_v15 = vpop.permute.xlu0 %1199  ;;  %v5847_v43 = vsub.f32 %v4515_v7, %v6490_v13  ;;  %v2139_v0 = vsub.f32 %v5854_v5, %v2138_v52  ;;  %v1474_v44 = vsel %vm294_vm0, %v1472_v62, %v1473_v51 }
 0x1f2   : > { %1466 = vrot.lane.b32.xlu1 %v1463_v26, %s4531_s24  ;;  %1456 = vrot.lane.b32.xlu0 %v5804_v40, %s4530_s23  ;;  %v2131_v21 = vand.u32 4294901760, %v5847_v43  ;;  %v2140_v39 = vand.u32 4294901760, %v2139_v0  ;;  %v222_v0 = vld [vmem:[%s4567_s17 + $0x198] sm:$0xff] }
 0x1f4   : > { %v5866_v53 = vpop.permute.xlu1 %1205  ;;  %v1164_v14 = vpop.permute.xlu0 %1163  ;;  %v2132_v6 = vsub.f32 %v5847_v43, %v2131_v21  ;;  %v4292_v2 = vpack.c.bf16 %v2138_v52, %v2131_v21 }
 0x1f5   : > { %v1182_v10 = vsel %vm389_vm10, %v1180_v22, %v1164_v14  ;;  %v1600_v11 = vld [vmem:[#allocation2 + $0xa0] sm:$0xff] }
 0x1f6   : > { %1184 = vst.msk [vmem:[#allocation2 + $0xa8] sm:$0xff] %vm392_vm11, %v1182_v10  ;;  %1513 = vrot.lane.b32.xlu1 %v273_v37, %s4525_s18  ;;  %1509 = vrot.lane.b32.xlu0 %v5772_v28, %s4526_s19  ;;  %v1685_v20 = vsel %vm392_vm11, %v1600_v11, 0  ;;  %v2133_v13 = vand.u32 4294901760, %v2132_v6  ;;  %v223_v14 = vld [vmem:[%s4567_s17 + $0x1a0] sm:$0xff]  ;;  %v224_v10 = vld [vmem:[%s4567_s17 + $0x1a8] sm:$0x3]  ;;  %v1476_v11 = vsel %vm294_vm0, %v1473_v51, %v1475_v63 }
 0x1f7   : > { %v5878_v7 = vand.u32 4294901760, %v1685_v20  ;;  %4293 = vmatprep.subr.bf16.mxu0 %v4292_v2  ;;  %s3685_s19 = sshll.u32 %s6526_s13, 8 }
 0x1f8   : > { %v5880_v34 = vpop.permute.xlu1 %1264  ;;  %v1210_v54 = vpop.permute.xlu0 %1209  ;;  %v4268_v38 = vpack.c.bf16 %v2140_v39, %v2133_v13  ;;  %4295 = vmatpush3.bf16.msra.mxu0 %v4292_v2  ;;  %v277_v13 = vand.u32 2147483647, %v223_v14  ;;  %v276_v39 = vand.u32 2147483647, %v222_v0  ;;  %v5919_v14 = vsub.f32 %v4687_v59, %v4691_v60 }
 0x1f9   : > { %v5883_v37 = vsub.f32 %v1685_v20, %v5878_v7 }
 0x1fa   : > { %1477 = vrot.lane.b32.xlu1 %v1474_v44, %s4532_s29  ;;  %1468 = vrot.lane.b32.xlu0 %v1465_v8, %s4531_s24 }
 0x1fb   : > { %v1996_v28 = vand.u32 4294901760, %v5883_v37  ;;  %4269 = vmatprep.subr.bf16.mxu1 %v4268_v38 }
 0x1fc   : > { %v1218_v62 = vpop.permute.xlu1 %1217  ;;  %v5888_v16 = vpop.permute.xlu0 %1211  ;;  %4271 = vmatpush3.bf16.msra.mxu1 %v4268_v38 }
 0x1fd   : > { %4122 = vmatprep.mubr.f32.mxu0 %v1996_v28  ;;  %v1997_v21 = vsub.f32 %v5883_v37, %v1996_v28  ;;  %v1601_v52 = vld [vmem:[#allocation2 + $0xa8] sm:$0xff] }
 0x1fe   : > { %1519 = vrot.lane.b32.xlu1 %v1463_v26, %s4528_s21  ;;  %1515 = vrot.lane.b32.xlu0 %v5804_v40, %s4525_s18  ;;  %v1688_v22 = vsel %vm392_vm11, %v1601_v52, 0  ;;  %v278_v40 = vand.u32 2147483647, %v224_v10 }
 0x1ff   : > { %v1998_v19 = vand.u32 4294901760, %v1997_v21  ;;  %v5898_v6 = vand.u32 4294901760, %v1688_v22  ;;  %v1541_v21 = vrot.slane %v277_v13, 1 }
 0x200   : > { %v5901_v20 = vpop.permute.xlu1 %1270  ;;  %v5903_v2 = vpop.permute.xlu0 %1266  ;;  %v1543_v52 = vrot.slane %v278_v40, 1 }
 0x201   : > { %3948 = vmatprep.mubr.f32.mxu1 %v1998_v19  ;;  %v5906_v26 = vsub.f32 %v1688_v22, %v5898_v6  ;;  %v1246_v22 = vsel %vm368_vm3, %v5291_v49, %v5739_v61  ;;  %v2145_v49 = vand.u32 4294901760, %v5919_v14 }
 0x202   : > { %1521 = vrot.lane.b32.xlu1 %v1465_v8, %s4528_s21  ;;  %1479 = vrot.lane.b32.xlu0 %v1476_v11, %s4532_s29  ;;  %v1540_v8 = vrot.slane %v276_v39, 1  ;;  %v1248_v10 = vsel %vm371_vm4, %v1246_v22, %v5777_v48  ;;  %v1544_v59 = vsel %vm282_vm1, %v1541_v21, %v1543_v52  ;;  %v1554_v22 = vrot.slane %v278_v40, 2 }
 0x203   : > { %6492 = vst [vmem:[#allocation32_spill] sm:$0xff] %v5906_v26  ;;  %v2006_v51 = vand.u32 4294901760, %v5906_v26  ;;  %v1250_v0 = vsel %vm374_vm5, %v1248_v10, %v5808_v33  ;;  %v2146_v33 = vsub.f32 %v5919_v14, %v2145_v49  ;;  %v1551_v10 = vrot.slane %v276_v39, 2  ;;  %4148 = vmatprep.subr.mxu0 %v2145_v49 }
 0x204   : > { %v1230_v38 = vpop.permute.xlu1 %1229  ;;  %v1220_v28 = vpop.permute.xlu0 %1219  ;;  %v1252_v61 = vsel %vm377_vm6, %v1250_v0, %v5836_v55  ;;  %v1542_v48 = vsel %vm282_vm1, %v1540_v8, %v1541_v21  ;;  %4149 = vmatpush3.msra.mxu0 %v2145_v49  ;;  %v1247_v21 = vsel %vm368_vm3, %v5295_v9, %v5779_v42 }
 0x205   : > { %4123 = vmatmul.mubr.f32.gmra.mrb[20].mxu0 %v2006_v51  ;;  %v2007_v63 = vsub.f32 %v5906_v26, %v2006_v51  ;;  %v2147_v0 = vand.u32 4294901760, %v2146_v33  ;;  %4297 = vmatprep.subr.bf16.mxu0 %v4654_v50 }
 0x206   : > { %1527 = vrot.lane.b32.xlu1 %v1476_v11, %s4529_s22  ;;  %1525 = vrot.lane.b32.xlu0 %v1474_v44, %s4529_s22  ;;  %v1254_v44 = vsel %vm380_vm7, %v1252_v61, %v1210_v54 }
 0x207   : > { %v2008_v19 = vand.u32 4294901760, %v2007_v63  ;;  %v1256_v11 = vsel %vm383_vm8, %v1254_v44, %v1218_v62  ;;  %v1552_v63 = vrot.slane %v277_v13, 2  ;;  %v1249_v62 = vsel %vm371_vm4, %v1247_v21, %v5810_v32  ;;  %3974 = vmatprep.subr.mxu1 %v2147_v0 }
 0x208   : > { %v5925_v51 = vpop.permute.xlu1 %1276  ;;  %v5927_v26 = vpop.permute.xlu0 %1272  ;;  %v1258_v55 = vsel %vm386_vm9, %v1256_v11, %v1230_v38  ;;  %3975 = vmatpush3.msra.mxu1 %v2147_v0 }
 0x209   : > { %3949 = vmatmul.mubr.f32.gmra.mrb[20].mxu1 %v2008_v19  ;;  %v1553_v40 = vsel %vm294_vm0, %v1551_v10, %v1552_v63 }
 0x20a   : > { %1535 = vrot.lane.b32.xlu1 %v277_v13, %s4530_s23  ;;  %1533 = vrot.lane.b32.xlu0 %v276_v39, %s4530_s23  ;;  %v1555_v13 = vsel %vm294_vm0, %v1552_v63, %v1554_v22  ;;  %v1251_v39 = vsel %vm374_vm5, %v1249_v62, %v5838_v15  ;;  %v5975_v63 = vpack.c.bf16 %v5769_v30, %v5757_v27  ;;  %s6311_s23 = scalar_lea.vmem %s6413_s3, %s3685_s19 }
 0x20b   : > { %v1253_v9 = vsel %vm377_vm6, %v1251_v39, %v5866_v53 }
 0x20c   : > { %v1241_v19 = vpop.permute.xlu1 %1240  ;;  %v1232_v52 = vpop.permute.xlu0 %1231  ;;  %v1255_v42 = vsel %vm380_vm7, %v1253_v9, %v5888_v16  ;;  %4273 = vmatprep.subr.bf16.mxu1 %v5975_v63  ;;  %v1325_v9 = vsel %vm368_vm3, %v5386_v47, %v5880_v34 }
 0x20d   : > { %v1260_v54 = vsel %vm389_vm10, %v1258_v55, %v1241_v19  ;;  %v1257_v32 = vsel %vm383_vm8, %v1255_v42, %v1220_v28  ;;  %v1327_v42 = vsel %vm371_vm4, %v1325_v9, %v5901_v20 }
 0x20e   : > { %1262 = vst.msk [vmem:[#allocation2 + $0xb0] sm:$0xff] %vm392_vm11, %v1260_v54  ;;  %1547 = vrot.lane.b32.xlu1 %v1544_v59, %s4531_s24  ;;  %1545 = vrot.lane.b32.xlu0 %v1542_v48, %s4531_s24  ;;  %v1259_v49 = vsel %vm386_vm9, %v1257_v32, %v1232_v52 }
 0x210   : > { %v1283_v38 = vpop.permute.xlu1 %1282  ;;  %v1279_v8 = vpop.permute.xlu0 %1278 }
 0x212   : > { %1558 = vrot.lane.b32.xlu1 %v1555_v13, %s4532_s29  ;;  %1556 = vrot.lane.b32.xlu0 %v1553_v40, %s4532_s29 }
 0x214   : > { %v1285_v61 = vpop.permute.xlu1 %1284  ;;  %v1243_v59 = vpop.permute.xlu0 %1242 }
 0x215   : > { %v1261_v15 = vsel %vm389_vm10, %v1259_v49, %v1243_v59  ;;  %v1602_v44 = vld [vmem:[#allocation2 + $0xb0] sm:$0xff]  ;;  %v1329_v49 = vsel %vm374_vm5, %v1327_v42, %v5925_v51  ;;  %v1326_v51 = vsel %vm368_vm3, %v5390_v36, %v5903_v2 }
 0x216   : > { %1263 = vst.msk [vmem:[#allocation2 + $0xb8] sm:$0xff] %vm392_vm11, %v1261_v15  ;;  %v1691_v53 = vsel %vm392_vm11, %v1602_v44, 0  ;;  %v1331_v44 = vsel %vm377_vm6, %v1329_v49, %v1283_v38  ;;  %v1328_v38 = vsel %vm371_vm4, %v1326_v51, %v5927_v26 }
 0x217   : > { %v5965_v48 = vand.u32 4294901760, %v1691_v53 }
 0x218   : > { %v5967_v16 = vpop.permute.xlu1 %1343  ;;  %v1289_v33 = vpop.permute.xlu0 %1288 }
 0x219   : > { %v5970_v11 = vsub.f32 %v1691_v53, %v5965_v48  ;;  %v1333_v53 = vsel %vm380_vm7, %v1331_v44, %v1289_v33 }
 0x21b   : > { %v2016_v28 = vand.u32 4294901760, %v5970_v11 }
 0x21c   : > { %v1297_v22 = vpop.permute.xlu1 %1296  ;;  %v1291_v10 = vpop.permute.xlu0 %1290 }
 0x21d   : > { %4125 = vmatprep.mubr.f32.mxu0 %v2016_v28  ;;  %v2017_v55 = vsub.f32 %v5970_v11, %v2016_v28  ;;  %v1603_v19 = vld [vmem:[#allocation2 + $0xb8] sm:$0xff]  ;;  %v1335_v28 = vsel %vm383_vm8, %v1333_v53, %v1297_v22 }
 0x21e   : > { %v1694_v52 = vsel %vm392_vm11, %v1603_v19, 0  ;;  %v1330_v19 = vsel %vm374_vm5, %v1328_v38, %v1279_v8 }
 0x21f   : > { %v2018_v0 = vand.u32 4294901760, %v2017_v55  ;;  %v5980_v54 = vand.u32 4294901760, %v1694_v52  ;;  %v1332_v22 = vsel %vm377_vm6, %v1330_v19, %v1285_v61 }
 0x220   : > { %v5982_v21 = vpop.permute.xlu1 %1349  ;;  %v5984_v62 = vpop.permute.xlu0 %1345 }
 0x221   : > { %3951 = vmatprep.mubr.f32.mxu1 %v2018_v0  ;;  %v5987_v27 = vsub.f32 %v1694_v52, %v5980_v54  ;;  %v1334_v0 = vsel %vm380_vm7, %v1332_v22, %v1291_v10 }
 0x223   : > { %v2026_v30 = vand.u32 4294901760, %v5987_v27 }
 0x224   : > { %v1309_v13 = vpop.permute.xlu1 %1308  ;;  %v1299_v40 = vpop.permute.xlu0 %1298 }
 0x225   : > { %4126 = vmatmul.mubr.f32.gmra.mrb[22].mxu0 %v2026_v30  ;;  %v2027_v39 = vsub.f32 %v5987_v27, %v2026_v30  ;;  %v1337_v55 = vsel %vm386_vm9, %v1335_v28, %v1309_v13  ;;  %v1336_v30 = vsel %vm383_vm8, %v1334_v0, %v1299_v40  ;;  %v6017_v13 = vpack.c.bf16 %v5854_v5, %v5847_v43 }
 0x226   : > { %v1404_v0 = vsel %vm368_vm3, %v5481_v31, %v5967_v16 }
 0x227   : > { %v2028_v32 = vand.u32 4294901760, %v2027_v39 }
 0x228   : > { %v1356_v59 = vpop.permute.xlu1 %1355  ;;  %v5998_v15 = vpop.permute.xlu0 %1351 }
 0x229   : > { %3952 = vmatmul.mubr.f32.gmra.mrb[22].mxu1 %v2028_v32 }
 0x22c   : > { %v1320_v47 = vpop.permute.xlu1 %1319  ;;  %v1311_v34 = vpop.permute.xlu0 %1310 }
 0x22d   : > { %v1339_v20 = vsel %vm389_vm10, %v1337_v55, %v1320_v47  ;;  %v1338_v36 = vsel %vm386_vm9, %v1336_v30, %v1311_v34  ;;  %v1406_v30 = vsel %vm371_vm4, %v1404_v0, %v5982_v21  ;;  %v1405_v21 = vsel %vm368_vm3, %v5485_v29, %v5984_v62 }
 0x22e   : > { %1341 = vst.msk [vmem:[#allocation2 + $0xc0] sm:$0xff] %vm392_vm11, %v1339_v20 }
 0x230   : > { %v1362_v33 = vpop.permute.xlu1 %1361  ;;  %v1358_v52 = vpop.permute.xlu0 %1357 }
 0x234   : > { %v1364_v2 = vpop.permute.xlu1 %1363  ;;  %v1322_v39 = vpop.permute.xlu0 %1321 }
 0x235   : > { %v1340_v26 = vsel %vm389_vm10, %v1338_v36, %v1322_v39  ;;  %v1604_v9 = vld [vmem:[#allocation2 + $0xc0] sm:$0xff]  ;;  %v1408_v39 = vsel %vm374_vm5, %v1406_v30, %v1356_v59  ;;  %v1407_v59 = vsel %vm371_vm4, %v1405_v21, %v5998_v15 }
 0x236   : > { %1342 = vst.msk [vmem:[#allocation2 + $0xc8] sm:$0xff] %vm392_vm11, %v1340_v26  ;;  %v1697_v8 = vsel %vm392_vm11, %v1604_v9, 0 }
 0x237   : > { %v6023_v61 = vand.u32 4294901760, %v1697_v8 }
 0x238   : > { %v6025_v10 = vpop.permute.xlu1 %1422  ;;  %v1368_v40 = vpop.permute.xlu0 %1367 }
 0x239   : > { %v6028_v42 = vsub.f32 %v1697_v8, %v6023_v61  ;;  %v1410_v8 = vsel %vm377_vm6, %v1408_v39, %v1362_v33  ;;  %v1409_v33 = vsel %vm374_vm5, %v1407_v59, %v1358_v52 }
 0x23b   : > { %v2036_v43 = vand.u32 4294901760, %v6028_v42 }
 0x23c   : > { %v1376_v5 = vpop.permute.xlu1 %1375  ;;  %v1370_v32 = vpop.permute.xlu0 %1369 }
 0x23d   : > { %4128 = vmatprep.mubr.f32.mxu0 %v2036_v43  ;;  %v2037_v49 = vsub.f32 %v6028_v42, %v2036_v43  ;;  %v1605_v44 = vld [vmem:[#allocation2 + $0xc8] sm:$0xff]  ;;  %v1412_v43 = vsel %vm380_vm7, %v1410_v8, %v1368_v40 }
 0x23e   : > { %v1700_v53 = vsel %vm392_vm11, %v1605_v44, 0 }
 0x23f   : > { %v2038_v28 = vand.u32 4294901760, %v2037_v49  ;;  %v6033_v55 = vand.u32 4294901760, %v1700_v53  ;;  %v1414_v49 = vsel %vm383_vm8, %v1412_v43, %v1376_v5  ;;  %v1411_v5 = vsel %vm377_vm6, %v1409_v33, %v1364_v2 }
 0x240   : > { %v6035_v47 = vpop.permute.xlu1 %1428  ;;  %v6037_v34 = vpop.permute.xlu0 %1424 }
 0x241   : > { %3954 = vmatprep.mubr.f32.mxu1 %v2038_v28  ;;  %v6040_v20 = vsub.f32 %v1700_v53, %v6033_v55 }
 0x243   : > { %v2046_v51 = vand.u32 4294901760, %v6040_v20 }
 0x244   : > { %v1388_v38 = vpop.permute.xlu1 %1387  ;;  %v1378_v19 = vpop.permute.xlu0 %1377 }
 0x245   : > { %4129 = vmatmul.mubr.f32.gmra.mrb[24].mxu0 %v2046_v51  ;;  %v2047_v22 = vsub.f32 %v6040_v20, %v2046_v51  ;;  %v1416_v44 = vsel %vm386_vm9, %v1414_v49, %v1388_v38  ;;  %v1413_v51 = vsel %vm380_vm7, %v1411_v5, %v1370_v32 }
 0x246   : > { %v1415_v38 = vsel %vm383_vm8, %v1413_v51, %v1378_v19 }
 0x247   : > { %v2048_v36 = vand.u32 4294901760, %v2047_v22 }
 0x248   : > { %v1435_v26 = vpop.permute.xlu1 %1434  ;;  %v6050_v9 = vpop.permute.xlu0 %1430 }
 0x249   : > { %3955 = vmatmul.mubr.f32.gmra.mrb[24].mxu1 %v2048_v36 }
 0x24c   : > { %v1399_v53 = vpop.permute.xlu1 %1398  ;;  %v1390_v31 = vpop.permute.xlu0 %1389 }
 0x24d   : > { %v1418_v16 = vsel %vm389_vm10, %v1416_v44, %v1399_v53  ;;  %v1417_v22 = vsel %vm386_vm9, %v1415_v38, %v1390_v31 }
 0x24e   : > { %1420 = vst.msk [vmem:[#allocation2 + $0xd0] sm:$0xff] %vm392_vm11, %v1418_v16 }
 0x250   : > { %v1441_v40 = vpop.permute.xlu1 %1440  ;;  %v1437_v28 = vpop.permute.xlu0 %1436 }
 0x254   : > { %v1443_v0 = vpop.permute.xlu1 %1442  ;;  %v1401_v30 = vpop.permute.xlu0 %1400 }
 0x255   : > { %v1419_v29 = vsel %vm389_vm10, %v1417_v22, %v1401_v30  ;;  %v1606_v62 = vld [vmem:[#allocation2 + $0xd0] sm:$0xff]  ;;  %v1483_v22 = vsel %vm368_vm3, %v5576_v57, %v6025_v10  ;;  %v1484_v10 = vsel %vm368_vm3, %v5580_v35, %v6037_v34 }
 0x256   : > { %1421 = vst.msk [vmem:[#allocation2 + $0xd8] sm:$0xff] %vm392_vm11, %v1419_v29  ;;  %v1703_v15 = vsel %vm392_vm11, %v1606_v62, 0  ;;  %v1485_v30 = vsel %vm371_vm4, %v1483_v22, %v6035_v47  ;;  %v1486_v47 = vsel %vm371_vm4, %v1484_v10, %v6050_v9 }
 0x257   : > { %v6071_v52 = vand.u32 4294901760, %v1703_v15  ;;  %v1487_v62 = vsel %vm374_vm5, %v1485_v30, %v1435_v26  ;;  %v1488_v26 = vsel %vm374_vm5, %v1486_v47, %v1437_v28 }
 0x258   : > { %v1502_v36 = vpop.permute.xlu1 %1501  ;;  %v1447_v39 = vpop.permute.xlu0 %1446 }
 0x259   : > { %v6074_v2 = vsub.f32 %v1703_v15, %v6071_v52 }
 0x25b   : > { %v2056_v32 = vand.u32 4294901760, %v6074_v2 }
 0x25c   : > { %v1455_v19 = vpop.permute.xlu1 %1454  ;;  %v1449_v8 = vpop.permute.xlu0 %1448 }
 0x25d   : > { %4131 = vmatprep.mubr.f32.mxu0 %v2056_v32  ;;  %v2057_v43 = vsub.f32 %v6074_v2, %v2056_v32  ;;  %v1607_v49 = vld [vmem:[#allocation2 + $0xd8] sm:$0xff] }
 0x25e   : > { %v1706_v44 = vsel %vm392_vm11, %v1607_v49, 0 }
 0x25f   : > { %v2058_v53 = vand.u32 4294901760, %v2057_v43  ;;  %v6079_v31 = vand.u32 4294901760, %v1706_v44  ;;  %v1489_v43 = vsel %vm377_vm6, %v1487_v62, %v1441_v40 }
 0x260   : > { %v1508_v16 = vpop.permute.xlu1 %1507  ;;  %v1504_v21 = vpop.permute.xlu0 %1503  ;;  %v1491_v49 = vsel %vm380_vm7, %v1489_v43, %v1447_v39 }
 0x261   : > { %3957 = vmatprep.mubr.f32.mxu1 %v2058_v53  ;;  %v6082_v59 = vsub.f32 %v1706_v44, %v6079_v31  ;;  %v1493_v44 = vsel %vm383_vm8, %v1491_v49, %v1455_v19  ;;  %v1490_v19 = vsel %vm377_vm6, %v1488_v26, %v1443_v0 }
 0x263   : > { %6493 = vst [vmem:[#allocation33_spill] sm:$0xff] %v6082_v59  ;;  %v2066_v33 = vand.u32 4294901760, %v6082_v59 }
 0x264   : > { %v1467_v5 = vpop.permute.xlu1 %1466  ;;  %v1457_v51 = vpop.permute.xlu0 %1456 }
 0x265   : > { %4132 = vmatmul.mubr.f32.gmra.mrb[26].mxu0 %v2066_v33  ;;  %v2067_v38 = vsub.f32 %v6082_v59, %v2066_v33  ;;  %v1495_v53 = vsel %vm386_vm9, %v1493_v44, %v1467_v5  ;;  %v1492_v5 = vsel %vm380_vm7, %v1490_v19, %v1449_v8 }
 0x267   : > { %v2068_v29 = vand.u32 4294901760, %v2067_v38  ;;  %v1494_v38 = vsel %vm383_vm8, %v1492_v5, %v1457_v51 }
 0x268   : > { %v1514_v15 = vpop.permute.xlu1 %1513  ;;  %v1510_v32 = vpop.permute.xlu0 %1509 }
 0x269   : > { %3958 = vmatmul.mubr.f32.gmra.mrb[26].mxu1 %v2068_v29 }
 0x26c   : > { %v1478_v33 = vpop.permute.xlu1 %1477  ;;  %v1469_v59 = vpop.permute.xlu0 %1468 }
 0x26d   : > { %v1497_v57 = vsel %vm389_vm10, %v1495_v53, %v1478_v33  ;;  %v1496_v22 = vsel %vm386_vm9, %v1494_v38, %v1469_v59  ;;  %v1562_v53 = vsel %vm368_vm3, %v5671_v17, %v1502_v36  ;;  %v1563_v33 = vsel %vm368_vm3, %v5675_v12, %v1504_v21 }
 0x26e   : > { %1499 = vst.msk [vmem:[#allocation2 + $0xe0] sm:$0xff] %vm392_vm11, %v1497_v57  ;;  %v1564_v10 = vsel %vm371_vm4, %v1562_v53, %v1508_v16  ;;  %v1565_v47 = vsel %vm371_vm4, %v1563_v33, %v1510_v32 }
 0x26f   : > { %v1566_v5 = vsel %vm374_vm5, %v1564_v10, %v1514_v15 }
 0x270   : > { %v1520_v40 = vpop.permute.xlu1 %1519  ;;  %v1516_v39 = vpop.permute.xlu0 %1515 }
 0x271   : > { %v1567_v38 = vsel %vm374_vm5, %v1565_v47, %v1516_v39  ;;  %v1568_v17 = vsel %vm377_vm6, %v1566_v5, %v1520_v40 }
 0x274   : > { %v1522_v30 = vpop.permute.xlu1 %1521  ;;  %v1480_v29 = vpop.permute.xlu0 %1479 }
 0x275   : > { %v1498_v35 = vsel %vm389_vm10, %v1496_v22, %v1480_v29  ;;  %v1608_v34 = vld [vmem:[#allocation2 + $0xe0] sm:$0xff]  ;;  %v1569_v36 = vsel %vm377_vm6, %v1567_v38, %v1522_v30 }
 0x276   : > { %1500 = vst.msk [vmem:[#allocation2 + $0xe8] sm:$0xff] %vm392_vm11, %v1498_v35  ;;  %v1709_v9 = vsel %vm392_vm11, %v1608_v34, 0 }
 0x277   : > { %v6111_v28 = vand.u32 4294901760, %v1709_v9 }
 0x278   : > { %v1528_v62 = vpop.permute.xlu1 %1527  ;;  %v1526_v43 = vpop.permute.xlu0 %1525 }
 0x279   : > { %v6114_v0 = vsub.f32 %v1709_v9, %v6111_v28  ;;  %v1571_v16 = vsel %vm380_vm7, %v1569_v36, %v1528_v62  ;;  %v1570_v21 = vsel %vm380_vm7, %v1568_v17, %v1526_v43  ;;  %v6500_v17 = vld [vmem:[#allocation25_spill] sm:$0xff]  ;;  %v6501_v36 = vld [vmem:[#allocation27_spill] sm:$0xff] }
 0x27b   : > { %v2076_v8 = vand.u32 4294901760, %v6114_v0 }
 0x27c   : > { %v1536_v51 = vpop.permute.xlu1 %1535  ;;  %v1534_v59 = vpop.permute.xlu0 %1533 }
 0x27d   : > { %4134 = vmatprep.mubr.f32.mxu0 %v2076_v8  ;;  %v2077_v49 = vsub.f32 %v6114_v0, %v2076_v8  ;;  %v1609_v44 = vld [vmem:[#allocation2 + $0xe8] sm:$0xff]  ;;  %v1573_v32 = vsel %vm383_vm8, %v1571_v16, %v1536_v51  ;;  %v1572_v15 = vsel %vm383_vm8, %v1570_v21, %v1534_v59  ;;  %v6502_v16 = vld [vmem:[#allocation29_spill] sm:$0xff]  ;;  %v6503_v21 = vld [vmem:[#allocation31_spill] sm:$0xff] }
 0x27e   : > { %v1712_v57 = vsel %vm392_vm11, %v1609_v44, 0 }
 0x27f   : > { %v2078_v26 = vand.u32 4294901760, %v2077_v49  ;;  %v6125_v19 = vand.u32 4294901760, %v1712_v57 }
 0x280   : > { %v1548_v22 = vpop.permute.xlu1 %1547  ;;  %v1546_v29 = vpop.permute.xlu0 %1545 }
 0x281   : > { %3960 = vmatprep.mubr.f32.mxu1 %v2078_v26  ;;  %v6132_v12 = vsub.f32 %v1712_v57, %v6125_v19  ;;  %v1575_v35 = vsel %vm386_vm9, %v1573_v32, %v1548_v22  ;;  %v1574_v40 = vsel %vm386_vm9, %v1572_v15, %v1546_v29  ;;  %v6504_v32 = vld [vmem:[#allocation3_spill] sm:$0xff]  ;;  %v6505_v15 = vld [vmem:[#allocation4_spill] sm:$0xff] }
 0x283   : > { %v2086_v39 = vand.u32 4294901760, %v6132_v12 }
 0x284   : > { %v1559_v34 = vpop.permute.xlu1 %1558  ;;  %v1557_v30 = vpop.permute.xlu0 %1556 }
 0x285   : > { %v1577_v9 = vsel %vm389_vm10, %v1575_v35, %v1559_v34  ;;  %v1576_v8 = vsel %vm389_vm10, %v1574_v40, %v1557_v30  ;;  %4135 = vmatmul.mubr.f32.gmra.mrb[28].mxu0 %v2086_v39  ;;  %v2087_v62 = vsub.f32 %v6132_v12, %v2086_v39  ;;  %v6506_v39 = vld [vmem:[#allocation5_spill] sm:$0xff]  ;;  %v6507_v35 = vld [vmem:[#allocation6_spill] sm:$0xff]  ;;  %v6519_v34 = vld [vmem:[#allocation24_spill] sm:$0xff] }
 0x286   : > { %1579 = vst.msk [vmem:[#allocation2 + $0xf8] sm:$0xff] %vm392_vm11, %v1577_v9  ;;  %1578 = vst.msk [vmem:[#allocation2 + $0xf0] sm:$0xff] %vm392_vm11, %v1576_v8  ;;  %v6518_v40 = vld [vmem:[#allocation22_spill] sm:$0xff]  ;;  %v6521_v9 = vld [vmem:[#allocation28_spill] sm:$0xff] }
 0x287   : > { %v2088_v43 = vand.u32 4294901760, %v2087_v62  ;;  %v6520_v30 = vld [vmem:[#allocation26_spill] sm:$0xff]  ;;  %v6523_v62 = vld [vmem:[#allocation32_spill] sm:$0xff] }
 0x288   : > { %v6522_v8 = vld [vmem:[#allocation30_spill] sm:$0xff] }
 0x289   : > { %3961 = vmatmul.mubr.f32.gmra.mrb[28].mxu1 %v2088_v43 }
 0x28d   : > { %v1610_v51 = vld [vmem:[#allocation2 + $0xf0] sm:$0xff]  ;;  %v1611_v59 = vld [vmem:[#allocation2 + $0xf8] sm:$0xff] }
 0x28e   : > { %v1715_v49 = vsel %vm392_vm11, %v1610_v51, 0  ;;  %v1718_v44 = vsel %vm392_vm11, %v1611_v59, 0 }
 0x28f   : > { %v6148_v53 = vand.u32 4294901760, %v1715_v49  ;;  %v6150_v33 = vand.u32 4294901760, %v1718_v44 }
 0x291   : > { %v6153_v57 = vsub.f32 %v1715_v49, %v6148_v53  ;;  %v6156_v10 = vsub.f32 %v1718_v44, %v6150_v33 }
 0x293   : > { %v2096_v47 = vand.u32 4294901760, %v6153_v57  ;;  %v2106_v26 = vand.u32 4294901760, %v6156_v10 }
 0x295   : > { %4137 = vmatprep.mubr.f32.mxu0 %v2096_v47  ;;  %v2097_v5 = vsub.f32 %v6153_v57, %v2096_v47  ;;  %v2107_v38 = vsub.f32 %v6156_v10, %v2106_v26 }
 0x296   : > { %4138 = vmatmul.mubr.f32.gmra.mrb[30].mxu0 %v2106_v26 }
 0x297   : > { %4150 = vmatprep.mubr.f32.mxu0 %v4875_v25  ;;  %v2098_v22 = vand.u32 4294901760, %v2097_v5  ;;  %v2108_v29 = vand.u32 4294901760, %v2107_v38 }
 0x299   : > { %3963 = vmatprep.mubr.f32.mxu1 %v2098_v22 }
 0x29a   : > { %3964 = vmatmul.mubr.f32.gmra.mrb[30].mxu1 %v2108_v29  ;;  %4151 = vmatmul.mubr.f32.vlgmr.msra.gmra.mrb[0].mxu0 %v4891_v46 }
 0x29b   : > { %3976 = vmatprep.mubr.f32.mxu1 %v4875_v25  ;;  %4153 = vmatprep.mubr.f32.mxu0 %v4970_v18 }
 0x29c   : > { %4299 = vmatpush3.bf16.msra.mxu0 %v4654_v50  ;;  %v6494_v50 = vld [vmem:[#allocation13_spill] sm:$0xff] }
 0x29d   : > { %4301 = vmatprep.subr.bf16.mxu0 %v4675_v56 }
 0x29e   : > { %3977 = vmatmul.mubr.f32.vlgmr.msra.gmra.mrb[0].mxu1 %v4891_v46  ;;  %4154 = vmatmul.mubr.f32.gmra.mrb[2].mxu0 %v4986_v3 }
 0x29f   : > { %4275 = vmatpush3.bf16.msra.mxu1 %v5975_v63  ;;  %3979 = vmatprep.mubr.f32.mxu1 %v4970_v18  ;;  %v6497_v63 = vld [vmem:[#allocation19_spill] sm:$0xff] }
 0x2a0   : > { %4156 = vmatprep.mubr.f32.mxu0 %v5065_v23  ;;  %4277 = vmatprep.subr.bf16.mxu1 %v6017_v13 }
 0x2a1   : > { %4303 = vmatpush3.bf16.msra.mxu0 %v4675_v56  ;;  %v6495_v56 = vld [vmem:[#allocation15_spill] sm:$0xff] }
 0x2a2   : > { %3980 = vmatmul.mubr.f32.gmra.mrb[2].mxu1 %v4986_v3  ;;  %4157 = vmatmul.mubr.f32.gmra.mrb[4].mxu0 %v5081_v4 }
 0x2a3   : > { %3982 = vmatprep.mubr.f32.mxu1 %v5065_v23  ;;  %4159 = vmatprep.mubr.f32.mxu0 %v5160_v58 }
 0x2a4   : > { %4279 = vmatpush3.bf16.msra.mxu1 %v6017_v13  ;;  %4206 = vmatprep.subr.mxu0 %v4691_v60  ;;  %v6499_v13 = vld [vmem:[#allocation23_spill] sm:$0xff] }
 0x2a5   : > { %4032 = vmatprep.subr.mxu1 %v5919_v14  ;;  %4207 = vmatpush3.msra.mxu0 %v4691_v60  ;;  %v6496_v60 = vld [vmem:[#allocation17_spill] sm:$0xff] }
 0x2a6   : > { %3983 = vmatmul.mubr.f32.gmra.mrb[4].mxu1 %v5081_v4  ;;  %4160 = vmatmul.mubr.f32.gmra.mrb[6].mxu0 %v5176_v24 }
 0x2a7   : > { %3985 = vmatprep.mubr.f32.mxu1 %v5160_v58  ;;  %4162 = vmatprep.mubr.f32.mxu0 %v5255_v41 }
 0x2a8   : > { %4033 = vmatpush3.msra.mxu1 %v5919_v14  ;;  %v6498_v14 = vld [vmem:[#allocation21_spill] sm:$0xff] }
 0x2aa   : > { %3986 = vmatmul.mubr.f32.gmra.mrb[6].mxu1 %v5176_v24  ;;  %4163 = vmatmul.mubr.f32.gmra.mrb[8].mxu0 %v5271_v1 }
 0x2ab   : > { %3988 = vmatprep.mubr.f32.mxu1 %v5255_v41  ;;  %4165 = vmatprep.mubr.f32.mxu0 %v6494_v50 }
 0x2ae   : > { %3989 = vmatmul.mubr.f32.gmra.mrb[8].mxu1 %v5271_v1  ;;  %4166 = vmatmul.mubr.f32.gmra.mrb[10].mxu0 %v6495_v56 }
 0x2af   : > { %3991 = vmatprep.mubr.f32.mxu1 %v6494_v50  ;;  %4168 = vmatprep.mubr.f32.mxu0 %v6496_v60 }
 0x2b2   : > { %3992 = vmatmul.mubr.f32.gmra.mrb[10].mxu1 %v6495_v56  ;;  %4169 = vmatmul.mubr.f32.gmra.mrb[12].mxu0 %v6497_v63 }
 0x2b3   : > { %3994 = vmatprep.mubr.f32.mxu1 %v6496_v60  ;;  %4171 = vmatprep.mubr.f32.mxu0 %v6498_v14 }
 0x2b6   : > { %3995 = vmatmul.mubr.f32.gmra.mrb[12].mxu1 %v6497_v63  ;;  %4172 = vmatmul.mubr.f32.gmra.mrb[14].mxu0 %v6499_v13 }
 0x2b7   : > { %3997 = vmatprep.mubr.f32.mxu1 %v6498_v14  ;;  %4174 = vmatprep.mubr.f32.mxu0 %v6500_v17 }
 0x2ba   : > { %3998 = vmatmul.mubr.f32.gmra.mrb[14].mxu1 %v6499_v13  ;;  %4175 = vmatmul.mubr.f32.gmra.mrb[16].mxu0 %v6501_v36 }
 0x2bb   : > { %4000 = vmatprep.mubr.f32.mxu1 %v6500_v17  ;;  %4177 = vmatprep.mubr.f32.mxu0 %v6502_v16 }
 0x2be   : > { %4001 = vmatmul.mubr.f32.gmra.mrb[16].mxu1 %v6501_v36  ;;  %4178 = vmatmul.mubr.f32.gmra.mrb[18].mxu0 %v6503_v21 }
 0x2bf   : > { %4003 = vmatprep.mubr.f32.mxu1 %v6502_v16  ;;  %4180 = vmatprep.mubr.f32.mxu0 %v5878_v7 }
 0x2c2   : > { %4004 = vmatmul.mubr.f32.gmra.mrb[18].mxu1 %v6503_v21  ;;  %4181 = vmatmul.mubr.f32.gmra.mrb[20].mxu0 %v5898_v6 }
 0x2c3   : > { %4006 = vmatprep.mubr.f32.mxu1 %v5878_v7  ;;  %4183 = vmatprep.mubr.f32.mxu0 %v5965_v48 }
 0x2c6   : > { %4007 = vmatmul.mubr.f32.gmra.mrb[20].mxu1 %v5898_v6  ;;  %4184 = vmatmul.mubr.f32.gmra.mrb[22].mxu0 %v5980_v54 }
 0x2c7   : > { %4009 = vmatprep.mubr.f32.mxu1 %v5965_v48  ;;  %4186 = vmatprep.mubr.f32.mxu0 %v6023_v61 }
 0x2ca   : > { %4010 = vmatmul.mubr.f32.gmra.mrb[22].mxu1 %v5980_v54  ;;  %4187 = vmatmul.mubr.f32.gmra.mrb[24].mxu0 %v6033_v55 }
 0x2cb   : > { %4012 = vmatprep.mubr.f32.mxu1 %v6023_v61  ;;  %4189 = vmatprep.mubr.f32.mxu0 %v6071_v52 }
 0x2ce   : > { %4013 = vmatmul.mubr.f32.gmra.mrb[24].mxu1 %v6033_v55  ;;  %4190 = vmatmul.mubr.f32.gmra.mrb[26].mxu0 %v6079_v31 }
 0x2cf   : > { %4015 = vmatprep.mubr.f32.mxu1 %v6071_v52  ;;  %4192 = vmatprep.mubr.f32.mxu0 %v6111_v28 }
 0x2d2   : > { %4016 = vmatmul.mubr.f32.gmra.mrb[26].mxu1 %v6079_v31  ;;  %4193 = vmatmul.mubr.f32.gmra.mrb[28].mxu0 %v6125_v19 }
 0x2d3   : > { %4018 = vmatprep.mubr.f32.mxu1 %v6111_v28  ;;  %4195 = vmatprep.mubr.f32.mxu0 %v6148_v53 }
 0x2d6   : > { %4019 = vmatmul.mubr.f32.gmra.mrb[28].mxu1 %v6125_v19  ;;  %4196 = vmatmul.mubr.f32.gmra.mrb[30].mxu0 %v6150_v33 }
 0x2d7   : > { %4021 = vmatprep.mubr.f32.mxu1 %v6148_v53  ;;  %4208 = vmatprep.mubr.f32.mxu0 %v4875_v25  ;;  %v6508_v25 = vld [vmem:[#allocation7_spill] sm:$0xff] }
 0x2da   : > { %4022 = vmatmul.mubr.f32.gmra.mrb[30].mxu1 %v6150_v33  ;;  %4209 = vmatmul.mubr.f32.vlgmr.msra.gmra.mrb[0].mxu0 %v4891_v46  ;;  %v6509_v46 = vld [vmem:[#allocation8_spill] sm:$0xff] }
 0x2db   : > { %4034 = vmatprep.mubr.f32.mxu1 %v6504_v32  ;;  %4211 = vmatprep.mubr.f32.mxu0 %v4970_v18  ;;  %v6510_v18 = vld [vmem:[#allocation9_spill] sm:$0xff] }
 0x2de   : > { %4035 = vmatmul.mubr.f32.vlgmr.msra.gmra.mrb[0].mxu1 %v6505_v15  ;;  %4212 = vmatmul.mubr.f32.gmra.mrb[2].mxu0 %v4986_v3  ;;  %v6511_v3 = vld [vmem:[#allocation10_spill] sm:$0xff] }
 0x2df   : > { %4037 = vmatprep.mubr.f32.mxu1 %v6506_v39  ;;  %4214 = vmatprep.mubr.f32.mxu0 %v5065_v23  ;;  %v6512_v23 = vld [vmem:[#allocation11_spill] sm:$0xff] }
 0x2e2   : > { %4038 = vmatmul.mubr.f32.gmra.mrb[2].mxu1 %v6507_v35  ;;  %4215 = vmatmul.mubr.f32.gmra.mrb[4].mxu0 %v5081_v4  ;;  %v6513_v4 = vld [vmem:[#allocation12_spill] sm:$0xff] }
 0x2e3   : > { %4040 = vmatprep.mubr.f32.mxu1 %v6508_v25  ;;  %4217 = vmatprep.mubr.f32.mxu0 %v5160_v58  ;;  %v6514_v58 = vld [vmem:[#allocation14_spill] sm:$0xff] }
 0x2e6   : > { %4041 = vmatmul.mubr.f32.gmra.mrb[4].mxu1 %v6509_v46  ;;  %4218 = vmatmul.mubr.f32.gmra.mrb[6].mxu0 %v5176_v24  ;;  %v6515_v24 = vld [vmem:[#allocation16_spill] sm:$0xff] }
 0x2e7   : > { %4043 = vmatprep.mubr.f32.mxu1 %v6510_v18  ;;  %4220 = vmatprep.mubr.f32.mxu0 %v5255_v41  ;;  %v6516_v41 = vld [vmem:[#allocation18_spill] sm:$0xff] }
 0x2ea   : > { %4044 = vmatmul.mubr.f32.gmra.mrb[6].mxu1 %v6511_v3  ;;  %4221 = vmatmul.mubr.f32.gmra.mrb[8].mxu0 %v5271_v1  ;;  %v6517_v1 = vld [vmem:[#allocation20_spill] sm:$0xff] }
 0x2eb   : > { %4046 = vmatprep.mubr.f32.mxu1 %v6512_v23  ;;  %4223 = vmatprep.mubr.f32.mxu0 %v6494_v50 }
 0x2ee   : > { %4047 = vmatmul.mubr.f32.gmra.mrb[8].mxu1 %v6513_v4  ;;  %4224 = vmatmul.mubr.f32.gmra.mrb[10].mxu0 %v6495_v56 }
 0x2ef   : > { %4049 = vmatprep.mubr.f32.mxu1 %v6514_v58  ;;  %4226 = vmatprep.mubr.f32.mxu0 %v6496_v60 }
 0x2f2   : > { %4050 = vmatmul.mubr.f32.gmra.mrb[10].mxu1 %v6515_v24  ;;  %4227 = vmatmul.mubr.f32.gmra.mrb[12].mxu0 %v6497_v63 }
 0x2f3   : > { %4052 = vmatprep.mubr.f32.mxu1 %v6516_v41  ;;  %4229 = vmatprep.mubr.f32.mxu0 %v6498_v14 }
 0x2f6   : > { %4053 = vmatmul.mubr.f32.gmra.mrb[12].mxu1 %v6517_v1  ;;  %4230 = vmatmul.mubr.f32.gmra.mrb[14].mxu0 %v6499_v13 }
 0x2f7   : > { %4055 = vmatprep.mubr.f32.mxu1 %v6518_v40  ;;  %4232 = vmatprep.mubr.f32.mxu0 %v6500_v17 }
 0x2fa   : > { %4056 = vmatmul.mubr.f32.gmra.mrb[14].mxu1 %v6519_v34  ;;  %4233 = vmatmul.mubr.f32.gmra.mrb[16].mxu0 %v6501_v36 }
 0x2fb   : > { %4058 = vmatprep.mubr.f32.mxu1 %v6520_v30  ;;  %4235 = vmatprep.mubr.f32.mxu0 %v6502_v16 }
 0x2fe   : > { %4059 = vmatmul.mubr.f32.gmra.mrb[16].mxu1 %v6521_v9  ;;  %4236 = vmatmul.mubr.f32.gmra.mrb[18].mxu0 %v6503_v21 }
 0x2ff   : > { %4061 = vmatprep.mubr.f32.mxu1 %v6522_v8  ;;  %4238 = vmatprep.mubr.f32.mxu0 %v5878_v7 }
 0x302   : > { %4062 = vmatmul.mubr.f32.gmra.mrb[18].mxu1 %v5783_v45  ;;  %4239 = vmatmul.mubr.f32.gmra.mrb[20].mxu0 %v5898_v6  ;;  %v6524_v45 = vld [vmem:[#allocation33_spill] sm:$0xff]  ;;  %v6303_v6 = vld [vmem:[%s6412_s2] ss:$0 sm:$0xff] }
 0x303   : > { %4064 = vmatprep.mubr.f32.mxu1 %v5883_v37  ;;  %4241 = vmatprep.mubr.f32.mxu0 %v5965_v48 }
 0x306   : > { %4065 = vmatmul.mubr.f32.gmra.mrb[20].mxu1 %v6523_v62  ;;  %4242 = vmatmul.mubr.f32.gmra.mrb[22].mxu0 %v5980_v54 }
 0x307   : > { %4067 = vmatprep.mubr.f32.mxu1 %v5970_v11  ;;  %4244 = vmatprep.mubr.f32.mxu0 %v6023_v61 }
 0x30a   : > { %4068 = vmatmul.mubr.f32.gmra.mrb[22].mxu1 %v5987_v27  ;;  %4245 = vmatmul.mubr.f32.gmra.mrb[24].mxu0 %v6033_v55 }
 0x30b   : > { %4070 = vmatprep.mubr.f32.mxu1 %v6028_v42  ;;  %4247 = vmatprep.mubr.f32.mxu0 %v6071_v52 }
 0x30e   : > { %4071 = vmatmul.mubr.f32.gmra.mrb[24].mxu1 %v6040_v20  ;;  %4248 = vmatmul.mubr.f32.gmra.mrb[26].mxu0 %v6079_v31 }
 0x30f   : > { %4073 = vmatprep.mubr.f32.mxu1 %v6074_v2  ;;  %4250 = vmatprep.mubr.f32.mxu0 %v6111_v28 }
 0x312   : > { %4074 = vmatmul.mubr.f32.gmra.mrb[26].mxu1 %v6524_v45  ;;  %4251 = vmatmul.mubr.f32.gmra.mrb[28].mxu0 %v6125_v19 }
 0x313   : > { %4076 = vmatprep.mubr.f32.mxu1 %v6114_v0  ;;  %4253 = vmatprep.mubr.f32.mxu0 %v6148_v53 }
 0x316   : > { %4077 = vmatmul.mubr.f32.gmra.mrb[28].mxu1 %v6132_v12  ;;  %4254 = vmatmul.mubr.f32.gmra.mrb[30].mxu0 %v6150_v33 }
 0x317   : > { %4079 = vmatprep.mubr.f32.mxu1 %v6153_v57 }
 0x31a   : > { %4080 = vmatmul.mubr.f32.gmra.mrb[30].mxu1 %v6156_v10 }
 0x3ad   : > { %v4210_v7 = vpop.f32.mrb[0].mxu0 }
 0x3ae   : > { %v3365_v37 = vpop.f32.mrb[1].mxu0 }
 0x3b1   : > { %v4036_v48 = vpop.f32.mrb[0].mxu1  ;;  %v4213_v11 = vpop.f32.mrb[2].mxu0 }
 0x3b2   : > { %v4304_v54 = vadd.f32 %v4036_v48, %v6303_v6  ;;  %v2474_v27 = vpop.f32.mrb[1].mxu1  ;;  %v3377_v61 = vpop.f32.mrb[3].mxu0 }
 0x3b3   : > { %v4306_v42 = vadd.f32 %v6303_v6, %v2474_v27 }
 0x3b4   : > { %v4305_v55 = vadd.f32 %v4304_v54, %v4210_v7 }
 0x3b5   : > { %v4307_v20 = vadd.f32 %v4306_v42, %v3365_v37  ;;  %v4039_v52 = vpop.f32.mrb[2].mxu1  ;;  %v4216_v2 = vpop.f32.mrb[4].mxu0 }
 0x3b6   : > { %v3556_v31 = vmax.f32 %v4305_v55, 0.0  ;;  %v4308_v28 = vadd.f32 %v4039_v52, %v6303_v6  ;;  %v2488_v0 = vpop.f32.mrb[3].mxu1  ;;  %v3389_v19 = vpop.f32.mrb[5].mxu0 }
 0x3b7   : > { %v3555_v12 = vmax.f32 %v4307_v20, 0.0  ;;  %v4310_v43 = vadd.f32 %v6303_v6, %v2488_v0 }
 0x3b8   : > { %3588 = vst.msk [vmem:[%s6311_s23 + $0x8] sm:$0xff] %vm371_vm4, %v3556_v31  ;;  %v4309_v51 = vadd.f32 %v4308_v28, %v4213_v11 }
 0x3b9   : > { %3587 = vst.msk [vmem:[%s6311_s23] sm:$0xff] %vm371_vm4, %v3555_v12  ;;  %v4311_v59 = vadd.f32 %v4310_v43, %v3377_v61  ;;  %v4042_v49 = vpop.f32.mrb[4].mxu1  ;;  %v4219_v44 = vpop.f32.mrb[6].mxu0 }
 0x3ba   : > { %v3558_v53 = vmax.f32 %v4309_v51, 0.0  ;;  %v4312_v33 = vadd.f32 %v4042_v49, %v6303_v6  ;;  %v2502_v57 = vpop.f32.mrb[5].mxu1  ;;  %v3401_v10 = vpop.f32.mrb[7].mxu0 }
 0x3bb   : > { %v3557_v47 = vmax.f32 %v4311_v59, 0.0  ;;  %v4314_v26 = vadd.f32 %v6303_v6, %v2502_v57 }
 0x3bc   : > { %3590 = vst.msk [vmem:[%s6311_s23 + $0x18] sm:$0xff] %vm371_vm4, %v3558_v53  ;;  %v4313_v5 = vadd.f32 %v4312_v33, %v4216_v2 }
 0x3bd   : > { %3589 = vst.msk [vmem:[%s6311_s23 + $0x10] sm:$0xff] %vm371_vm4, %v3557_v47  ;;  %v4315_v38 = vadd.f32 %v4314_v26, %v3389_v19  ;;  %v4045_v22 = vpop.f32.mrb[6].mxu1  ;;  %v4222_v29 = vpop.f32.mrb[8].mxu0 }
 0x3be   : > { %v3560_v50 = vmax.f32 %v4313_v5, 0.0  ;;  %v4316_v56 = vadd.f32 %v4045_v22, %v6303_v6  ;;  %v2516_v60 = vpop.f32.mrb[7].mxu1  ;;  %v3413_v63 = vpop.f32.mrb[9].mxu0 }
 0x3bf   : > { %v3559_v14 = vmax.f32 %v4315_v38, 0.0  ;;  %v4318_v13 = vadd.f32 %v6303_v6, %v2516_v60 }
 0x3c0   : > { %3592 = vst.msk [vmem:[%s6311_s23 + $0x28] sm:$0xff] %vm371_vm4, %v3560_v50  ;;  %v4317_v17 = vadd.f32 %v4316_v56, %v4219_v44 }
 0x3c1   : > { %3591 = vst.msk [vmem:[%s6311_s23 + $0x20] sm:$0xff] %vm371_vm4, %v3559_v14  ;;  %v4319_v36 = vadd.f32 %v4318_v13, %v3401_v10  ;;  %v4048_v16 = vpop.f32.mrb[8].mxu1  ;;  %v4225_v21 = vpop.f32.mrb[10].mxu0 }
 0x3c2   : > { %v3562_v32 = vmax.f32 %v4317_v17, 0.0  ;;  %v4320_v15 = vadd.f32 %v4048_v16, %v6303_v6  ;;  %v2530_v39 = vpop.f32.mrb[9].mxu1  ;;  %v3425_v35 = vpop.f32.mrb[11].mxu0 }
 0x3c3   : > { %v3561_v25 = vmax.f32 %v4319_v36, 0.0  ;;  %v4322_v46 = vadd.f32 %v6303_v6, %v2530_v39 }
 0x3c4   : > { %3594 = vst.msk [vmem:[%s6311_s23 + $0x38] sm:$0xff] %vm371_vm4, %v3562_v32  ;;  %v4321_v18 = vadd.f32 %v4320_v15, %v4222_v29 }
 0x3c5   : > { %3593 = vst.msk [vmem:[%s6311_s23 + $0x30] sm:$0xff] %vm371_vm4, %v3561_v25  ;;  %v4323_v3 = vadd.f32 %v4322_v46, %v3413_v63  ;;  %v4051_v23 = vpop.f32.mrb[10].mxu1  ;;  %v4228_v4 = vpop.f32.mrb[12].mxu0 }
 0x3c6   : > { %v3564_v58 = vmax.f32 %v4321_v18, 0.0  ;;  %v4324_v24 = vadd.f32 %v4051_v23, %v6303_v6  ;;  %v2544_v41 = vpop.f32.mrb[11].mxu1  ;;  %v3437_v1 = vpop.f32.mrb[13].mxu0 }
 0x3c7   : > { %v3563_v40 = vmax.f32 %v4323_v3, 0.0  ;;  %v4326_v34 = vadd.f32 %v6303_v6, %v2544_v41 }
 0x3c8   : > { %3596 = vst.msk [vmem:[%s6311_s23 + $0x48] sm:$0xff] %vm371_vm4, %v3564_v58  ;;  %v4325_v30 = vadd.f32 %v4324_v24, %v4225_v21 }
 0x3c9   : > { %3595 = vst.msk [vmem:[%s6311_s23 + $0x40] sm:$0xff] %vm371_vm4, %v3563_v40  ;;  %v4327_v9 = vadd.f32 %v4326_v34, %v3425_v35  ;;  %v4054_v8 = vpop.f32.mrb[12].mxu1  ;;  %v4231_v62 = vpop.f32.mrb[14].mxu0 }
 0x3ca   : > { %v3566_v45 = vmax.f32 %v4325_v30, 0.0  ;;  %v4328_v7 = vadd.f32 %v4054_v8, %v6303_v6  ;;  %v2558_v37 = vpop.f32.mrb[13].mxu1  ;;  %v3449_v48 = vpop.f32.mrb[15].mxu0 }
 0x3cb   : > { %v3565_v11 = vmax.f32 %v4327_v9, 0.0  ;;  %v4330_v54 = vadd.f32 %v6303_v6, %v2558_v37 }
 0x3cc   : > { %3598 = vst.msk [vmem:[%s6311_s23 + $0x58] sm:$0xff] %vm371_vm4, %v3566_v45  ;;  %v4329_v27 = vadd.f32 %v4328_v7, %v4228_v4 }
 0x3cd   : > { %3597 = vst.msk [vmem:[%s6311_s23 + $0x50] sm:$0xff] %vm371_vm4, %v3565_v11  ;;  %v4331_v61 = vadd.f32 %v4330_v54, %v3437_v1  ;;  %v4057_v42 = vpop.f32.mrb[14].mxu1  ;;  %v4234_v55 = vpop.f32.mrb[16].mxu0 }
 0x3ce   : > { %v3568_v20 = vmax.f32 %v4329_v27, 0.0  ;;  %v4332_v52 = vadd.f32 %v4057_v42, %v6303_v6  ;;  %v2572_v2 = vpop.f32.mrb[15].mxu1  ;;  %v3461_v31 = vpop.f32.mrb[17].mxu0 }
 0x3cf   : > { %v3567_v28 = vmax.f32 %v4331_v61, 0.0  ;;  %v4334_v0 = vadd.f32 %v6303_v6, %v2572_v2 }
 0x3d0   : > { %3600 = vst.msk [vmem:[%s6311_s23 + $0x68] sm:$0xff] %vm371_vm4, %v3568_v20  ;;  %v4333_v19 = vadd.f32 %v4332_v52, %v4231_v62 }
 0x3d1   : > { %3599 = vst.msk [vmem:[%s6311_s23 + $0x60] sm:$0xff] %vm371_vm4, %v3567_v28  ;;  %v4335_v12 = vadd.f32 %v4334_v0, %v3449_v48  ;;  %v4060_v43 = vpop.f32.mrb[16].mxu1  ;;  %v4237_v51 = vpop.f32.mrb[18].mxu0 }
 0x3d2   : > { %v3570_v59 = vmax.f32 %v4333_v19, 0.0  ;;  %v4336_v49 = vadd.f32 %v4060_v43, %v6303_v6  ;;  %v2586_v44 = vpop.f32.mrb[17].mxu1  ;;  %v3473_v53 = vpop.f32.mrb[19].mxu0 }
 0x3d3   : > { %v3569_v33 = vmax.f32 %v4335_v12, 0.0  ;;  %v4338_v57 = vadd.f32 %v6303_v6, %v2586_v44 }
 0x3d4   : > { %3602 = vst.msk [vmem:[%s6311_s23 + $0x78] sm:$0xff] %vm371_vm4, %v3570_v59  ;;  %v4337_v10 = vadd.f32 %v4336_v49, %v4234_v55 }
 0x3d5   : > { %3601 = vst.msk [vmem:[%s6311_s23 + $0x70] sm:$0xff] %vm371_vm4, %v3569_v33  ;;  %v4339_v47 = vadd.f32 %v4338_v57, %v3461_v31  ;;  %v4063_v26 = vpop.f32.mrb[18].mxu1  ;;  %v4240_v5 = vpop.f32.mrb[20].mxu0 }
 0x3d6   : > { %v3572_v38 = vmax.f32 %v4337_v10, 0.0  ;;  %v4340_v22 = vadd.f32 %v4063_v26, %v6303_v6  ;;  %v2600_v29 = vpop.f32.mrb[19].mxu1  ;;  %v3485_v50 = vpop.f32.mrb[21].mxu0 }
 0x3d7   : > { %v3571_v56 = vmax.f32 %v4339_v47, 0.0  ;;  %v4342_v60 = vadd.f32 %v6303_v6, %v2600_v29 }
 0x3d8   : > { %3604 = vst.msk [vmem:[%s6311_s23 + $0x88] sm:$0xff] %vm371_vm4, %v3572_v38  ;;  %v4341_v63 = vadd.f32 %v4340_v22, %v4237_v51 }
 0x3d9   : > { %3603 = vst.msk [vmem:[%s6311_s23 + $0x80] sm:$0xff] %vm371_vm4, %v3571_v56  ;;  %v4343_v14 = vadd.f32 %v4342_v60, %v3473_v53  ;;  %v4066_v13 = vpop.f32.mrb[20].mxu1  ;;  %v4243_v17 = vpop.f32.mrb[22].mxu0 }
 0x3da   : > { %v3574_v36 = vmax.f32 %v4341_v63, 0.0  ;;  %v4344_v16 = vadd.f32 %v4066_v13, %v6303_v6  ;;  %v2614_v21 = vpop.f32.mrb[21].mxu1  ;;  %v3497_v32 = vpop.f32.mrb[23].mxu0 }
 0x3db   : > { %v3573_v15 = vmax.f32 %v4343_v14, 0.0  ;;  %v4346_v39 = vadd.f32 %v6303_v6, %v2614_v21 }
 0x3dc   : > { %3606 = vst.msk [vmem:[%s6311_s23 + $0x98] sm:$0xff] %vm371_vm4, %v3574_v36  ;;  %v4345_v35 = vadd.f32 %v4344_v16, %v4240_v5 }
 0x3dd   : > { %3605 = vst.msk [vmem:[%s6311_s23 + $0x90] sm:$0xff] %vm371_vm4, %v3573_v15  ;;  %v4347_v25 = vadd.f32 %v4346_v39, %v3485_v50  ;;  %v4069_v46 = vpop.f32.mrb[22].mxu1  ;;  %v4246_v18 = vpop.f32.mrb[24].mxu0 }
 0x3de   : > { %v3576_v3 = vmax.f32 %v4345_v35, 0.0  ;;  %v4348_v23 = vadd.f32 %v4069_v46, %v6303_v6  ;;  %v2628_v4 = vpop.f32.mrb[23].mxu1  ;;  %v3509_v58 = vpop.f32.mrb[25].mxu0 }
 0x3df   : > { %v3575_v24 = vmax.f32 %v4347_v25, 0.0  ;;  %v4350_v41 = vadd.f32 %v6303_v6, %v2628_v4 }
 0x3e0   : > { %3608 = vst.msk [vmem:[%s6311_s23 + $0xa8] sm:$0xff] %vm371_vm4, %v3576_v3  ;;  %v4349_v1 = vadd.f32 %v4348_v23, %v4243_v17 }
 0x3e1   : > { %3607 = vst.msk [vmem:[%s6311_s23 + $0xa0] sm:$0xff] %vm371_vm4, %v3575_v24  ;;  %v4351_v40 = vadd.f32 %v4350_v41, %v3497_v32  ;;  %v4072_v34 = vpop.f32.mrb[24].mxu1  ;;  %v4249_v30 = vpop.f32.mrb[26].mxu0 }
 0x3e2   : > { %v3578_v9 = vmax.f32 %v4349_v1, 0.0  ;;  %v4352_v8 = vadd.f32 %v4072_v34, %v6303_v6  ;;  %v2642_v62 = vpop.f32.mrb[25].mxu1  ;;  %v3521_v45 = vpop.f32.mrb[27].mxu0 }
 0x3e3   : > { %v3577_v7 = vmax.f32 %v4351_v40, 0.0  ;;  %v4354_v37 = vadd.f32 %v6303_v6, %v2642_v62 }
 0x3e4   : > { %3610 = vst.msk [vmem:[%s6311_s23 + $0xb8] sm:$0xff] %vm371_vm4, %v3578_v9  ;;  %v4353_v48 = vadd.f32 %v4352_v8, %v4246_v18 }
 0x3e5   : > { %3609 = vst.msk [vmem:[%s6311_s23 + $0xb0] sm:$0xff] %vm371_vm4, %v3577_v7  ;;  %v4355_v11 = vadd.f32 %v4354_v37, %v3509_v58  ;;  %v4075_v54 = vpop.f32.mrb[26].mxu1  ;;  %v4252_v27 = vpop.f32.mrb[28].mxu0 }
 0x3e6   : > { %v3580_v61 = vmax.f32 %v4353_v48, 0.0  ;;  %v4356_v42 = vadd.f32 %v4075_v54, %v6303_v6  ;;  %v2656_v55 = vpop.f32.mrb[27].mxu1  ;;  %v3533_v20 = vpop.f32.mrb[29].mxu0 }
 0x3e7   : > { %v3579_v52 = vmax.f32 %v4355_v11, 0.0  ;;  %v4358_v2 = vadd.f32 %v6303_v6, %v2656_v55 }
 0x3e8   : > { %3612 = vst.msk [vmem:[%s6311_s23 + $0xc8] sm:$0xff] %vm371_vm4, %v3580_v61  ;;  %v4357_v31 = vadd.f32 %v4356_v42, %v4249_v30 }
 0x3e9   : > { %3611 = vst.msk [vmem:[%s6311_s23 + $0xc0] sm:$0xff] %vm371_vm4, %v3579_v52  ;;  %v4359_v28 = vadd.f32 %v4358_v2, %v3521_v45  ;;  %v4078_v0 = vpop.f32.mrb[28].mxu1  ;;  %v4255_v19 = vpop.f32.mrb[30].mxu0 }
 0x3ea   : > { %v3582_v12 = vmax.f32 %v4357_v31, 0.0  ;;  %v4360_v43 = vadd.f32 %v4078_v0, %v6303_v6  ;;  %v2670_v51 = vpop.f32.mrb[29].mxu1  ;;  %v3545_v59 = vpop.f32.mrb[31].mxu0 }
 0x3eb   : > { %v3581_v49 = vmax.f32 %v4359_v28, 0.0  ;;  %v4362_v44 = vadd.f32 %v6303_v6, %v2670_v51 }
 0x3ec   : > { %3614 = vst.msk [vmem:[%s6311_s23 + $0xd8] sm:$0xff] %vm371_vm4, %v3582_v12  ;;  %v4361_v53 = vadd.f32 %v4360_v43, %v4252_v27 }
 0x3ed   : > { %3613 = vst.msk [vmem:[%s6311_s23 + $0xd0] sm:$0xff] %vm371_vm4, %v3581_v49  ;;  %v4363_v33 = vadd.f32 %v4362_v44, %v3533_v20  ;;  %v4081_v57 = vpop.f32.mrb[30].mxu1 }
 0x3ee   : > { %v3584_v10 = vmax.f32 %v4361_v53, 0.0  ;;  %v4364_v47 = vadd.f32 %v4081_v57, %v6303_v6  ;;  %v2684_v26 = vpop.f32.mrb[31].mxu1 }
 0x3ef   : > { %v3583_v5 = vmax.f32 %v4363_v33, 0.0  ;;  %v4366_v38 = vadd.f32 %v6303_v6, %v2684_v26 }
 0x3f0   : > { %3616 = vst.msk [vmem:[%s6311_s23 + $0xe8] sm:$0xff] %vm371_vm4, %v3584_v10  ;;  %v4365_v22 = vadd.f32 %v4364_v47, %v4255_v19 }
 0x3f1   : > { %3615 = vst.msk [vmem:[%s6311_s23 + $0xe0] sm:$0xff] %vm371_vm4, %v3583_v5  ;;  %v4367_v29 = vadd.f32 %v4366_v38, %v3545_v59 }
 0x3f2   : > { %v3586_v50 = vmax.f32 %v4365_v22, 0.0 }
 0x3f3   : > { %v3585_v56 = vmax.f32 %v4367_v29, 0.0 }
 0x3f4   : > { %3618 = vst.msk [vmem:[%s6311_s23 + $0xf8] sm:$0xff] %vm371_vm4, %v3586_v50 }
 0x3f5   : > { %3617 = vst.msk [vmem:[%s6311_s23 + $0xf0] sm:$0xff] %vm371_vm4, %v3585_v56 }
 0x3f6 PF: > { %s13_s12 = sadd.s32 1, %s4523_s12  }
 0x3f7   : > { %p10_p4 = scmp.ge.s32.totalorder %s13_s12, 4  }
 0x3f9   :  { %12 = sbr.rel (!%p10_p4) target bundleno = 1 (0x1), region = 62 }

// kernel: h_analysis_transform_forward.4
= control target key start
LH: loop header
LB: loop body
LE: loop exit
PB: predicated region body
PF: predicated region fallthrough
CT: control target
= control target key end

     0   :  { %s2954_s12 = smov 0   ;;  %s4800_s0 = inlined_call_operand.vmem [shape: f32[2,40,10,8], index: 0, kind: input, shape index: {}]   ;;  %s4801_s1 = inlined_call_operand.vmem [shape: f32[200,8], index: 1, kind: input, shape index: {}]   ;;  %s4802_s2 = inlined_call_operand.vmem [shape: f32[1,8], index: 2, kind: input, shape index: {}]   ;;  %s4803_s3 = inlined_call_operand.vmem [shape: f32[2,64,8], index: 3, kind: output, shape index: {}]  }
   0x1 LB: > { %s2569_s13 = sadd.s32 4294967295, %s2915_s12   ;;  %p2573_p0 = scmp.ge.s32.totalorder %s2915_s12, 1  ;;  %s2915_s12 = sphi %s2954_s12, %s13_s12  }
   0x2   : > { %p137_p1 = scmp.lt.s32.totalorder %s2915_s12, 3 }
   0x4   : > { %p138_p2 = pnand %p2573_p0, %p137_p1 }
   0x6   : > { %141 = sbr.rel (%p138_p2) target bundleno = 817 (0x331), region = 32 }
   0xd   : > { %p161_p3 = scmp.lt.s32.totalorder %s2569_s13, 1  ;;  %v1279_v0 = vld [vmem:[%s4801_s1] sm:$0xff]  ;;  %v1280_v1 = vld [vmem:[%s4801_s1 + $0x8] sm:$0xff]  ;;  %v4806_v3 = vmov 0.0|0.0   ;;  %v1281_v5 = vld [vmem:[%s4801_s1 + $0x10] sm:$0xff]  ;;  %vm253_vm0 = vcmask 1046528  }
   0xe   : > { %v1336_v2 = vand.u32 4294901760, %v1279_v0  ;;  %2689 = vmatprep.subr.bf16.mxu0 %v4806_v3  ;;  %v1339_v4 = vand.u32 4294901760, %v1280_v1  ;;  %2581 = vmatprep.subr.bf16.mxu1 %v4806_v3  ;;  %v1282_v6 = vld [vmem:[%s4801_s1 + $0x18] sm:$0xff]  ;;  %v1342_v7 = vand.u32 4294901760, %v1281_v5  ;;  %vm267_vm1 = vcmask 1045504   ;;  %s2918_s26 = smov 48  }
   0xf   : > { %s5022_s13 = smov (!%p161_p3, %s2569_s13), 1  ;;  %v1345_v9 = vand.u32 4294901760, %v1282_v6  ;;  %s2919_s27 = smov 8   ;;  %v1283_v52 = vld [vmem:[%s4801_s1 + $0x20] sm:$0xff]  ;;  %v1284_v53 = vld [vmem:[%s4801_s1 + $0x28] sm:$0xff]  ;;  %v1285_v57 = vld [vmem:[%s4801_s1 + $0x30] sm:$0xff] }
  0x10   : > { %s2877_s22 = smul.u32 640, %s5022_s13  ;;  %v2979_v8 = vpack.c.bf16 %v1339_v4, %v1336_v2  ;;  %v2981_v10 = vsub.f32 %v1279_v0, %v1336_v2  ;;  %v2983_v11 = vsub.f32 %v1280_v1, %v1339_v4  ;;  %v3007_v22 = vsub.f32 %v1281_v5, %v1342_v7  ;;  %s2920_s28 = smov 40   ;;  %v1286_v60 = vld [vmem:[%s4801_s1 + $0x38] sm:$0xff]  ;;  %v1287_v61 = vld [vmem:[%s4801_s1 + $0x40] sm:$0xff]  ;;  %v1288_v63 = vld [vmem:[%s4801_s1 + $0x48] sm:$0xff] }
  0x11   : > { %v2992_v12 = vpack.c.bf16 %v1345_v9, %v1342_v7  ;;  %v3009_v23 = vsub.f32 %v1282_v6, %v1345_v9  ;;  %s2921_s29 = smov 24   ;;  %s2922_s30 = smov 32   ;;  %v1348_v56 = vand.u32 4294901760, %v1283_v52  ;;  %v1351_v58 = vand.u32 4294901760, %v1284_v53 }
  0x12   : > { %4874 = vst [vmem:[#allocation3_spill] sm:$0xff] %v2979_v8  ;;  %s2988_s25 = scalar_lea.vmem %s4800_s0, %s2877_s22  ;;  %2691 = vmatpush1.bf16.msra.mxu0 %v2979_v8  ;;  %2583 = vmatpush1.bf16.msra.mxu1 %v2979_v8  ;;  %s2923_s4 = smov 16   ;;  %v1354_v6 = vand.u32 4294901760, %v1285_v57  ;;  %v1357_v9 = vand.u32 4294901760, %v1286_v60  ;;  %vm334_vm2 = vcmask 64512   ;;  %vm336_vm3 = vcmask 130048  }
  0x13   : > { %4875 = vst [vmem:[#allocation4_spill] sm:$0xff] %v2992_v12  ;;  %v229_v13 = vld [vmem:[%s2988_s25 + $0x1e0] sm:$0xff]  ;;  %2692 = vmatprep.subr.bf16.mxu0 %v4806_v3  ;;  %2584 = vmatprep.subr.bf16.mxu1 %v4806_v3  ;;  %v192_v17 = vld [vmem:[%s2988_s25 + $0xa8] sm:$0x3]  ;;  %4876 = vst [vmem:[#allocation5_spill] sm:$0xff] %v3009_v23  ;;  %s2924_s5 = smov 56   ;;  %v3063_v59 = vsub.f32 %v1283_v52, %v1348_v56  ;;  %v3089_v4 = vpack.c.bf16 %v1351_v58, %v1348_v56 }
  0x14   : > { %v191_v14 = vld [vmem:[%s2988_s25 + $0xa0] sm:$0xff]  ;;  %279 = vrot.lane.b32.xlu1 %v229_v13, %s2918_s26  ;;  %v262_v18 = vrot.slane %v192_v17, 1  ;;  %v172_v20 = vld [vmem:[%s2988_s25 + $0x8] sm:$0x3]  ;;  %v3014_v28 = vld [vmem:[%s2988_s25 + $0x150] sm:$0xff]  ;;  %v290_v40 = vrot.slane %v229_v13, 1  ;;  %v3091_v5 = vsub.f32 %v1284_v53, %v1351_v58 }
  0x15   : > { %248 = vrot.lane.b32.xlu0 %v191_v14, %s2919_s27  ;;  %v261_v15 = vrot.slane %v191_v14, 1  ;;  %v211_v16 = vld [vmem:[%s2988_s25 + $0x140] sm:$0xff]  ;;  %v212_v21 = vld [vmem:[%s2988_s25 + $0x148] sm:$0x3]  ;;  %v269_v25 = vrot.slane %v172_v20, 2  ;;  %v255_v27 = vrot.slane %v172_v20, 1 }
  0x16   : > { %v3003_v19 = vld [vmem:[%s2988_s25] sm:$0xff]  ;;  %2694 = vmatpush1.bf16.msra.mxu0 %v2992_v12  ;;  %2586 = vmatpush1.bf16.msra.mxu1 %v2992_v12  ;;  %v214_v30 = vld [vmem:[%s2988_s25 + $0x158] sm:$0x3]  ;;  %v283_v31 = vrot.slane %v211_v16, 1  ;;  %v284_v32 = vrot.slane %v212_v21, 1  ;;  %v365_v35 = vrot.slane %v3014_v28, 1 }
  0x17   : > { %v268_v24 = vrot.slane %v3003_v19, 2  ;;  %v254_v26 = vrot.slane %v3003_v19, 1  ;;  %v263_v29 = vsel %vm253_vm0, %v261_v15, %v262_v18  ;;  %2695 = vmatprep.subr.bf16.mxu0 %v4806_v3  ;;  %2587 = vmatprep.subr.bf16.mxu1 %v4806_v3  ;;  %v366_v36 = vrot.slane %v214_v30, 1  ;;  %v230_v37 = vld [vmem:[%s2988_s25 + $0x1e8] sm:$0x3]  ;;  %v3029_v38 = vld [vmem:[%s2988_s25 + $0x1f0] sm:$0xff] }
  0x18   : > { %264 = vrot.lane.b32.xlu1 %v263_v29, %s2921_s29  ;;  %v232_v39 = vld [vmem:[%s2988_s25 + $0x1f8] sm:$0x3]  ;;  %v291_v41 = vrot.slane %v230_v37, 1  ;;  %v285_v42 = vsel %vm253_vm0, %v283_v31, %v284_v32  ;;  %v373_v44 = vrot.slane %v3029_v38, 1  ;;  %v296_v46 = vrot.slane %v211_v16, 2  ;;  %s2925_s8 = smov 64  }
  0x19   : > { %275 = vrot.lane.b32.xlu0 %v211_v16, %s2920_s28  ;;  %v270_v33 = vsel %vm267_vm1, %v268_v24, %v269_v25  ;;  %v256_v34 = vsel %vm253_vm0, %v254_v26, %v255_v27  ;;  %v3036_v43 = vsel %vm253_vm0, %v365_v35, %v366_v36  ;;  %v374_v45 = vrot.slane %v232_v39, 1  ;;  %4877 = vst [vmem:[#allocation6_spill] sm:$0xff] %v3063_v59  ;;  %s2926_s19 = smov 72   ;;  %v3075_v62 = vld [vmem:[%s2988_s25 + $0x18] sm:$0x3]  ;;  %v3081_v0 = vld [vmem:[%s2988_s25 + $0x10] sm:$0xff] }
  0x1a   : > { %v297_v47 = vrot.slane %v212_v21, 2  ;;  %v292_v48 = vsel %vm253_vm0, %v290_v40, %v291_v41  ;;  %v379_v50 = vrot.slane %v3014_v28, 2  ;;  %v380_v51 = vrot.slane %v214_v30, 2  ;;  %v3084_v1 = vld [vmem:[%s2988_s25 + $0x20] sm:$0xff]  ;;  %v3087_v2 = vld [vmem:[%s2988_s25 + $0x28] sm:$0x3]  ;;  %2697 = vmatpush1.bf16.msra.mxu0 %v3089_v4  ;;  %2589 = vmatpush1.bf16.msra.mxu1 %v3089_v4 }
  0x1b   : > { %v3044_v49 = vsel %vm253_vm0, %v373_v44, %v374_v45  ;;  %4878 = vst [vmem:[#allocation7_spill] sm:$0xff] %v3089_v4  ;;  %4879 = vst [vmem:[#allocation8_spill] sm:$0xff] %v3091_v5  ;;  %v311_v7 = vrot.slane %v3081_v0, 1  ;;  %v1360_v13 = vand.u32 4294901760, %v1287_v61  ;;  %v1289_v14 = vld [vmem:[%s4801_s1 + $0x50] sm:$0xff]  ;;  %v1290_v15 = vld [vmem:[%s4801_s1 + $0x58] sm:$0xff]  ;;  %v3110_v21 = vsub.f32 %v1285_v57, %v1354_v6  ;;  %2698 = vmatprep.subr.bf16.mxu0 %v4806_v3 }
  0x1c   : > { %271 = vrot.lane.b32.xlu1 %v270_v33, %s2922_s30  ;;  %v298_v54 = vsel %vm267_vm1, %v296_v46, %v297_v47  ;;  %v3058_v55 = vsel %vm267_vm1, %v379_v50, %v380_v51  ;;  %v3101_v16 = vld [vmem:[%s2988_s25 + $0xb0] sm:$0xff]  ;;  %v312_v17 = vrot.slane %v3075_v62, 1  ;;  %v394_v18 = vrot.slane %v3084_v1, 1  ;;  %v3106_v20 = vld [vmem:[%s2988_s25 + $0xb8] sm:$0x3]  ;;  %s2927_s7 = smov 80   ;;  %2590 = vmatprep.subr.bf16.mxu1 %v4806_v3 }
  0x1d   : > { %257 = vrot.lane.b32.xlu0 %v256_v34, %s2923_s4  ;;  %4880 = vst [vmem:[#allocation9_spill] sm:$0xff] %v3110_v21  ;;  %v1363_v24 = vand.u32 4294901760, %v1288_v63  ;;  %v3117_v25 = vld [vmem:[%s2988_s25 + $0xc0] sm:$0xff]  ;;  %v395_v26 = vrot.slane %v3087_v2, 1  ;;  %v3120_v27 = vpack.c.bf16 %v1357_v9, %v1354_v6  ;;  %v3122_v29 = vsub.f32 %v1286_v60, %v1357_v9  ;;  %v196_v32 = vld [vmem:[%s2988_s25 + $0xc8] sm:$0x3] }
  0x1e   : > { %v3124_v30 = vsub.f32 %v1287_v61, %v1360_v13  ;;  %v3129_v31 = vld [vmem:[%s4801_s1 + $0x60] sm:$0xff]  ;;  %v1366_v34 = vand.u32 4294901760, %v1289_v14  ;;  %v1369_v35 = vand.u32 4294901760, %v1290_v15  ;;  %v1292_v36 = vld [vmem:[%s4801_s1 + $0x68] sm:$0xff]  ;;  %v3142_v37 = vld [vmem:[%s4801_s1 + $0x70] sm:$0xff]  ;;  %v318_v39 = vrot.slane %v3101_v16, 1 }
  0x1f   : > { %4881 = vst [vmem:[#allocation10_spill] sm:$0xff] %v3120_v27  ;;  %4882 = vst [vmem:[#allocation11_spill] sm:$0xff] %v3122_v29  ;;  %v3134_v33 = vsub.f32 %v1288_v63, %v1363_v24  ;;  %v319_v40 = vrot.slane %v3106_v20, 1  ;;  %v3149_v41 = vld [vmem:[%s4801_s1 + $0x78] sm:$0xff]  ;;  %2700 = vmatpush1.bf16.msra.mxu0 %v3120_v27  ;;  %2592 = vmatpush1.bf16.msra.mxu1 %v3120_v27  ;;  %v1372_v46 = vand.u32 4294901760, %v3129_v31  ;;  %s2928_s20 = smov 88  }
  0x20   : > { %286 = vrot.lane.b32.xlu1 %v285_v42, %s2924_s5  ;;  %4883 = vst [vmem:[#allocation12_spill] sm:$0xff] %v3124_v30  ;;  %v3153_v42 = vpack.c.bf16 %v1363_v24, %v1360_v13  ;;  %v3155_v44 = vsub.f32 %v1289_v14, %v1366_v34  ;;  %v3157_v45 = vsub.f32 %v1290_v15, %v1369_v35  ;;  %v401_v47 = vrot.slane %v3117_v25, 1  ;;  %v1295_v57 = vld [vmem:[%s4801_s1 + $0x80] sm:$0xff]  ;;  %v1296_v58 = vld [vmem:[%s4801_s1 + $0x88] sm:$0xff]  ;;  %v3192_v63 = vld [vmem:[%s4801_s1 + $0x90] sm:$0xff]  ;;  %s2929_s18 = smov 96  }
  0x21   : > { %368 = vrot.lane.b32.xlu0 %v3036_v43, %s2919_s27  ;;  %4884 = vst [vmem:[#allocation13_spill] sm:$0xff] %v3134_v33  ;;  %v1375_v50 = vand.u32 4294901760, %v1292_v36  ;;  %v1378_v51 = vand.u32 4294901760, %v3142_v37  ;;  %v3167_v52 = vsel %vm253_vm0, %v311_v7, %v312_v17  ;;  %v3170_v53 = vsel %vm253_vm0, %v394_v18, %v395_v26  ;;  %2701 = vmatprep.subr.bf16.mxu0 %v4806_v3  ;;  %v3197_v6 = vld [vmem:[%s4801_s1 + $0x98] sm:$0xff]  ;;  %v3211_v15 = vld [vmem:[%s4801_s1 + $0xa0] sm:$0xff]  ;;  %v3216_v17 = vld [vmem:[%s4801_s1 + $0xa8] sm:$0xff] }
  0x22   : > { %4885 = vst [vmem:[#allocation14_spill] sm:$0xff] %v3153_v42  ;;  %4886 = vst [vmem:[#allocation15_spill] sm:$0xff] %v3155_v44  ;;  %2593 = vmatprep.subr.bf16.mxu1 %v4806_v3  ;;  %v1381_v56 = vand.u32 4294901760, %v3149_v41  ;;  %v324_v7 = vrot.slane %v3081_v0, 2  ;;  %v325_v9 = vrot.slane %v3075_v62, 2  ;;  %v3203_v13 = vpack.c.bf16 %v1369_v35, %v1366_v34  ;;  %s2930_s6 = smov 104  }
  0x23   : > { %4887 = vst [vmem:[#allocation16_spill] sm:$0xff] %v3157_v45  ;;  %v3184_v60 = vsub.f32 %v1292_v36, %v1375_v50  ;;  %v3187_v61 = vsub.f32 %v3142_v37, %v1378_v51  ;;  %2703 = vmatpush1.bf16.msra.mxu0 %v3153_v42  ;;  %2595 = vmatpush1.bf16.msra.mxu1 %v3153_v42  ;;  %v407_v18 = vrot.slane %v3084_v1, 2  ;;  %v1384_v20 = vand.u32 4294901760, %v1295_v57  ;;  %s2931_s9 = smov 112   ;;  %s2932_s10 = smov 120   ;;  %v3487_v27 = vld [vmem:[%s2988_s25 + $0x220] sm:$0xff] }
  0x24   : > { %293 = vrot.lane.b32.xlu1 %v292_v48, %s2925_s8  ;;  %v402_v48 = vrot.slane %v196_v32, 1  ;;  %4891 = vst [vmem:[#allocation20_spill] sm:$0xff] %v3203_v13  ;;  %v3206_v14 = vsub.f32 %v3149_v41, %v1381_v56  ;;  %v320_v62 = vsel %vm253_vm0, %v318_v39, %v319_v40  ;;  %v1387_v24 = vand.u32 4294901760, %v1296_v58  ;;  %2704 = vmatprep.subr.bf16.mxu0 %v4806_v3  ;;  %v238_v4 = vld [vmem:[%s2988_s25 + $0x228] sm:$0x3]  ;;  %v3780_v59 = vld [vmem:[%s2988_s25 + $0x240] sm:$0xff] }
  0x25   : > { %376 = vrot.lane.b32.xlu0 %v3044_v49, %s2923_s4  ;;  %4889 = vst [vmem:[#allocation18_spill] sm:$0xff] %v3184_v60  ;;  %4890 = vst [vmem:[#allocation19_spill] sm:$0xff] %v3187_v61  ;;  %2596 = vmatprep.subr.bf16.mxu1 %v4806_v3  ;;  %v1390_v32 = vand.u32 4294901760, %v3192_v63  ;;  %v1393_v34 = vand.u32 4294901760, %v3197_v6  ;;  %v3232_v35 = vsub.f32 %v1295_v57, %v1384_v20  ;;  %v1396_v37 = vand.u32 4294901760, %v3211_v15 }
  0x26   : > { %4892 = vst [vmem:[#allocation21_spill] sm:$0xff] %v3206_v14  ;;  %v3225_v26 = vsel %vm253_vm0, %v401_v47, %v402_v48  ;;  %v3234_v36 = vsub.f32 %v1296_v58, %v1387_v24  ;;  %v1399_v39 = vand.u32 4294901760, %v3216_v17  ;;  %v1301_v47 = vld [vmem:[%s4801_s1 + $0xb0] sm:$0xff]  ;;  %v1302_v48 = vld [vmem:[%s4801_s1 + $0xb8] sm:$0xff]  ;;  %v326_v57 = vsel %vm267_vm1, %v324_v7, %v325_v9  ;;  %v3733_v14 = vld [vmem:[%s2988_s25 + $0x1a0] sm:$0xff] }
  0x27   : > { %4893 = vst [vmem:[#allocation22_spill] sm:$0xff] %v3232_v35  ;;  %2706 = vmatpush1.bf16.msra.mxu0 %v3203_v13  ;;  %2598 = vmatpush1.bf16.msra.mxu1 %v3203_v13  ;;  %v3243_v40 = vsub.f32 %v3192_v63, %v1390_v32  ;;  %v3246_v41 = vsub.f32 %v3197_v6, %v1393_v34  ;;  %v1402_v63 = vand.u32 4294901760, %v1301_v47  ;;  %v1405_v6 = vand.u32 4294901760, %v1302_v48  ;;  %v3736_v61 = vld [vmem:[%s2988_s25 + $0x1a8] sm:$0x3] }
  0x28   : > { %299 = vrot.lane.b32.xlu1 %v298_v54, %s2926_s19  ;;  %v3175_v54 = vsub.f32 %v3129_v31, %v1372_v46  ;;  %v408_v31 = vrot.slane %v3087_v2, 2  ;;  %4894 = vst [vmem:[#allocation23_spill] sm:$0xff] %v3234_v36  ;;  %v3240_v2 = vpack.c.bf16 %v1375_v50, %v1372_v46  ;;  %v3258_v46 = vsub.f32 %v3211_v15, %v1396_v37  ;;  %v3747_v33 = vld [vmem:[%s2988_s25 + $0x68] sm:$0x3] }
  0x29   : > { %382 = vrot.lane.b32.xlu0 %v3058_v55, %s2921_s29  ;;  %4896 = vst [vmem:[#allocation25_spill] sm:$0xff] %v3243_v40  ;;  %4897 = vst [vmem:[#allocation26_spill] sm:$0xff] %v3246_v41  ;;  %v3261_v50 = vsub.f32 %v3216_v17, %v1399_v39  ;;  %2707 = vmatprep.subr.bf16.mxu0 %v4806_v3  ;;  %v3271_v15 = vpack.c.bf16 %v1381_v56, %v1378_v51  ;;  %v216_v17 = vld [vmem:[%s2988_s25 + $0x168] sm:$0x3]  ;;  %vm338_vm4 = vcmask 195584   ;;  %vm340_vm5 = vcmask 261120  }
  0x2a   : > { %4888 = vst [vmem:[#allocation17_spill] sm:$0xff] %v3175_v54  ;;  %4895 = vst [vmem:[#allocation24_spill] sm:$0xff] %v3240_v2  ;;  %v3265_v58 = vsel %vm267_vm1, %v407_v18, %v408_v31  ;;  %2599 = vmatprep.subr.bf16.mxu1 %v4806_v3  ;;  %v3276_v7 = vsub.f32 %v1301_v47, %v1402_v63  ;;  %v3278_v9 = vsub.f32 %v1302_v48, %v1405_v6  ;;  %v4804_v48 = vmov 0.0  }
  0x2b   : > { %4898 = vst [vmem:[#allocation27_spill] sm:$0xff] %v3258_v46  ;;  %4899 = vst [vmem:[#allocation28_spill] sm:$0xff] %v3261_v50  ;;  %2709 = vmatpush1.bf16.msra.mxu0 %v3240_v2  ;;  %2601 = vmatpush1.bf16.msra.mxu1 %v3240_v2  ;;  %v3284_v51 = vpack.c.bf16 %v1387_v24, %v1384_v20  ;;  %v3294_v56 = vpack.c.bf16 %v1393_v34, %v1390_v32  ;;  %v3316_v20 = vld [vmem:[%s2988_s25 + $0x200] sm:$0xff]  ;;  %v234_v24 = vld [vmem:[%s2988_s25 + $0x208] sm:$0x3]  ;;  %vm342_vm6 = vcmask 326656  }
  0x2c   : > { %303 = vrot.lane.b32.xlu1 %v3081_v0, %s2927_s7  ;;  %4900 = vst [vmem:[#allocation29_spill] sm:$0xff] %v3271_v15  ;;  %4901 = vst [vmem:[#allocation30_spill] sm:$0xff] %v3276_v7  ;;  %2710 = vmatprep.subr.bf16.mxu0 %v4806_v3  ;;  %v3307_v18 = vpack.c.bf16 %v1399_v39, %v1396_v37  ;;  %v3321_v31 = vpack.c.bf16 %v1405_v6, %v1402_v63  ;;  %v493_v34 = vrot.slane %v3316_v20, 1  ;;  %v200_v7 = vld [vmem:[%s2988_s25 + $0xe8] sm:$0x3]  ;;  %vm344_vm7 = vcmask 392192  }
  0x2d   : > { %386 = vrot.lane.b32.xlu0 %v3084_v1, %s2922_s30  ;;  %4902 = vst [vmem:[#allocation31_spill] sm:$0xff] %v3278_v9  ;;  %2602 = vmatprep.subr.bf16.mxu1 %v4806_v3  ;;  %4903 = vst [vmem:[#allocation32_spill] sm:$0xff] %v3284_v51  ;;  %v494_v37 = vrot.slane %v234_v24, 1  ;;  %v500_v63 = vrot.slane %v216_v17, 2  ;;  %vm4850_vm8 = vcmask 457728   ;;  %vm348_vm9 = vcmask 523264  }
  0x2e   : > { %4904 = vst [vmem:[#allocation33_spill] sm:$0xff] %v3294_v56  ;;  %4905 = vst [vmem:[#allocation34_spill] sm:$0xff] %v3307_v18  ;;  %vm350_vm10 = vcmask 588800   ;;  %vm4825_vm11 = vcmask 654336   ;;  %vm354_vm12 = vcmask 719872   ;;  %vm356_vm13 = vcmask 785408  }
  0x2f   : > { %2712 = vmatpush1.bf16.msra.mxu0 %v3271_v15  ;;  %2604 = vmatpush1.bf16.msra.mxu1 %v3271_v15  ;;  %4906 = vst [vmem:[#allocation35_spill] sm:$0xff] %v3321_v31  ;;  %v495_v47 = vsel %vm253_vm0, %v493_v34, %v494_v37  ;;  %vm358_vm14 = vcmask 850944   ;;  %vm360_vm15 = vcmask 916480   ;;  %v965_v60 = vrot.slane %v3733_v14, 1 }
  0x30   : > { %307 = vrot.lane.b32.xlu1 %v3101_v16, %s2928_s20  ;;  %2713 = vmatprep.subr.bf16.mxu0 %v4806_v3  ;;  %v966_v54 = vrot.slane %v3736_v61, 1  ;;  %v875_v29 = vrot.slane %v3747_v33, 1 }
  0x31   : > { %390 = vrot.lane.b32.xlu0 %v3117_v25, %s2920_s28  ;;  %2605 = vmatprep.subr.bf16.mxu1 %v4806_v3 }
  0x33   : > { %2715 = vmatpush1.bf16.msra.mxu0 %v3284_v51  ;;  %2607 = vmatpush1.bf16.msra.mxu1 %v3284_v51  ;;  %v3468_v51 = vld [vmem:[%s2988_s25 + $0x48] sm:$0x3] }
  0x34   : > { %314 = vrot.lane.b32.xlu1 %v3167_v52, %s2929_s18  ;;  %2716 = vmatprep.subr.bf16.mxu0 %v4806_v3  ;;  %v635_v2 = vrot.slane %v3468_v51, 1 }
  0x35   : > { %397 = vrot.lane.b32.xlu0 %v3170_v53, %s2918_s26  ;;  %2608 = vmatprep.subr.bf16.mxu1 %v4806_v3 }
  0x37   : > { %2718 = vmatpush1.bf16.msra.mxu0 %v3294_v56  ;;  %2610 = vmatpush1.bf16.msra.mxu1 %v3294_v56 }
  0x38   : > { %321 = vrot.lane.b32.xlu1 %v320_v62, %s2930_s6  ;;  %2719 = vmatprep.subr.bf16.mxu0 %v4806_v3 }
  0x39   : > { %404 = vrot.lane.b32.xlu0 %v3225_v26, %s2924_s5  ;;  %2611 = vmatprep.subr.bf16.mxu1 %v4806_v3 }
  0x3b   : > { %2721 = vmatpush1.bf16.msra.mxu0 %v3307_v18  ;;  %2613 = vmatpush1.bf16.msra.mxu1 %v3307_v18 }
  0x3c   : > { %327 = vrot.lane.b32.xlu1 %v326_v57, %s2931_s9  ;;  %2722 = vmatprep.subr.bf16.mxu0 %v4806_v3 }
  0x3d   : > { %410 = vrot.lane.b32.xlu0 %v3265_v58, %s2925_s8  ;;  %2614 = vmatprep.subr.bf16.mxu1 %v4806_v3 }
  0x3f   : > { %2724 = vmatpush1.bf16.msra.mxu0 %v3321_v31  ;;  %2616 = vmatpush1.bf16.msra.mxu1 %v3321_v31 }
  0x40   : > { %423 = vrot.lane.b32.xlu1 %v3101_v16, %s2919_s27  ;;  %v3302_v16 = vld [vmem:[%s2988_s25 + $0x160] sm:$0xff]  ;;  %2050 = vmatprep.subr.mxu0 %v4804_v48 }
  0x41   : > { %331 = vrot.lane.b32.xlu0 %v3014_v28, %s2932_s10  ;;  %1407 = vmatprep.subr.mxu1 %v4804_v48  ;;  %v3397_v48 = vld [vmem:[%s2988_s25 + $0x210] sm:$0xff] }
  0x44   : > { %429 = vrot.lane.b32.xlu1 %v320_v62, %s2921_s29  ;;  %v486_v62 = vrot.slane %v216_v17, 1  ;;  %v3368_v17 = vld [vmem:[%s2988_s25 + $0xd0] sm:$0xff] }
  0x45   : > { %426 = vrot.lane.b32.xlu0 %v3167_v52, %s2923_s4  ;;  %v485_v52 = vrot.slane %v3302_v16, 1 }
  0x47   : > { %v487_v32 = vsel %vm253_vm0, %v485_v52, %v486_v62  ;;  %v218_v52 = vld [vmem:[%s2988_s25 + $0x178] sm:$0x3] }
  0x48   : > { %435 = vrot.lane.b32.xlu1 %v3014_v28, %s2920_s28  ;;  %v1303_v28 = vld [vmem:[%s4801_s1 + $0xc0] sm:$0xff]  ;;  %v606_v24 = vrot.slane %v218_v52, 1 }
  0x49   : > { %432 = vrot.lane.b32.xlu0 %v326_v57, %s2922_s30  ;;  %v3336_v39 = vand.u32 4294901760, %v1303_v28  ;;  %v499_v57 = vrot.slane %v3302_v16, 2  ;;  %v178_v28 = vld [vmem:[%s2988_s25 + $0x38] sm:$0x3] }
  0x4a   : > { %v515_v37 = vrot.slane %v178_v28, 1 }
  0x4b   : > { %4907 = vst [vmem:[#allocation36_spill] sm:$0xff] %v3336_v39  ;;  %2052 = vmatpush1.msra.mxu0 %v3336_v39  ;;  %1409 = vmatpush1.msra.mxu1 %v3336_v39  ;;  %v501_v6 = vsel %vm267_vm1, %v499_v57, %v500_v63  ;;  %v198_v63 = vld [vmem:[%s2988_s25 + $0xd8] sm:$0x3] }
  0x4c   : > { %438 = vrot.lane.b32.xlu1 %v3029_v38, %s2918_s26  ;;  %2725 = vmatprep.subr.bf16.mxu0 %v4806_v3 }
  0x4d   : > { %543 = vrot.lane.b32.xlu0 %v3117_v25, %s2919_s27  ;;  %2617 = vmatprep.subr.bf16.mxu1 %v4806_v3  ;;  %v236_v3 = vld [vmem:[%s2988_s25 + $0x218] sm:$0x3] }
  0x4e   : > { %v614_v31 = vrot.slane %v236_v3, 1  ;;  %v620_v3 = vrot.slane %v218_v52, 2 }
  0x50   : > { %546 = vrot.lane.b32.xlu1 %v3170_v53, %s2923_s4 }
  0x51   : > { %488 = vrot.lane.b32.xlu0 %v487_v32, %s2919_s27 }
  0x54   : > { %496 = vrot.lane.b32.xlu1 %v495_v47, %s2923_s4 }
  0x55   : > { %441 = vrot.lane.b32.xlu0 %v3036_v43, %s2924_s5  ;;  %v3361_v43 = vld [vmem:[%s2988_s25 + $0x30] sm:$0xff] }
  0x56   : > { %v514_v34 = vrot.slane %v3361_v43, 1 }
  0x58   : > { %444 = vrot.lane.b32.xlu1 %v3044_v49, %s2925_s8  ;;  %v3371_v49 = vld [vmem:[%s2988_s25 + $0x170] sm:$0xff]  ;;  %v3393_v57 = vsel %vm253_vm0, %v514_v34, %v515_v37 }
  0x59   : > { %549 = vrot.lane.b32.xlu0 %v3225_v26, %s2921_s29  ;;  %v605_v62 = vrot.slane %v3371_v49, 1 }
  0x5c   : > { %552 = vrot.lane.b32.xlu1 %v3265_v58, %s2922_s30 }
  0x5d   : > { %502 = vrot.lane.b32.xlu0 %v501_v6, %s2921_s29 }
  0x60   : > { %506 = vrot.lane.b32.xlu1 %v3361_v43, %s2922_s30 }
  0x61   : > { %447 = vrot.lane.b32.xlu0 %v3058_v55, %s2926_s19  ;;  %v3385_v55 = vsel %vm253_vm0, %v605_v62, %v606_v24  ;;  %v522_v62 = vrot.slane %v198_v63, 1  ;;  %v613_v24 = vrot.slane %v3397_v48, 1  ;;  %v528_v63 = vrot.slane %v178_v28, 2 }
  0x63   : > { %v3413_v37 = vsel %vm253_vm0, %v613_v24, %v614_v31  ;;  %v527_v31 = vrot.slane %v3361_v43, 2 }
  0x64   : > { %663 = vrot.lane.b32.xlu1 %v3368_v17, %s2919_s27 }
  0x65   : > { %555 = vrot.lane.b32.xlu0 %v3302_v16, %s2920_s28  ;;  %v3432_v52 = vsel %vm267_vm1, %v527_v31, %v528_v63 }
  0x68   : > { %510 = vrot.lane.b32.xlu1 %v3368_v17, %s2920_s28 }
  0x69   : > { %450 = vrot.lane.b32.xlu0 %v3084_v1, %s2927_s7  ;;  %v521_v1 = vrot.slane %v3368_v17, 1 }
  0x6b   : > { %v3410_v34 = vsel %vm253_vm0, %v521_v1, %v522_v62 }
  0x6c   : > { %608 = vrot.lane.b32.xlu1 %v3385_v55, %s2919_s27 }
  0x6d   : > { %558 = vrot.lane.b32.xlu0 %v3316_v20, %s2918_s26 }
  0x70   : > { %453 = vrot.lane.b32.xlu1 %v3117_v25, %s2928_s20  ;;  %v619_v25 = vrot.slane %v3371_v49, 2 }
  0x71   : > { %666 = vrot.lane.b32.xlu0 %v3393_v57, %s2923_s4 }
  0x74   : > { %561 = vrot.lane.b32.xlu1 %v487_v32, %s2924_s5  ;;  %v3425_v32 = vsel %vm267_vm1, %v619_v25, %v620_v3  ;;  %v3454_v3 = vld [vmem:[%s2988_s25 + $0x180] sm:$0xff] }
  0x75   : > { %517 = vrot.lane.b32.xlu0 %v3393_v57, %s2918_s26  ;;  %v725_v31 = vrot.slane %v3454_v3, 1 }
  0x78   : > { %669 = vrot.lane.b32.xlu1 %v3410_v34, %s2921_s29 }
  0x79   : > { %616 = vrot.lane.b32.xlu0 %v3413_v37, %s2923_s4 }
  0x7c   : > { %524 = vrot.lane.b32.xlu1 %v3410_v34, %s2924_s5 }
  0x7d   : > { %456 = vrot.lane.b32.xlu0 %v3170_v53, %s2929_s18 }
  0x80   : > { %622 = vrot.lane.b32.xlu1 %v3425_v32, %s2921_s29 }
  0x81   : > { %564 = vrot.lane.b32.xlu0 %v495_v47, %s2925_s8  ;;  %v3444_v47 = vld [vmem:[%s2988_s25 + $0x40] sm:$0xff] }
  0x82   : > { %v634_v15 = vrot.slane %v3444_v47, 1 }
  0x84   : > { %459 = vrot.lane.b32.xlu1 %v3225_v26, %s2930_s6  ;;  %v3451_v26 = vld [vmem:[%s2988_s25 + $0xe0] sm:$0xff] }
  0x85   : > { %672 = vrot.lane.b32.xlu0 %v3432_v52, %s2922_s30 }
  0x86   : > { %v3438_v53 = vpop.permute.xlu1 %279 }
  0x87   : > { %v249_v1 = vpop.permute.xlu0 %248 }
  0x88   : > { %567 = vrot.lane.b32.xlu1 %v501_v6, %s2926_s19  ;;  %v3457_v6 = vld [vmem:[%s2988_s25 + $0x188] sm:$0x3]  ;;  %v335_v12 = vsel %vm334_vm2, %v3003_v19, %v249_v1  ;;  %v641_v19 = vrot.slane %v3451_v26, 1 }
  0x89   : > { %530 = vrot.lane.b32.xlu0 %v3432_v52, %s2925_s8  ;;  %v726_v63 = vrot.slane %v3457_v6, 1 }
  0x8a   : > { %v265_v62 = vpop.permute.xlu1 %264 }
  0x8b   : > { %v276_v28 = vpop.permute.xlu0 %275 }
  0x8c   : > { %675 = vrot.lane.b32.xlu1 %v3371_v49, %s2920_s28 }
  0x8d   : > { %626 = vrot.lane.b32.xlu0 %v3444_v47, %s2922_s30 }
  0x8e   : > { %v272_v24 = vpop.permute.xlu1 %271 }
  0x8f   : > { %v258_v25 = vpop.permute.xlu0 %257 }
  0x90   : > { %462 = vrot.lane.b32.xlu1 %v3265_v58, %s2931_s9  ;;  %v3475_v58 = vsel %vm253_vm0, %v725_v31, %v726_v63  ;;  %v337_v8 = vsel %vm336_vm3, %v335_v12, %v258_v25 }
  0x91   : > { %783 = vrot.lane.b32.xlu0 %v3451_v26, %s2919_s27  ;;  %v339_v50 = vsel %vm338_vm4, %v337_v8, %v265_v62 }
  0x92   : > { %v3465_v18 = vpop.permute.xlu1 %286 }
  0x93   : > { %v369_v56 = vpop.permute.xlu0 %368 }
  0x94   : > { %630 = vrot.lane.b32.xlu1 %v3451_v26, %s2920_s28  ;;  %v413_v8 = vsel %vm334_vm2, %v3029_v38, %v369_v56  ;;  %v647_v56 = vrot.slane %v3444_v47, 2 }
  0x95   : > { %570 = vrot.lane.b32.xlu0 %v3361_v43, %s2927_s7  ;;  %v3484_v43 = vsel %vm253_vm0, %v634_v15, %v635_v2  ;;  %v733_v2 = vrot.slane %v3487_v27, 1  ;;  %v734_v15 = vrot.slane %v238_v4, 1  ;;  %v341_v4 = vsel %vm340_vm5, %v339_v50, %v272_v24 }
  0x96   : > { %v294_v13 = vpop.permute.xlu1 %293 }
  0x97   : > { %v377_v42 = vpop.permute.xlu0 %376  ;;  %v3505_v12 = vsel %vm253_vm0, %v733_v2, %v734_v15  ;;  %v740_v2 = vrot.slane %v3457_v6, 2 }
  0x98   : > { %728 = vrot.lane.b32.xlu1 %v3475_v58, %s2919_s27  ;;  %v414_v24 = vsel %vm336_vm3, %v413_v8, %v377_v42 }
  0x99   : > { %678 = vrot.lane.b32.xlu0 %v3397_v48, %s2918_s26 }
  0x9a   : > { %v300_v31 = vpop.permute.xlu1 %299 }
  0x9b   : > { %v383_v63 = vpop.permute.xlu0 %382 }
  0x9c   : > { %466 = vrot.lane.b32.xlu1 %v3302_v16, %s2932_s10  ;;  %v642_v16 = vrot.slane %v200_v7, 1  ;;  %v415_v42 = vsel %vm338_vm4, %v414_v24, %v383_v63 }
  0x9d   : > { %786 = vrot.lane.b32.xlu0 %v3484_v43, %s2923_s4 }
  0x9e   : > { %v304_v39 = vpop.permute.xlu1 %303  ;;  %v3517_v62 = vsel %vm253_vm0, %v641_v19, %v642_v16 }
  0x9f   : > { %v387_v9 = vpop.permute.xlu0 %386 }
  0xa0   : > { %637 = vrot.lane.b32.xlu1 %v3484_v43, %s2918_s26 }
  0xa1   : > { %573 = vrot.lane.b32.xlu0 %v3368_v17, %s2928_s20  ;;  %v343_v17 = vsel %vm342_vm6, %v341_v4, %v276_v28  ;;  %v739_v28 = vrot.slane %v3454_v3, 2 }
  0xa2   : > { %v308_v1 = vpop.permute.xlu1 %307  ;;  %v345_v38 = vsel %vm344_vm7, %v343_v17, %v3438_v53 }
  0xa3   : > { %v391_v25 = vpop.permute.xlu0 %390  ;;  %v347_v19 = vsel %vm4850_vm8, %v345_v38, %v3465_v18 }
  0xa4   : > { %736 = vrot.lane.b32.xlu1 %v3505_v12, %s2923_s4  ;;  %v349_v16 = vsel %vm348_vm9, %v347_v19, %v294_v13 }
  0xa5   : > { %681 = vrot.lane.b32.xlu0 %v3385_v55, %s2924_s5  ;;  %v648_v55 = vrot.slane %v3468_v51, 2  ;;  %v351_v6 = vsel %vm350_vm10, %v349_v16, %v300_v31 }
  0xa6   : > { %v315_v7 = vpop.permute.xlu1 %314  ;;  %v353_v13 = vsel %vm4825_vm11, %v351_v6, %v304_v39  ;;  %vm362_vm11 = vcmask 982016  }
  0xa7   : > { %v398_v50 = vpop.permute.xlu0 %397  ;;  %v3543_v18 = vsel %vm267_vm1, %v647_v56, %v648_v55  ;;  %v355_v8 = vsel %vm354_vm12, %v353_v13, %v308_v1  ;;  %v3570_v56 = vld [vmem:[%s2988_s25 + $0x50] sm:$0xff]  ;;  %v3607_v13 = vld [vmem:[%s2988_s25 + $0x58] sm:$0x3] }
  0xa8   : > { %576 = vrot.lane.b32.xlu1 %v3393_v57, %s2929_s18  ;;  %v416_v57 = vsel %vm340_vm5, %v415_v42, %v387_v9  ;;  %v3546_v9 = vsel %vm267_vm1, %v739_v28, %v740_v2  ;;  %v357_v17 = vsel %vm356_vm13, %v355_v8, %v315_v7 }
  0xa9   : > { %789 = vrot.lane.b32.xlu0 %v3517_v62, %s2921_s29  ;;  %v417_v51 = vsel %vm342_vm6, %v416_v57, %v391_v25 }
  0xaa   : > { %v322_v15 = vpop.permute.xlu1 %321  ;;  %v418_v63 = vsel %vm344_vm7, %v417_v51, %v398_v50 }
  0xab   : > { %v405_v53 = vpop.permute.xlu0 %404  ;;  %v359_v39 = vsel %vm358_vm14, %v357_v17, %v322_v15  ;;  %v3585_v15 = vld [vmem:[%s2988_s25 + $0xf0] sm:$0xff] }
  0xac   : > { %684 = vrot.lane.b32.xlu1 %v3413_v37, %s2925_s8  ;;  %v419_v4 = vsel %vm4850_vm8, %v418_v63, %v405_v53 }
  0xad   : > { %644 = vrot.lane.b32.xlu0 %v3517_v62, %s2924_s5 }
  0xae   : > { %v328_v25 = vpop.permute.xlu1 %327 }
  0xaf   : > { %v411_v37 = vpop.permute.xlu0 %410  ;;  %v361_v1 = vsel %vm360_vm15, %v359_v39, %v328_v25  ;;  %v222_v25 = vld [vmem:[%s2988_s25 + $0x198] sm:$0x3]  ;;  %v755_v39 = vrot.slane %v3607_v13, 1 }
  0xb0   : > { %v420_v31 = vsel %vm348_vm9, %v419_v4, %v411_v37  ;;  %792 = vrot.lane.b32.xlu1 %v3543_v18, %s2922_s30  ;;  %v3610_v4 = vld [vmem:[%s2988_s25 + $0x190] sm:$0xff] }
  0xb1   : > { %422 = vst.msk [vmem:[#allocation2 + $0x8] sm:$0xff] %vm350_vm10, %v420_v31  ;;  %742 = vrot.lane.b32.xlu0 %v3546_v9, %s2921_s29  ;;  %v754_v31 = vrot.slane %v3570_v56, 1 }
  0xb2   : > { %v3560_v50 = vpop.permute.xlu1 %423 }
  0xb3   : > { %v332_v24 = vpop.permute.xlu0 %331 }
  0xb4   : > { %v363_v38 = vsel %vm362_vm11, %v361_v1, %v332_v24  ;;  %650 = vrot.lane.b32.xlu1 %v3543_v18, %s2925_s8  ;;  %v845_v1 = vrot.slane %v3610_v4, 1  ;;  %v846_v24 = vrot.slane %v222_v25, 1 }
  0xb5   : > { %579 = vrot.lane.b32.xlu0 %v3410_v34, %s2930_s6  ;;  %v3567_v7 = vand.u32 4294901760, %v363_v38 }
  0xb6   : > { %v3572_v55 = vpop.permute.xlu1 %429 }
  0xb7   : > { %4908 = vst [vmem:[#allocation37_spill] sm:$0xff] %v3567_v7  ;;  %v3574_v28 = vpop.permute.xlu0 %426  ;;  %v3577_v42 = vsub.f32 %v363_v38, %v3567_v7 }
  0xb8   : > { %v1264_v2 = vld [vmem:[#allocation2 + $0x8] sm:$0xff]  ;;  %746 = vrot.lane.b32.xlu1 %v3570_v56, %s2922_s30 }
  0xb9   : > { %4909 = vst [vmem:[#allocation38_spill] sm:$0xff] %v3577_v42  ;;  %687 = vrot.lane.b32.xlu0 %v3425_v32, %s2926_s19  ;;  %v1312_v34 = vsel %vm350_vm10, %v1264_v2, 0  ;;  %v1432_v51 = vand.u32 4294901760, %v3577_v42 }
  0xba   : > { %v3587_v53 = vand.u32 4294901760, %v1312_v34  ;;  %v3589_v19 = vpop.permute.xlu1 %435 }
  0xbb   : > { %v3591_v57 = vpop.permute.xlu0 %432  ;;  %v1433_v8 = vsub.f32 %v3577_v42, %v1432_v51 }
  0xbc   : > { %4910 = vst [vmem:[#allocation39_spill] sm:$0xff] %v3587_v53  ;;  %v3594_v16 = vsub.f32 %v1312_v34, %v3587_v53  ;;  %903 = vrot.lane.b32.xlu1 %v3585_v15, %s2919_s27 }
  0xbd   : > { %795 = vrot.lane.b32.xlu0 %v3454_v3, %s2920_s28  ;;  %v1434_v34 = vand.u32 4294901760, %v1433_v8 }
  0xbe   : > { %4911 = vst [vmem:[#allocation40_spill] sm:$0xff] %v3594_v16  ;;  %v1426_v32 = vand.u32 4294901760, %v3594_v16  ;;  %v3602_v6 = vpop.permute.xlu1 %438 }
  0xbf   : > { %v3604_v63 = vpop.permute.xlu0 %543 }
  0xc0   : > { %2070 = vmatprep.mubr.f32.mxu0 %v1426_v32  ;;  %v1427_v37 = vsub.f32 %v3594_v16, %v1426_v32  ;;  %690 = vrot.lane.b32.xlu1 %v3444_v47, %s2927_s7 }
  0xc1   : > { %582 = vrot.lane.b32.xlu0 %v3432_v52, %s2931_s9  ;;  %2074 = vmatmul.mubr.f32.vlgmr.msra.gmra.mrb[0].mxu0 %v1432_v51  ;;  %v3631_v52 = vsel %vm253_vm0, %v754_v31, %v755_v39  ;;  %v3634_v51 = vsel %vm253_vm0, %v845_v1, %v846_v24  ;;  %v3650_v31 = vld [vmem:[%s2988_s25 + $0x230] sm:$0xff]  ;;  %v240_v39 = vld [vmem:[%s2988_s25 + $0x238] sm:$0x3]  ;;  %v761_v1 = vrot.slane %v3585_v15, 1 }
  0xc2   : > { %v1428_v17 = vand.u32 4294901760, %v1427_v37  ;;  %v3622_v38 = vpop.permute.xlu1 %546  ;;  %v853_v42 = vrot.slane %v3650_v31, 1  ;;  %v854_v16 = vrot.slane %v240_v39, 1  ;;  %v860_v39 = vrot.slane %v222_v25, 2 }
  0xc3   : > { %v3624_v2 = vpop.permute.xlu0 %488 }
  0xc4   : > { %1429 = vmatprep.mubr.f32.mxu1 %v1428_v17  ;;  %798 = vrot.lane.b32.xlu1 %v3487_v27, %s2918_s26  ;;  %v533_v21 = vsel %vm334_vm2, %v3316_v20, %v3624_v2 }
  0xc5   : > { %750 = vrot.lane.b32.xlu0 %v3585_v15, %s2920_s28  ;;  %1435 = vmatmul.mubr.f32.vlgmr.msra.gmra.mrb[0].mxu1 %v1434_v34  ;;  %v202_v34 = vld [vmem:[%s2988_s25 + $0xf8] sm:$0x3] }
  0xc6   : > { %v3636_v32 = vpop.permute.xlu1 %496  ;;  %v762_v24 = vrot.slane %v202_v34, 1 }
  0xc7   : > { %v3638_v37 = vpop.permute.xlu0 %441 }
  0xc8   : > { %906 = vrot.lane.b32.xlu1 %v3631_v52, %s2923_s4 }
  0xc9   : > { %848 = vrot.lane.b32.xlu0 %v3634_v51, %s2919_s27 }
  0xca   : > { %v3644_v8 = vpop.permute.xlu1 %444 }
  0xcb   : > { %v3646_v17 = vpop.permute.xlu0 %549 }
  0xcc   : > { %693 = vrot.lane.b32.xlu1 %v3451_v26, %s2928_s20  ;;  %v3666_v26 = vsel %vm253_vm0, %v761_v1, %v762_v24  ;;  %v768_v1 = vrot.slane %v3607_v13, 2 }
  0xcd   : > { %586 = vrot.lane.b32.xlu0 %v3371_v49, %s2932_s10  ;;  %v3669_v49 = vsel %vm253_vm0, %v853_v42, %v854_v16  ;;  %v767_v16 = vrot.slane %v3570_v56, 2 }
  0xce   : > { %v3659_v7 = vpop.permute.xlu1 %552 }
  0xcf   : > { %v503_v53 = vpop.permute.xlu0 %502 }
  0xd0   : > { %801 = vrot.lane.b32.xlu1 %v3475_v58, %s2924_s5  ;;  %v859_v58 = vrot.slane %v3610_v4, 2 }
  0xd1   : > { %757 = vrot.lane.b32.xlu0 %v3631_v52, %s2918_s26 }
  0xd2   : > { %v507_v46 = vpop.permute.xlu1 %506  ;;  %v3687_v42 = vsel %vm267_vm1, %v859_v58, %v860_v39 }
  0xd3   : > { %v3671_v34 = vpop.permute.xlu0 %447 }
  0xd4   : > { %909 = vrot.lane.b32.xlu1 %v3666_v26, %s2921_s29 }
  0xd5   : > { %856 = vrot.lane.b32.xlu0 %v3669_v49, %s2923_s4 }
  0xd6   : > { %v3678_v41 = vpop.permute.xlu1 %663 }
  0xd7   : > { %4912 = vst [vmem:[#allocation41_spill] sm:$0xff] %v3678_v41  ;;  %v3680_v40 = vpop.permute.xlu0 %555  ;;  %v242_v41 = vld [vmem:[%s2988_s25 + $0x248] sm:$0x3] }
  0xd8   : > { %764 = vrot.lane.b32.xlu1 %v3666_v26, %s2924_s5 }
  0xd9   : > { %696 = vrot.lane.b32.xlu0 %v3484_v43, %s2929_s18  ;;  %v3698_v43 = vsel %vm267_vm1, %v767_v16, %v768_v1 }
  0xda   : > { %v511_v24 = vpop.permute.xlu1 %510 }
  0xdb   : > { %v3691_v25 = vpop.permute.xlu0 %450 }
  0xdc   : > { %862 = vrot.lane.b32.xlu1 %v3687_v42, %s2921_s29 }
  0xdd   : > { %804 = vrot.lane.b32.xlu0 %v3505_v12, %s2925_s8  ;;  %v3717_v12 = vld [vmem:[%s2988_s25 + $0x60] sm:$0xff] }
  0xde   : > { %v3700_v58 = vpop.permute.xlu1 %608  ;;  %v874_v30 = vrot.slane %v3717_v12, 1 }
  0xdf   : > { %v3702_v39 = vpop.permute.xlu0 %558 }
  0xe0   : > { %699 = vrot.lane.b32.xlu1 %v3517_v62, %s2930_s6  ;;  %v3726_v62 = vld [vmem:[%s2988_s25 + $0x100] sm:$0xff] }
  0xe1   : > { %912 = vrot.lane.b32.xlu0 %v3698_v43, %s2922_s30 }
  0xe2   : > { %v3708_v13 = vpop.permute.xlu1 %453 }
  0xe3   : > { %v3710_v36 = vpop.permute.xlu0 %666 }
  0xe4   : > { %4913 = vst [vmem:[#allocation42_spill] sm:$0xff] %v3710_v36  ;;  %807 = vrot.lane.b32.xlu1 %v3546_v9, %s2926_s19 }
  0xe5   : > { %770 = vrot.lane.b32.xlu0 %v3698_v43, %s2925_s8 }
  0xe6   : > { %v3719_v16 = vpop.permute.xlu1 %561 }
  0xe7   : > { %v518_v1 = vpop.permute.xlu0 %517 }
  0xe8   : > { %915 = vrot.lane.b32.xlu1 %v3610_v4, %s2920_s28 }
  0xe9   : > { %866 = vrot.lane.b32.xlu0 %v3717_v12, %s2922_s30 }
  0xea   : > { %v3728_v35 = vpop.permute.xlu1 %669 }
  0xeb   : > { %4914 = vst [vmem:[#allocation43_spill] sm:$0xff] %v3728_v35  ;;  %v3730_v9 = vpop.permute.xlu0 %616 }
  0xec   : > { %702 = vrot.lane.b32.xlu1 %v3543_v18, %s2931_s9  ;;  %v3754_v18 = vsel %vm253_vm0, %v965_v60, %v966_v54  ;;  %v534_v54 = vsel %vm336_vm3, %v533_v21, %v3636_v32  ;;  %v3772_v60 = vsel %vm253_vm0, %v874_v30, %v875_v29  ;;  %v973_v29 = vrot.slane %v3780_v59, 1 }
  0xed   : > { %1023 = vrot.lane.b32.xlu0 %v3726_v62, %s2919_s27  ;;  %v535_v5 = vsel %vm338_vm4, %v534_v54, %v503_v53  ;;  %v974_v30 = vrot.slane %v242_v41, 1 }
  0xee   : > { %v525_v45 = vpop.permute.xlu1 %524  ;;  %v536_v23 = vsel %vm340_vm5, %v535_v5, %v507_v46 }
  0xef   : > { %v3744_v44 = vpop.permute.xlu0 %456  ;;  %v3806_v41 = vsel %vm253_vm0, %v973_v29, %v974_v30  ;;  %v979_v30 = vrot.slane %v3733_v14, 2 }
  0xf0   : > { %870 = vrot.lane.b32.xlu1 %v3726_v62, %s2920_s28 }
  0xf1   : > { %810 = vrot.lane.b32.xlu0 %v3570_v56, %s2927_s7 }
  0xf2   : > { %v3761_v35 = vpop.permute.xlu1 %622 }
  0xf3   : > { %v3763_v36 = vpop.permute.xlu0 %564 }
  0xf4   : > { %968 = vrot.lane.b32.xlu1 %v3754_v18, %s2919_s27 }
  0xf5   : > { %918 = vrot.lane.b32.xlu0 %v3650_v31, %s2918_s26  ;;  %v537_v31 = vsel %vm342_vm6, %v536_v23, %v511_v24  ;;  %v469_v23 = vsel %vm334_vm2, %v3081_v0, %v3560_v50 }
  0xf6   : > { %v3775_v20 = vpop.permute.xlu1 %459  ;;  %v538_v21 = vsel %vm344_vm7, %v537_v31, %v518_v1 }
  0xf7   : > { %v3777_v2 = vpop.permute.xlu0 %672  ;;  %v539_v53 = vsel %vm4850_vm8, %v538_v21, %v525_v45  ;;  %v881_v45 = vrot.slane %v3726_v62, 1  ;;  %v888_v21 = vrot.slane %v3747_v33, 2 }
  0xf8   : > { %4915 = vst [vmem:[#allocation44_spill] sm:$0xff] %v3777_v2  ;;  %706 = vrot.lane.b32.xlu1 %v3454_v3, %s2932_s10  ;;  %v204_v2 = vld [vmem:[%s2988_s25 + $0x108] sm:$0x3]  ;;  %v470_v3 = vsel %vm336_vm3, %v469_v23, %v3574_v28 }
  0xf9   : > { %1026 = vrot.lane.b32.xlu0 %v3772_v60, %s2923_s4  ;;  %v882_v46 = vrot.slane %v204_v2, 1  ;;  %v471_v0 = vsel %vm338_vm4, %v470_v3, %v3572_v55  ;;  %v887_v55 = vrot.slane %v3717_v12, 2 }
  0xfa   : > { %v3792_v32 = vpop.permute.xlu1 %567 }
  0xfb   : > { %v531_v54 = vpop.permute.xlu0 %530  ;;  %v3821_v50 = vsel %vm253_vm0, %v881_v45, %v882_v46  ;;  %v3861_v45 = vsel %vm267_vm1, %v887_v55, %v888_v21  ;;  %v3894_v21 = vld [vmem:[%s2988_s25 + $0x70] sm:$0xff] }
  0xfc   : > { %v540_v5 = vsel %vm348_vm9, %v539_v53, %v531_v54  ;;  %877 = vrot.lane.b32.xlu1 %v3772_v60, %s2918_s26  ;;  %v980_v53 = vrot.slane %v3736_v61, 2 }
  0xfd   : > { %542 = vst.msk [vmem:[#allocation2 + $0x18] sm:$0xff] %vm350_vm10, %v540_v5  ;;  %813 = vrot.lane.b32.xlu0 %v3585_v15, %s2928_s20  ;;  %v472_v15 = vsel %vm340_vm5, %v471_v0, %v3591_v57 }
  0xfe   : > { %v3810_v24 = vpop.permute.xlu1 %675  ;;  %v473_v29 = vsel %vm342_vm6, %v472_v15, %v3589_v19 }
  0xff   : > { %v3812_v1 = vpop.permute.xlu0 %626 }
 0x100   : > { %976 = vrot.lane.b32.xlu1 %v3806_v41, %s2923_s4 }
 0x101   : > { %921 = vrot.lane.b32.xlu0 %v3634_v51, %s2924_s5 }
 0x102   : > { %v463_v28 = vpop.permute.xlu1 %462 }
 0x103   : > { %v3825_v2 = vpop.permute.xlu0 %783 }
 0x104   : > { %v1266_v31 = vld [vmem:[#allocation2 + $0x18] sm:$0xff]  ;;  %816 = vrot.lane.b32.xlu1 %v3631_v52, %s2929_s18  ;;  %v474_v52 = vsel %vm344_vm7, %v473_v29, %v3602_v6 }
 0x105   : > { %1029 = vrot.lane.b32.xlu0 %v3821_v50, %s2921_s29  ;;  %v1315_v51 = vsel %vm350_vm10, %v1266_v31, 0  ;;  %v475_v23 = vsel %vm4850_vm8, %v474_v52, %v3638_v37  ;;  %v3864_v37 = vsel %vm267_vm1, %v979_v30, %v980_v53  ;;  %vm4917_vm8 = vcmask 654336   ;;  %v3907_v30 = vld [vmem:[%s2988_s25 + $0x110] sm:$0xff] }
 0x106   : > { %v3836_v57 = vand.u32 4294901760, %v1315_v51  ;;  %v3842_v54 = vpop.permute.xlu1 %630  ;;  %v476_v19 = vsel %vm348_vm9, %v475_v23, %v3644_v8 }
 0x107   : > { %v3844_v5 = vpop.permute.xlu0 %570  ;;  %v477_v61 = vsel %vm350_vm10, %v476_v19, %v3671_v34 }
 0x108   : > { %v3849_v33 = vsub.f32 %v1315_v51, %v3836_v57  ;;  %924 = vrot.lane.b32.xlu1 %v3669_v49, %s2925_s8  ;;  %v478_v8 = vsel %vm4917_vm8, %v477_v61, %v3691_v25  ;;  %vm4920_vm8 = vcmask 457728  }
 0x109   : > { %884 = vrot.lane.b32.xlu0 %v3821_v50, %s2924_s5  ;;  %v479_v3 = vsel %vm354_vm12, %v478_v8, %v3708_v13  ;;  %v3926_v8 = vld [vmem:[%s2988_s25 + $0x1b0] sm:$0xff] }
 0x10a   : > { %4916 = vst [vmem:[#allocation45_spill] sm:$0xff] %v3849_v33  ;;  %v1441_v6 = vand.u32 4294901760, %v3849_v33  ;;  %v3868_v46 = vpop.permute.xlu1 %728  ;;  %v480_v0 = vsel %vm356_vm13, %v479_v3, %v3744_v44  ;;  %v3929_v3 = vld [vmem:[%s2988_s25 + $0x1b8] sm:$0x3] }
 0x10b   : > { %v3870_v49 = vpop.permute.xlu0 %678  ;;  %v481_v25 = vsel %vm358_vm14, %v480_v0, %v3775_v20 }
 0x10c   : > { %2081 = vmatprep.mubr.f32.mxu0 %v1441_v6  ;;  %v1442_v34 = vsub.f32 %v3849_v33, %v1441_v6  ;;  %1032 = vrot.lane.b32.xlu1 %v3861_v45, %s2922_s30  ;;  %v482_v13 = vsel %vm360_vm15, %v481_v25, %v463_v28  ;;  %v3923_v6 = vld [vmem:[%s2988_s25 + $0x78] sm:$0x3]  ;;  %v1085_v25 = vrot.slane %v3926_v8, 1 }
 0x10d   : > { %982 = vrot.lane.b32.xlu0 %v3864_v37, %s2921_s29  ;;  %v995_v0 = vrot.slane %v3923_v6, 1 }
 0x10e   : > { %v1443_v15 = vand.u32 4294901760, %v1442_v34  ;;  %v467_v31 = vpop.permute.xlu1 %466  ;;  %v994_v34 = vrot.slane %v3894_v21, 1 }
 0x10f   : > { %v3884_v51 = vpop.permute.xlu0 %786  ;;  %v483_v55 = vsel %vm362_vm11, %v482_v13, %v467_v31 }
 0x110   : > { %1444 = vmatprep.mubr.f32.mxu1 %v1443_v15  ;;  %890 = vrot.lane.b32.xlu1 %v3861_v45, %s2925_s8  ;;  %v3891_v44 = vand.u32 4294901760, %v483_v55  ;;  %v1086_v15 = vrot.slane %v3929_v3, 1 }
 0x111   : > { %819 = vrot.lane.b32.xlu0 %v3666_v26, %s2930_s6 }
 0x112   : > { %4918 = vst [vmem:[#allocation46_spill] sm:$0xff] %v3891_v44  ;;  %v638_v20 = vpop.permute.xlu1 %637  ;;  %v3899_v28 = vsub.f32 %v483_v55, %v3891_v44  ;;  %v653_v55 = vsel %vm334_vm2, %v3397_v48, %v3700_v58 }
 0x113   : > { %v3896_v29 = vpop.permute.xlu0 %573 }
 0x114   : > { %4919 = vst [vmem:[#allocation47_spill] sm:$0xff] %v3899_v28  ;;  %986 = vrot.lane.b32.xlu1 %v3894_v21, %s2922_s30  ;;  %v1447_v26 = vand.u32 4294901760, %v3899_v28 }
 0x115   : > { %927 = vrot.lane.b32.xlu0 %v3687_v42, %s2926_s19 }
 0x116   : > { %v3909_v53 = vpop.permute.xlu1 %736  ;;  %2085 = vmatmul.mubr.f32.gmra.mrb[2].mxu0 %v1447_v26  ;;  %v1448_v23 = vsub.f32 %v3899_v28, %v1447_v26  ;;  %v3951_v26 = vsel %vm253_vm0, %v994_v34, %v995_v0 }
 0x117   : > { %v3911_v52 = vpop.permute.xlu0 %681 }
 0x118   : > { %1143 = vrot.lane.b32.xlu1 %v3907_v30, %s2919_s27  ;;  %v1449_v19 = vand.u32 4294901760, %v1448_v23  ;;  %v3954_v23 = vsel %vm253_vm0, %v1085_v25, %v1086_v15  ;;  %v206_v15 = vld [vmem:[%s2988_s25 + $0x118] sm:$0x3] }
 0x119   : > { %1035 = vrot.lane.b32.xlu0 %v3733_v14, %s2920_s28 }
 0x11a   : > { %v3918_v61 = vpop.permute.xlu1 %576  ;;  %1450 = vmatmul.mubr.f32.gmra.mrb[2].mxu1 %v1449_v19 }
 0x11b   : > { %v3920_v42 = vpop.permute.xlu0 %789 }
 0x11c   : > { %930 = vrot.lane.b32.xlu1 %v3717_v12, %s2927_s7 }
 0x11d   : > { %822 = vrot.lane.b32.xlu0 %v3698_v43, %s2931_s9  ;;  %v654_v43 = vsel %vm336_vm3, %v653_v55, %v3730_v9  ;;  %v3976_v55 = vld [vmem:[%s2988_s25 + $0x250] sm:$0xff] }
 0x11e   : > { %v3939_v13 = vpop.permute.xlu1 %684  ;;  %v655_v48 = vsel %vm338_vm4, %v654_v43, %v3761_v35 }
 0x11f   : > { %v645_v31 = vpop.permute.xlu0 %644  ;;  %v656_v19 = vsel %vm340_vm5, %v655_v48, %v3812_v1  ;;  %v244_v1 = vld [vmem:[%s2988_s25 + $0x258] sm:$0x3] }
 0x120   : > { %1038 = vrot.lane.b32.xlu1 %v3780_v59, %s2918_s26  ;;  %v657_v9 = vsel %vm342_vm6, %v656_v19, %v3842_v54  ;;  %v1001_v54 = vrot.slane %v3907_v30, 1  ;;  %v1094_v48 = vrot.slane %v244_v1, 1 }
 0x121   : > { %990 = vrot.lane.b32.xlu0 %v3907_v30, %s2920_s28  ;;  %v658_v34 = vsel %vm344_vm7, %v657_v9, %v638_v20  ;;  %v1002_v20 = vrot.slane %v206_v15, 1 }
 0x122   : > { %v3958_v58 = vpop.permute.xlu1 %792  ;;  %v659_v35 = vsel %vm4920_vm8, %v658_v34, %v645_v31  ;;  %v1093_v31 = vrot.slane %v3976_v55, 1 }
 0x123   : > { %v3960_v59 = vpop.permute.xlu0 %742 }
 0x124   : > { %1146 = vrot.lane.b32.xlu1 %v3951_v26, %s2923_s4 }
 0x125   : > { %1088 = vrot.lane.b32.xlu0 %v3954_v23, %s2919_s27 }
 0x126   : > { %v651_v0 = vpop.permute.xlu1 %650 }
 0x127   : > { %v3972_v25 = vpop.permute.xlu0 %579  ;;  %v660_v43 = vsel %vm348_vm9, %v659_v35, %v651_v0  ;;  %v2903_v0 = vld [vmem:[%s2988_s25 + $0x20] sm:$0xff] }
 0x128   : > { %662 = vst.msk [vmem:[#allocation2 + $0x28] sm:$0xff] %vm350_vm10, %v660_v43  ;;  %933 = vrot.lane.b32.xlu1 %v3726_v62, %s2928_s20  ;;  %v3996_v62 = vsel %vm253_vm0, %v1001_v54, %v1002_v20  ;;  %v589_v15 = vsel %vm334_vm2, %v2903_v0, %v3604_v63  ;;  %v1099_v43 = vrot.slane %v3926_v8, 2  ;;  %v1100_v54 = vrot.slane %v3929_v3, 2 }
 0x129   : > { %826 = vrot.lane.b32.xlu0 %v3610_v4, %s2932_s10  ;;  %v3999_v4 = vsel %vm253_vm0, %v1093_v31, %v1094_v48  ;;  %v590_v31 = vsel %vm336_vm3, %v589_v15, %v3622_v38  ;;  %v1007_v15 = vrot.slane %v3894_v21, 2 }
 0x12a   : > { %v3987_v19 = vpop.permute.xlu1 %746  ;;  %v591_v0 = vsel %vm338_vm4, %v590_v31, %v3646_v17  ;;  %v4031_v38 = vsel %vm267_vm1, %v1099_v43, %v1100_v54 }
 0x12b   : > { %v3989_v9 = vpop.permute.xlu0 %687 }
 0x12c   : > { %1041 = vrot.lane.b32.xlu1 %v3754_v18, %s2924_s5 }
 0x12d   : > { %997 = vrot.lane.b32.xlu0 %v3951_v26, %s2918_s26 }
 0x12e   : > { %v4001_v34 = vpop.permute.xlu1 %903 }
 0x12f   : > { %v796_v35 = vpop.permute.xlu0 %795  ;;  %v1268_v1 = vld [vmem:[#allocation2 + $0x28] sm:$0xff] }
 0x130   : > { %1149 = vrot.lane.b32.xlu1 %v3996_v62, %s2921_s29  ;;  %v1318_v18 = vsel %vm350_vm10, %v1268_v1, 0  ;;  %v592_v1 = vsel %vm340_vm5, %v591_v0, %v3659_v7 }
 0x131   : > { %1096 = vrot.lane.b32.xlu0 %v3999_v4, %s2923_s4  ;;  %v4013_v20 = vand.u32 4294901760, %v1318_v18  ;;  %v593_v3 = vsel %vm342_vm6, %v592_v1, %v3680_v40 }
 0x132   : > { %v4017_v48 = vpop.permute.xlu1 %690  ;;  %v594_v7 = vsel %vm344_vm7, %v593_v3, %v3702_v39 }
 0x133   : > { %4921 = vst [vmem:[#allocation48_spill] sm:$0xff] %v4013_v20  ;;  %v583_v63 = vpop.permute.xlu0 %582  ;;  %v4022_v28 = vsub.f32 %v1318_v18, %v4013_v20  ;;  %v1008_v18 = vrot.slane %v3923_v6, 2 }
 0x134   : > { %1004 = vrot.lane.b32.xlu1 %v3996_v62, %s2924_s5 }
 0x135   : > { %4922 = vst [vmem:[#allocation49_spill] sm:$0xff] %v4022_v28  ;;  %936 = vrot.lane.b32.xlu0 %v3772_v60, %s2929_s18  ;;  %v1456_v17 = vand.u32 4294901760, %v4022_v28  ;;  %v595_v60 = vsel %vm4920_vm8, %v594_v7, %v3719_v16  ;;  %v4054_v54 = vsel %vm267_vm1, %v1007_v15, %v1008_v18  ;;  %vm4923_vm8 = vcmask 654336  }
 0x136   : > { %v799_v31 = vpop.permute.xlu1 %798  ;;  %v596_v40 = vsel %vm348_vm9, %v595_v60, %v3763_v36 }
 0x137   : > { %v4040_v0 = vpop.permute.xlu0 %750  ;;  %2092 = vmatprep.mubr.f32.mxu0 %v1456_v17  ;;  %v1457_v43 = vsub.f32 %v4022_v28, %v1456_v17  ;;  %v597_v39 = vsel %vm350_vm10, %v596_v40, %v3792_v32  ;;  %v829_v32 = vsel %vm334_vm2, %v3444_v47, %v3825_v2 }
 0x138   : > { %1102 = vrot.lane.b32.xlu1 %v4031_v38, %s2921_s29  ;;  %v598_v16 = vsel %vm4923_vm8, %v597_v39, %v3844_v5  ;;  %vm4926_vm8 = vcmask 457728   ;;  %v4112_v39 = vld [vmem:[%s2988_s25 + $0x1c0] sm:$0xff] }
 0x139   : > { %1044 = vrot.lane.b32.xlu0 %v3806_v41, %s2925_s8  ;;  %v1458_v6 = vand.u32 4294901760, %v1457_v43  ;;  %v599_v36 = vsel %vm354_vm12, %v598_v16, %v3896_v29  ;;  %v830_v29 = vsel %vm336_vm3, %v829_v32, %v3884_v51  ;;  %v4091_v51 = vld [vmem:[%s2988_s25 + $0x80] sm:$0xff]  ;;  %v4129_v32 = vld [vmem:[%s2988_s25 + $0x88] sm:$0x3] }
 0x13a   : > { %v907_v1 = vpop.permute.xlu1 %906  ;;  %v600_v41 = vsel %vm356_vm13, %v599_v36, %v3918_v61 }
 0x13b   : > { %v4058_v3 = vpop.permute.xlu0 %848  ;;  %1459 = vmatprep.mubr.f32.mxu1 %v1458_v6  ;;  %v601_v5 = vsel %vm358_vm14, %v600_v41, %v3972_v25  ;;  %v4115_v6 = vld [vmem:[%s2988_s25 + $0x1c8] sm:$0x3] }
 0x13c   : > { %939 = vrot.lane.b32.xlu1 %v3821_v50, %s2930_s6  ;;  %v602_v17 = vsel %vm360_vm15, %v601_v5, %v583_v63  ;;  %v831_v50 = vsel %vm338_vm4, %v830_v29, %v3920_v42  ;;  %v1206_v41 = vrot.slane %v4115_v6, 1 }
 0x13d   : > { %1152 = vrot.lane.b32.xlu0 %v4054_v54, %s2922_s30  ;;  %v832_v7 = vsel %vm340_vm5, %v831_v50, %v3958_v58  ;;  %v4141_v50 = vld [vmem:[%s2988_s25 + $0x260] sm:$0xff] }
 0x13e   : > { %v4076_v61 = vpop.permute.xlu1 %693  ;;  %v833_v2 = vsel %vm342_vm6, %v832_v7, %v796_v35 }
 0x13f   : > { %v587_v15 = vpop.permute.xlu0 %586  ;;  %v834_v42 = vsel %vm344_vm7, %v833_v2, %v799_v31  ;;  %v949_v31 = vsel %vm334_vm2, %v3570_v56, %v4001_v34  ;;  %v4124_v34 = vld [vmem:[%s2988_s25 + $0x120] sm:$0xff] }
 0x140   : > { %v603_v18 = vsel %vm362_vm11, %v602_v17, %v587_v15  ;;  %1047 = vrot.lane.b32.xlu1 %v3864_v37, %s2926_s19  ;;  %v950_v60 = vsel %vm336_vm3, %v949_v31, %v907_v1  ;;  %v1205_v1 = vrot.slane %v4112_v39, 1  ;;  %v1114_v17 = vrot.slane %v4091_v51, 1 }
 0x141   : > { %1010 = vrot.lane.b32.xlu0 %v4054_v54, %s2925_s8  ;;  %v4087_v47 = vand.u32 4294901760, %v603_v18 }
 0x142   : > { %v802_v25 = vpop.permute.xlu1 %801  ;;  %v1207_v15 = vsel %vm253_vm0, %v1205_v1, %v1206_v41 }
 0x143   : > { %4924 = vst [vmem:[#allocation50_spill] sm:$0xff] %v4087_v47  ;;  %v4094_v63 = vpop.permute.xlu0 %757  ;;  %v4097_v58 = vsub.f32 %v603_v18, %v4087_v47  ;;  %v835_v37 = vsel %vm4926_vm8, %v834_v42, %v802_v25  ;;  %v246_v18 = vld [vmem:[%s2988_s25 + $0x268] sm:$0x3]  ;;  %v1548_v25 = vand.u32 4294901760, %v2981_v10 }
 0x144   : > { %1155 = vrot.lane.b32.xlu1 %v3926_v8, %s2920_s28 }
 0x145   : > { %4925 = vst [vmem:[#allocation51_spill] sm:$0xff] %v4097_v58  ;;  %1106 = vrot.lane.b32.xlu0 %v4091_v51, %s2922_s30  ;;  %v1462_v35 = vand.u32 4294901760, %v4097_v58  ;;  %v1549_v1 = vsub.f32 %v2981_v10, %v1548_v25 }
 0x146   : > { %v910_v43 = vpop.permute.xlu1 %909 }
 0x147   : > { %v4109_v40 = vpop.permute.xlu0 %856  ;;  %2096 = vmatmul.mubr.f32.gmra.mrb[4].mxu0 %v1462_v35  ;;  %v1463_v16 = vsub.f32 %v4097_v58, %v1462_v35  ;;  %v951_v36 = vsel %vm338_vm4, %v950_v60, %v910_v43  ;;  %v773_v35 = vsel %vm334_vm2, %v3487_v27, %v3868_v46  ;;  %v1213_v60 = vrot.slane %v4141_v50, 1 }
 0x148   : > { %1050 = vrot.lane.b32.xlu1 %v3894_v21, %s2927_s7  ;;  %v774_v43 = vsel %vm336_vm3, %v773_v35, %v3909_v53  ;;  %v1121_v46 = vrot.slane %v4124_v34, 1  ;;  %v1550_v53 = vand.u32 4294901760, %v1549_v1 }
 0x149   : > { %942 = vrot.lane.b32.xlu0 %v3861_v45, %s2931_s9  ;;  %v1464_v56 = vand.u32 4294901760, %v1463_v16  ;;  %v1115_v45 = vrot.slane %v4129_v32, 1  ;;  %v208_v16 = vld [vmem:[%s2988_s25 + $0x128] sm:$0x3] }
 0x14a   : > { %v765_v5 = vpop.permute.xlu1 %764 }
 0x14b   : > { %v4131_v29 = vpop.permute.xlu0 %696  ;;  %1465 = vmatmul.mubr.f32.gmra.mrb[4].mxu1 %v1464_v56  ;;  %v4158_v31 = vsel %vm253_vm0, %v1114_v17, %v1115_v45 }
 0x14c   : > { %1158 = vrot.lane.b32.xlu1 %v3976_v55, %s2918_s26  ;;  %v1555_v55 = vand.u32 4294901760, %v2983_v11 }
 0x14d   : > { %1110 = vrot.lane.b32.xlu0 %v4124_v34, %s2920_s28 }
 0x14e   : > { %v4144_v7 = vpop.permute.xlu1 %862  ;;  %v2726_v56 = vpack.c.bf16 %v1555_v55, %v1548_v25  ;;  %v1556_v27 = vsub.f32 %v2983_v11, %v1555_v55  ;;  %v1562_v25 = vand.u32 4294901760, %v3007_v22  ;;  %v4927_v55 = vld [vmem:[#allocation5_spill] sm:$0xff] }
 0x14f   : > { %v805_v2 = vpop.permute.xlu0 %804 }
 0x150   : > { %v4147_v42 = vsel %vm348_vm9, %v835_v37, %v805_v2  ;;  %946 = vrot.lane.b32.xlu1 %v3733_v14, %s2932_s10  ;;  %v1214_v37 = vrot.slane %v246_v18, 1  ;;  %v775_v14 = vsel %vm338_vm4, %v774_v43, %v3960_v59  ;;  %2727 = vmatpush1.bf16.msra.mxu0 %v2726_v56  ;;  %v1557_v18 = vand.u32 4294901760, %v1556_v27 }
 0x151   : > { %1208 = vrot.lane.b32.xlu0 %v1207_v15, %s2919_s27  ;;  %v776_v45 = vsel %vm340_vm5, %v775_v14, %v3987_v19  ;;  %v1122_v59 = vrot.slane %v208_v16, 1  ;;  %v1569_v19 = vand.u32 4294901760, %v4927_v55  ;;  %v4928_v43 = vmov 0.0|0.0  }
 0x152   : > { %v4169_v41 = vpop.permute.xlu1 %699  ;;  %v777_v2 = vsel %vm342_vm6, %v776_v45, %v4040_v0  ;;  %v1215_v35 = vsel %vm253_vm0, %v1213_v60, %v1214_v37  ;;  %2728 = vmatprep.subr.bf16.mxu0 %v4928_v43  ;;  %v2618_v0 = vpack.c.bf16 %v1557_v18, %v1550_v53  ;;  %v4929_v45 = vld [vmem:[#allocation41_spill] sm:$0xff]  ;;  %v4930_v60 = vld [vmem:[#allocation6_spill] sm:$0xff]  ;;  %v4931_v53 = vld [vmem:[#allocation8_spill] sm:$0xff] }
 0x153   : > { %v913_v17 = vpop.permute.xlu0 %912  ;;  %v2729_v14 = vpack.c.bf16 %v1569_v19, %v1562_v25  ;;  %v1570_v16 = vsub.f32 %v4927_v55, %v1569_v19  ;;  %v1576_v37 = vand.u32 4294901760, %v4930_v60  ;;  %v1583_v18 = vand.u32 4294901760, %v4931_v53 }
 0x154   : > { %v952_v15 = vsel %vm340_vm5, %v951_v36, %v913_v17  ;;  %1117 = vrot.lane.b32.xlu1 %v4158_v31, %s2918_s26  ;;  %v778_v36 = vsel %vm344_vm7, %v777_v2, %v4094_v63  ;;  %v2904_v17 = vld [vmem:[%s2988_s25 + $0x30] sm:$0xff]  ;;  %2619 = vmatpush1.bf16.msra.mxu1 %v2618_v0  ;;  %v1219_v2 = vrot.slane %v4112_v39, 2 }
 0x155   : > { %1053 = vrot.lane.b32.xlu0 %v3907_v30, %s2928_s20  ;;  %v779_v56 = vsel %vm4926_vm8, %v778_v36, %v765_v5  ;;  %v1563_v30 = vsub.f32 %v3007_v22, %v1562_v25  ;;  %v709_v58 = vsel %vm334_vm2, %v2904_v17, %v4929_v45  ;;  %v4202_v5 = vsel %vm253_vm0, %v1121_v46, %v1122_v59 }
 0x156   : > { %v4187_v1 = vpop.permute.xlu1 %807  ;;  %v1571_v19 = vand.u32 4294901760, %v1570_v16  ;;  %v1220_v36 = vrot.slane %v4115_v6, 2  ;;  %2730 = vmatpush1.bf16.msra.mxu0 %v2729_v14  ;;  %2620 = vmatprep.subr.bf16.mxu1 %v4928_v43  ;;  %v2732_v0 = vpack.c.bf16 %v1583_v18, %v1576_v37  ;;  %v1127_v46 = vrot.slane %v4091_v51, 2  ;;  %v4933_v14 = vld [vmem:[#allocation43_spill] sm:$0xff] }
 0x157   : > { %v771_v27 = vpop.permute.xlu0 %770  ;;  %v1564_v25 = vand.u32 4294901760, %v1563_v30  ;;  %v1128_v30 = vrot.slane %v4129_v32, 2  ;;  %2731 = vmatprep.subr.bf16.mxu0 %v4928_v43  ;;  %v4935_v32 = vld [vmem:[#allocation9_spill] sm:$0xff] }
 0x158   : > { %v780_v63 = vsel %vm348_vm9, %v779_v56, %v771_v27  ;;  %1216 = vrot.lane.b32.xlu1 %v1215_v35, %s2923_s4  ;;  %v1577_v56 = vsub.f32 %v4930_v60, %v1576_v37  ;;  %v1584_v35 = vsub.f32 %v4931_v53, %v1583_v18  ;;  %v4932_v27 = vld [vmem:[#allocation42_spill] sm:$0xff]  ;;  %v4934_v18 = vld [vmem:[#allocation44_spill] sm:$0xff] }
 0x159   : > { %782 = vst.msk [vmem:[#allocation2 + $0x38] sm:$0xff] %vm350_vm10, %v780_v63  ;;  %1161 = vrot.lane.b32.xlu0 %v3954_v23, %s2924_s5  ;;  %v710_v23 = vsel %vm336_vm3, %v709_v58, %v4932_v27  ;;  %v2621_v6 = vpack.c.bf16 %v1571_v19, %v1564_v25  ;;  %v1590_v27 = vand.u32 4294901760, %v4935_v32  ;;  %v4936_v25 = vld [vmem:[#allocation11_spill] sm:$0xff] }
 0x15a   : > { %v916_v59 = vpop.permute.xlu1 %915  ;;  %v711_v16 = vsel %vm338_vm4, %v710_v23, %v4933_v14  ;;  %v1578_v63 = vand.u32 4294901760, %v1577_v56  ;;  %v1585_v37 = vand.u32 4294901760, %v1584_v35  ;;  %v1597_v19 = vand.u32 4294901760, %v4936_v25  ;;  %2733 = vmatpush1.bf16.msra.mxu0 %v2732_v0  ;;  %v4937_v0 = vld [vmem:[#allocation12_spill] sm:$0xff] }
 0x15b   : > { %v4212_v17 = vpop.permute.xlu0 %866  ;;  %v4219_v45 = vsel %vm342_vm6, %v952_v15, %v916_v59  ;;  %v712_v58 = vsel %vm340_vm5, %v711_v16, %v4934_v18  ;;  %v1221_v15 = vsel %vm267_vm1, %v1219_v2, %v1220_v36  ;;  %2622 = vmatpush1.bf16.msra.mxu1 %v2621_v6  ;;  %2734 = vmatprep.subr.bf16.mxu0 %v4928_v43  ;;  %v1604_v6 = vand.u32 4294901760, %v4937_v0 }
 0x15c   : > { %1124 = vrot.lane.b32.xlu1 %v4202_v5, %s2924_s5  ;;  %v713_v23 = vsel %vm342_vm6, %v712_v58, %v3810_v24  ;;  %v2624_v56 = vpack.c.bf16 %v1585_v37, %v1578_v63  ;;  %2623 = vmatprep.subr.bf16.mxu1 %v4928_v43  ;;  %v1591_v14 = vsub.f32 %v4935_v32, %v1590_v27  ;;  %v4938_v63 = vld [vmem:[#allocation13_spill] sm:$0xff] }
 0x15d   : > { %1056 = vrot.lane.b32.xlu0 %v3951_v26, %s2929_s18  ;;  %v2735_v26 = vpack.c.bf16 %v1597_v19, %v1590_v27  ;;  %v1598_v16 = vsub.f32 %v4936_v25, %v1597_v19  ;;  %v714_v24 = vsel %vm344_vm7, %v713_v23, %v3870_v49  ;;  %v4243_v2 = vsel %vm267_vm1, %v1127_v46, %v1128_v30 }
 0x15e   : > { %v4232_v35 = vpop.permute.xlu1 %702  ;;  %v1611_v37 = vand.u32 4294901760, %v4938_v63  ;;  %v715_v18 = vsel %vm4926_vm8, %v714_v24, %v3911_v52  ;;  %v1592_v27 = vand.u32 4294901760, %v1591_v14  ;;  %v1605_v30 = vsub.f32 %v4937_v0, %v1604_v6 }
 0x15f   : > { %v4234_v59 = vpop.permute.xlu0 %1023  ;;  %v1599_v49 = vand.u32 4294901760, %v1598_v16  ;;  %2625 = vmatpush1.bf16.msra.mxu1 %v2624_v56  ;;  %2736 = vmatpush1.bf16.msra.mxu0 %v2735_v26  ;;  %v716_v52 = vsel %vm348_vm9, %v715_v18, %v3939_v13  ;;  %vm4941_vm8 = vcmask 654336  }
 0x160   : > { %v1270_v36 = vld [vmem:[#allocation2 + $0x38] sm:$0xff]  ;;  %1222 = vrot.lane.b32.xlu1 %v1221_v15, %s2921_s29  ;;  %v2738_v46 = vpack.c.bf16 %v1611_v37, %v1604_v6  ;;  %v1612_v23 = vsub.f32 %v4938_v63, %v1611_v37  ;;  %2626 = vmatprep.subr.bf16.mxu1 %v4928_v43  ;;  %v717_v56 = vsel %vm350_vm10, %v716_v52, %v3989_v9  ;;  %v1606_v16 = vand.u32 4294901760, %v1605_v30  ;;  %v4943_v37 = vld [vmem:[#allocation16_spill] sm:$0xff]  ;;  %s2580_s29 = sshll.u32 %s5022_s13, 6 }
 0x161   : > { %1164 = vrot.lane.b32.xlu0 %v3999_v4, %s2925_s8  ;;  %v1321_v58 = vsel %vm350_vm10, %v1270_v36, 0  ;;  %2737 = vmatprep.subr.bf16.mxu0 %v4928_v43  ;;  %v2627_v14 = vpack.c.bf16 %v1599_v49, %v1592_v27  ;;  %v718_v13 = vsel %vm4941_vm8, %v717_v56, %v4017_v48  ;;  %v4942_v36 = vld [vmem:[#allocation15_spill] sm:$0xff]  ;;  %v1625_v18 = vand.u32 4294901760, %v4943_v37  ;;  %v4282_v27 = vld [vmem:[%s2988_s25 + $0x90] sm:$0xff] }
 0x162   : > { %v4253_v19 = vand.u32 4294901760, %v1321_v58  ;;  %v4259_v15 = vpop.permute.xlu1 %870  ;;  %v1613_v24 = vand.u32 4294901760, %v1612_v23  ;;  %v1618_v6 = vand.u32 4294901760, %v4942_v36  ;;  %v719_v9 = vsel %vm354_vm12, %v718_v13, %v4076_v61 }
 0x163   : > { %v4261_v4 = vpop.permute.xlu0 %810  ;;  %2628 = vmatpush1.bf16.msra.mxu1 %v2627_v14  ;;  %2739 = vmatpush1.bf16.msra.mxu0 %v2738_v46  ;;  %v720_v61 = vsel %vm356_vm13, %v719_v9, %v4131_v29  ;;  %v1626_v14 = vsub.f32 %v4943_v37, %v1625_v18  ;;  %vm4952_vm8 = vcmask 457728  }
 0x164   : > { %4939 = vst [vmem:[#allocation5_spill] sm:$0xff] %v4253_v19  ;;  %v4268_v26 = vsub.f32 %v1321_v58, %v4253_v19  ;;  %1130 = vrot.lane.b32.xlu1 %v4243_v2, %s2925_s8  ;;  %2629 = vmatprep.subr.bf16.mxu1 %v4928_v43  ;;  %v2741_v30 = vpack.c.bf16 %v1625_v18, %v1618_v6  ;;  %v4951_v19 = vld [vmem:[#allocation23_spill] sm:$0xff] }
 0x165   : > { %1059 = vrot.lane.b32.xlu0 %v3996_v62, %s2930_s6  ;;  %2740 = vmatprep.subr.bf16.mxu0 %v4928_v43  ;;  %v2630_v62 = vpack.c.bf16 %v1613_v24, %v1606_v16  ;;  %v1619_v23 = vsub.f32 %v4942_v36, %v1618_v6  ;;  %v721_v56 = vsel %vm358_vm14, %v720_v61, %v4169_v41  ;;  %v4944_v16 = vld [vmem:[#allocation17_spill] sm:$0xff]  ;;  %v1627_v41 = vand.u32 4294901760, %v1626_v14  ;;  %v210_v14 = vld [vmem:[%s2988_s25 + $0x138] sm:$0x3] }
 0x166   : > { %4940 = vst [vmem:[#allocation41_spill] sm:$0xff] %v4268_v26  ;;  %v1471_v58 = vand.u32 4294901760, %v4268_v26  ;;  %v4284_v48 = vpop.permute.xlu1 %968  ;;  %v1632_v13 = vand.u32 4294901760, %v4944_v16  ;;  %v722_v6 = vsel %vm360_vm15, %v721_v56, %v4232_v35  ;;  %v1069_v18 = vsel %vm334_vm2, %v3717_v12, %v4234_v59 }
 0x167   : > { %v919_v49 = vpop.permute.xlu0 %918  ;;  %v1620_v29 = vand.u32 4294901760, %v1619_v23  ;;  %2631 = vmatpush1.bf16.msra.mxu1 %v2630_v62  ;;  %2742 = vmatpush1.bf16.msra.mxu0 %v2741_v30  ;;  %v4946_v30 = vld [vmem:[#allocation19_spill] sm:$0xff]  ;;  %v1242_v28 = vrot.slane %v210_v14, 1  ;;  %v1667_v47 = vand.u32 4294901760, %v4951_v19  ;;  %v1247_v14 = vrot.slane %v4282_v27, 2 }
 0x168   : > { %v4293_v52 = vsel %vm344_vm7, %v4219_v45, %v919_v49  ;;  %2103 = vmatprep.mubr.f32.mxu0 %v1471_v58  ;;  %v1472_v46 = vsub.f32 %v4268_v26, %v1471_v58  ;;  %1226 = vrot.lane.b32.xlu1 %v4282_v27, %s2922_s30  ;;  %v4945_v45 = vld [vmem:[#allocation18_spill] sm:$0xff]  ;;  %v1633_v35 = vsub.f32 %v4944_v16, %v1632_v13  ;;  %v4948_v26 = vld [vmem:[#allocation21_spill] sm:$0xff] }
 0x169   : > { %1167 = vrot.lane.b32.xlu0 %v4031_v38, %s2926_s19  ;;  %v1639_v24 = vand.u32 4294901760, %v4945_v45  ;;  %v4311_v38 = vld [vmem:[%s2988_s25 + $0x98] sm:$0x3]  ;;  %2632 = vmatprep.subr.bf16.mxu1 %v4928_v43  ;;  %v2633_v62 = vpack.c.bf16 %v1627_v41, %v1620_v29 }
 0x16a   : > { %v1473_v9 = vand.u32 4294901760, %v1472_v46  ;;  %v707_v58 = vpop.permute.xlu1 %706  ;;  %2743 = vmatprep.subr.bf16.mxu0 %v4928_v43  ;;  %v1646_v46 = vand.u32 4294901760, %v4946_v30  ;;  %v1235_v29 = vrot.slane %v4311_v38, 1 }
 0x16b   : > { %v1027_v49 = vpop.permute.xlu0 %1026  ;;  %v2744_v23 = vpack.c.bf16 %v1639_v24, %v1632_v13  ;;  %v1640_v61 = vsub.f32 %v4945_v45, %v1639_v24  ;;  %v723_v12 = vsel %vm362_vm11, %v722_v6, %v707_v58  ;;  %v1634_v13 = vand.u32 4294901760, %v1633_v35  ;;  %v209_v58 = vld [vmem:[%s2988_s25 + $0x130] sm:$0xff]  ;;  %2634 = vmatpush1.bf16.msra.mxu1 %v2633_v62 }
 0x16c   : > { %v4319_v59 = vsel %vm336_vm3, %v1069_v18, %v1027_v49  ;;  %1474 = vmatprep.mubr.f32.mxu1 %v1473_v9  ;;  %1170 = vrot.lane.b32.xlu1 %v4091_v51, %s2927_s7  ;;  %v4327_v56 = vand.u32 4294901760, %v723_v12  ;;  %v1653_v6 = vand.u32 4294901760, %v4948_v26  ;;  %v1234_v18 = vrot.slane %v4282_v27, 1 }
 0x16d   : > { %1062 = vrot.lane.b32.xlu0 %v4054_v54, %s2931_s9  ;;  %v1641_v24 = vand.u32 4294901760, %v1640_v61  ;;  %2745 = vmatpush1.bf16.msra.mxu0 %v2744_v23  ;;  %v1647_v9 = vsub.f32 %v4946_v30, %v1646_v46  ;;  %v1241_v61 = vrot.slane %v209_v58, 1  ;;  %v1668_v27 = vsub.f32 %v4951_v19, %v1667_v47 }
 0x16e   : > { %4947 = vst [vmem:[#allocation6_spill] sm:$0xff] %v4327_v56  ;;  %v4334_v51 = vpop.permute.xlu1 %877  ;;  %v4339_v54 = vsub.f32 %v723_v12, %v4327_v56  ;;  %2635 = vmatprep.subr.bf16.mxu1 %v4928_v43  ;;  %2746 = vmatprep.subr.bf16.mxu0 %v4928_v43  ;;  %v2747_v35 = vpack.c.bf16 %v1653_v6, %v1646_v46  ;;  %v4950_v12 = vld [vmem:[#allocation22_spill] sm:$0xff] }
 0x16f   : > { %v4336_v41 = vpop.permute.xlu0 %813  ;;  %v2636_v49 = vpack.c.bf16 %v1641_v24, %v1634_v13  ;;  %v1648_v33 = vand.u32 4294901760, %v1647_v9  ;;  %v1654_v23 = vsub.f32 %v4948_v26, %v1653_v6  ;;  %v1660_v56 = vand.u32 4294901760, %v4950_v12 }
 0x170   : > { %4949 = vst [vmem:[#allocation8_spill] sm:$0xff] %v4339_v54  ;;  %1066 = vrot.lane.b32.xlu1 %v3926_v8, %s2932_s10  ;;  %v1477_v62 = vand.u32 4294901760, %v4339_v54  ;;  %v1236_v20 = vsel %vm253_vm0, %v1234_v18, %v1235_v29  ;;  %v1243_v18 = vsel %vm253_vm0, %v1241_v61, %v1242_v28  ;;  %v1669_v28 = vand.u32 4294901760, %v1668_v27  ;;  %v4955_v61 = vld [vmem:[#allocation27_spill] sm:$0xff]  ;;  %vm4961_vm0 = vmmov %vm4952_vm8 }
 0x171   : > { %1230 = vrot.lane.b32.xlu0 %v209_v58, %s2920_s28  ;;  %2637 = vmatpush1.bf16.msra.mxu1 %v2636_v49  ;;  %v1655_v46 = vand.u32 4294901760, %v1654_v23  ;;  %v2750_v6 = vpack.c.bf16 %v1667_v47, %v1660_v56  ;;  %v1661_v58 = vsub.f32 %v4950_v12, %v1660_v56  ;;  %v4953_v23 = vld [vmem:[#allocation25_spill] sm:$0xff]  ;;  %v4954_v56 = vld [vmem:[#allocation26_spill] sm:$0xff] }
 0x172   : > { %2748 = vmatpush1.bf16.msra.mxu0 %v2747_v35  ;;  %v4352_v13 = vpop.permute.xlu1 %976  ;;  %v1478_v8 = vsub.f32 %v4339_v54, %v1477_v62  ;;  %2638 = vmatprep.subr.bf16.mxu1 %v4928_v43  ;;  %v1681_v54 = vand.u32 4294901760, %v4954_v56 }
 0x173   : > { %v922_v24 = vpop.permute.xlu0 %921  ;;  %2107 = vmatmul.mubr.f32.gmra.mrb[6].mxu0 %v1477_v62  ;;  %2749 = vmatprep.subr.bf16.mxu0 %v4928_v43  ;;  %v2639_v29 = vpack.c.bf16 %v1655_v46, %v1648_v33  ;;  %v1662_v35 = vand.u32 4294901760, %v1661_v58  ;;  %v1674_v62 = vand.u32 4294901760, %v4953_v23  ;;  %v1688_v33 = vand.u32 4294901760, %v4955_v61  ;;  %v4956_v46 = vld [vmem:[#allocation28_spill] sm:$0xff] }
 0x174   : > { %v955_v9 = vsel %vm4952_vm8, %v4293_v52, %v922_v24  ;;  %1237 = vrot.lane.b32.xlu1 %v1236_v20, %s2918_s26  ;;  %v1479_v49 = vand.u32 4294901760, %v1478_v8  ;;  %v1248_v52 = vrot.slane %v4311_v38, 2  ;;  %v1695_v47 = vand.u32 4294901760, %v4956_v46  ;;  %vm4966_vm8 = vmmov %vm4961_vm0 }
 0x175   : > { %1173 = vrot.lane.b32.xlu0 %v4124_v34, %s2928_s20  ;;  %2640 = vmatpush1.bf16.msra.mxu1 %v2639_v29  ;;  %v2753_v34 = vpack.c.bf16 %v1681_v54, %v1674_v62  ;;  %v1675_v8 = vsub.f32 %v4953_v23, %v1674_v62  ;;  %v1682_v58 = vsub.f32 %v4954_v56, %v1681_v54 }
 0x176   : > { %2751 = vmatpush1.bf16.msra.mxu0 %v2750_v6  ;;  %v4370_v24 = vpop.permute.xlu1 %816  ;;  %1480 = vmatmul.mubr.f32.gmra.mrb[6].mxu1 %v1479_v49  ;;  %v2642_v6 = vpack.c.bf16 %v1669_v28, %v1662_v35  ;;  %v2756_v29 = vpack.c.bf16 %v1695_v47, %v1688_v33  ;;  %v1249_v44 = vsel %vm267_vm1, %v1247_v14, %v1248_v52  ;;  %v2905_v35 = vld [vmem:[%s2988_s25 + $0x230] sm:$0xff]  ;;  %vm4964_vm1 = vcmask 654336  }
 0x177   : > { %v1030_v20 = vpop.permute.xlu0 %1029  ;;  %2641 = vmatprep.subr.bf16.mxu1 %v4928_v43  ;;  %2752 = vmatprep.subr.bf16.mxu0 %v4928_v43  ;;  %v1676_v27 = vand.u32 4294901760, %v1675_v8  ;;  %v1683_v49 = vand.u32 4294901760, %v1682_v58  ;;  %v1689_v54 = vsub.f32 %v4955_v61, %v1688_v33  ;;  %v4958_v8 = vld [vmem:[#allocation31_spill] sm:$0xff] }
 0x178   : > { %v1071_v38 = vsel %vm338_vm4, %v4319_v59, %v1030_v20  ;;  %1244 = vrot.lane.b32.xlu1 %v1243_v18, %s2924_s5  ;;  %v1696_v59 = vsub.f32 %v4956_v46, %v1695_v47  ;;  %v4957_v47 = vld [vmem:[#allocation30_spill] sm:$0xff]  ;;  %v1709_v58 = vand.u32 4294901760, %v4958_v8  ;;  %s4779_s5 = scalar_lea.vmem %s4803_s3, %s2580_s29 }
 0x179   : > { %1176 = vrot.lane.b32.xlu0 %v4158_v31, %s2929_s18  ;;  %2643 = vmatpush1.bf16.msra.mxu1 %v2642_v6  ;;  %v2645_v18 = vpack.c.bf16 %v1683_v49, %v1676_v27  ;;  %v893_v31 = vsel %vm334_vm2, %v2905_v35, %v4058_v3  ;;  %v1690_v14 = vand.u32 4294901760, %v1689_v54  ;;  %v2906_v3 = vld [vmem:[%s4801_s1 + $0xc0] sm:$0xff] }
 0x17a   : > { %2754 = vmatpush1.bf16.msra.mxu0 %v2753_v34  ;;  %v925_v62 = vpop.permute.xlu1 %924  ;;  %2644 = vmatprep.subr.bf16.mxu1 %v4928_v43  ;;  %v1697_v52 = vand.u32 4294901760, %v1696_v59  ;;  %v894_v33 = vsel %vm336_vm3, %v893_v31, %v4109_v40  ;;  %v1702_v34 = vand.u32 4294901760, %v4957_v47  ;;  %v1710_v59 = vsub.f32 %v4958_v8, %v1709_v58 }
 0x17b   : > { %v885_v20 = vpop.permute.xlu0 %884  ;;  %2755 = vmatprep.subr.bf16.mxu0 %v4928_v43  ;;  %v4390_v28 = vsel %vm348_vm9, %v955_v9, %v925_v62  ;;  %v4959_v9 = vld [vmem:[#allocation36_spill] sm:$0xff]  ;;  %v895_v27 = vsel %vm338_vm4, %v894_v33, %v4144_v7 }
 0x17c   : > { %1250 = vrot.lane.b32.xlu1 %v1249_v44, %s2925_s8  ;;  %v4403_v6 = vsub.f32 %v2906_v3, %v4959_v9  ;;  %v2648_v44 = vpack.c.bf16 %v1697_v52, %v1690_v14  ;;  %v1703_v54 = vsub.f32 %v4957_v47, %v1702_v34  ;;  %v896_v62 = vsel %vm340_vm5, %v895_v27, %v4212_v17 }
 0x17d   : > { %1179 = vrot.lane.b32.xlu0 %v4202_v5, %s2930_s6  ;;  %2646 = vmatpush1.bf16.msra.mxu1 %v2645_v18  ;;  %v2759_v5 = vpack.c.bf16 %v1709_v58, %v1702_v34  ;;  %v1711_v35 = vand.u32 4294901760, %v1710_v59 }
 0x17e   : > { %4960 = vst [vmem:[#allocation42_spill] sm:$0xff] %v4403_v6  ;;  %2757 = vmatpush1.bf16.msra.mxu0 %v2756_v29  ;;  %v1033_v40 = vpop.permute.xlu1 %1032  ;;  %2647 = vmatprep.subr.bf16.mxu1 %v4928_v43  ;;  %v897_v29 = vsel %vm342_vm6, %v896_v62, %v4259_v15  ;;  %v1704_v18 = vand.u32 4294901760, %v1703_v54  ;;  %v1716_v17 = vand.u32 4294901760, %v4403_v6  ;;  %v4962_v15 = vmov 0.0  }
 0x17f   : > { %v4407_v49 = vpop.permute.xlu0 %982  ;;  %2758 = vmatprep.subr.bf16.mxu0 %v4928_v43  ;;  %v1072_v7 = vsel %vm340_vm5, %v1071_v38, %v1033_v40  ;;  %v898_v31 = vsel %vm344_vm7, %v897_v29, %v4334_v51 }
 0x180   : > { %1186 = vrot.lane.b32.xlu1 %v4112_v39, %s2932_s10  ;;  %v899_v38 = vsel %vm4961_vm0, %v898_v31, %v885_v20  ;;  %v1717_v33 = vsub.f32 %v4403_v6, %v1716_v17  ;;  %vm4967_vm0 = vmmov %vm4964_vm1 }
 0x181   : > { %1182 = vrot.lane.b32.xlu0 %v4243_v2, %s2931_s9  ;;  %2649 = vmatpush1.bf16.msra.mxu1 %v2648_v44  ;;  %v2651_v2 = vpack.c.bf16 %v1711_v35, %v1704_v18 }
 0x182   : > { %2760 = vmatpush1.bf16.msra.mxu0 %v2759_v5  ;;  %v891_v14 = vpop.permute.xlu1 %890  ;;  %2650 = vmatprep.subr.bf16.mxu1 %v4928_v43  ;;  %v1718_v51 = vand.u32 4294901760, %v1717_v33 }
 0x183   : > { %v820_v52 = vpop.permute.xlu0 %819  ;;  %2276 = vmatprep.subr.mxu0 %v4962_v15  ;;  %v900_v39 = vsel %vm348_vm9, %v899_v38, %v891_v14 }
 0x184   : > { %902 = vst.msk [vmem:[#allocation2 + $0x48] sm:$0xff] %vm350_vm10, %v900_v39  ;;  %v837_v39 = vsel %vm350_vm10, %v4147_v42, %v4187_v1 }
 0x185   : > { %2652 = vmatpush1.bf16.msra.mxu1 %v2651_v2 }
 0x186   : > { %2280 = vmatpush1.msra.mxu0 %v1716_v17  ;;  %v4431_v34 = vpop.permute.xlu1 %986  ;;  %1713 = vmatprep.subr.mxu1 %v4962_v15 }
 0x187   : > { %v4433_v58 = vpop.permute.xlu0 %927  ;;  %2761 = vmatprep.subr.bf16.mxu0 %v4928_v43 }
 0x189   : > { %1719 = vmatpush1.msra.mxu1 %v1718_v51  ;;  %v838_v51 = vsel %vm4964_vm1, %v837_v39, %v4261_v4  ;;  %vm4970_vm1 = vmmov %vm4966_vm8 }
 0x18a   : > { %v1144_v3 = vpop.permute.xlu1 %1143  ;;  %2653 = vmatprep.subr.bf16.mxu1 %v4928_v43 }
 0x18b   : > { %v1036_v27 = vpop.permute.xlu0 %1035  ;;  %v1272_v40 = vld [vmem:[#allocation2 + $0x48] sm:$0xff] }
 0x18c   : > { %v1073_v44 = vsel %vm342_vm6, %v1072_v7, %v1036_v27  ;;  %v1324_v54 = vsel %vm350_vm10, %v1272_v40, 0  ;;  %v1189_v27 = vsel %vm334_vm2, %v3894_v21, %v1144_v3 }
 0x18d   : > { %v4444_v59 = vand.u32 4294901760, %v1324_v54 }
 0x18e   : > { %v4446_v62 = vpop.permute.xlu1 %930 }
 0x18f   : > { %v823_v29 = vpop.permute.xlu0 %822  ;;  %v4449_v18 = vsub.f32 %v1324_v54, %v4444_v59  ;;  %v839_v54 = vsel %vm354_vm12, %v838_v51, %v4336_v41 }
 0x190   : > { %v840_v42 = vsel %vm356_vm13, %v839_v54, %v4370_v24 }
 0x191   : > { %4963 = vst [vmem:[#allocation43_spill] sm:$0xff] %v4449_v18  ;;  %v1486_v31 = vand.u32 4294901760, %v4449_v18  ;;  %v841_v1 = vsel %vm358_vm14, %v840_v42, %v820_v52 }
 0x192   : > { %v1039_v7 = vpop.permute.xlu1 %1038  ;;  %v842_v4 = vsel %vm360_vm15, %v841_v1, %v823_v29 }
 0x193   : > { %v991_v17 = vpop.permute.xlu0 %990  ;;  %v4455_v38 = vsel %vm344_vm7, %v1073_v44, %v1039_v7  ;;  %2114 = vmatprep.mubr.f32.mxu0 %v1486_v31  ;;  %v1487_v14 = vsub.f32 %v4449_v18, %v1486_v31 }
 0x195   : > { %v1488_v33 = vand.u32 4294901760, %v1487_v14 }
 0x196   : > { %v1147_v40 = vpop.permute.xlu1 %1146 }
 0x197   : > { %v4467_v44 = vpop.permute.xlu0 %1088  ;;  %v1190_v31 = vsel %vm336_vm3, %v1189_v27, %v1147_v40  ;;  %1489 = vmatprep.mubr.f32.mxu1 %v1488_v33 }
 0x19a   : > { %v934_v21 = vpop.permute.xlu1 %933 }
 0x19b   : > { %v827_v3 = vpop.permute.xlu0 %826 }
 0x19c   : > { %v843_v14 = vsel %vm362_vm11, %v842_v4, %v827_v3 }
 0x19d   : > { %v4481_v39 = vand.u32 4294901760, %v843_v14 }
 0x19e   : > { %v4483_v33 = vpop.permute.xlu1 %1041 }
 0x19f   : > { %v998_v51 = vpop.permute.xlu0 %997  ;;  %v4486_v27 = vsub.f32 %v843_v14, %v4481_v39 }
 0x1a1   : > { %4965 = vst [vmem:[#allocation44_spill] sm:$0xff] %v4486_v27  ;;  %v1492_v52 = vand.u32 4294901760, %v4486_v27 }
 0x1a2   : > { %v1150_v29 = vpop.permute.xlu1 %1149 }
 0x1a3   : > { %v4491_v40 = vpop.permute.xlu0 %1096  ;;  %2118 = vmatmul.mubr.f32.gmra.mrb[8].mxu0 %v1492_v52  ;;  %v1493_v54 = vsub.f32 %v4486_v27, %v1492_v52  ;;  %v4495_v42 = vsel %vm338_vm4, %v1190_v31, %v1150_v29  ;;  %v2907_v52 = vld [vmem:[%s2988_s25 + $0x240] sm:$0xff] }
 0x1a4   : > { %v1013_v31 = vsel %vm334_vm2, %v2907_v52, %v4284_v48 }
 0x1a5   : > { %v1494_v4 = vand.u32 4294901760, %v1493_v54  ;;  %v1014_v29 = vsel %vm336_vm3, %v1013_v31, %v4352_v13 }
 0x1a6   : > { %v1005_v3 = vpop.permute.xlu1 %1004  ;;  %v1015_v54 = vsel %vm338_vm4, %v1014_v29, %v4407_v49 }
 0x1a7   : > { %v937_v14 = vpop.permute.xlu0 %936  ;;  %1495 = vmatmul.mubr.f32.gmra.mrb[8].mxu1 %v1494_v4  ;;  %v1016_v35 = vsel %vm340_vm5, %v1015_v54, %v4431_v34 }
 0x1a8   : > { %v1017_v2 = vsel %vm342_vm6, %v1016_v35, %v991_v17 }
 0x1a9   : > { %v1018_v5 = vsel %vm344_vm7, %v1017_v2, %v998_v51 }
 0x1aa   : > { %v1103_v41 = vpop.permute.xlu1 %1102  ;;  %v1019_v48 = vsel %vm4966_vm8, %v1018_v5, %v1005_v3  ;;  %v957_v5 = vsel %vm350_vm10, %v4390_v28, %v4433_v58  ;;  %vm4971_vm8 = vmmov %vm4970_vm1 }
 0x1ab   : > { %v4501_v7 = vpop.permute.xlu0 %1044  ;;  %v958_v2 = vsel %vm4967_vm0, %v957_v5, %v4446_v62 }
 0x1ae   : > { %v940_v4 = vpop.permute.xlu1 %939 }
 0x1af   : > { %v4512_v1 = vpop.permute.xlu0 %1152 }
 0x1b2   : > { %v1048_v52 = vpop.permute.xlu1 %1047 }
 0x1b3   : > { %v1011_v13 = vpop.permute.xlu0 %1010 }
 0x1b4   : > { %v1020_v31 = vsel %vm348_vm9, %v1019_v48, %v1011_v13  ;;  %v959_v48 = vsel %vm354_vm12, %v958_v2, %v934_v21 }
 0x1b5   : > { %1022 = vst.msk [vmem:[#allocation2 + $0x58] sm:$0xff] %vm350_vm10, %v1020_v31  ;;  %v960_v31 = vsel %vm356_vm13, %v959_v48, %v937_v14 }
 0x1b6   : > { %v4525_v29 = vpop.permute.xlu1 %1155 }
 0x1b7   : > { %v1107_v24 = vpop.permute.xlu0 %1106 }
 0x1ba   : > { %v1051_v20 = vpop.permute.xlu1 %1050 }
 0x1bb   : > { %v943_v34 = vpop.permute.xlu0 %942 }
 0x1bc   : > { %v1274_v54 = vld [vmem:[#allocation2 + $0x58] sm:$0xff] }
 0x1bd   : > { %v1327_v35 = vsel %vm350_vm10, %v1274_v54, 0  ;;  %v961_v54 = vsel %vm358_vm14, %v960_v31, %v940_v4 }
 0x1be   : > { %v4531_v17 = vand.u32 4294901760, %v1327_v35  ;;  %v4535_v51 = vpop.permute.xlu1 %1158  ;;  %v962_v28 = vsel %vm360_vm15, %v961_v54, %v943_v34 }
 0x1bf   : > { %v1111_v3 = vpop.permute.xlu0 %1110 }
 0x1c0   : > { %v4539_v13 = vsub.f32 %v1327_v35, %v4531_v17 }
 0x1c2   : > { %4968 = vst [vmem:[#allocation9_spill] sm:$0xff] %v4539_v13  ;;  %v1501_v49 = vand.u32 4294901760, %v4539_v13  ;;  %v947_v58 = vpop.permute.xlu1 %946 }
 0x1c3   : > { %v1209_v27 = vpop.permute.xlu0 %1208  ;;  %v963_v62 = vsel %vm362_vm11, %v962_v28, %v947_v58  ;;  %v2908_v58 = vld [vmem:[%s2988_s25 + $0x250] sm:$0xff] }
 0x1c4   : > { %2125 = vmatprep.mubr.f32.mxu0 %v1501_v49  ;;  %v1502_v5 = vsub.f32 %v4539_v13, %v1501_v49  ;;  %v4547_v21 = vand.u32 4294901760, %v963_v62 }
 0x1c6   : > { %v1503_v35 = vand.u32 4294901760, %v1502_v5  ;;  %v1118_v2 = vpop.permute.xlu1 %1117  ;;  %v4550_v14 = vsub.f32 %v963_v62, %v4547_v21  ;;  %v1133_v5 = vsel %vm334_vm2, %v2908_v58, %v4467_v44 }
 0x1c7   : > { %v1054_v18 = vpop.permute.xlu0 %1053  ;;  %v1134_v62 = vsel %vm336_vm3, %v1133_v5, %v4491_v40 }
 0x1c8   : > { %4969 = vst [vmem:[#allocation11_spill] sm:$0xff] %v4550_v14  ;;  %1504 = vmatprep.mubr.f32.mxu1 %v1503_v35  ;;  %v1507_v4 = vand.u32 4294901760, %v4550_v14  ;;  %v1135_v35 = vsel %vm338_vm4, %v1134_v62, %v1103_v41  ;;  %v1075_v41 = vsel %vm4971_vm8, %v4455_v38, %v4483_v33 }
 0x1c9   : > { %v1136_v9 = vsel %vm340_vm5, %v1135_v35, %v1107_v24  ;;  %v1076_v24 = vsel %vm348_vm9, %v1075_v41, %v4501_v7  ;;  %v1253_v41 = vsel %vm334_vm2, %v4141_v50, %v1209_v27 }
 0x1ca   : > { %v1217_v34 = vpop.permute.xlu1 %1216  ;;  %2129 = vmatmul.mubr.f32.gmra.mrb[10].mxu0 %v1507_v4  ;;  %v1508_v31 = vsub.f32 %v4550_v14, %v1507_v4  ;;  %v1137_v47 = vsel %vm342_vm6, %v1136_v9, %v1111_v3  ;;  %v1077_v9 = vsel %vm350_vm10, %v1076_v24, %v1048_v52 }
 0x1cb   : > { %v1162_v48 = vpop.permute.xlu0 %1161  ;;  %v1138_v4 = vsel %vm344_vm7, %v1137_v47, %v1118_v2  ;;  %v1078_v47 = vsel %vm4967_vm0, %v1077_v9, %v1051_v20  ;;  %v1192_v9 = vsel %vm340_vm5, %v4495_v42, %v4512_v1 }
 0x1cc   : > { %v1509_v54 = vand.u32 4294901760, %v1508_v31 }
 0x1ce   : > { %v1125_v28 = vpop.permute.xlu1 %1124  ;;  %1510 = vmatmul.mubr.f32.gmra.mrb[10].mxu1 %v1509_v54 }
 0x1cf   : > { %v1057_v49 = vpop.permute.xlu0 %1056  ;;  %v1139_v31 = vsel %vm4970_vm1, %v1138_v4, %v1125_v28  ;;  %v1079_v28 = vsel %vm354_vm12, %v1078_v47, %v1054_v18  ;;  %v1254_v47 = vsel %vm336_vm3, %v1253_v41, %v1217_v34  ;;  %vm4972_vm3 = vmmov %vm4970_vm1 }
 0x1d2   : > { %v1223_v13 = vpop.permute.xlu1 %1222 }
 0x1d3   : > { %v1165_v6 = vpop.permute.xlu0 %1164 }
 0x1d6   : > { %v1131_v54 = vpop.permute.xlu1 %1130 }
 0x1d7   : > { %v1060_v14 = vpop.permute.xlu0 %1059  ;;  %v1140_v8 = vsel %vm348_vm9, %v1139_v31, %v1131_v54 }
 0x1d8   : > { %1142 = vst.msk [vmem:[#allocation2 + $0x68] sm:$0xff] %vm350_vm10, %v1140_v8  ;;  %v1080_v8 = vsel %vm356_vm13, %v1079_v28, %v1057_v49  ;;  %v1193_v28 = vsel %vm342_vm6, %v1192_v9, %v4525_v29 }
 0x1d9   : > { %v1081_v62 = vsel %vm358_vm14, %v1080_v8, %v1060_v14  ;;  %v1194_v50 = vsel %vm344_vm7, %v1193_v28, %v4535_v51 }
 0x1da   : > { %v1227_v44 = vpop.permute.xlu1 %1226  ;;  %v1195_v42 = vsel %vm4970_vm1, %v1194_v50, %v1162_v48  ;;  %v4974_v50 = vld [vmem:[#allocation39_spill] sm:$0xff] }
 0x1db   : > { %v1168_v40 = vpop.permute.xlu0 %1167  ;;  %v1196_v29 = vsel %vm348_vm9, %v1195_v42, %v1165_v6  ;;  %v4975_v42 = vld [vmem:[#allocation37_spill] sm:$0xff] }
 0x1de   : > { %v1171_v3 = vpop.permute.xlu1 %1170 }
 0x1df   : > { %v1063_v2 = vpop.permute.xlu0 %1062  ;;  %v1276_v58 = vld [vmem:[#allocation2 + $0x68] sm:$0xff] }
 0x1e0   : > { %v1330_v5 = vsel %vm350_vm10, %v1276_v58, 0  ;;  %v1082_v38 = vsel %vm360_vm15, %v1081_v62, %v1063_v2  ;;  %v1255_v58 = vsel %vm338_vm4, %v1254_v47, %v1223_v13  ;;  %vm4973_vm4 = vmmov %vm4967_vm0 }
 0x1e1   : > { %v4577_v35 = vand.u32 4294901760, %v1330_v5  ;;  %v1256_v27 = vsel %vm340_vm5, %v1255_v58, %v1227_v44 }
 0x1e2   : > { %v1067_v7 = vpop.permute.xlu1 %1066 }
 0x1e3   : > { %v1231_v33 = vpop.permute.xlu0 %1230  ;;  %v1083_v52 = vsel %vm362_vm11, %v1082_v38, %v1067_v7  ;;  %v4582_v20 = vsub.f32 %v1330_v5, %v4577_v35  ;;  %v1197_v38 = vsel %vm350_vm10, %v1196_v29, %v1168_v40  ;;  %v4978_v29 = vpack.c.bf16 %v2983_v11, %v2981_v10  ;;  %v4983_v10 = vld [vmem:[#allocation7_spill] sm:$0xff]  ;;  %v4984_v11 = vld [vmem:[#allocation5_spill] sm:$0xff] }
 0x1e4   : > { %v4584_v4 = vand.u32 4294901760, %v1083_v52  ;;  %v1257_v1 = vsel %vm342_vm6, %v1256_v27, %v1231_v33  ;;  %v1198_v51 = vsel %vm4973_vm4, %v1197_v38, %v1171_v3  ;;  %v4980_v38 = vld [vmem:[#allocation48_spill] sm:$0xff] }
 0x1e5   : > { %v1516_v18 = vand.u32 4294901760, %v4582_v20 }
 0x1e6   : > { %v1238_v49 = vpop.permute.xlu1 %1237  ;;  %v4588_v54 = vsub.f32 %v1083_v52, %v4584_v4 }
 0x1e7   : > { %v1174_v31 = vpop.permute.xlu0 %1173  ;;  %2136 = vmatprep.mubr.f32.mxu0 %v1516_v18  ;;  %v1517_v14 = vsub.f32 %v4582_v20, %v1516_v18  ;;  %v1258_v13 = vsel %vm344_vm7, %v1257_v1, %v1238_v49  ;;  %v4976_v1 = vld [vmem:[#allocation3_spill] sm:$0xff] }
 0x1e8   : > { %v1522_v24 = vand.u32 4294901760, %v4588_v54  ;;  %v1199_v48 = vsel %vm354_vm12, %v1198_v51, %v1174_v31  ;;  %v4986_v51 = vpack.c.bf16 %v4931_v53, %v4930_v60  ;;  %v4989_v60 = vld [vmem:[#allocation14_spill] sm:$0xff]  ;;  %v4990_v53 = vpack.c.bf16 %v4938_v63, %v4937_v0  ;;  %v4993_v0 = vld [vmem:[#allocation24_spill] sm:$0xff] }
 0x1e9   : > { %v1518_v2 = vand.u32 4294901760, %v1517_v14  ;;  %v4994_v63 = vpack.c.bf16 %v4945_v45, %v4944_v16  ;;  %v4998_v16 = vld [vmem:[#allocation40_spill] sm:$0xff]  ;;  %v4999_v45 = vpack.c.bf16 %v4951_v19, %v4950_v12  ;;  %v5003_v19 = vpack.c.bf16 %v4956_v46, %v4955_v61  ;;  %v5004_v12 = vld [vmem:[#allocation35_spill] sm:$0xff]  ;;  %v5009_v61 = vld [vmem:[#allocation42_spill] sm:$0xff] }
 0x1ea   : > { %v1245_v8 = vpop.permute.xlu1 %1244  ;;  %2140 = vmatmul.mubr.f32.gmra.mrb[12].mxu0 %v1522_v24  ;;  %v1523_v62 = vsub.f32 %v4588_v54, %v1522_v24  ;;  %v5010_v46 = vld [vmem:[#allocation38_spill] sm:$0xff] }
 0x1eb   : > { %v1177_v5 = vpop.permute.xlu0 %1176  ;;  %1519 = vmatprep.mubr.f32.mxu1 %v1518_v2  ;;  %v1259_v7 = vsel %vm4972_vm3, %v1258_v13, %v1245_v8  ;;  %v4979_v13 = vld [vmem:[#allocation4_spill] sm:$0xff] }
 0x1ec   : > { %v1524_v34 = vand.u32 4294901760, %v1523_v62  ;;  %v1200_v33 = vsel %vm356_vm13, %v1199_v48, %v1177_v5  ;;  %v5000_v48 = vld [vmem:[#allocation33_spill] sm:$0xff] }
 0x1ee   : > { %v1251_v52 = vpop.permute.xlu1 %1250  ;;  %1525 = vmatmul.mubr.f32.gmra.mrb[12].mxu1 %v1524_v34  ;;  %v4977_v34 = vld [vmem:[#allocation46_spill] sm:$0xff] }
 0x1ef   : > { %v1180_v18 = vpop.permute.xlu0 %1179  ;;  %v1260_v44 = vsel %vm348_vm9, %v1259_v7, %v1251_v52  ;;  %v4981_v7 = vld [vmem:[#allocation50_spill] sm:$0xff]  ;;  %v4982_v52 = vpack.c.bf16 %v4927_v55, %v3007_v22  ;;  %v4988_v55 = vpack.c.bf16 %v4936_v25, %v4935_v32  ;;  %v4991_v32 = vld [vmem:[#allocation20_spill] sm:$0xff]  ;;  %v4992_v25 = vpack.c.bf16 %v4943_v37, %v4942_v36  ;;  %v4995_v36 = vld [vmem:[#allocation29_spill] sm:$0xff] }
 0x1f0   : > { %1262 = vst.msk [vmem:[#allocation2 + $0x78] sm:$0xff] %vm350_vm10, %v1260_v44  ;;  %v1201_v6 = vsel %vm358_vm14, %v1200_v33, %v1180_v18  ;;  %v4985_v18 = vld [vmem:[#allocation6_spill] sm:$0xff]  ;;  %v4996_v37 = vpack.c.bf16 %v4948_v26, %v4946_v30  ;;  %v4997_v44 = vld [vmem:[#allocation32_spill] sm:$0xff]  ;;  %v5001_v26 = vpack.c.bf16 %v4954_v56, %v4953_v23  ;;  %v5005_v33 = vld [vmem:[#allocation31_spill] sm:$0xff] }
 0x1f1   : > { %v4987_v22 = vld [vmem:[#allocation10_spill] sm:$0xff]  ;;  %v5008_v56 = vld [vmem:[#allocation36_spill] sm:$0xff] }
 0x1f2   : > { %v1187_v14 = vpop.permute.xlu1 %1186  ;;  %v5002_v30 = vld [vmem:[#allocation34_spill] sm:$0xff] }
 0x1f3   : > { %v1183_v49 = vpop.permute.xlu0 %1182 }
 0x1f4   : > { %v1202_v40 = vsel %vm360_vm15, %v1201_v6, %v1183_v49  ;;  %v5006_v6 = vld [vmem:[#allocation30_spill] sm:$0xff]  ;;  %v5012_v49 = vld [vmem:[#allocation47_spill] sm:$0xff] }
 0x1f5   : > { %v1203_v41 = vsel %vm362_vm11, %v1202_v40, %v1187_v14  ;;  %v5007_v23 = vpack.c.bf16 %v5005_v33, %v5006_v6  ;;  %v5013_v14 = vld [vmem:[#allocation49_spill] sm:$0xff]  ;;  %v5016_v40 = vld [vmem:[#allocation8_spill] sm:$0xff] }
 0x1f6   : > { %v4619_v24 = vand.u32 4294901760, %v1203_v41 }
 0x1f7   : > { %v1278_v9 = vld [vmem:[#allocation2 + $0x78] sm:$0xff] }
 0x1f8   : > { %v4622_v3 = vsub.f32 %v1203_v41, %v4619_v24  ;;  %v1333_v31 = vsel %vm350_vm10, %v1278_v9, 0  ;;  %v5017_v41 = vld [vmem:[#allocation43_spill] sm:$0xff]  ;;  %v5018_v9 = vld [vmem:[#allocation44_spill] sm:$0xff] }
 0x1f9   : > { %v4625_v47 = vand.u32 4294901760, %v1333_v31 }
 0x1fa   : > { %v1537_v2 = vand.u32 4294901760, %v4622_v3 }
 0x1fb   : > { %v4629_v28 = vsub.f32 %v1333_v31, %v4625_v47  ;;  %v5019_v31 = vld [vmem:[#allocation9_spill] sm:$0xff] }
 0x1fc   : > { %v1538_v8 = vsub.f32 %v4622_v3, %v1537_v2 }
 0x1fd   : > { %v1531_v58 = vand.u32 4294901760, %v4629_v28 }
 0x1fe   : > { %v1539_v27 = vand.u32 4294901760, %v1538_v8 }
 0x1ff   : > { %2147 = vmatprep.mubr.f32.mxu0 %v1531_v58  ;;  %v1532_v5 = vsub.f32 %v4629_v28, %v1531_v58 }
 0x200   : > { %2151 = vmatmul.mubr.f32.gmra.mrb[14].mxu0 %v1537_v2  ;;  %v5020_v2 = vld [vmem:[#allocation11_spill] sm:$0xff] }
 0x201   : > { %v1533_v62 = vand.u32 4294901760, %v1532_v5  ;;  %2296 = vmatprep.mubr.f32.mxu0 %v4974_v50 }
 0x203   : > { %1534 = vmatprep.mubr.f32.mxu1 %v1533_v62 }
 0x204   : > { %1540 = vmatmul.mubr.f32.gmra.mrb[14].mxu1 %v1539_v27  ;;  %2298 = vmatmul.mubr.f32.vlgmr.msra.gmra.mrb[0].mxu0 %v4975_v42 }
 0x205   : > { %2763 = vmatpush1.bf16.msra.mxu0 %v4976_v1  ;;  %1735 = vmatprep.mubr.f32.mxu1 %v4974_v50 }
 0x206   : > { %2303 = vmatprep.mubr.f32.mxu0 %v3836_v57  ;;  %2764 = vmatprep.subr.bf16.mxu0 %v4928_v43 }
 0x208   : > { %1737 = vmatmul.mubr.f32.vlgmr.msra.gmra.mrb[0].mxu1 %v4975_v42  ;;  %2305 = vmatmul.mubr.f32.gmra.mrb[2].mxu0 %v4977_v34 }
 0x209   : > { %2655 = vmatpush1.bf16.msra.mxu1 %v4978_v29  ;;  %2766 = vmatpush1.bf16.msra.mxu0 %v4979_v13 }
 0x20a   : > { %1742 = vmatprep.mubr.f32.mxu1 %v3836_v57  ;;  %2310 = vmatprep.mubr.f32.mxu0 %v4980_v38 }
 0x20b   : > { %2656 = vmatprep.subr.bf16.mxu1 %v4928_v43  ;;  %2767 = vmatprep.subr.bf16.mxu0 %v4928_v43 }
 0x20c   : > { %1744 = vmatmul.mubr.f32.gmra.mrb[2].mxu1 %v4977_v34  ;;  %2312 = vmatmul.mubr.f32.gmra.mrb[4].mxu0 %v4981_v7 }
 0x20d   : > { %2658 = vmatpush1.bf16.msra.mxu1 %v4982_v52  ;;  %2769 = vmatpush1.bf16.msra.mxu0 %v4983_v10 }
 0x20e   : > { %1749 = vmatprep.mubr.f32.mxu1 %v4980_v38  ;;  %2317 = vmatprep.mubr.f32.mxu0 %v4984_v11 }
 0x20f   : > { %2659 = vmatprep.subr.bf16.mxu1 %v4928_v43  ;;  %2770 = vmatprep.subr.bf16.mxu0 %v4928_v43 }
 0x210   : > { %1751 = vmatmul.mubr.f32.gmra.mrb[4].mxu1 %v4981_v7  ;;  %2319 = vmatmul.mubr.f32.gmra.mrb[6].mxu0 %v4985_v18 }
 0x211   : > { %2661 = vmatpush1.bf16.msra.mxu1 %v4986_v51  ;;  %2772 = vmatpush1.bf16.msra.mxu0 %v4987_v22 }
 0x212   : > { %1756 = vmatprep.mubr.f32.mxu1 %v4984_v11  ;;  %2324 = vmatprep.mubr.f32.mxu0 %v4444_v59 }
 0x213   : > { %2662 = vmatprep.subr.bf16.mxu1 %v4928_v43  ;;  %2773 = vmatprep.subr.bf16.mxu0 %v4928_v43 }
 0x214   : > { %1758 = vmatmul.mubr.f32.gmra.mrb[6].mxu1 %v4985_v18  ;;  %2326 = vmatmul.mubr.f32.gmra.mrb[8].mxu0 %v4481_v39 }
 0x215   : > { %2664 = vmatpush1.bf16.msra.mxu1 %v4988_v55  ;;  %2775 = vmatpush1.bf16.msra.mxu0 %v4989_v60 }
 0x216   : > { %1763 = vmatprep.mubr.f32.mxu1 %v4444_v59  ;;  %2331 = vmatprep.mubr.f32.mxu0 %v4531_v17 }
 0x217   : > { %2665 = vmatprep.subr.bf16.mxu1 %v4928_v43  ;;  %2776 = vmatprep.subr.bf16.mxu0 %v4928_v43 }
 0x218   : > { %1765 = vmatmul.mubr.f32.gmra.mrb[8].mxu1 %v4481_v39  ;;  %2333 = vmatmul.mubr.f32.gmra.mrb[10].mxu0 %v4547_v21 }
 0x219   : > { %2667 = vmatpush1.bf16.msra.mxu1 %v4990_v53  ;;  %2778 = vmatpush1.bf16.msra.mxu0 %v4991_v32 }
 0x21a   : > { %1770 = vmatprep.mubr.f32.mxu1 %v4531_v17  ;;  %2338 = vmatprep.mubr.f32.mxu0 %v4577_v35 }
 0x21b   : > { %2668 = vmatprep.subr.bf16.mxu1 %v4928_v43  ;;  %2779 = vmatprep.subr.bf16.mxu0 %v4928_v43 }
 0x21c   : > { %1772 = vmatmul.mubr.f32.gmra.mrb[10].mxu1 %v4547_v21  ;;  %2340 = vmatmul.mubr.f32.gmra.mrb[12].mxu0 %v4584_v4 }
 0x21d   : > { %2670 = vmatpush1.bf16.msra.mxu1 %v4992_v25  ;;  %2781 = vmatpush1.bf16.msra.mxu0 %v4993_v0 }
 0x21e   : > { %1777 = vmatprep.mubr.f32.mxu1 %v4577_v35  ;;  %2345 = vmatprep.mubr.f32.mxu0 %v4625_v47 }
 0x21f   : > { %2671 = vmatprep.subr.bf16.mxu1 %v4928_v43  ;;  %2782 = vmatprep.subr.bf16.mxu0 %v4928_v43 }
 0x220   : > { %1779 = vmatmul.mubr.f32.gmra.mrb[12].mxu1 %v4584_v4  ;;  %2347 = vmatmul.mubr.f32.gmra.mrb[14].mxu0 %v4619_v24 }
 0x221   : > { %2673 = vmatpush1.bf16.msra.mxu1 %v4994_v63  ;;  %2784 = vmatpush1.bf16.msra.mxu0 %v4995_v36 }
 0x222   : > { %1784 = vmatprep.mubr.f32.mxu1 %v4625_v47  ;;  %2442 = vmatprep.mubr.f32.mxu0 %v4974_v50 }
 0x223   : > { %2674 = vmatprep.subr.bf16.mxu1 %v4928_v43  ;;  %2785 = vmatprep.subr.bf16.mxu0 %v4928_v43 }
 0x224   : > { %1786 = vmatmul.mubr.f32.gmra.mrb[14].mxu1 %v4619_v24 }
 0x225   : > { %2676 = vmatpush1.bf16.msra.mxu1 %v4996_v37  ;;  %2787 = vmatpush1.bf16.msra.mxu0 %v4997_v44 }
 0x226   : > { %1907 = vmatprep.mubr.f32.mxu1 %v4998_v16  ;;  %2677 = vmatprep.subr.bf16.mxu1 %v4928_v43 }
 0x227   : > { %2788 = vmatprep.subr.bf16.mxu0 %v4928_v43 }
 0x229   : > { %2679 = vmatpush1.bf16.msra.mxu1 %v4999_v45  ;;  %2790 = vmatpush1.bf16.msra.mxu0 %v5000_v48 }
 0x22a   : > { %2680 = vmatprep.subr.bf16.mxu1 %v4928_v43  ;;  %2791 = vmatprep.subr.bf16.mxu0 %v4928_v43 }
 0x22d   : > { %2682 = vmatpush1.bf16.msra.mxu1 %v5001_v26  ;;  %2793 = vmatpush1.bf16.msra.mxu0 %v5002_v30 }
 0x22e   : > { %2683 = vmatprep.subr.bf16.mxu1 %v4928_v43  ;;  %2794 = vmatprep.subr.bf16.mxu0 %v4928_v43 }
 0x231   : > { %2685 = vmatpush1.bf16.msra.mxu1 %v5003_v19  ;;  %2796 = vmatpush1.bf16.msra.mxu0 %v5004_v12 }
 0x232   : > { %2686 = vmatprep.subr.bf16.mxu1 %v4928_v43  ;;  %2424 = vmatprep.subr.mxu0 %v4962_v15  ;;  %v5011_v43 = vld [vmem:[#allocation45_spill] sm:$0xff] }
 0x235   : > { %2688 = vmatpush1.bf16.msra.mxu1 %v5007_v23  ;;  %2426 = vmatpush1.msra.mxu0 %v5008_v56 }
 0x236   : > { %2444 = vmatmul.mubr.f32.vlgmr.msra.gmra.mrb[0].mxu0 %v4975_v42  ;;  %1887 = vmatprep.subr.mxu1 %v4962_v15  ;;  %v5014_v15 = vld [vmem:[#allocation51_spill] sm:$0xff] }
 0x237   : > { %2449 = vmatprep.mubr.f32.mxu0 %v3836_v57  ;;  %v5015_v57 = vld [vmem:[#allocation41_spill] sm:$0xff] }
 0x239   : > { %1890 = vmatpush1.msra.mxu1 %v5009_v61 }
 0x23a   : > { %1910 = vmatmul.mubr.f32.vlgmr.msra.gmra.mrb[0].mxu1 %v5010_v46  ;;  %2451 = vmatmul.mubr.f32.gmra.mrb[2].mxu0 %v4977_v34 }
 0x23b   : > { %1916 = vmatprep.mubr.f32.mxu1 %v5011_v43  ;;  %2456 = vmatprep.mubr.f32.mxu0 %v4980_v38 }
 0x23e   : > { %1919 = vmatmul.mubr.f32.gmra.mrb[2].mxu1 %v5012_v49  ;;  %2458 = vmatmul.mubr.f32.gmra.mrb[4].mxu0 %v4981_v7 }
 0x23f   : > { %1925 = vmatprep.mubr.f32.mxu1 %v5013_v14  ;;  %2463 = vmatprep.mubr.f32.mxu0 %v4984_v11 }
 0x242   : > { %1928 = vmatmul.mubr.f32.gmra.mrb[4].mxu1 %v5014_v15  ;;  %2465 = vmatmul.mubr.f32.gmra.mrb[6].mxu0 %v4985_v18 }
 0x243   : > { %1934 = vmatprep.mubr.f32.mxu1 %v5015_v57  ;;  %2470 = vmatprep.mubr.f32.mxu0 %v4444_v59 }
 0x246   : > { %1937 = vmatmul.mubr.f32.gmra.mrb[6].mxu1 %v5016_v40  ;;  %2472 = vmatmul.mubr.f32.gmra.mrb[8].mxu0 %v4481_v39 }
 0x247   : > { %1943 = vmatprep.mubr.f32.mxu1 %v5017_v41  ;;  %2477 = vmatprep.mubr.f32.mxu0 %v4531_v17  ;;  %v2577_v17 = vld [vmem:[%s4802_s2] ss:$0 sm:$0xff] }
 0x24a   : > { %1946 = vmatmul.mubr.f32.gmra.mrb[8].mxu1 %v5018_v9  ;;  %2479 = vmatmul.mubr.f32.gmra.mrb[10].mxu0 %v4547_v21 }
 0x24b   : > { %1952 = vmatprep.mubr.f32.mxu1 %v5019_v31  ;;  %2484 = vmatprep.mubr.f32.mxu0 %v4577_v35 }
 0x24e   : > { %1955 = vmatmul.mubr.f32.gmra.mrb[10].mxu1 %v5020_v2  ;;  %2486 = vmatmul.mubr.f32.gmra.mrb[12].mxu0 %v4584_v4 }
 0x24f   : > { %1961 = vmatprep.mubr.f32.mxu1 %v4582_v20  ;;  %2491 = vmatprep.mubr.f32.mxu0 %v4625_v47 }
 0x252   : > { %1964 = vmatmul.mubr.f32.gmra.mrb[12].mxu1 %v4588_v54  ;;  %2493 = vmatmul.mubr.f32.gmra.mrb[14].mxu0 %v4619_v24 }
 0x253   : > { %1970 = vmatprep.mubr.f32.mxu1 %v4629_v28 }
 0x256   : > { %1973 = vmatmul.mubr.f32.gmra.mrb[14].mxu1 %v4622_v3 }
 0x309   : > { %v2445_v59 = vpop.f32.mrb[0].mxu0 }
 0x30a   : > { %v2447_v39 = vpop.f32.mrb[1].mxu0 }
 0x30d   : > { %v1911_v21 = vpop.f32.mrb[0].mxu1  ;;  %v2452_v35 = vpop.f32.mrb[2].mxu0 }
 0x30e   : > { %v2797_v20 = vadd.f32 %v2577_v17, %v1911_v21  ;;  %v1913_v4 = vpop.f32.mrb[1].mxu1  ;;  %v2454_v47 = vpop.f32.mrb[3].mxu0 }
 0x310   : > { %v2798_v58 = vadd.f32 %v2797_v20, %v2445_v59 }
 0x311   : > { %v1920_v54 = vpop.f32.mrb[2].mxu1  ;;  %v2459_v24 = vpop.f32.mrb[4].mxu0 }
 0x312   : > { %v2498_v3 = vmax.f32 %v2798_v58, 0.0  ;;  %v2799_v28 = vadd.f32 %v2577_v17, %v1920_v54  ;;  %v1922_v8 = vpop.f32.mrb[3].mxu1  ;;  %v2461_v5 = vpop.f32.mrb[5].mxu0 }
 0x314   : > { %2506 = vst.msk [vmem:[%s4779_s5] sm:$0xff] %vm334_vm2, %v2498_v3  ;;  %v2800_v62 = vadd.f32 %v2799_v28, %v2452_v35 }
 0x315   : > { %v1929_v50 = vpop.f32.mrb[4].mxu1  ;;  %v2466_v27 = vpop.f32.mrb[6].mxu0 }
 0x316   : > { %v2499_v42 = vmax.f32 %v2800_v62, 0.0  ;;  %v2801_v1 = vadd.f32 %v2577_v17, %v1929_v50  ;;  %v1931_v34 = vpop.f32.mrb[5].mxu1  ;;  %v2468_v29 = vpop.f32.mrb[7].mxu0 }
 0x318   : > { %2507 = vst.msk [vmem:[%s4779_s5 + $0x8] sm:$0xff] %vm334_vm2, %v2499_v42  ;;  %v2802_v13 = vadd.f32 %v2801_v1, %v2459_v24 }
 0x319   : > { %v1938_v38 = vpop.f32.mrb[6].mxu1  ;;  %v2473_v7 = vpop.f32.mrb[8].mxu0 }
 0x31a   : > { %v2500_v52 = vmax.f32 %v2802_v13, 0.0  ;;  %v2803_v10 = vadd.f32 %v2577_v17, %v1938_v38  ;;  %v1940_v11 = vpop.f32.mrb[7].mxu1  ;;  %v2475_v18 = vpop.f32.mrb[9].mxu0 }
 0x31c   : > { %2508 = vst.msk [vmem:[%s4779_s5 + $0x10] sm:$0xff] %vm334_vm2, %v2500_v52  ;;  %v2804_v51 = vadd.f32 %v2803_v10, %v2466_v27 }
 0x31d   : > { %v1947_v22 = vpop.f32.mrb[8].mxu1  ;;  %v2480_v55 = vpop.f32.mrb[10].mxu0 }
 0x31e   : > { %v2501_v60 = vmax.f32 %v2804_v51, 0.0  ;;  %v2805_v53 = vadd.f32 %v2577_v17, %v1947_v22  ;;  %v1949_v32 = vpop.f32.mrb[9].mxu1  ;;  %v2482_v25 = vpop.f32.mrb[11].mxu0 }
 0x320   : > { %2509 = vst.msk [vmem:[%s4779_s5 + $0x18] sm:$0xff] %vm334_vm2, %v2501_v60  ;;  %v2806_v0 = vadd.f32 %v2805_v53, %v2473_v7 }
 0x321   : > { %v1956_v63 = vpop.f32.mrb[10].mxu1  ;;  %v2487_v36 = vpop.f32.mrb[12].mxu0 }
 0x322   : > { %v2502_v37 = vmax.f32 %v2806_v0, 0.0  ;;  %v2807_v44 = vadd.f32 %v2577_v17, %v1956_v63  ;;  %v1958_v16 = vpop.f32.mrb[11].mxu1  ;;  %v2489_v45 = vpop.f32.mrb[13].mxu0 }
 0x324   : > { %2510 = vst.msk [vmem:[%s4779_s5 + $0x20] sm:$0xff] %vm334_vm2, %v2502_v37  ;;  %v2808_v48 = vadd.f32 %v2807_v44, %v2480_v55 }
 0x325   : > { %v1965_v26 = vpop.f32.mrb[12].mxu1  ;;  %v2494_v30 = vpop.f32.mrb[14].mxu0 }
 0x326   : > { %v2503_v19 = vmax.f32 %v2808_v48, 0.0  ;;  %v2809_v12 = vadd.f32 %v2577_v17, %v1965_v26  ;;  %v1967_v33 = vpop.f32.mrb[13].mxu1  ;;  %v2496_v6 = vpop.f32.mrb[15].mxu0 }
 0x328   : > { %2511 = vst.msk [vmem:[%s4779_s5 + $0x28] sm:$0xff] %vm334_vm2, %v2503_v19  ;;  %v2810_v23 = vadd.f32 %v2809_v12, %v2487_v36 }
 0x329   : > { %v1974_v56 = vpop.f32.mrb[14].mxu1 }
 0x32a   : > { %v2504_v61 = vmax.f32 %v2810_v23, 0.0  ;;  %v2811_v46 = vadd.f32 %v2577_v17, %v1974_v56  ;;  %v1976_v43 = vpop.f32.mrb[15].mxu1 }
 0x32c   : > { %2512 = vst.msk [vmem:[%s4779_s5 + $0x30] sm:$0xff] %vm334_vm2, %v2504_v61  ;;  %v2812_v49 = vadd.f32 %v2811_v46, %v2494_v30 }
 0x32e   : > { %v2505_v14 = vmax.f32 %v2812_v49, 0.0 }
 0x330   : > { %2513 = vst.msk [vmem:[%s4779_s5 + $0x38] sm:$0xff] %vm334_vm2, %v2505_v14 }
 0x331 PF: > { %s13_s12 = sadd.s32 1, %s2915_s12  }
 0x332   : > { %p10_p4 = scmp.ge.s32.totalorder %s13_s12, 4  }
 0x334   :  { %12 = sbr.rel (!%p10_p4) target bundleno = 1 (0x1), region = 62 }

// kernel: h_analysis_transform_forward.5
= control target key start
LH: loop header
LB: loop body
LE: loop exit
PB: predicated region body
PF: predicated region fallthrough
CT: control target
= control target key end

     0   :  { %8 = vsyncpa [#allocation4], 0  ;;  %s3121_s0 = inlined_call_operand.vmem [shape: f32[2,24,6,8], index: 0, kind: input, shape index: {}]   ;;  %s3122_s1 = inlined_call_operand.vmem [shape: f32[200,8], index: 1, kind: input, shape index: {}]   ;;  %s3123_s2 = inlined_call_operand.vmem [shape: f32[1,8], index: 2, kind: input, shape index: {}]   ;;  %s3124_s3 = inlined_call_operand.hbm [shape: f32[2,16,8], index: 3, kind: output, shape index: {}]  }
   0x1   :  { %10 = vsyncpa [#allocation4 + $0x1], 0  ;;  %s2008_s12 = smov 0   ;;  %s2010_s13 = smov 0  }
   0x2   :  { %s2012_s14 = smov 0   ;;  %s2014_s15 = smov 0  }
   0x3 LB: > { %s2029_s16 = sadd.s32 4294967295, %s1967_s15   ;;  %s1598_s17 = sadd.s32 4294967294, %s1967_s15   ;;  %s1967_s15 = sphi %s2014_s15, %s3311_s15   ;;  %s1963_s14 = sphi %s2012_s14, %s3310_s14   ;;  %s1959_s13 = sphi %s2010_s13, %s3309_s13   ;;  %s1955_s12 = sphi %s2008_s12, %s3308_s12  }
   0x4   : > { %s2033_s18 = sadd.s32 1, %s1967_s15   ;;  %s91_s19 = sadd.s32 1, %s1963_s14 }
   0x5   : > { %s88_s20 = ssub.s32 %s1967_s15, %s2033_s18  ;;  %p101_p0 = scmp.ne.s32.totalorder %s1963_s14, %s1959_s13 }
   0x6   : > { %p89_p1 = scmp.eq.s32.totalorder %s88_s20, 0  ;;  %p102_p2 = scmp.eq.s32.totalorder %s2029_s16, 1 }
   0x7   : > { %p107_p3 = scmp.ne.s32.totalorder %s1959_s13, %s1955_s12  ;;  %p108_p4 = scmp.eq.s32.totalorder %s1598_s17, 1 }
   0x8   : > { %s2044_s21 = scalar_select %p89_p1, %s1963_s14, %s91_s19  }
   0x9   : > { %p2046_p5 = por %p102_p2, %p101_p0  ;;  %p2050_p6 = por %p108_p4, %p107_p3 }
   0xa   : > { %p1601_p7 = scmp.ge.s32.totalorder %s1967_s15, 1  ;;  %p140_p8 = scmp.lt.s32.totalorder %s1967_s15, 3 }
   0xc   : > { %p141_p9 = pnand %p1601_p7, %p140_p8 }
   0xe   : > { %144 = sbr.rel (%p141_p9) target bundleno = 633 (0x279), region = 32 }
  0x15   : > { %p164_p10 = scmp.lt.s32.totalorder %s2029_s16, 1  ;;  %s1969_s29 = smov 8   ;;  %v655_v24 = vld [vmem:[%s3122_s1] sm:$0xff]  ;;  %v656_v25 = vld [vmem:[%s3122_s1 + $0x8] sm:$0xff]  ;;  %v3131_v32 = vmov 0.0|0.0   ;;  %v657_v33 = vld [vmem:[%s3122_s1 + $0x10] sm:$0xff] }
  0x16   : > { %s1970_s30 = smov 24   ;;  %s1971_s4 = smov 16   ;;  %v694_v26 = vand.u32 4294901760, %v655_v24  ;;  %v697_v27 = vand.u32 4294901760, %v656_v25  ;;  %1719 = vmatprep.subr.bf16.mxu0 %v3131_v32  ;;  %1611 = vmatprep.subr.bf16.mxu1 %v3131_v32  ;;  %v658_v34 = vld [vmem:[%s3122_s1 + $0x18] sm:$0xff]  ;;  %v700_v35 = vand.u32 4294901760, %v657_v33 }
  0x17   : > { %s165_s24 = scalar_select %p164_p10, %s2029_s16, 1  ;;  %v703_v36 = vand.u32 4294901760, %v658_v34  ;;  %v659_v42 = vld [vmem:[%s3122_s1 + $0x20] sm:$0xff]  ;;  %v660_v43 = vld [vmem:[%s3122_s1 + $0x28] sm:$0xff]  ;;  %v661_v50 = vld [vmem:[%s3122_s1 + $0x30] sm:$0xff]  ;;  %vm252_vm0 = vcmask 64512  }
  0x18   : > { %s1972_s5 = smov 32   ;;  %s1973_s6 = smov 40   ;;  %v2149_v29 = vpack.c.bf16 %v697_v27, %v694_v26  ;;  %v2151_v30 = vsub.f32 %v655_v24, %v694_v26  ;;  %v2153_v31 = vsub.f32 %v656_v25, %v697_v27  ;;  %v2174_v39 = vsub.f32 %v657_v33, %v700_v35  ;;  %v662_v51 = vld [vmem:[%s3122_s1 + $0x38] sm:$0xff]  ;;  %v663_v59 = vld [vmem:[%s3122_s1 + $0x40] sm:$0xff]  ;;  %v664_v60 = vld [vmem:[%s3122_s1 + $0x48] sm:$0xff] }
  0x19   : > { %s1847_s25 = smul.u32 192, %s165_s24  ;;  %s1974_s7 = smov 48   ;;  %v2172_v38 = vpack.c.bf16 %v703_v36, %v700_v35  ;;  %v2176_v40 = vsub.f32 %v658_v34, %v703_v36  ;;  %v706_v44 = vand.u32 4294901760, %v659_v42  ;;  %v709_v45 = vand.u32 4294901760, %v660_v43  ;;  %v668_v24 = vld [vmem:[%s3122_s1 + $0x68] sm:$0xff]  ;;  %v669_v36 = vld [vmem:[%s3122_s1 + $0x70] sm:$0xff] }
  0x1a   : > { %s1975_s8 = smov 56   ;;  %s1976_s9 = smov 64   ;;  %3182 = vst [vmem:[#allocation7_spill] sm:$0xff] %v2149_v29  ;;  %1721 = vmatpush1.bf16.msra.mxu0 %v2149_v29  ;;  %1613 = vmatpush1.bf16.msra.mxu1 %v2149_v29  ;;  %v712_v52 = vand.u32 4294901760, %v661_v50  ;;  %v715_v53 = vand.u32 4294901760, %v662_v51  ;;  %v718_v61 = vand.u32 4294901760, %v663_v59 }
  0x1b   : > { %s2061_s28 = scalar_lea.vmem %s3121_s0, %s1847_s25  ;;  %s1977_s20 = smov 72   ;;  %1722 = vmatprep.subr.bf16.mxu0 %v3131_v32  ;;  %1614 = vmatprep.subr.bf16.mxu1 %v3131_v32  ;;  %3183 = vst [vmem:[#allocation8_spill] sm:$0xff] %v2172_v38  ;;  %v2196_v47 = vpack.c.bf16 %v709_v45, %v706_v44  ;;  %v2198_v48 = vsub.f32 %v659_v42, %v706_v44  ;;  %v721_v62 = vand.u32 4294901760, %v664_v60  ;;  %v670_v42 = vld [vmem:[%s3122_s1 + $0x78] sm:$0xff]  ;;  %vm254_vm1 = vcmask 130048  }
  0x1c   : > { %v2064_v0 = vld [vmem:[%s2061_s28 + $0x38] sm:$0x3f]  ;;  %v175_v1 = vld [vmem:[%s2061_s28 + $0x30] sm:$0x3f]  ;;  %v2068_v2 = vld [vmem:[%s2061_s28 + $0x8] sm:$0x3f]  ;;  %v2200_v49 = vsub.f32 %v660_v43, %v709_v45  ;;  %v2218_v55 = vpack.c.bf16 %v715_v53, %v712_v52  ;;  %v2220_v56 = vsub.f32 %v661_v50, %v712_v52  ;;  %v2222_v57 = vsub.f32 %v662_v51, %v715_v53 }
  0x1d   : > { %326 = vrot.lane.b32.xlu0 %v2064_v0, %s1969_s29  ;;  %192 = vrot.lane.b32.xlu1 %v175_v1, %s1969_s29  ;;  %v240_v3 = vrot.slane %v2064_v0, 1  ;;  %v236_v4 = vrot.slane %v2068_v2, 1  ;;  %v2076_v5 = vld [vmem:[%s2061_s28] sm:$0x3f]  ;;  %v244_v6 = vrot.slane %v2068_v2, 2  ;;  %v200_v8 = vrot.slane %v175_v1, 1 }
  0x1e   : > { %v196_v7 = vrot.slane %v2076_v5, 1  ;;  %v2091_v9 = vld [vmem:[%s2061_s28 + $0x68] sm:$0x3f]  ;;  %v204_v10 = vrot.slane %v2076_v5, 2  ;;  %v2098_v11 = vld [vmem:[%s2061_s28 + $0x98] sm:$0x3f]  ;;  %1724 = vmatpush1.bf16.msra.mxu0 %v2172_v38  ;;  %1616 = vmatpush1.bf16.msra.mxu1 %v2172_v38  ;;  %v2241_v63 = vpack.c.bf16 %v721_v62, %v718_v61  ;;  %v2243_v1 = vsub.f32 %v663_v59, %v718_v61 }
  0x1f   : > { %v2101_v12 = vld [vmem:[%s2061_s28 + $0x70] sm:$0x3f]  ;;  %v2108_v14 = vld [vmem:[%s2061_s28 + $0x60] sm:$0x3f]  ;;  %v282_v17 = vrot.slane %v2091_v9, 1  ;;  %v287_v20 = vrot.slane %v2098_v11, 1  ;;  %1725 = vmatprep.subr.bf16.mxu0 %v3131_v32  ;;  %1617 = vmatprep.subr.bf16.mxu1 %v3131_v32 }
  0x20   : > { %v3135_v13 = vrot.slane %v2101_v12, 1  ;;  %v2111_v15 = vld [vmem:[%s2061_s28 + $0xa0] sm:$0x3f]  ;;  %v186_v18 = vld [vmem:[%s2061_s28 + $0x90] sm:$0x3f]  ;;  %v3133_v19 = vrot.slane %v2101_v12, 2 }
  0x21   : > { %332 = vrot.lane.b32.xlu1 %v240_v3, %s1970_s30  ;;  %329 = vrot.lane.b32.xlu0 %v236_v4, %s1971_s4  ;;  %v3134_v16 = vrot.slane %v2111_v15, 1  ;;  %v216_v21 = vrot.slane %v2108_v14, 1  ;;  %v291_v22 = vrot.slane %v2091_v9, 2  ;;  %v2138_v23 = vld [vmem:[%s2061_s28 + $0x18] sm:$0x3f]  ;;  %v220_v28 = vrot.slane %v186_v18, 1 }
  0x22   : > { %3181 = vst [vmem:[#allocation6_spill] sm:$0xff] %v2138_v23  ;;  %v2170_v37 = vld [vmem:[%s2061_s28 + $0x48] sm:$0x3f]  ;;  %v2179_v41 = vld [vmem:[%s2061_s28 + $0x10] sm:$0x3f]  ;;  %s1979_s24 = smov 80   ;;  %1727 = vmatpush1.bf16.msra.mxu0 %v2196_v47  ;;  %1619 = vmatpush1.bf16.msra.mxu1 %v2196_v47 }
  0x23   : > { %3184 = vst [vmem:[#allocation9_spill] sm:$0xff] %v2179_v41  ;;  %v224_v46 = vrot.slane %v2108_v14, 2  ;;  %3185 = vst [vmem:[#allocation10_spill] sm:$0xff] %v2196_v47  ;;  %1728 = vmatprep.subr.bf16.mxu0 %v3131_v32  ;;  %1620 = vmatprep.subr.bf16.mxu1 %v3131_v32  ;;  %v2216_v54 = vrot.slane %v2138_v23, 1  ;;  %v2225_v58 = vld [vmem:[%s2061_s28 + $0x40] sm:$0x3f] }
  0x24   : > { %3186 = vst [vmem:[#allocation11_spill] sm:$0xff] %v2218_v55  ;;  %3187 = vst [vmem:[#allocation12_spill] sm:$0xff] %v2220_v56  ;;  %s1980_s26 = smov 88   ;;  %s3125_s11 = smov 96   ;;  %v736_v43 = vand.u32 4294901760, %v669_v36  ;;  %v739_v44 = vand.u32 4294901760, %v670_v42 }
  0x25   : > { %335 = vrot.lane.b32.xlu1 %v244_v6, %s1972_s5  ;;  %197 = vrot.lane.b32.xlu0 %v196_v7, %s1971_s4  ;;  %3188 = vst [vmem:[#allocation13_spill] sm:$0xff] %v2222_v57  ;;  %3189 = vst [vmem:[#allocation14_spill] sm:$0xff] %v2241_v63  ;;  %v2245_v7 = vsub.f32 %v664_v60, %v721_v62  ;;  %v2302_v45 = vrot.slane %v2138_v23, 2  ;;  %v671_v53 = vld [vmem:[%s3122_s1 + $0x80] sm:$0xff]  ;;  %v672_v59 = vld [vmem:[%s3122_s1 + $0x88] sm:$0xff]  ;;  %s3127_s27 = smov 104  }
  0x26   : > { %1730 = vmatpush1.bf16.msra.mxu0 %v2218_v55  ;;  %1622 = vmatpush1.bf16.msra.mxu1 %v2218_v55  ;;  %3190 = vst [vmem:[#allocation15_spill] sm:$0xff] %v2243_v1  ;;  %v2313_v50 = vpack.c.bf16 %v739_v44, %v736_v43  ;;  %v2315_v51 = vsub.f32 %v669_v36, %v736_v43  ;;  %v742_v60 = vand.u32 4294901760, %v671_v53  ;;  %v745_v61 = vand.u32 4294901760, %v672_v59  ;;  %v675_v43 = vld [vmem:[%s3122_s1 + $0xa0] sm:$0xff]  ;;  %s1983_s10 = smov 112   ;;  %s1986_s19 = smov [#allocation3]  }
  0x27   : > { %1731 = vmatprep.subr.bf16.mxu0 %v3131_v32  ;;  %1623 = vmatprep.subr.bf16.mxu1 %v3131_v32  ;;  %3191 = vst [vmem:[#allocation16_spill] sm:$0xff] %v2245_v7  ;;  %v2317_v52 = vsub.f32 %v670_v42, %v739_v44  ;;  %v676_v44 = vld [vmem:[%s3122_s1 + $0xa8] sm:$0xff]  ;;  %vm256_vm2 = vcmask 195584   ;;  %vm258_vm3 = vcmask 261120   ;;  %v844_v38 = vand.u32 4294901760, %v2198_v48  ;;  %s1909_s25 = sshll.u32 %s1986_s19, 4  ;;  %s1910_s25 = int_to_ptr.vmem [resolvable:$false] %s1909_s25 }
  0x28   : > { %3195 = vst [vmem:[#allocation20_spill] sm:$0xff] %v2313_v50  ;;  %v2333_v62 = vpack.c.bf16 %v745_v61, %v742_v60  ;;  %vm260_vm4 = vcmask 326656   ;;  %vm262_vm5 = vcmask 392192   ;;  %vm264_vm6 = vcmask 457728  }
  0x29   : > { %338 = vrot.lane.b32.xlu1 %v2091_v9, %s1973_s6  ;;  %201 = vrot.lane.b32.xlu0 %v200_v8, %s1970_s30  ;;  %v665_v8 = vld [vmem:[%s3122_s1 + $0x50] sm:$0xff]  ;;  %vm266_vm7 = vcmask 523264   ;;  %vm3169_vm8 = vcmask 588804   ;;  %vm268_vm9 = vcmask 588800   ;;  %vm270_vm10 = vcmask 654336  }
  0x2a   : > { %1733 = vmatpush1.bf16.msra.mxu0 %v2241_v63  ;;  %1625 = vmatpush1.bf16.msra.mxu1 %v2241_v63  ;;  %3196 = vst [vmem:[#allocation21_spill] sm:$0xff] %v2333_v62  ;;  %vm272_vm11 = vcmask 719872   ;;  %vm274_vm12 = vcmask 785408   ;;  %vm276_vm13 = vcmask 850944   ;;  %vm278_vm14 = vcmask 916480  }
  0x2b   : > { %1734 = vmatprep.subr.bf16.mxu0 %v3131_v32  ;;  %1626 = vmatprep.subr.bf16.mxu1 %v3131_v32  ;;  %vm280_vm15 = vcmask 982016  }
  0x2d   : > { %341 = vrot.lane.b32.xlu1 %v2098_v11, %s1974_s7  ;;  %205 = vrot.lane.b32.xlu0 %v204_v10, %s1972_s5  ;;  %v666_v10 = vld [vmem:[%s3122_s1 + $0x58] sm:$0xff] }
  0x31   : > { %209 = vrot.lane.b32.xlu1 %v2108_v14, %s1973_s6  ;;  %388 = vrot.lane.b32.xlu0 %v3135_v13, %s1969_s29  ;;  %v724_v14 = vand.u32 4294901760, %v665_v8 }
  0x33   : > { %v2275_v25 = vsub.f32 %v665_v8, %v724_v14  ;;  %v673_v8 = vld [vmem:[%s3122_s1 + $0x90] sm:$0xff] }
  0x35   : > { %393 = vrot.lane.b32.xlu1 %v3134_v16, %s1971_s4  ;;  %344 = vrot.lane.b32.xlu0 %v282_v17, %s1975_s8 }
  0x39   : > { %283 = vrot.lane.b32.xlu1 %v282_v17, %s1969_s29  ;;  %213 = vrot.lane.b32.xlu0 %v186_v18, %s1974_s7  ;;  %v727_v17 = vand.u32 4294901760, %v666_v10  ;;  %v2262_v18 = vrot.slane %v2170_v37, 1 }
  0x3b   : > { %v2277_v26 = vsub.f32 %v666_v10, %v727_v17  ;;  %v674_v10 = vld [vmem:[%s3122_s1 + $0x98] sm:$0xff] }
  0x3d   : > { %397 = vrot.lane.b32.xlu1 %v3133_v19, %s1970_s30  ;;  %347 = vrot.lane.b32.xlu0 %v287_v20, %s1976_s9 }
  0x41   : > { %288 = vrot.lane.b32.xlu1 %v287_v20, %s1971_s4  ;;  %217 = vrot.lane.b32.xlu0 %v216_v21, %s1975_s8  ;;  %v2265_v20 = vrot.slane %v2179_v41, 1  ;;  %v2267_v21 = vpack.c.bf16 %v727_v17, %v724_v14  ;;  %v2341_v14 = vsub.f32 %v671_v53, %v742_v60  ;;  %v2343_v17 = vsub.f32 %v672_v59, %v745_v61 }
  0x42   : > { %v757_v53 = vand.u32 4294901760, %v676_v44 }
  0x43   : > { %3192 = vst [vmem:[#allocation17_spill] sm:$0xff] %v2267_v21  ;;  %1736 = vmatpush1.bf16.msra.mxu0 %v2267_v21  ;;  %1628 = vmatpush1.bf16.msra.mxu1 %v2267_v21  ;;  %3197 = vst [vmem:[#allocation22_spill] sm:$0xff] %v2341_v14  ;;  %v837_v21 = vand.u32 4294901760, %v2176_v40 }
  0x44   : > { %1737 = vmatprep.subr.bf16.mxu0 %v3131_v32  ;;  %1629 = vmatprep.subr.bf16.mxu1 %v3131_v32  ;;  %3198 = vst [vmem:[#allocation23_spill] sm:$0xff] %v2343_v17  ;;  %v2379_v61 = vsub.f32 %v676_v44, %v757_v53  ;;  %v2405_v44 = vld [vmem:[%s3122_s1 + $0xc0] sm:$0xff] }
  0x45   : > { %401 = vrot.lane.b32.xlu1 %v2138_v23, %s1972_s5  ;;  %350 = vrot.lane.b32.xlu0 %v291_v22, %s1977_s20  ;;  %3207 = vst [vmem:[#allocation32_spill] sm:$0xff] %v2405_v44 }
  0x46   : > { %3203 = vst [vmem:[#allocation28_spill] sm:$0xff] %v2379_v61 }
  0x49   : > { %292 = vrot.lane.b32.xlu1 %v291_v22, %s1970_s30  ;;  %221 = vrot.lane.b32.xlu0 %v220_v28, %s1976_s9  ;;  %v667_v22 = vld [vmem:[%s3122_s1 + $0x60] sm:$0xff]  ;;  %v733_v28 = vand.u32 4294901760, %v668_v24 }
  0x4a   : > { %v730_v27 = vand.u32 4294901760, %v667_v22 }
  0x4b   : > { %v2291_v35 = vsub.f32 %v668_v24, %v733_v28  ;;  %v751_v24 = vand.u32 4294901760, %v674_v10 }
  0x4c   : > { %v2287_v33 = vpack.c.bf16 %v733_v28, %v730_v27  ;;  %v2289_v34 = vsub.f32 %v667_v22, %v730_v27  ;;  %v748_v22 = vand.u32 4294901760, %v673_v8  ;;  %v311_v27 = vrot.slane %v2179_v41, 2 }
  0x4d   : > { %405 = vrot.lane.b32.xlu1 %v2170_v37, %s1973_s6  ;;  %353 = vrot.lane.b32.xlu0 %v2179_v41, %s1979_s24  ;;  %v2359_v42 = vsub.f32 %v674_v10, %v751_v24  ;;  %v678_v10 = vld [vmem:[%s3122_s1 + $0xb8] sm:$0xff] }
  0x4e   : > { %3193 = vst [vmem:[#allocation18_spill] sm:$0xff] %v2287_v33  ;;  %3194 = vst [vmem:[#allocation19_spill] sm:$0xff] %v2289_v34  ;;  %1739 = vmatpush1.bf16.msra.mxu0 %v2287_v33  ;;  %1631 = vmatpush1.bf16.msra.mxu1 %v2287_v33  ;;  %v2355_v28 = vpack.c.bf16 %v751_v24, %v748_v22  ;;  %v2357_v36 = vsub.f32 %v673_v8, %v748_v22  ;;  %v677_v8 = vld [vmem:[%s3122_s1 + $0xb0] sm:$0xff]  ;;  %v830_v33 = vand.u32 4294901760, %v2174_v39 }
  0x4f   : > { %1740 = vmatprep.subr.bf16.mxu0 %v3131_v32  ;;  %1632 = vmatprep.subr.bf16.mxu1 %v3131_v32 }
  0x50   : > { %3199 = vst [vmem:[#allocation24_spill] sm:$0xff] %v2355_v28  ;;  %3200 = vst [vmem:[#allocation25_spill] sm:$0xff] %v2357_v36  ;;  %v2523_v55 = vpack.c.bf16 %v837_v21, %v830_v33 }
  0x51   : > { %296 = vrot.lane.b32.xlu1 %v2179_v41, %s1972_s5  ;;  %225 = vrot.lane.b32.xlu0 %v224_v46, %s1977_s20  ;;  %v2311_v46 = vrot.slane %v2225_v58, 1 }
  0x52   : > { %1742 = vmatpush1.bf16.msra.mxu0 %v2313_v50  ;;  %1634 = vmatpush1.bf16.msra.mxu1 %v2313_v50  ;;  %3214 = vst [vmem:[#allocation37_spill] sm:$0xff] %v2523_v55 }
  0x53   : > { %1743 = vmatprep.subr.bf16.mxu0 %v3131_v32  ;;  %1635 = vmatprep.subr.bf16.mxu1 %v3131_v32 }
  0x55   : > { %409 = vrot.lane.b32.xlu1 %v2216_v54, %s1974_s7  ;;  %356 = vrot.lane.b32.xlu0 %v2225_v58, %s1980_s26 }
  0x56   : > { %1745 = vmatpush1.bf16.msra.mxu0 %v2333_v62  ;;  %1637 = vmatpush1.bf16.msra.mxu1 %v2333_v62  ;;  %v2515_v62 = vld [vmem:[%s2061_s28 + $0x20] sm:$0x3f] }
  0x57   : > { %1746 = vmatprep.subr.bf16.mxu0 %v3131_v32  ;;  %1638 = vmatprep.subr.bf16.mxu1 %v3131_v32 }
  0x59   : > { %300 = vrot.lane.b32.xlu1 %v2225_v58, %s1973_s6  ;;  %229 = vrot.lane.b32.xlu0 %v2068_v2, %s1979_s24 }
  0x5a   : > { %1748 = vmatpush1.bf16.msra.mxu0 %v2355_v28  ;;  %1640 = vmatpush1.bf16.msra.mxu1 %v2355_v28 }
  0x5b   : > { %1749 = vmatprep.subr.bf16.mxu0 %v3131_v32  ;;  %1641 = vmatprep.subr.bf16.mxu1 %v3131_v32 }
  0x5d   : > { %413 = vrot.lane.b32.xlu1 %v2262_v18, %s1975_s8  ;;  %359 = vrot.lane.b32.xlu0 %v2265_v20, %s3125_s11 }
  0x61   : > { %304 = vrot.lane.b32.xlu1 %v2265_v20, %s1974_s7  ;;  %233 = vrot.lane.b32.xlu0 %v2064_v0, %s1980_s26  ;;  %v760_v0 = vand.u32 4294901760, %v677_v8 }
  0x63   : > { %v2396_v24 = vsub.f32 %v677_v8, %v760_v0  ;;  %v2444_v8 = vld [vmem:[%s2061_s28 + $0x80] sm:$0x3f] }
  0x65   : > { %417 = vrot.lane.b32.xlu1 %v2302_v45, %s1976_s9  ;;  %362 = vrot.lane.b32.xlu0 %v2311_v46, %s3127_s27  ;;  %3205 = vst [vmem:[#allocation30_spill] sm:$0xff] %v2396_v24 }
  0x69   : > { %308 = vrot.lane.b32.xlu1 %v2311_v46, %s1975_s8  ;;  %237 = vrot.lane.b32.xlu0 %v236_v4, %s3125_s11  ;;  %v754_v4 = vand.u32 4294901760, %v675_v43  ;;  %s1911_s11 = scalar_lea.vmem %s1910_s25, 512 }
  0x6b   : > { %v2375_v59 = vpack.c.bf16 %v757_v53, %v754_v4  ;;  %v2377_v60 = vsub.f32 %v675_v43, %v754_v4  ;;  %v2413_v4 = vand.u32 4294901760, %v2405_v44  ;;  %v3129_v53 = vmov 0.0  }
  0x6c   : > { %v845_v44 = vsub.f32 %v2198_v48, %v844_v38 }
  0x6d   : > { %241 = vrot.lane.b32.xlu1 %v240_v3, %s3127_s27  ;;  %365 = vrot.lane.b32.xlu0 %v311_v27, %s1983_s10  ;;  %3201 = vst [vmem:[#allocation26_spill] sm:$0xff] %v2375_v59  ;;  %3202 = vst [vmem:[#allocation27_spill] sm:$0xff] %v2377_v60  ;;  %v763_v3 = vand.u32 4294901760, %v678_v10  ;;  %s1984_s27 = smov 120  }
  0x6e   : > { %1751 = vmatpush1.bf16.msra.mxu0 %v2375_v59  ;;  %1643 = vmatpush1.bf16.msra.mxu1 %v2375_v59  ;;  %3208 = vst [vmem:[#allocation33_spill] sm:$0xff] %v2413_v4  ;;  %v2511_v59 = vld [vmem:[%s2061_s28 + $0x58] sm:$0x3f] }
  0x6f   : > { %1752 = vmatprep.subr.bf16.mxu0 %v3131_v32  ;;  %1644 = vmatprep.subr.bf16.mxu1 %v3131_v32  ;;  %v2394_v22 = vpack.c.bf16 %v763_v3, %v760_v0  ;;  %v2398_v43 = vsub.f32 %v678_v10, %v763_v3 }
  0x71   : > { %369 = vrot.lane.b32.xlu1 %v2101_v12, %s1984_s27  ;;  %312 = vrot.lane.b32.xlu0 %v311_v27, %s1976_s9  ;;  %3204 = vst [vmem:[#allocation29_spill] sm:$0xff] %v2394_v22  ;;  %3206 = vst [vmem:[#allocation31_spill] sm:$0xff] %v2398_v43 }
  0x72   : > { %1754 = vmatpush1.bf16.msra.mxu0 %v2394_v22  ;;  %1646 = vmatpush1.bf16.msra.mxu1 %v2394_v22  ;;  %v3213_v22 = vrot.slane %v2111_v15, 1 }
  0x73   : > { %1222 = vmatprep.subr.mxu0 %v3129_v53  ;;  %765 = vmatprep.subr.mxu1 %v3129_v53 }
  0x75   : > { %249 = vrot.lane.b32.xlu1 %v2091_v9, %s1984_s27  ;;  %245 = vrot.lane.b32.xlu0 %v244_v6, %s1983_s10  ;;  %v2434_v6 = vld [vmem:[%s2061_s28 + $0x78] sm:$0x3f]  ;;  %v2441_v9 = vld [vmem:[%s2061_s28 + $0xa8] sm:$0x3f] }
  0x76   : > { %1224 = vmatpush1.msra.mxu0 %v2413_v4  ;;  %767 = vmatpush1.msra.mxu1 %v2413_v4  ;;  %3209 = vst [vmem:[#allocation34_spill] sm:$0xff] %v2441_v9  ;;  %v498_v10 = vrot.slane %v2434_v6, 1  ;;  %v503_v16 = vrot.slane %v2441_v9, 1  ;;  %v2552_v4 = vld [vmem:[%s2061_s28 + $0x50] sm:$0x3f] }
  0x77   : > { %1755 = vmatprep.subr.bf16.mxu0 %v3131_v32  ;;  %1647 = vmatprep.subr.bf16.mxu1 %v3131_v32 }
  0x79   : > { %544 = vrot.lane.b32.xlu1 %v2216_v54, %s1971_s4  ;;  %541 = vrot.lane.b32.xlu0 %v2170_v37, %s1969_s29 }
  0x7d   : > { %547 = vrot.lane.b32.xlu1 %v2262_v18, %s1970_s30  ;;  %437 = vrot.lane.b32.xlu0 %v2225_v58, %s1969_s29  ;;  %v602_v58 = vrot.slane %v2444_v8, 1 }
  0x81   : > { %550 = vrot.lane.b32.xlu1 %v2302_v45, %s1972_s5  ;;  %440 = vrot.lane.b32.xlu0 %v2265_v20, %s1971_s4  ;;  %v2451_v20 = vld [vmem:[%s2061_s28 + $0xb0] sm:$0x3f] }
  0x82   : > { %3210 = vst [vmem:[#allocation35_spill] sm:$0xff] %v2451_v20 }
  0x85   : > { %553 = vrot.lane.b32.xlu1 %v2434_v6, %s1973_s6  ;;  %443 = vrot.lane.b32.xlu0 %v2311_v46, %s1970_s30  ;;  %v607_v46 = vrot.slane %v2451_v20, 1 }
  0x89   : > { %556 = vrot.lane.b32.xlu1 %v2441_v9, %s1974_s7  ;;  %446 = vrot.lane.b32.xlu0 %v311_v27, %s1972_s5 }
  0x8d   : > { %449 = vrot.lane.b32.xlu1 %v2101_v12, %s1973_s6  ;;  %603 = vrot.lane.b32.xlu0 %v602_v58, %s1969_s29 }
  0x8f   : > { %v327_v0 = vpop.permute.xlu0 %326  ;;  %v193_v3 = vpop.permute.xlu1 %192 }
  0x90   : > { %v372_v27 = vsel %vm252_vm0, %v2068_v2, %v327_v0  ;;  %v253_v2 = vsel %vm252_vm0, %v2076_v5, %v193_v3  ;;  %v3211_v5 = vrot.slane %v2101_v12, 1 }
  0x91   : > { %608 = vrot.lane.b32.xlu1 %v607_v46, %s1971_s4  ;;  %559 = vrot.lane.b32.xlu0 %v498_v10, %s1975_s8  ;;  %v611_v46 = vrot.slane %v2444_v8, 2 }
  0x93   : > { %v333_v53 = vpop.permute.xlu1 %332  ;;  %v330_v32 = vpop.permute.xlu0 %329 }
  0x94   : > { %v373_v58 = vsel %vm254_vm1, %v372_v27, %v330_v32 }
  0x95   : > { %499 = vrot.lane.b32.xlu1 %v498_v10, %s1969_s29  ;;  %452 = vrot.lane.b32.xlu0 %v2111_v15, %s1974_s7  ;;  %v374_v19 = vsel %vm256_vm2, %v373_v58, %v333_v53 }
  0x97   : > { %v336_v0 = vpop.permute.xlu1 %335  ;;  %v198_v13 = vpop.permute.xlu0 %197 }
  0x98   : > { %v2472_v32 = vsel %vm258_vm3, %v374_v19, %v336_v0  ;;  %v255_v10 = vsel %vm254_vm1, %v253_v2, %v198_v13  ;;  %v507_v19 = vrot.slane %v2434_v6, 2  ;;  %v2488_v13 = vld [vmem:[%s2061_s28 + $0x28] sm:$0x3f]  ;;  %v823_v2 = vand.u32 4294901760, %v2153_v31  ;;  %s3224_s28 = smov 96  }
  0x99   : > { %612 = vrot.lane.b32.xlu1 %v611_v46, %s1970_s30  ;;  %562 = vrot.lane.b32.xlu0 %v503_v16, %s1976_s9 }
  0x9a   : > { %v824_v28 = vsub.f32 %v2153_v31, %v823_v2 }
  0x9b   : > { %v2477_v53 = vpop.permute.xlu1 %338  ;;  %v202_v27 = vpop.permute.xlu0 %201 }
  0x9c   : > { %v2480_v58 = vsel %vm256_vm2, %v255_v10, %v202_v27 }
  0x9d   : > { %504 = vrot.lane.b32.xlu1 %v503_v16, %s1971_s4  ;;  %455 = vrot.lane.b32.xlu0 %v3211_v5, %s1975_s8  ;;  %v816_v16 = vand.u32 4294901760, %v2151_v30  ;;  %s161_s4 = sand.u32 1, %s1959_s13  }
  0x9f   : > { %v2490_v3 = vpop.permute.xlu1 %341  ;;  %v2492_v46 = vpop.permute.xlu0 %205  ;;  %v2503_v27 = vpack.c.bf16 %v823_v2, %v816_v16  ;;  %v817_v5 = vsub.f32 %v2151_v30, %v816_v16 }
  0xa1   : > { %616 = vrot.lane.b32.xlu1 %v2488_v13, %s1972_s5  ;;  %565 = vrot.lane.b32.xlu0 %v507_v19, %s1977_s20  ;;  %3212 = vst [vmem:[#allocation36_spill] sm:$0xff] %v2503_v27  ;;  %v818_v50 = vand.u32 4294901760, %v817_v5  ;;  %v838_v5 = vsub.f32 %v2176_v40, %v837_v21  ;;  %v3217_v21 = vrot.slane %v2101_v12, 2 }
  0xa3   : > { %v2499_v0 = vpop.permute.xlu1 %209  ;;  %v2501_v10 = vpop.permute.xlu0 %388 }
  0xa5   : > { %508 = vrot.lane.b32.xlu1 %v507_v19, %s1970_s30  ;;  %458 = vrot.lane.b32.xlu0 %v3213_v22, %s1976_s9  ;;  %v825_v19 = vand.u32 4294901760, %v824_v28  ;;  %v831_v22 = vsub.f32 %v2174_v39, %v830_v33  ;;  %v851_v28 = vand.u32 4294901760, %v2200_v49  ;;  %v839_v33 = vand.u32 4294901760, %v838_v5  ;;  %s3229_s30 = smov 104  }
  0xa6   : > { %v846_v5 = vand.u32 4294901760, %v845_v44 }
  0xa7   : > { %v2519_v63 = vpop.permute.xlu1 %393  ;;  %v2521_v16 = vpop.permute.xlu0 %344  ;;  %v2530_v2 = vpack.c.bf16 %v825_v19, %v818_v50  ;;  %v832_v47 = vand.u32 4294901760, %v831_v22  ;;  %v2539_v20 = vpack.c.bf16 %v851_v28, %v844_v38  ;;  %v623_v50 = vrot.slane %v2488_v13, 1 }
  0xa8   : > { %v852_v22 = vsub.f32 %v2200_v49, %v851_v28  ;;  %v865_v38 = vand.u32 4294901760, %v2222_v57 }
  0xa9   : > { %620 = vrot.lane.b32.xlu1 %v2511_v59, %s1973_s6  ;;  %568 = vrot.lane.b32.xlu0 %v2515_v62, %s1979_s24  ;;  %3215 = vst [vmem:[#allocation38_spill] sm:$0xff] %v2530_v2  ;;  %3216 = vst [vmem:[#allocation39_spill] sm:$0xff] %v2539_v20  ;;  %v2548_v19 = vpack.c.bf16 %v839_v33, %v832_v47  ;;  %v858_v20 = vand.u32 4294901760, %v2220_v56  ;;  %v872_v33 = vand.u32 4294901760, %v2243_v1 }
  0xaa   : > { %v853_v27 = vand.u32 4294901760, %v852_v22  ;;  %v866_v44 = vsub.f32 %v2222_v57, %v865_v38 }
  0xab   : > { %v2535_v29 = vpop.permute.xlu1 %283  ;;  %v2537_v9 = vpop.permute.xlu0 %213  ;;  %3218 = vst [vmem:[#allocation40_spill] sm:$0xff] %v2548_v19  ;;  %v2560_v12 = vpack.c.bf16 %v865_v38, %v858_v20  ;;  %v879_v19 = vand.u32 4294901760, %v2245_v7 }
  0xac   : > { %v2566_v47 = vpack.c.bf16 %v853_v27, %v846_v5  ;;  %v519_v27 = vrot.slane %v2515_v62, 1 }
  0xad   : > { %512 = vrot.lane.b32.xlu1 %v2515_v62, %s1972_s5  ;;  %461 = vrot.lane.b32.xlu0 %v3217_v21, %s1977_s20  ;;  %3219 = vst [vmem:[#allocation41_spill] sm:$0xff] %v2560_v12  ;;  %v859_v21 = vsub.f32 %v2220_v56, %v858_v20  ;;  %v867_v12 = vand.u32 4294901760, %v866_v44  ;;  %v2575_v20 = vpack.c.bf16 %v879_v19, %v872_v33  ;;  %v627_v56 = vrot.slane %v2511_v59, 1 }
  0xae   : > { %3220 = vst [vmem:[#allocation42_spill] sm:$0xff] %v2566_v47  ;;  %v880_v38 = vsub.f32 %v2245_v7, %v879_v19  ;;  %v886_v44 = vand.u32 4294901760, %v2275_v25 }
  0xaf   : > { %v2556_v55 = vpop.permute.xlu1 %397  ;;  %v2558_v2 = vpop.permute.xlu0 %347  ;;  %v860_v28 = vand.u32 4294901760, %v859_v21  ;;  %3221 = vst [vmem:[#allocation43_spill] sm:$0xff] %v2575_v20  ;;  %v893_v20 = vand.u32 4294901760, %v2277_v26 }
  0xb0   : > { %v881_v47 = vand.u32 4294901760, %v880_v38 }
  0xb1   : > { %624 = vrot.lane.b32.xlu1 %v623_v50, %s1974_s7  ;;  %571 = vrot.lane.b32.xlu0 %v2552_v4, %s1980_s26  ;;  %v873_v50 = vsub.f32 %v2243_v1, %v872_v33  ;;  %v2584_v5 = vpack.c.bf16 %v867_v12, %v860_v28  ;;  %v2593_v1 = vpack.c.bf16 %v893_v20, %v886_v44 }
  0xb2   : > { %v894_v19 = vsub.f32 %v2277_v26, %v893_v20 }
  0xb3   : > { %v2571_v41 = vpop.permute.xlu1 %288  ;;  %v2573_v22 = vpop.permute.xlu0 %217  ;;  %3222 = vst [vmem:[#allocation44_spill] sm:$0xff] %v2584_v5  ;;  %v874_v21 = vand.u32 4294901760, %v873_v50  ;;  %3223 = vst [vmem:[#allocation45_spill] sm:$0xff] %v2593_v1  ;;  %v900_v50 = vand.u32 4294901760, %v2289_v34  ;;  %v907_v5 = vand.u32 4294901760, %v2291_v35 }
  0xb4   : > { %v895_v1 = vand.u32 4294901760, %v894_v19  ;;  %v914_v19 = vand.u32 4294901760, %v2315_v51 }
  0xb5   : > { %516 = vrot.lane.b32.xlu1 %v2552_v4, %s1973_s6  ;;  %464 = vrot.lane.b32.xlu0 %v2138_v23, %s1979_s24  ;;  %v887_v23 = vsub.f32 %v2275_v25, %v886_v44  ;;  %v2598_v12 = vpack.c.bf16 %v881_v47, %v874_v21  ;;  %v2607_v57 = vpack.c.bf16 %v907_v5, %v900_v50  ;;  %v523_v47 = vrot.slane %v2552_v4, 1 }
  0xb6   : > { %v908_v21 = vsub.f32 %v2291_v35, %v907_v5  ;;  %v928_v5 = vand.u32 4294901760, %v2341_v14 }
  0xb7   : > { %v2589_v33 = vpop.permute.xlu1 %401  ;;  %v2591_v59 = vpop.permute.xlu0 %350  ;;  %3225 = vst [vmem:[#allocation46_spill] sm:$0xff] %v2598_v12  ;;  %v888_v28 = vand.u32 4294901760, %v887_v23  ;;  %3226 = vst [vmem:[#allocation47_spill] sm:$0xff] %v2607_v57  ;;  %v631_v23 = vrot.slane %v2488_v13, 2  ;;  %v921_v57 = vand.u32 4294901760, %v2317_v52 }
  0xb9   : > { %628 = vrot.lane.b32.xlu1 %v627_v56, %s1975_s8  ;;  %574 = vrot.lane.b32.xlu0 %v519_v27, %s3224_s28  ;;  %v901_v56 = vsub.f32 %v2289_v34, %v900_v50  ;;  %v2615_v20 = vpack.c.bf16 %v895_v1, %v888_v28  ;;  %v2624_v34 = vpack.c.bf16 %v921_v57, %v914_v19  ;;  %v935_v28 = vand.u32 4294901760, %v2343_v17 }
  0xba   : > { %v922_v4 = vsub.f32 %v2317_v52, %v921_v57  ;;  %v527_v57 = vrot.slane %v2515_v62, 2 }
  0xbb   : > { %v2603_v7 = vpop.permute.xlu1 %292  ;;  %v2605_v38 = vpop.permute.xlu0 %221  ;;  %3227 = vst [vmem:[#allocation48_spill] sm:$0xff] %v2615_v20  ;;  %v902_v44 = vand.u32 4294901760, %v901_v56  ;;  %3228 = vst [vmem:[#allocation49_spill] sm:$0xff] %v2624_v34  ;;  %v2638_v20 = vpack.c.bf16 %v935_v28, %v928_v5 }
  0xbc   : > { %v923_v34 = vand.u32 4294901760, %v922_v4  ;;  %v949_v4 = vand.u32 4294901760, %v2359_v42 }
  0xbd   : > { %520 = vrot.lane.b32.xlu1 %v519_v27, %s1974_s7  ;;  %467 = vrot.lane.b32.xlu0 %v2170_v37, %s1980_s26  ;;  %v909_v27 = vand.u32 4294901760, %v908_v21  ;;  %v915_v37 = vsub.f32 %v2315_v51, %v914_v19  ;;  %3231 = vst [vmem:[#allocation51_spill] sm:$0xff] %v2638_v20  ;;  %v936_v19 = vsub.f32 %v2343_v17, %v935_v28  ;;  %v956_v20 = vand.u32 4294901760, %v2377_v60  ;;  %s1602_s7 = sshll.u32 %s161_s4, 4 }
  0xbf   : > { %v2620_v12 = vpop.permute.xlu1 %405  ;;  %v2622_v50 = vpop.permute.xlu0 %353  ;;  %v2629_v1 = vpack.c.bf16 %v909_v27, %v902_v44  ;;  %v916_v13 = vand.u32 4294901760, %v915_v37  ;;  %v942_v37 = vand.u32 4294901760, %v2357_v36 }
  0xc1   : > { %632 = vrot.lane.b32.xlu1 %v631_v23, %s1976_s9  ;;  %577 = vrot.lane.b32.xlu0 %v523_v47, %s3229_s30  ;;  %3230 = vst [vmem:[#allocation50_spill] sm:$0xff] %v2629_v1  ;;  %v929_v23 = vsub.f32 %v2341_v14, %v928_v5  ;;  %v2645_v44 = vpack.c.bf16 %v923_v34, %v916_v13  ;;  %v963_v14 = vand.u32 4294901760, %v2379_v61 }
  0xc2   : > { %v943_v34 = vsub.f32 %v2357_v36, %v942_v37  ;;  %v950_v13 = vsub.f32 %v2359_v42, %v949_v4 }
  0xc3   : > { %v2634_v56 = vpop.permute.xlu1 %296  ;;  %v2636_v21 = vpop.permute.xlu0 %225  ;;  %3232 = vst [vmem:[#allocation52_spill] sm:$0xff] %v2645_v44  ;;  %v930_v27 = vand.u32 4294901760, %v929_v23  ;;  %v2663_v28 = vpack.c.bf16 %v963_v14, %v956_v20 }
  0xc4   : > { %v944_v23 = vand.u32 4294901760, %v943_v34  ;;  %v951_v17 = vand.u32 4294901760, %v950_v13  ;;  %v977_v34 = vand.u32 4294901760, %v2398_v43 }
  0xc5   : > { %524 = vrot.lane.b32.xlu1 %v523_v47, %s1975_s8  ;;  %470 = vrot.lane.b32.xlu0 %v2216_v54, %s3224_s28  ;;  %v937_v47 = vand.u32 4294901760, %v936_v19  ;;  %v2654_v54 = vpack.c.bf16 %v949_v4, %v942_v37  ;;  %3235 = vst [vmem:[#allocation55_spill] sm:$0xff] %v2663_v28  ;;  %v964_v37 = vsub.f32 %v2379_v61, %v963_v14  ;;  %s1610_s8 = sshll.u32 %s2029_s16, 8  ;;  %s3079_s16 = scalar_lea.sflag [#allocation4], %s161_s4 }
  0xc6   : > { %v420_v14 = vsel %vm252_vm0, %v2111_v15, %v2501_v10 }
  0xc7   : > { %v410_v1 = vpop.permute.xlu1 %409  ;;  %v2651_v5 = vpop.permute.xlu0 %356  ;;  %3233 = vst [vmem:[#allocation53_spill] sm:$0xff] %v2654_v54  ;;  %v2660_v62 = vpack.c.bf16 %v937_v47, %v930_v27  ;;  %v957_v54 = vsub.f32 %v2377_v60, %v956_v20  ;;  %v965_v4 = vand.u32 4294901760, %v964_v37  ;;  %v970_v47 = vand.u32 4294901760, %v2396_v24 }
  0xc9   : > { %473 = vrot.lane.b32.xlu1 %v2262_v18, %s3229_s30  ;;  %580 = vrot.lane.b32.xlu0 %v527_v57, %s1983_s10  ;;  %3234 = vst [vmem:[#allocation54_spill] sm:$0xff] %v2660_v62  ;;  %v2674_v18 = vpack.c.bf16 %v951_v17, %v944_v23  ;;  %v958_v27 = vand.u32 4294901760, %v957_v54  ;;  %v2680_v20 = vpack.c.bf16 %v977_v34, %v970_v47 }
  0xca   : > { %v971_v17 = vsub.f32 %v2396_v24, %v970_v47 }
  0xcb   : > { %v2665_v44 = vpop.permute.xlu1 %300  ;;  %v2667_v19 = vpop.permute.xlu0 %229  ;;  %v2678_v13 = vpack.c.bf16 %v965_v4, %v958_v27 }
  0xcc   : > { %v972_v27 = vand.u32 4294901760, %v971_v17 }
  0xcd   : > { %584 = vrot.lane.b32.xlu1 %v2444_v8, %s1984_s27  ;;  %528 = vrot.lane.b32.xlu0 %v527_v57, %s1976_s9  ;;  %v978_v8 = vsub.f32 %v2398_v43, %v977_v34  ;;  %v421_v57 = vsel %vm254_vm1, %v420_v14, %v2519_v63  ;;  %s163_s9 = scalar_lea.vmem [#allocation3], %s1602_s7 }
  0xce   : > { %v422_v54 = vsel %vm256_vm2, %v421_v57, %v2556_v55  ;;  %v315_v57 = vsel %vm252_vm0, %v2098_v11, %v2535_v29  ;;  %s1536_s20 = sshll.u32 %s163_s9, 4  ;;  %s3076_s20 = int_to_ptr.vmem [resolvable:$true] %s1536_s20 }
  0xcf   : > { %v414_v28 = vpop.permute.xlu1 %413  ;;  %v360_v62 = vpop.permute.xlu0 %359  ;;  %v979_v15 = vand.u32 4294901760, %v978_v8  ;;  %p1912_p0 = scmp.lt.s32.totalorder %s3076_s20, %s1910_s25 }
  0xd1   : > { %476 = vrot.lane.b32.xlu0 %v2302_v45, %s1983_s10  ;;  %480 = vrot.lane.b32.xlu1 %v2434_v6, %s1984_s27  ;;  %v423_v45 = vsel %vm258_vm3, %v422_v54, %v2589_v33  ;;  %v2699_v10 = vpack.c.bf16 %v979_v15, %v972_v27  ;;  %v376_v33 = vsel %vm260_vm4, %v2472_v32, %v2477_v53  ;;  %s3074_s27 = scalar_lea.hbm %s3124_s3, %s1610_s8  ;;  %s1905_s10 = scalar_lea.vmem %s3076_s20, 256 }
  0xd2   : > { %v424_v6 = vsel %vm260_vm4, %v423_v45, %v2620_v12  ;;  %v377_v12 = vsel %vm262_vm5, %v376_v33, %v2490_v3  ;;  %v259_v53 = vsel %vm258_vm3, %v2480_v58, %v2492_v46  ;;  %v316_v3 = vsel %vm254_vm1, %v315_v57, %v2571_v41  ;;  %v3238_v57 = vld [vmem:[#allocation15_spill] sm:$0xff]  ;;  %p1906_p11 = scmp.ne.s32.totalorder %s3076_s20, %s1905_s10  ;;  %p1913_p1 = scmp.lt.s32.totalorder %s1911_s11, %s1905_s10 }
  0xd3   : > { %v305_v23 = vpop.permute.xlu1 %304  ;;  %v234_v37 = vpop.permute.xlu0 %233  ;;  %v425_v63 = vsel %vm262_vm5, %v424_v6, %v410_v1  ;;  %v378_v8 = vsel %vm264_vm6, %v377_v12, %v2521_v16  ;;  %v261_v54 = vsel %vm260_vm4, %v259_v53, %v2499_v0  ;;  %v317_v11 = vsel %vm256_vm2, %v316_v3, %v2603_v7 }
  0xd4   : > { %v426_v55 = vsel %vm264_vm6, %v425_v63, %v414_v28  ;;  %v379_v32 = vsel %vm266_vm7, %v378_v8, %v2558_v2  ;;  %v263_v41 = vsel %vm262_vm5, %v261_v54, %v2537_v9  ;;  %v318_v46 = vsel %vm258_vm3, %v317_v11, %v2634_v56  ;;  %p1907_p12 = pnand %p1906_p11, %p2046_p5  ;;  %p1914_p2 = por %p1913_p1, %p1912_p0 }
  0xd5   : > { %v380_v16 = vsel %vm268_vm9, %v379_v32, %v2591_v59  ;;  %v265_v7 = vsel %vm264_vm6, %v263_v41, %v2573_v22  ;;  %v319_v59 = vsel %vm260_vm4, %v318_v46, %v2665_v44  ;;  %v3267_v32 = vld [vmem:[#allocation54_spill] sm:$0xff]  ;;  %v3270_v28 = vmov 0.0  }
  0xd6   : > { %v381_v29 = vsel %vm270_vm10, %v380_v16, %v2622_v50  ;;  %v267_v15 = vsel %vm266_vm7, %v265_v7, %v2605_v38  ;;  %v320_v9 = vsel %vm262_vm5, %v319_v59, %v305_v23  ;;  %v3240_v16 = vld [vmem:[#allocation6_spill] sm:$0xff]  ;;  %p1908_p13 = pneg %p1907_p12 }
  0xd7   : > { %v418_v4 = vpop.permute.xlu1 %417  ;;  %v363_v47 = vpop.permute.xlu0 %362  ;;  %v382_v0 = vsel %vm272_vm11, %v381_v29, %v2651_v5  ;;  %v269_v5 = vsel %vm268_vm9, %v267_v15, %v2636_v21 }
  0xd8   : > { %v427_v34 = vsel %vm266_vm7, %v426_v55, %v418_v4  ;;  %v383_v50 = vsel %vm274_vm12, %v382_v0, %v360_v62  ;;  %v271_v38 = vsel %vm270_vm10, %v269_v5, %v2667_v19  ;;  %v3242_v5 = vld [vmem:[#allocation9_spill] sm:$0xff]  ;;  %v3269_v62 = vld [vmem:[#allocation55_spill] sm:$0xff]  ;;  %p1915_p3 = pnand %p1914_p2, %p1908_p13 }
  0xd9   : > { %v431_v14 = vrot.slane %v427_v34, 4  ;;  %v384_v56 = vsel %vm276_vm13, %v383_v50, %v363_v47  ;;  %v273_v55 = vsel %vm272_vm11, %v271_v38, %v234_v37  ;;  %v3236_v47 = vld [vmem:[#allocation12_spill] sm:$0xff]  ;;  %v3237_v34 = vld [vmem:[#allocation13_spill] sm:$0xff] }
  0xda   : > { %v3239_v37 = vld [vmem:[#allocation16_spill] sm:$0xff] }
  0xdb   : > { %436 = vst.msk [vmem:[#allocation2 + $0x8] sm:$0xf0] %vm3169_vm8, %v431_v14  ;;  %v309_v1 = vpop.permute.xlu1 %308  ;;  %v238_v17 = vpop.permute.xlu0 %237  ;;  %vm3178_vm8 = vcmask 584704   ;;  %v3268_v14 = vld [vmem:[#allocation53_spill] sm:$0xff] }
  0xdc   : > { %v321_v45 = vsel %vm264_vm6, %v320_v9, %v309_v1  ;;  %v275_v21 = vsel %vm274_vm12, %v273_v55, %v238_v17  ;;  %v3241_v9 = vld [vmem:[#allocation19_spill] sm:$0xff] }
  0xdf   : > { %v242_v2 = vpop.permute.xlu1 %241  ;;  %v366_v27 = vpop.permute.xlu0 %365 }
  0xe0   : > { %v385_v22 = vsel %vm278_vm14, %v384_v56, %v366_v27  ;;  %v277_v33 = vsel %vm276_vm13, %v275_v21, %v242_v2  ;;  %v3264_v56 = vld [vmem:[#allocation33_spill] sm:$0xff] }
  0xe3   : > { %v370_v6 = vpop.permute.xlu1 %369  ;;  %v313_v44 = vpop.permute.xlu0 %312 }
  0xe4   : > { %v386_v23 = vsel %vm280_vm15, %v385_v22, %v370_v6  ;;  %v322_v63 = vsel %vm266_vm7, %v321_v45, %v313_v44 }
  0xe5   : > { %v430_v4 = vrot.slane %v386_v23, 4  ;;  %325 = vst.msk [vmem:[#allocation2 + $0x8] sm:$0xf] %vm3178_vm8, %v322_v63  ;;  %vm3272_vm8 = vcmask 588804  }
  0xe7   : > { %434 = vst [vmem:[#allocation2] sm:$0xf0] %v430_v4  ;;  %v250_v12 = vpop.permute.xlu1 %249  ;;  %v246_v1 = vpop.permute.xlu0 %245 }
  0xe8   : > { %v279_v19 = vsel %vm278_vm14, %v277_v33, %v246_v1 }
  0xe9   : > { %v281_v8 = vsel %vm280_vm15, %v279_v19, %v250_v12 }
  0xea   : > { %323 = vst [vmem:[#allocation2] sm:$0xf] %v281_v8  ;;  %v3244_v8 = vld [vmem:[#allocation36_spill] sm:$0xff] }
  0xeb   : > { %v545_v53 = vpop.permute.xlu1 %544  ;;  %v542_v3 = vpop.permute.xlu0 %541 }
  0xec   : > { %v587_v17 = vsel %vm252_vm0, %v3240_v16, %v542_v3  ;;  %v652_v54 = vld [vmem:[#allocation2 + $0x8] sm:$0xff]  ;;  %v3245_v3 = vmov 0.0|0.0   ;;  %v3246_v16 = vld [vmem:[#allocation22_spill] sm:$0xff] }
  0xed   : > { %v588_v11 = vsel %vm254_vm1, %v587_v17, %v545_v53  ;;  %v688_v29 = vsel %vm268_vm9, %v652_v54, 0  ;;  %v3247_v17 = vld [vmem:[#allocation23_spill] sm:$0xff] }
  0xee   : > { %v2773_v2 = vand.u32 4294901760, %v688_v29  ;;  %v3263_v54 = vld [vmem:[#allocation51_spill] sm:$0xff] }
  0xef   : > { %v548_v41 = vpop.permute.xlu1 %547  ;;  %v438_v46 = vpop.permute.xlu0 %437 }
  0xf0   : > { %v589_v0 = vsel %vm256_vm2, %v588_v11, %v548_v41  ;;  %v2779_v7 = vsub.f32 %v688_v29, %v2773_v2  ;;  %v483_v45 = vsel %vm252_vm0, %v3242_v5, %v438_v46  ;;  %v3248_v41 = vld [vmem:[#allocation38_spill] sm:$0xff]  ;;  %v3249_v46 = vld [vmem:[#allocation37_spill] sm:$0xff]  ;;  %v3250_v5 = vld [vmem:[#allocation40_spill] sm:$0xff] }
  0xf1   : > { %v651_v59 = vld [vmem:[#allocation2] sm:$0xff] }
  0xf2   : > { %v784_v50 = vand.u32 4294901760, %v2779_v7  ;;  %v2782_v15 = vand.u32 4294901760, %v651_v59 }
  0xf3   : > { %v551_v22 = vpop.permute.xlu1 %550  ;;  %v441_v6 = vpop.permute.xlu0 %440 }
  0xf4   : > { %v2789_v44 = vsel %vm258_vm3, %v589_v0, %v551_v22  ;;  %v484_v38 = vsel %vm254_vm1, %v483_v45, %v441_v6  ;;  %1242 = vmatprep.mubr.f32.mxu0 %v784_v50  ;;  %v785_v23 = vsub.f32 %v2779_v7, %v784_v50  ;;  %v2794_v63 = vsub.f32 %v651_v59, %v2782_v15  ;;  %v3251_v45 = vld [vmem:[#allocation39_spill] sm:$0xff]  ;;  %v3261_v22 = vld [vmem:[#allocation49_spill] sm:$0xff] }
  0xf6   : > { %3243 = vst [vmem:[#allocation12_spill] sm:$0xff] %v2794_v63  ;;  %v786_v55 = vand.u32 4294901760, %v785_v23  ;;  %v790_v4 = vand.u32 4294901760, %v2794_v63  ;;  %v3252_v23 = vld [vmem:[#allocation42_spill] sm:$0xff] }
  0xf7   : > { %v2799_v33 = vpop.permute.xlu1 %553  ;;  %v444_v12 = vpop.permute.xlu0 %443 }
  0xf8   : > { %v2802_v1 = vsel %vm256_vm2, %v484_v38, %v444_v12  ;;  %787 = vmatprep.mubr.f32.mxu1 %v786_v55  ;;  %1246 = vmatmul.mubr.f32.vlgmr.msra.gmra.mrb[0].mxu0 %v790_v4  ;;  %v791_v19 = vsub.f32 %v2794_v63, %v790_v4  ;;  %v3253_v55 = vld [vmem:[#allocation41_spill] sm:$0xff] }
  0xf9   : > { %1757 = vmatpush1.bf16.msra.mxu0 %v3244_v8  ;;  %v3254_v8 = vld [vmem:[#allocation44_spill] sm:$0xff] }
  0xfa   : > { %v792_v53 = vand.u32 4294901760, %v791_v19  ;;  %1758 = vmatprep.subr.bf16.mxu0 %v3245_v3 }
  0xfb   : > { %v2809_v11 = vpop.permute.xlu1 %556  ;;  %v2811_v29 = vpop.permute.xlu0 %446 }
  0xfc   : > { %793 = vmatmul.mubr.f32.vlgmr.msra.gmra.mrb[0].mxu1 %v792_v53  ;;  %v3255_v53 = vld [vmem:[#allocation43_spill] sm:$0xff] }
  0xfd   : > { %1649 = vmatpush1.bf16.msra.mxu1 %v3248_v41  ;;  %1760 = vmatpush1.bf16.msra.mxu0 %v3249_v46 }
  0xfe   : > { %1650 = vmatprep.subr.bf16.mxu1 %v3245_v3  ;;  %1761 = vmatprep.subr.bf16.mxu0 %v3245_v3 }
  0xff   : > { %v2819_v59 = vpop.permute.xlu1 %449  ;;  %v2821_v50 = vpop.permute.xlu0 %603 }
 0x101   : > { %1652 = vmatpush1.bf16.msra.mxu1 %v3250_v5  ;;  %1763 = vmatpush1.bf16.msra.mxu0 %v3251_v45  ;;  %v3256_v5 = vld [vmem:[#allocation46_spill] sm:$0xff]  ;;  %v3257_v45 = vld [vmem:[#allocation45_spill] sm:$0xff] }
 0x102   : > { %1653 = vmatprep.subr.bf16.mxu1 %v3245_v3  ;;  %1764 = vmatprep.subr.bf16.mxu0 %v3245_v3 }
 0x103   : > { %v2829_v6 = vpop.permute.xlu1 %608  ;;  %v2831_v38 = vpop.permute.xlu0 %559 }
 0x105   : > { %1655 = vmatpush1.bf16.msra.mxu1 %v3252_v23  ;;  %1766 = vmatpush1.bf16.msra.mxu0 %v3253_v55 }
 0x106   : > { %1656 = vmatprep.subr.bf16.mxu1 %v3245_v3  ;;  %1767 = vmatprep.subr.bf16.mxu0 %v3245_v3 }
 0x107   : > { %v2839_v12 = vpop.permute.xlu1 %499  ;;  %v2841_v19 = vpop.permute.xlu0 %452 }
 0x109   : > { %1658 = vmatpush1.bf16.msra.mxu1 %v3254_v8  ;;  %1769 = vmatpush1.bf16.msra.mxu0 %v3255_v53  ;;  %v3258_v8 = vld [vmem:[#allocation48_spill] sm:$0xff]  ;;  %v3259_v53 = vld [vmem:[#allocation47_spill] sm:$0xff] }
 0x10a   : > { %1659 = vmatprep.subr.bf16.mxu1 %v3245_v3  ;;  %1770 = vmatprep.subr.bf16.mxu0 %v3245_v3 }
 0x10b   : > { %v613_v41 = vpop.permute.xlu1 %612  ;;  %v2847_v46 = vpop.permute.xlu0 %562 }
 0x10d   : > { %1661 = vmatpush1.bf16.msra.mxu1 %v3256_v5  ;;  %1772 = vmatpush1.bf16.msra.mxu0 %v3257_v45  ;;  %v3260_v45 = vld [vmem:[#allocation50_spill] sm:$0xff] }
 0x10e   : > { %1662 = vmatprep.subr.bf16.mxu1 %v3245_v3  ;;  %1773 = vmatprep.subr.bf16.mxu0 %v3245_v3 }
 0x10f   : > { %v2853_v23 = vpop.permute.xlu1 %504  ;;  %v2855_v55 = vpop.permute.xlu0 %455 }
 0x111   : > { %1664 = vmatpush1.bf16.msra.mxu1 %v3258_v8  ;;  %1775 = vmatpush1.bf16.msra.mxu0 %v3259_v53  ;;  %v3262_v53 = vld [vmem:[#allocation52_spill] sm:$0xff] }
 0x112   : > { %1665 = vmatprep.subr.bf16.mxu1 %v3245_v3  ;;  %1776 = vmatprep.subr.bf16.mxu0 %v3245_v3 }
 0x113   : > { %v617_v4 = vpop.permute.xlu1 %616  ;;  %v2861_v5 = vpop.permute.xlu0 %565 }
 0x115   : > { %1667 = vmatpush1.bf16.msra.mxu1 %v3260_v45  ;;  %1778 = vmatpush1.bf16.msra.mxu0 %v3261_v22  ;;  %v3265_v22 = vld [vmem:[#allocation32_spill] sm:$0xff] }
 0x116   : > { %1668 = vmatprep.subr.bf16.mxu1 %v3245_v3  ;;  %1779 = vmatprep.subr.bf16.mxu0 %v3245_v3  ;;  %v2877_v27 = vsub.f32 %v3265_v22, %v3264_v56 }
 0x117   : > { %v2867_v0 = vpop.permute.xlu1 %508  ;;  %v2869_v8 = vpop.permute.xlu0 %458 }
 0x118   : > { %3266 = vst [vmem:[#allocation13_spill] sm:$0xff] %v2877_v27  ;;  %v984_v58 = vand.u32 4294901760, %v2877_v27 }
 0x119   : > { %1670 = vmatpush1.bf16.msra.mxu1 %v3262_v53  ;;  %1781 = vmatpush1.bf16.msra.mxu0 %v3263_v54 }
 0x11a   : > { %1671 = vmatprep.subr.bf16.mxu1 %v3245_v3  ;;  %1782 = vmatprep.subr.bf16.mxu0 %v3245_v3 }
 0x11b   : > { %v621_v21 = vpop.permute.xlu1 %620  ;;  %v569_v45 = vpop.permute.xlu0 %568 }
 0x11d   : > { %1673 = vmatpush1.bf16.msra.mxu1 %v3267_v32  ;;  %1784 = vmatpush1.bf16.msra.mxu0 %v3268_v14  ;;  %v985_v14 = vsub.f32 %v2877_v27, %v984_v58 }
 0x11e   : > { %1674 = vmatprep.subr.bf16.mxu1 %v3245_v3  ;;  %1785 = vmatprep.subr.bf16.mxu0 %v3245_v3 }
 0x11f   : > { %v513_v53 = vpop.permute.xlu1 %512  ;;  %v2883_v54 = vpop.permute.xlu0 %461  ;;  %v986_v63 = vand.u32 4294901760, %v985_v14 }
 0x121   : > { %1676 = vmatpush1.bf16.msra.mxu1 %v2674_v18  ;;  %1787 = vmatpush1.bf16.msra.mxu0 %v3269_v62 }
 0x122   : > { %1677 = vmatprep.subr.bf16.mxu1 %v3245_v3  ;;  %1788 = vmatprep.subr.bf16.mxu0 %v3245_v3 }
 0x123   : > { %v625_v32 = vpop.permute.xlu1 %624  ;;  %v572_v22 = vpop.permute.xlu0 %571 }
 0x125   : > { %1679 = vmatpush1.bf16.msra.mxu1 %v2678_v13  ;;  %1790 = vmatpush1.bf16.msra.mxu0 %v2680_v20  ;;  %v3271_v20 = vld [vmem:[#allocation35_spill] sm:$0xff] }
 0x126   : > { %1680 = vmatprep.subr.bf16.mxu1 %v3245_v3  ;;  %1382 = vmatprep.subr.mxu0 %v3270_v28  ;;  %v635_v27 = vsel %vm252_vm0, %v3271_v20, %v2821_v50 }
 0x127   : > { %v517_v18 = vpop.permute.xlu1 %516  ;;  %v465_v62 = vpop.permute.xlu0 %464  ;;  %v636_v24 = vsel %vm254_vm1, %v635_v27, %v2829_v6  ;;  %v591_v27 = vsel %vm260_vm4, %v2789_v44, %v2799_v33 }
 0x129   : > { %1682 = vmatpush1.bf16.msra.mxu1 %v2699_v10  ;;  %1386 = vmatpush1.msra.mxu0 %v984_v58  ;;  %v637_v10 = vsel %vm256_vm2, %v636_v24, %v613_v41  ;;  %v592_v24 = vsel %vm262_vm5, %v591_v27, %v2809_v11 }
 0x12a   : > { %1791 = vmatprep.subr.bf16.mxu0 %v3245_v3  ;;  %981 = vmatprep.subr.mxu1 %v3270_v28  ;;  %v638_v43 = vsel %vm258_vm3, %v637_v10, %v617_v4 }
 0x12b   : > { %v629_v56 = vpop.permute.xlu1 %628  ;;  %v575_v13 = vpop.permute.xlu0 %574  ;;  %v639_v28 = vsel %vm260_vm4, %v638_v43, %v621_v21 }
 0x12c   : > { %v640_v60 = vsel %vm262_vm5, %v639_v28, %v625_v32  ;;  %v593_v28 = vsel %vm264_vm6, %v592_v24, %v2831_v38 }
 0x12d   : > { %987 = vmatpush1.msra.mxu1 %v986_v63  ;;  %v641_v61 = vsel %vm264_vm6, %v640_v60, %v629_v56  ;;  %v3273_v60 = vld [vmem:[#allocation34_spill] sm:$0xff] }
 0x12e   : > { %1683 = vmatprep.subr.bf16.mxu1 %v3245_v3  ;;  %v531_v56 = vsel %vm252_vm0, %v3273_v60, %v2839_v12 }
 0x12f   : > { %v521_v58 = vpop.permute.xlu1 %520  ;;  %v468_v14 = vpop.permute.xlu0 %467  ;;  %v532_v44 = vsel %vm254_vm1, %v531_v56, %v2853_v23  ;;  %vm3274_vm1 = vcmask 584704  }
 0x130   : > { %v533_v11 = vsel %vm256_vm2, %v532_v44, %v2867_v0 }
 0x133   : > { %v633_v36 = vpop.permute.xlu1 %632  ;;  %v578_v50 = vpop.permute.xlu0 %577 }
 0x134   : > { %v642_v63 = vsel %vm266_vm7, %v641_v61, %v633_v36  ;;  %v594_v36 = vsel %vm266_vm7, %v593_v28, %v2847_v46  ;;  %v486_v61 = vsel %vm258_vm3, %v2802_v1, %v2811_v29  ;;  %v534_v1 = vsel %vm258_vm3, %v533_v11, %v513_v53 }
 0x135   : > { %v646_v20 = vrot.slane %v642_v63, 4  ;;  %v595_v21 = vsel %vm268_vm9, %v594_v36, %v2861_v5  ;;  %v487_v33 = vsel %vm260_vm4, %v486_v61, %v2819_v59  ;;  %v535_v23 = vsel %vm260_vm4, %v534_v1, %v517_v18  ;;  %v3279_v1 = vld [vmem:[#allocation10_spill] sm:$0xff] }
 0x136   : > { %v596_v38 = vsel %vm270_vm10, %v595_v21, %v569_v45  ;;  %v488_v41 = vsel %vm262_vm5, %v487_v33, %v2841_v19  ;;  %v536_v5 = vsel %vm262_vm5, %v535_v23, %v521_v58  ;;  %v3302_v23 = vld [vmem:[#allocation31_spill] sm:$0xff] }
 0x137   : > { %650 = vst.msk [vmem:[#allocation2 + $0x18] sm:$0xf0] %vm3272_vm8, %v646_v20  ;;  %v525_v6 = vpop.permute.xlu1 %524  ;;  %v471_v43 = vpop.permute.xlu0 %470  ;;  %v597_v29 = vsel %vm272_vm11, %v596_v38, %v572_v22  ;;  %v489_v46 = vsel %vm264_vm6, %v488_v41, %v2855_v55  ;;  %v3275_v38 = vld [vmem:[#allocation7_spill] sm:$0xff]  ;;  %v3278_v41 = vpack.c.bf16 %v2176_v40, %v2174_v39  ;;  %v3282_v39 = vpack.c.bf16 %v3237_v34, %v3236_v47  ;;  %v3283_v40 = vld [vmem:[#allocation14_spill] sm:$0xff] }
 0x138   : > { %v598_v59 = vsel %vm274_vm12, %v597_v29, %v575_v13  ;;  %v490_v0 = vsel %vm266_vm7, %v489_v46, %v2869_v8  ;;  %v537_v53 = vsel %vm264_vm6, %v536_v5, %v525_v6  ;;  %v3286_v47 = vpack.c.bf16 %v2277_v26, %v2275_v25  ;;  %v3287_v34 = vld [vmem:[#allocation18_spill] sm:$0xff]  ;;  %v3291_v26 = vld [vmem:[#allocation21_spill] sm:$0xff]  ;;  %v3298_v29 = vld [vmem:[#allocation27_spill] sm:$0xff] }
 0x139   : > { %v599_v45 = vsel %vm276_vm13, %v598_v59, %v578_v50  ;;  %v491_v19 = vsel %vm268_vm9, %v490_v0, %v2883_v54  ;;  %v3290_v25 = vpack.c.bf16 %v2317_v52, %v2315_v51  ;;  %v3296_v52 = vld [vmem:[#allocation26_spill] sm:$0xff]  ;;  %v3301_v46 = vmov 0.0   ;;  %v3305_v0 = vld [vmem:[#allocation33_spill] sm:$0xff] }
 0x13a   : > { %v492_v18 = vsel %vm270_vm10, %v491_v19, %v465_v62  ;;  %v3306_v5 = vld [vmem:[#allocation13_spill] sm:$0xff] }
 0x13b   : > { %v474_v4 = vpop.permute.xlu1 %473  ;;  %v581_v12 = vpop.permute.xlu0 %580  ;;  %v493_v8 = vsel %vm272_vm11, %v492_v18, %v468_v14 }
 0x13c   : > { %v600_v32 = vsel %vm278_vm14, %v599_v45, %v581_v12  ;;  %v494_v50 = vsel %vm274_vm12, %v493_v8, %v471_v43  ;;  %v3277_v12 = vld [vmem:[#allocation8_spill] sm:$0xff] }
 0x13d   : > { %v495_v54 = vsel %vm276_vm13, %v494_v50, %v474_v4  ;;  %v3276_v4 = vpack.c.bf16 %v2153_v31, %v2151_v30  ;;  %v3280_v30 = vpack.c.bf16 %v2200_v49, %v2198_v48  ;;  %v3281_v31 = vld [vmem:[#allocation11_spill] sm:$0xff]  ;;  %v3284_v48 = vpack.c.bf16 %v3239_v37, %v3238_v57  ;;  %v3285_v49 = vld [vmem:[#allocation17_spill] sm:$0xff]  ;;  %v3289_v37 = vld [vmem:[#allocation20_spill] sm:$0xff] }
 0x13e   : > { %v3288_v57 = vpack.c.bf16 %v2291_v35, %v3241_v9  ;;  %v3292_v35 = vpack.c.bf16 %v3247_v17, %v3246_v16  ;;  %v3297_v9 = vld [vmem:[#allocation28_spill] sm:$0xff]  ;;  %v3300_v17 = vld [vmem:[#allocation29_spill] sm:$0xff] }
 0x13f   : > { %v585_v22 = vpop.permute.xlu1 %584  ;;  %v529_v55 = vpop.permute.xlu0 %528  ;;  %v3299_v16 = vpack.c.bf16 %v3297_v9, %v3298_v29  ;;  %v3307_v45 = vld [vmem:[#allocation12_spill] sm:$0xff] }
 0x140   : > { %v601_v13 = vsel %vm280_vm15, %v600_v32, %v585_v22  ;;  %v538_v10 = vsel %vm266_vm7, %v537_v53, %v529_v55 }
 0x141   : > { %v645_v58 = vrot.slane %v601_v13, 4  ;;  %540 = vst.msk [vmem:[#allocation2 + $0x18] sm:$0xf] %vm3274_vm1, %v538_v10 }
 0x143   : > { %649 = vst [vmem:[#allocation2 + $0x10] sm:$0xf0] %v645_v58  ;;  %v477_v63 = vpop.permute.xlu0 %476  ;;  %v481_v20 = vpop.permute.xlu1 %480 }
 0x144   : > { %v496_v27 = vsel %vm278_vm14, %v495_v54, %v477_v63 }
 0x145   : > { %v497_v62 = vsel %vm280_vm15, %v496_v27, %v481_v20 }
 0x146   : > { %539 = vst [vmem:[#allocation2 + $0x10] sm:$0xf] %v497_v62 }
 0x148   : > { %v654_v24 = vld [vmem:[#allocation2 + $0x18] sm:$0xff] }
 0x149   : > { %v691_v6 = vsel %vm268_vm9, %v654_v24, 0 }
 0x14a   : > { %v2961_v28 = vand.u32 4294901760, %v691_v6 }
 0x14c   : > { %v2964_v14 = vsub.f32 %v691_v6, %v2961_v28 }
 0x14d   : > { %v653_v60 = vld [vmem:[#allocation2 + $0x10] sm:$0xff] }
 0x14e   : > { %v799_v43 = vand.u32 4294901760, %v2964_v14  ;;  %v2967_v56 = vand.u32 4294901760, %v653_v60 }
 0x150   : > { %1253 = vmatprep.mubr.f32.mxu0 %v799_v43  ;;  %v800_v36 = vsub.f32 %v2964_v14, %v799_v43  ;;  %v2971_v61 = vsub.f32 %v653_v60, %v2967_v56 }
 0x152   : > { %v801_v44 = vand.u32 4294901760, %v800_v36  ;;  %v805_v21 = vand.u32 4294901760, %v2971_v61 }
 0x154   : > { %802 = vmatprep.mubr.f32.mxu1 %v801_v44  ;;  %1257 = vmatmul.mubr.f32.gmra.mrb[2].mxu0 %v805_v21  ;;  %v806_v33 = vsub.f32 %v2971_v61, %v805_v21 }
 0x155   : > { %1402 = vmatprep.mubr.f32.mxu0 %v2773_v2 }
 0x156   : > { %v807_v11 = vand.u32 4294901760, %v806_v33 }
 0x158   : > { %808 = vmatmul.mubr.f32.gmra.mrb[2].mxu1 %v807_v11  ;;  %1404 = vmatmul.mubr.f32.vlgmr.msra.gmra.mrb[0].mxu0 %v2782_v15 }
 0x159   : > { %1793 = vmatpush1.bf16.msra.mxu0 %v3275_v38  ;;  %1003 = vmatprep.mubr.f32.mxu1 %v2773_v2 }
 0x15a   : > { %1409 = vmatprep.mubr.f32.mxu0 %v2961_v28  ;;  %1794 = vmatprep.subr.bf16.mxu0 %v3245_v3 }
 0x15c   : > { %1005 = vmatmul.mubr.f32.vlgmr.msra.gmra.mrb[0].mxu1 %v2782_v15  ;;  %1411 = vmatmul.mubr.f32.gmra.mrb[2].mxu0 %v2967_v56 }
 0x15d   : > { %1685 = vmatpush1.bf16.msra.mxu1 %v3276_v4  ;;  %1796 = vmatpush1.bf16.msra.mxu0 %v3277_v12 }
 0x15e   : > { %1010 = vmatprep.mubr.f32.mxu1 %v2961_v28  ;;  %1506 = vmatprep.mubr.f32.mxu0 %v2773_v2  ;;  %v3293_v2 = vld [vmem:[#allocation24_spill] sm:$0xff] }
 0x15f   : > { %1686 = vmatprep.subr.bf16.mxu1 %v3245_v3  ;;  %1797 = vmatprep.subr.bf16.mxu0 %v3245_v3 }
 0x160   : > { %1012 = vmatmul.mubr.f32.gmra.mrb[2].mxu1 %v2967_v56 }
 0x161   : > { %1688 = vmatpush1.bf16.msra.mxu1 %v3278_v41  ;;  %1799 = vmatpush1.bf16.msra.mxu0 %v3279_v1 }
 0x162   : > { %1133 = vmatprep.mubr.f32.mxu1 %v2779_v7  ;;  %1689 = vmatprep.subr.bf16.mxu1 %v3245_v3  ;;  %v3294_v7 = vld [vmem:[#allocation25_spill] sm:$0xff] }
 0x163   : > { %1800 = vmatprep.subr.bf16.mxu0 %v3245_v3  ;;  %v3295_v51 = vpack.c.bf16 %v2359_v42, %v3294_v7  ;;  %v3303_v42 = vld [vmem:[#allocation30_spill] sm:$0xff] }
 0x164   : > { %v3304_v59 = vpack.c.bf16 %v3302_v23, %v3303_v42 }
 0x165   : > { %1691 = vmatpush1.bf16.msra.mxu1 %v3280_v30  ;;  %1802 = vmatpush1.bf16.msra.mxu0 %v3281_v31 }
 0x166   : > { %1692 = vmatprep.subr.bf16.mxu1 %v3245_v3  ;;  %1803 = vmatprep.subr.bf16.mxu0 %v3245_v3 }
 0x169   : > { %1694 = vmatpush1.bf16.msra.mxu1 %v3282_v39  ;;  %1805 = vmatpush1.bf16.msra.mxu0 %v3283_v40 }
 0x16a   : > { %1695 = vmatprep.subr.bf16.mxu1 %v3245_v3  ;;  %1806 = vmatprep.subr.bf16.mxu0 %v3245_v3 }
 0x16d   : > { %1697 = vmatpush1.bf16.msra.mxu1 %v3284_v48  ;;  %1808 = vmatpush1.bf16.msra.mxu0 %v3285_v49 }
 0x16e   : > { %1698 = vmatprep.subr.bf16.mxu1 %v3245_v3  ;;  %1809 = vmatprep.subr.bf16.mxu0 %v3245_v3 }
 0x171   : > { %1700 = vmatpush1.bf16.msra.mxu1 %v3286_v47  ;;  %1811 = vmatpush1.bf16.msra.mxu0 %v3287_v34 }
 0x172   : > { %1701 = vmatprep.subr.bf16.mxu1 %v3245_v3  ;;  %1812 = vmatprep.subr.bf16.mxu0 %v3245_v3 }
 0x175   : > { %1703 = vmatpush1.bf16.msra.mxu1 %v3288_v57  ;;  %1814 = vmatpush1.bf16.msra.mxu0 %v3289_v37 }
 0x176   : > { %1704 = vmatprep.subr.bf16.mxu1 %v3245_v3  ;;  %1815 = vmatprep.subr.bf16.mxu0 %v3245_v3 }
 0x179   : > { %1706 = vmatpush1.bf16.msra.mxu1 %v3290_v25  ;;  %1817 = vmatpush1.bf16.msra.mxu0 %v3291_v26 }
 0x17a   : > { %1707 = vmatprep.subr.bf16.mxu1 %v3245_v3  ;;  %1818 = vmatprep.subr.bf16.mxu0 %v3245_v3 }
 0x17d   : > { %1709 = vmatpush1.bf16.msra.mxu1 %v3292_v35  ;;  %1820 = vmatpush1.bf16.msra.mxu0 %v3293_v2 }
 0x17e   : > { %1710 = vmatprep.subr.bf16.mxu1 %v3245_v3  ;;  %1821 = vmatprep.subr.bf16.mxu0 %v3245_v3 }
 0x181   : > { %1712 = vmatpush1.bf16.msra.mxu1 %v3295_v51  ;;  %1823 = vmatpush1.bf16.msra.mxu0 %v3296_v52 }
 0x182   : > { %1713 = vmatprep.subr.bf16.mxu1 %v3245_v3  ;;  %1824 = vmatprep.subr.bf16.mxu0 %v3245_v3 }
 0x185   : > { %1715 = vmatpush1.bf16.msra.mxu1 %v3299_v16  ;;  %1826 = vmatpush1.bf16.msra.mxu0 %v3300_v17 }
 0x186   : > { %1716 = vmatprep.subr.bf16.mxu1 %v3245_v3  ;;  %1488 = vmatprep.subr.mxu0 %v3301_v46 }
 0x189   : > { %1718 = vmatpush1.bf16.msra.mxu1 %v3304_v59  ;;  %1490 = vmatpush1.msra.mxu0 %v3305_v0 }
 0x18a   : > { %1508 = vmatmul.mubr.f32.vlgmr.msra.gmra.mrb[0].mxu0 %v2782_v15  ;;  %1113 = vmatprep.subr.mxu1 %v3301_v46  ;;  %v1604_v15 = vld [vmem:[%s3123_s2] ss:$0 sm:$0xff] }
 0x18b   : > { %1513 = vmatprep.mubr.f32.mxu0 %v2961_v28 }
 0x18d   : > { %1116 = vmatpush1.msra.mxu1 %v3306_v5 }
 0x18e   : > { %1136 = vmatmul.mubr.f32.vlgmr.msra.gmra.mrb[0].mxu1 %v3307_v45  ;;  %1515 = vmatmul.mubr.f32.gmra.mrb[2].mxu0 %v2967_v56 }
 0x18f   : > { %1142 = vmatprep.mubr.f32.mxu1 %v2964_v14 }
 0x192   : > { %1145 = vmatmul.mubr.f32.gmra.mrb[2].mxu1 %v2971_v61 }
 0x25d   : > { %v1509_v3 = vpop.f32.mrb[0].mxu0 }
 0x25e   : > { %v1511_v19 = vpop.f32.mrb[1].mxu0 }
 0x261   : > { %v1137_v53 = vpop.f32.mrb[0].mxu1  ;;  %v1516_v32 = vpop.f32.mrb[2].mxu0 }
 0x262   : > { %v1827_v22 = vadd.f32 %v1604_v15, %v1137_v53  ;;  %v1139_v55 = vpop.f32.mrb[1].mxu1  ;;  %v1518_v18 = vpop.f32.mrb[3].mxu0 }
 0x264   : > { %v1828_v13 = vadd.f32 %v1827_v22, %v1509_v3 }
 0x265   : > { %v1146_v10 = vpop.f32.mrb[2].mxu1 }
 0x266   : > { %1520 = vst.msk [vmem:[%s163_s9] sm:$0xff] %vm252_vm0, %v1828_v13  ;;  %v1829_v8 = vadd.f32 %v1604_v15, %v1146_v10  ;;  %v1148_v58 = vpop.f32.mrb[3].mxu1 }
 0x268   : > { %v1830_v50 = vadd.f32 %v1829_v8, %v1516_v32 }
 0x26a   : > { %1521 = vst.msk [vmem:[%s163_s9 + $0x8] sm:$0xff] %vm252_vm0, %v1830_v50 }
 0x26b   : > { %1918 = shalt.err (!%p1915_p3)
}
 0x26c   : > { %s1919_s17 = scalar_lea.hbm %s3074_s27, 256  ;;  %s1923_s4 = scalar_lea.hbm %s3124_s3, 512 }
 0x26d   : > { %p1920_p4 = scmp.ne.s32.totalorder %s3074_s27, %s1919_s17  ;;  %p1924_p9 = scmp.lt.u32.totalorder %s3074_s27, %s3124_s3 }
 0x26e   : > { %p1925_p10 = scmp.lt.u32.totalorder %s1923_s4, %s1919_s17  ;;  %p1927_p12 = scmp.lt.u32.totalorder %s1919_s17, %s3074_s27 }
 0x26f   : > { %p1921_p7 = pnand %p1920_p4, %p2046_p5 }
 0x270   : > { %p1926_p11 = por %p1925_p10, %p1924_p9 }
 0x271   : > { %p1922_p8 = pneg %p1921_p7 }
 0x272   : > { %p1928_p13 = por %p1927_p12, %p1926_p11 }
 0x274   : > { %p1929_p0 = pnand %p1928_p13, %p1922_p8 }
 0x276   : > { %1932 = shalt.err (!%p1929_p0)
}
 0x277   : > { %s1987_s7 = smov 128  }
 0x278   : > { %1848 = dma.vmem_to_hbm [thread:$0]  (%p2046_p5), %s3076_s20, 256, %s3074_s27, %s3079_s16, %s1987_s7, %s1987_s7, %s1969_s29  }
 0x279 PF: > { %p1854_p1 = scmp.ge.s32.totalorder %s1967_s15, 2  ;;  %s1551_s8 = sand.u32 1, %s1955_s12  }
 0x27a   : > { %s1552_s9 = scalar_lea.sflag [#allocation4], %s1551_s8 }
 0x27b   : > { %p1851_p2 = pnand %p1854_p1, %p2050_p6 }
 0x27d   : > { %1950 = dma.done.wait (!%p1851_p2), %s1552_s9, 256  }
 0x27e   : > { %1952 = vsyncadd (!%p1851_p2), %s1552_s9, 4294967040  ;;  %p13_p3 = scmp.ge.s32.totalorder %s2033_s18, 4   ;;  %s3308_s12 = smov %s1959_s13 }
 0x27f   : > { %s3309_s13 = smov %s1963_s14  ;;  %s3310_s14 = smov %s2044_s21 }
 0x280   : > { %s3311_s15 = smov %s2033_s18  ;;  %15 = sbr.rel (!%p13_p3) target bundleno = 3 (0x3), region = 67 }
 0x287   :  { %1557 = vsyncpa [#allocation4], 1 }
 0x288   :  { %1559 = vsyncpa [#allocation4 + $0x1], 1 }

</bundles_post_ra>
